<compile_context>
chip_gen: v5e
topology: v5e:2x2
jax: 0.10.0
libtpu: 0.0.40
codegen_flags: <defaults>
</compile_context>

<pallas_src>
import jax
import jax.numpy as jnp
from jax.experimental import pallas as pl
from jax.experimental.pallas import tpu as pltpu


def _round_up(a, m):
    return -(-a // m) * m


# ---------------- Pallas kernels ----------------

def _pdist_kernel(xt_ref, o_ref):
    # xt_ref: (bt, N, Cp) f32 ; o_ref: (bt, N, N) f32
    xt = xt_ref[...]
    g = jnp.einsum("bnc,bmc->bnm", xt, xt,
                   preferred_element_type=jnp.float32)          # xt @ xt^T per slice
    sq = jnp.sum(xt * xt, axis=-1, keepdims=True)               # (bt, N, 1)
    o_ref[...] = 2.0 * g - sq - jnp.swapaxes(sq, -1, -2)        # -||xi - xj||^2


def pairwise_neg_sqdist(xT, *, bt=8):
    """xT: (BF, N, C) f32 -> (BF, N, N) negative squared pairwise distances (kept f32)."""
    BF, N, C = xT.shape
    xT = xT.astype(jnp.float32)
    # Pad C up to a multiple of 8 (sane contraction width; zeros don't change the result).
    Cp = _round_up(max(C, 8), 8)
    if Cp != C:
        xT = jnp.pad(xT, ((0, 0), (0, 0), (0, Cp - C)))
    # Batch several (batch*frame) slices per grid step to amortize per-step overhead.
    bt = min(bt, BF)
    BF_pad = _round_up(BF, bt)
    if BF_pad != BF:
        xT = jnp.pad(xT, ((0, BF_pad - BF), (0, 0), (0, 0)))
    out = pl.pallas_call(
        _pdist_kernel,
        out_shape=jax.ShapeDtypeStruct((BF_pad, N, N), jnp.float32),
        grid_spec=pltpu.PrefetchScalarGridSpec(
            num_scalar_prefetch=0,
            grid=(BF_pad // bt,),
            in_specs=[pl.BlockSpec((bt, N, Cp), lambda i: (i, 0, 0))],
            out_specs=pl.BlockSpec((bt, N, N), lambda i: (i, 0, 0)),
        ),
        compiler_params=pltpu.CompilerParams(dimension_semantics=("parallel",)),
    )(xT)
    return out[:BF]


def _fused_conv_kernel(x_ref, w_ref, shift_ref, o_ref):
    # x_ref: (tp, W, Kp) bf16 ; w_ref: (Kp, Np) bf16 (BN scale pre-folded)
    # shift_ref: (1, Np) f32  ; o_ref: (tp, Np) f32
    Wdim = x_ref.shape[1]
    wgt = w_ref[...]
    shift = shift_ref[...]

    def bn_act(xw):
        y = jnp.dot(xw, wgt, preferred_element_type=jnp.float32)
        y = y + shift                      # folded eval-mode BatchNorm (scale already in wgt)
        return jnp.maximum(y, 0.2 * y)     # LeakyReLU(0.2)

    # W reduction folded into the body (W is a small static constant -> fully unrolled).
    o_ref[...] = bn_act(x_ref[:, 0, :])
    for wi in range(1, Wdim):
        o_ref[...] = jnp.maximum(o_ref[...], bn_act(x_ref[:, wi, :]))


def fused_conv_bn_lrelu_max(x_pwk, weight_kn, scale_n, shift_n, *, tp_max=512):
    """out[p, n] = max_w leaky_relu(bn(x[p, w, :] @ weight[:, n])).

    x_pwk: (P, W, K) in its natural (no-transpose) layout.
    """
    P, W, K = x_pwk.shape
    N = weight_kn.shape[1]

    # Fold BN scale into the weight columns (wrapper-side).
    w_scaled = weight_kn.astype(jnp.float32) * scale_n.astype(jnp.float32)[None, :]
    shift = shift_n.astype(jnp.float32)

    # Pad K to a multiple of 128 (aligned MXU feeds / vlds).
    Kp = _round_up(K, 128)
    if Kp != K:
        x_pwk = jnp.pad(x_pwk, ((0, 0), (0, 0), (0, Kp - K)))
        w_scaled = jnp.pad(w_scaled, ((0, Kp - K), (0, 0)))
    # Pad N to a multiple of 128 (lane-dense, unmasked output stores).
    Np = _round_up(N, 128)
    if Np != N:
        w_scaled = jnp.pad(w_scaled, ((0, 0), (0, Np - N)))
        shift = jnp.pad(shift, ((0, Np - N),))

    # Large P tile; single, purely-parallel grid axis.
    tp = min(tp_max, _round_up(P, 8))
    P_pad = _round_up(P, tp)
    if P_pad != P:
        x_pwk = jnp.pad(x_pwk, ((0, P_pad - P), (0, 0), (0, 0)))

    out = pl.pallas_call(
        _fused_conv_kernel,
        out_shape=jax.ShapeDtypeStruct((P_pad, Np), jnp.float32),
        grid_spec=pltpu.PrefetchScalarGridSpec(
            num_scalar_prefetch=0,
            grid=(P_pad // tp,),
            in_specs=[
                pl.BlockSpec((tp, W, Kp), lambda i: (i, 0, 0)),
                pl.BlockSpec((Kp, Np), lambda i: (0, 0)),
                pl.BlockSpec((1, Np), lambda i: (0, 0)),
            ],
            out_specs=pl.BlockSpec((tp, Np), lambda i: (i, 0)),
        ),
        compiler_params=pltpu.CompilerParams(
            dimension_semantics=("parallel",),
            vmem_limit_bytes=48 * 1024 * 1024,
        ),
    )(x_pwk.astype(jnp.bfloat16),        # bf16 MXU inputs; accumulate/epilogue in f32
      w_scaled.astype(jnp.bfloat16),
      shift.reshape(1, Np).astype(jnp.float32))
    return out[:P, :N]


# ---------------- JAX glue (knn / graph feature / im2col) ----------------

def graph_feature(xT, k):
    """xT: (BF, N, C) point-major -> (BF, N, k, 2C) = cat(neighbor - center, center)."""
    BF, N, C = xT.shape
    pd = pairwise_neg_sqdist(xT)                                 # (BF, N, N), f32 (keep knn in f32)
    # TODO(synk): topk + data-dependent gather have no clean in-kernel equivalent; done in JAX.
    idx = jax.lax.top_k(pd, k)[1]                                # (BF, N, k)
    flat = xT.reshape(BF * N, C)
    idx_flat = (idx + (jnp.arange(BF) * N)[:, None, None]).reshape(-1)
    nbr = flat[idx_flat].reshape(BF, N, k, C)
    ctr = jnp.broadcast_to(xT[:, :, None, :], (BF, N, k, C))
    return jnp.concatenate([nbr - ctr, ctr], axis=-1)


def conv3d_dgcnn_encoder_forward(x, params, *, k, depth):
    # x: (B, F, C=3, N) float32
    B, F, C, N = x.shape
    D_out = (F - depth) // depth + 1
    H_out = (N - 3) // 2 + 1
    W_out = k - 3 + 1

    # ---- stage 1: graph feature over points of each (batch, frame) ----
    xT = jnp.transpose(x, (0, 1, 3, 2)).reshape(B * F, N, C)
    gf1 = graph_feature(xT, k).reshape(B, F, N, k, 2 * C)

    # im2col for Conv3d(6 -> 64, kernel=(depth,3,3), stride=(depth,2,1), bias=False)
    slices = []
    for dd in range(depth):
        for hh in range(3):
            for ww in range(3):
                slices.append(
                    gf1[:,
                        dd:dd + depth * (D_out - 1) + 1:depth,
                        hh:hh + 2 * (H_out - 1) + 1:2,
                        ww:ww + W_out,
                        :])
    K1 = 2 * C * depth * 9
    patches = jnp.stack(slices, axis=-1)            # (B, D_out, H_out, W_out, 2C, depth*9)
    patches = patches.reshape(B, D_out, H_out, W_out, K1)
    # Natural (P, W, K) layout: pure leading-dim merge, no HBM transpose.
    X1 = patches.reshape(B * D_out * H_out, W_out, K1)

    w1 = params["w1"].reshape(64, K1).T             # matches torch weight.reshape(64,-1) order
    out1 = fused_conv_bn_lrelu_max(X1, w1, params["s1"], params["b1"])     # (P, 64) == x1

    # ---- stage 2: graph feature over H_out points per (batch, D_out "frame") ----
    xT2 = out1.reshape(B * D_out, H_out, 64)
    gf2 = graph_feature(xT2, k)                                            # (B*D_out, H_out, k, 128)
    X2 = gf2.reshape(B * D_out * H_out, k, 128)                            # (P, W=k, K) no transpose
    w2 = params["w2"].reshape(64, 128).T
    out2 = fused_conv_bn_lrelu_max(X2, w2, params["s2"], params["b2"])     # (P, 64) == x2

    # ---- stage 3: concat channels, Conv2d 1x1, max over points, permute ----
    xcat = jnp.concatenate([out1, out2], axis=-1)                          # (B*D_out*H_out, 128)
    X5 = xcat.reshape(B * D_out, H_out, 128)                               # (P, W=H_out, K)
    emb_dims = params["w5"].shape[0]
    w5 = params["w5"].reshape(emb_dims, 128).T
    emb = fused_conv_bn_lrelu_max(X5, w5, params["s5"], params["b5"])      # (B*D_out, emb)
    return emb.reshape(B, D_out, emb_dims)


def init_params(key, depth, emb_dims, eps=1e-5):
    k1, k2, k5 = jax.random.split(key, 3)
    w1 = 0.1 * jax.random.normal(k1, (64, 6, depth, 3, 3), jnp.float32)
    w2 = 0.1 * jax.random.normal(k2, (64, 128, 1, 1, 1), jnp.float32)
    w5 = 0.1 * jax.random.normal(k5, (emb_dims, 128, 1, 1), jnp.float32)

    # BatchNorm folded to eval-mode affine with PyTorch default init
    # (gamma=1, beta=0, running_mean=0, running_var=1): y = x / sqrt(1 + eps).
    def bn(n):
        return (jnp.ones((n,), jnp.float32) / jnp.sqrt(1.0 + eps),
                jnp.zeros((n,), jnp.float32))

    s1, b1 = bn(64)
    s2, b2 = bn(64)
    s5, b5 = bn(emb_dims)
    return dict(w1=w1, w2=w2, w5=w5, s1=s1, b1=b1, s2=s2, b2=b2, s5=s5, b5=b5)


if __name__ == "__main__":
    B, frames, C, num_points = 2, 8, 3, 16
    k, depth, emb_dims = 6, 2, 64

    key = jax.random.PRNGKey(0)
    kx, kp = jax.random.split(key)
    x = jax.random.normal(kx, (B, frames, C, num_points), dtype=jnp.float32)
    params = init_params(kp, depth=depth, emb_dims=emb_dims)

    fwd = jax.jit(lambda xx, pp: conv3d_dgcnn_encoder_forward(xx, pp, k=k, depth=depth))
    emb = fwd(x, params)
    emb = jax.block_until_ready(emb)

    D_out = (frames - depth) // depth + 1
    assert emb.shape == (B, D_out, emb_dims), emb.shape
    assert bool(jnp.all(jnp.isfinite(emb)))
    print("KERNEL_OK")
</pallas_src>

<mosaic_0001>
module attributes {stable_mosaic.version = 11 : i64} {
  func.func @_pdist_kernel(%arg0: i32, %arg1: memref<8x16x8xf32, #tpu.memory_space<vmem>>, %arg2: memref<8x16x16xf32, #tpu.memory_space<vmem>>) attributes {dimension_semantics = [#tpu.dimension_semantics<parallel>], iteration_bounds = array<i64: 2>, scalar_prefetch = 0 : i64, scratch_operands = 0 : i64, tpu.core_type = #tpu.core_type<tc>, window_params = [{transform_indices = @transform_0, window_bounds = array<i64: 8, 16, 8>}, {transform_indices = @transform_1, window_bounds = array<i64: 8, 16, 16>}]} {
    %c0 = arith.constant 0 : index
    %c0_0 = arith.constant 0 : index
    %c0_1 = arith.constant 0 : index
    %0 = vector.load %arg1[%c0, %c0_0, %c0_1] : memref<8x16x8xf32, #tpu.memory_space<vmem>>, vector<8x16x8xf32>
    "tpu.trace_start"() <{level = 10 : i32, message = "bnc,bmc->bnm"}> : () -> ()
    %cst = arith.constant dense<0.000000e+00> : vector<8x16x16xf32>
    %1 = tpu.matmul %0, %0, %cst {dimension_numbers = #tpu.dot_dimension_numbers<[2], [2], [1], [1], [0, 0, 0, 1, 1, 1], [0], [0]>} : vector<8x16x8xf32>, vector<8x16x8xf32>, vector<8x16x16xf32> -> vector<8x16x16xf32>
    "tpu.trace_stop"() : () -> ()
    %2 = arith.mulf %0, %0 : vector<8x16x8xf32>
    %cst_2 = arith.constant dense<0.000000e+00> : vector<8x16xf32>
    %3 = vector.multi_reduction <add>, %2, %cst_2 [2] : vector<8x16x8xf32> to vector<8x16xf32>
    %4 = vector.shape_cast %3 : vector<8x16xf32> to vector<8x16x1xf32>
    %cst_3 = arith.constant 2.000000e+00 : f32
    %5 = vector.broadcast %cst_3 : f32 to vector<8x16x16xf32>
    %6 = arith.mulf %5, %1 : vector<8x16x16xf32>
    %7 = vector.broadcast %4 : vector<8x16x1xf32> to vector<8x16x16xf32>
    %8 = arith.subf %6, %7 : vector<8x16x16xf32>
    %9 = tpu.transpose %4, [0, 2, 1] : vector<8x16x1xf32> -> vector<8x1x16xf32>
    %10 = vector.broadcast %9 : vector<8x1x16xf32> to vector<8x16x16xf32>
    %11 = arith.subf %8, %10 : vector<8x16x16xf32>
    %c0_4 = arith.constant 0 : index
    %c0_5 = arith.constant 0 : index
    %c0_6 = arith.constant 0 : index
    %12 = vector.load %arg2[%c0_4, %c0_5, %c0_6] : memref<8x16x16xf32, #tpu.memory_space<vmem>>, vector<8x16x16xf32>
    tpu.vector_store %arg2[%c0_4, %c0_5, %c0_6], %11 {strides = array<i32>} : memref<8x16x16xf32, #tpu.memory_space<vmem>>, vector<8x16x16xf32>,
    return
  }
  func.func @transform_0(%arg0: i32) -> (i32, i32, i32) {
    %c0_i32 = arith.constant 0 : i32
    %c0_i32_0 = arith.constant 0 : i32
    %c0_i32_1 = arith.constant 0 : i32
    return %arg0, %c0_i32, %c0_i32_0 : i32, i32, i32
  }
  func.func @transform_1(%arg0: i32) -> (i32, i32, i32) {
    %c0_i32 = arith.constant 0 : i32
    %c0_i32_0 = arith.constant 0 : i32
    %c0_i32_1 = arith.constant 0 : i32
    return %arg0, %c0_i32, %c0_i32_0 : i32, i32, i32
  }
}

module attributes {stable_mosaic.version = 11 : i64} {
  func.func @_fused_conv_kernel(%arg0: i32, %arg1: memref<56x4x128xbf16, #tpu.memory_space<vmem>>, %arg2: memref<128x128xbf16, #tpu.memory_space<vmem>>, %arg3: memref<1x128xf32, #tpu.memory_space<vmem>>, %arg4: memref<56x128xf32, #tpu.memory_space<vmem>>) attributes {dimension_semantics = [#tpu.dimension_semantics<parallel>], iteration_bounds = array<i64: 1>, scalar_prefetch = 0 : i64, scratch_operands = 0 : i64, tpu.core_type = #tpu.core_type<tc>, window_params = [{transform_indices = @transform_0, window_bounds = array<i64: 56, 4, 128>}, {pipeline_mode = #tpu.pipeline_mode<synchronous>, transform_indices = @transform_1, window_bounds = array<i64: 128, 128>}, {pipeline_mode = #tpu.pipeline_mode<synchronous>, transform_indices = @transform_2, window_bounds = array<i64: 1, 128>}, {transform_indices = @transform_3, window_bounds = array<i64: 56, 128>}]} {
    %c0 = arith.constant 0 : index
    %c0_0 = arith.constant 0 : index
    %0 = vector.load %arg2[%c0, %c0_0] : memref<128x128xbf16, #tpu.memory_space<vmem>>, vector<128x128xbf16>
    %c0_1 = arith.constant 0 : index
    %c0_2 = arith.constant 0 : index
    %1 = vector.load %arg3[%c0_1, %c0_2] : memref<1x128xf32, #tpu.memory_space<vmem>>, vector<1x128xf32>
    %c0_3 = arith.constant 0 : index
    %c0_4 = arith.constant 0 : index
    %c0_5 = arith.constant 0 : index
    %2 = vector.load %arg1[%c0_3, %c0_4, %c0_5] : memref<56x4x128xbf16, #tpu.memory_space<vmem>>, vector<56x1x128xbf16>
    %3 = vector.shape_cast %2 : vector<56x1x128xbf16> to vector<56x128xbf16>
    %cst = arith.constant dense<0.000000e+00> : vector<56x128xf32>
    %4 = tpu.matmul %3, %0, %cst {dimension_numbers = #tpu.dot_dimension_numbers<[1], [0], [0], [1], [0, 0, 1, 1], [], []>} : vector<56x128xbf16>, vector<128x128xbf16>, vector<56x128xf32> -> vector<56x128xf32>
    %5 = vector.broadcast %1 : vector<1x128xf32> to vector<56x128xf32>
    %6 = arith.addf %4, %5 : vector<56x128xf32>
    %cst_6 = arith.constant 2.000000e-01 : f32
    %7 = vector.broadcast %cst_6 : f32 to vector<56x128xf32>
    %8 = arith.mulf %7, %6 : vector<56x128xf32>
    %9 = arith.maximumf %6, %8 : vector<56x128xf32>
    %c0_7 = arith.constant 0 : index
    %c0_8 = arith.constant 0 : index
    %10 = vector.load %arg4[%c0_7, %c0_8] : memref<56x128xf32, #tpu.memory_space<vmem>>, vector<56x128xf32>
    tpu.vector_store %arg4[%c0_7, %c0_8], %9 {strides = array<i32>} : memref<56x128xf32, #tpu.memory_space<vmem>>, vector<56x128xf32>,
    %c0_9 = arith.constant 0 : index
    %c0_10 = arith.constant 0 : index
    %11 = vector.load %arg4[%c0_9, %c0_10] : memref<56x128xf32, #tpu.memory_space<vmem>>, vector<56x128xf32>
    %c0_11 = arith.constant 0 : index
    %c1 = arith.constant 1 : index
    %c0_12 = arith.constant 0 : index
    %12 = vector.load %arg1[%c0_11, %c1, %c0_12] : memref<56x4x128xbf16, #tpu.memory_space<vmem>>, vector<56x1x128xbf16>
    %13 = vector.shape_cast %12 : vector<56x1x128xbf16> to vector<56x128xbf16>
    %cst_13 = arith.constant dense<0.000000e+00> : vector<56x128xf32>
    %14 = tpu.matmul %13, %0, %cst_13 {dimension_numbers = #tpu.dot_dimension_numbers<[1], [0], [0], [1], [0, 0, 1, 1], [], []>} : vector<56x128xbf16>, vector<128x128xbf16>, vector<56x128xf32> -> vector<56x128xf32>
    %15 = vector.broadcast %1 : vector<1x128xf32> to vector<56x128xf32>
    %16 = arith.addf %14, %15 : vector<56x128xf32>
    %cst_14 = arith.constant 2.000000e-01 : f32
    %17 = vector.broadcast %cst_14 : f32 to vector<56x128xf32>
    %18 = arith.mulf %17, %16 : vector<56x128xf32>
    %19 = arith.maximumf %16, %18 : vector<56x128xf32>
    %20 = arith.maximumf %11, %19 : vector<56x128xf32>
    %c0_15 = arith.constant 0 : index
    %c0_16 = arith.constant 0 : index
    %21 = vector.load %arg4[%c0_15, %c0_16] : memref<56x128xf32, #tpu.memory_space<vmem>>, vector<56x128xf32>
    tpu.vector_store %arg4[%c0_15, %c0_16], %20 {strides = array<i32>} : memref<56x128xf32, #tpu.memory_space<vmem>>, vector<56x128xf32>,
    %c0_17 = arith.constant 0 : index
    %c0_18 = arith.constant 0 : index
    %22 = vector.load %arg4[%c0_17, %c0_18] : memref<56x128xf32, #tpu.memory_space<vmem>>, vector<56x128xf32>
    %c0_19 = arith.constant 0 : index
    %c2 = arith.constant 2 : index
    %c0_20 = arith.constant 0 : index
    %23 = vector.load %arg1[%c0_19, %c2, %c0_20] : memref<56x4x128xbf16, #tpu.memory_space<vmem>>, vector<56x1x128xbf16>
    %24 = vector.shape_cast %23 : vector<56x1x128xbf16> to vector<56x128xbf16>
    %cst_21 = arith.constant dense<0.000000e+00> : vector<56x128xf32>
    %25 = tpu.matmul %24, %0, %cst_21 {dimension_numbers = #tpu.dot_dimension_numbers<[1], [0], [0], [1], [0, 0, 1, 1], [], []>} : vector<56x128xbf16>, vector<128x128xbf16>, vector<56x128xf32> -> vector<56x128xf32>
    %26 = vector.broadcast %1 : vector<1x128xf32> to vector<56x128xf32>
    %27 = arith.addf %25, %26 : vector<56x128xf32>
    %cst_22 = arith.constant 2.000000e-01 : f32
    %28 = vector.broadcast %cst_22 : f32 to vector<56x128xf32>
    %29 = arith.mulf %28, %27 : vector<56x128xf32>
    %30 = arith.maximumf %27, %29 : vector<56x128xf32>
    %31 = arith.maximumf %22, %30 : vector<56x128xf32>
    %c0_23 = arith.constant 0 : index
    %c0_24 = arith.constant 0 : index
    %32 = vector.load %arg4[%c0_23, %c0_24] : memref<56x128xf32, #tpu.memory_space<vmem>>, vector<56x128xf32>
    tpu.vector_store %arg4[%c0_23, %c0_24], %31 {strides = array<i32>} : memref<56x128xf32, #tpu.memory_space<vmem>>, vector<56x128xf32>,
    %c0_25 = arith.constant 0 : index
    %c0_26 = arith.constant 0 : index
    %33 = vector.load %arg4[%c0_25, %c0_26] : memref<56x128xf32, #tpu.memory_space<vmem>>, vector<56x128xf32>
    %c0_27 = arith.constant 0 : index
    %c3 = arith.constant 3 : index
    %c0_28 = arith.constant 0 : index
    %34 = vector.load %arg1[%c0_27, %c3, %c0_28] : memref<56x4x128xbf16, #tpu.memory_space<vmem>>, vector<56x1x128xbf16>
    %35 = vector.shape_cast %34 : vector<56x1x128xbf16> to vector<56x128xbf16>
    %cst_29 = arith.constant dense<0.000000e+00> : vector<56x128xf32>
    %36 = tpu.matmul %35, %0, %cst_29 {dimension_numbers = #tpu.dot_dimension_numbers<[1], [0], [0], [1], [0, 0, 1, 1], [], []>} : vector<56x128xbf16>, vector<128x128xbf16>, vector<56x128xf32> -> vector<56x128xf32>
    %37 = vector.broadcast %1 : vector<1x128xf32> to vector<56x128xf32>
    %38 = arith.addf %36, %37 : vector<56x128xf32>
    %cst_30 = arith.constant 2.000000e-01 : f32
    %39 = vector.broadcast %cst_30 : f32 to vector<56x128xf32>
    %40 = arith.mulf %39, %38 : vector<56x128xf32>
    %41 = arith.maximumf %38, %40 : vector<56x128xf32>
    %42 = arith.maximumf %33, %41 : vector<56x128xf32>
    %c0_31 = arith.constant 0 : index
    %c0_32 = arith.constant 0 : index
    %43 = vector.load %arg4[%c0_31, %c0_32] : memref<56x128xf32, #tpu.memory_space<vmem>>, vector<56x128xf32>
    tpu.vector_store %arg4[%c0_31, %c0_32], %42 {strides = array<i32>} : memref<56x128xf32, #tpu.memory_space<vmem>>, vector<56x128xf32>,
    return
  }
  func.func @transform_0(%arg0: i32) -> (i32, i32, i32) {
    %c0_i32 = arith.constant 0 : i32
    %c0_i32_0 = arith.constant 0 : i32
    %c0_i32_1 = arith.constant 0 : i32
    return %arg0, %c0_i32, %c0_i32_0 : i32, i32, i32
  }
  func.func @transform_1(%arg0: i32) -> (i32, i32) {
    %c0_i32 = arith.constant 0 : i32
    %c0_i32_0 = arith.constant 0 : i32
    %c0_i32_1 = arith.constant 0 : i32
    return %c0_i32, %c0_i32_0 : i32, i32
  }
  func.func @transform_2(%arg0: i32) -> (i32, i32) {
    %c0_i32 = arith.constant 0 : i32
    %c0_i32_0 = arith.constant 0 : i32
    %c0_i32_1 = arith.constant 0 : i32
    return %c0_i32, %c0_i32_0 : i32, i32
  }
  func.func @transform_3(%arg0: i32) -> (i32, i32) {
    %c0_i32 = arith.constant 0 : i32
    %c0_i32_0 = arith.constant 0 : i32
    return %arg0, %c0_i32 : i32, i32
  }
}

module attributes {stable_mosaic.version = 11 : i64} {
  func.func @_pdist_kernel(%arg0: i32, %arg1: memref<8x7x64xf32, #tpu.memory_space<vmem>>, %arg2: memref<8x7x7xf32, #tpu.memory_space<vmem>>) attributes {dimension_semantics = [#tpu.dimension_semantics<parallel>], iteration_bounds = array<i64: 1>, scalar_prefetch = 0 : i64, scratch_operands = 0 : i64, tpu.core_type = #tpu.core_type<tc>, window_params = [{transform_indices = @transform_0, window_bounds = array<i64: 8, 7, 64>}, {transform_indices = @transform_1, window_bounds = array<i64: 8, 7, 7>}]} {
    %c0 = arith.constant 0 : index
    %c0_0 = arith.constant 0 : index
    %c0_1 = arith.constant 0 : index
    %0 = vector.load %arg1[%c0, %c0_0, %c0_1] : memref<8x7x64xf32, #tpu.memory_space<vmem>>, vector<8x7x64xf32>
    "tpu.trace_start"() <{level = 10 : i32, message = "bnc,bmc->bnm"}> : () -> ()
    %cst = arith.constant dense<0.000000e+00> : vector<8x7x7xf32>
    %1 = tpu.matmul %0, %0, %cst {dimension_numbers = #tpu.dot_dimension_numbers<[2], [2], [1], [1], [0, 0, 0, 1, 1, 1], [0], [0]>} : vector<8x7x64xf32>, vector<8x7x64xf32>, vector<8x7x7xf32> -> vector<8x7x7xf32>
    "tpu.trace_stop"() : () -> ()
    %2 = arith.mulf %0, %0 : vector<8x7x64xf32>
    %cst_2 = arith.constant dense<0.000000e+00> : vector<8x7xf32>
    %3 = vector.multi_reduction <add>, %2, %cst_2 [2] : vector<8x7x64xf32> to vector<8x7xf32>
    %4 = vector.shape_cast %3 : vector<8x7xf32> to vector<8x7x1xf32>
    %cst_3 = arith.constant 2.000000e+00 : f32
    %5 = vector.broadcast %cst_3 : f32 to vector<8x7x7xf32>
    %6 = arith.mulf %5, %1 : vector<8x7x7xf32>
    %7 = vector.broadcast %4 : vector<8x7x1xf32> to vector<8x7x7xf32>
    %8 = arith.subf %6, %7 : vector<8x7x7xf32>
    %9 = tpu.transpose %4, [0, 2, 1] : vector<8x7x1xf32> -> vector<8x1x7xf32>
    %10 = vector.broadcast %9 : vector<8x1x7xf32> to vector<8x7x7xf32>
    %11 = arith.subf %8, %10 : vector<8x7x7xf32>
    %c0_4 = arith.constant 0 : index
    %c0_5 = arith.constant 0 : index
    %c0_6 = arith.constant 0 : index
    %12 = vector.load %arg2[%c0_4, %c0_5, %c0_6] : memref<8x7x7xf32, #tpu.memory_space<vmem>>, vector<8x7x7xf32>
    tpu.vector_store %arg2[%c0_4, %c0_5, %c0_6], %11 {strides = array<i32>} : memref<8x7x7xf32, #tpu.memory_space<vmem>>, vector<8x7x7xf32>,
    return
  }
  func.func @transform_0(%arg0: i32) -> (i32, i32, i32) {
    %c0_i32 = arith.constant 0 : i32
    %c0_i32_0 = arith.constant 0 : i32
    %c0_i32_1 = arith.constant 0 : i32
    return %arg0, %c0_i32, %c0_i32_0 : i32, i32, i32
  }
  func.func @transform_1(%arg0: i32) -> (i32, i32, i32) {
    %c0_i32 = arith.constant 0 : i32
    %c0_i32_0 = arith.constant 0 : i32
    %c0_i32_1 = arith.constant 0 : i32
    return %arg0, %c0_i32, %c0_i32_0 : i32, i32, i32
  }
}

module attributes {stable_mosaic.version = 11 : i64} {
  func.func @_fused_conv_kernel(%arg0: i32, %arg1: memref<56x6x128xbf16, #tpu.memory_space<vmem>>, %arg2: memref<128x128xbf16, #tpu.memory_space<vmem>>, %arg3: memref<1x128xf32, #tpu.memory_space<vmem>>, %arg4: memref<56x128xf32, #tpu.memory_space<vmem>>) attributes {dimension_semantics = [#tpu.dimension_semantics<parallel>], iteration_bounds = array<i64: 1>, scalar_prefetch = 0 : i64, scratch_operands = 0 : i64, tpu.core_type = #tpu.core_type<tc>, window_params = [{transform_indices = @transform_0, window_bounds = array<i64: 56, 6, 128>}, {pipeline_mode = #tpu.pipeline_mode<synchronous>, transform_indices = @transform_1, window_bounds = array<i64: 128, 128>}, {pipeline_mode = #tpu.pipeline_mode<synchronous>, transform_indices = @transform_2, window_bounds = array<i64: 1, 128>}, {transform_indices = @transform_3, window_bounds = array<i64: 56, 128>}]} {
    %c0 = arith.constant 0 : index
    %c0_0 = arith.constant 0 : index
    %0 = vector.load %arg2[%c0, %c0_0] : memref<128x128xbf16, #tpu.memory_space<vmem>>, vector<128x128xbf16>
    %c0_1 = arith.constant 0 : index
    %c0_2 = arith.constant 0 : index
    %1 = vector.load %arg3[%c0_1, %c0_2] : memref<1x128xf32, #tpu.memory_space<vmem>>, vector<1x128xf32>
    %c0_3 = arith.constant 0 : index
    %c0_4 = arith.constant 0 : index
    %c0_5 = arith.constant 0 : index
    %2 = vector.load %arg1[%c0_3, %c0_4, %c0_5] : memref<56x6x128xbf16, #tpu.memory_space<vmem>>, vector<56x1x128xbf16>
    %3 = vector.shape_cast %2 : vector<56x1x128xbf16> to vector<56x128xbf16>
    %cst = arith.constant dense<0.000000e+00> : vector<56x128xf32>
    %4 = tpu.matmul %3, %0, %cst {dimension_numbers = #tpu.dot_dimension_numbers<[1], [0], [0], [1], [0, 0, 1, 1], [], []>} : vector<56x128xbf16>, vector<128x128xbf16>, vector<56x128xf32> -> vector<56x128xf32>
    %5 = vector.broadcast %1 : vector<1x128xf32> to vector<56x128xf32>
    %6 = arith.addf %4, %5 : vector<56x128xf32>
    %cst_6 = arith.constant 2.000000e-01 : f32
    %7 = vector.broadcast %cst_6 : f32 to vector<56x128xf32>
    %8 = arith.mulf %7, %6 : vector<56x128xf32>
    %9 = arith.maximumf %6, %8 : vector<56x128xf32>
    %c0_7 = arith.constant 0 : index
    %c0_8 = arith.constant 0 : index
    %10 = vector.load %arg4[%c0_7, %c0_8] : memref<56x128xf32, #tpu.memory_space<vmem>>, vector<56x128xf32>
    tpu.vector_store %arg4[%c0_7, %c0_8], %9 {strides = array<i32>} : memref<56x128xf32, #tpu.memory_space<vmem>>, vector<56x128xf32>,
    %c0_9 = arith.constant 0 : index
    %c0_10 = arith.constant 0 : index
    %11 = vector.load %arg4[%c0_9, %c0_10] : memref<56x128xf32, #tpu.memory_space<vmem>>, vector<56x128xf32>
    %c0_11 = arith.constant 0 : index
    %c1 = arith.constant 1 : index
    %c0_12 = arith.constant 0 : index
    %12 = vector.load %arg1[%c0_11, %c1, %c0_12] : memref<56x6x128xbf16, #tpu.memory_space<vmem>>, vector<56x1x128xbf16>
    %13 = vector.shape_cast %12 : vector<56x1x128xbf16> to vector<56x128xbf16>
    %cst_13 = arith.constant dense<0.000000e+00> : vector<56x128xf32>
    %14 = tpu.matmul %13, %0, %cst_13 {dimension_numbers = #tpu.dot_dimension_numbers<[1], [0], [0], [1], [0, 0, 1, 1], [], []>} : vector<56x128xbf16>, vector<128x128xbf16>, vector<56x128xf32> -> vector<56x128xf32>
    %15 = vector.broadcast %1 : vector<1x128xf32> to vector<56x128xf32>
    %16 = arith.addf %14, %15 : vector<56x128xf32>
    %cst_14 = arith.constant 2.000000e-01 : f32
    %17 = vector.broadcast %cst_14 : f32 to vector<56x128xf32>
    %18 = arith.mulf %17, %16 : vector<56x128xf32>
    %19 = arith.maximumf %16, %18 : vector<56x128xf32>
    %20 = arith.maximumf %11, %19 : vector<56x128xf32>
    %c0_15 = arith.constant 0 : index
    %c0_16 = arith.constant 0 : index
    %21 = vector.load %arg4[%c0_15, %c0_16] : memref<56x128xf32, #tpu.memory_space<vmem>>, vector<56x128xf32>
    tpu.vector_store %arg4[%c0_15, %c0_16], %20 {strides = array<i32>} : memref<56x128xf32, #tpu.memory_space<vmem>>, vector<56x128xf32>,
    %c0_17 = arith.constant 0 : index
    %c0_18 = arith.constant 0 : index
    %22 = vector.load %arg4[%c0_17, %c0_18] : memref<56x128xf32, #tpu.memory_space<vmem>>, vector<56x128xf32>
    %c0_19 = arith.constant 0 : index
    %c2 = arith.constant 2 : index
    %c0_20 = arith.constant 0 : index
    %23 = vector.load %arg1[%c0_19, %c2, %c0_20] : memref<56x6x128xbf16, #tpu.memory_space<vmem>>, vector<56x1x128xbf16>
    %24 = vector.shape_cast %23 : vector<56x1x128xbf16> to vector<56x128xbf16>
    %cst_21 = arith.constant dense<0.000000e+00> : vector<56x128xf32>
    %25 = tpu.matmul %24, %0, %cst_21 {dimension_numbers = #tpu.dot_dimension_numbers<[1], [0], [0], [1], [0, 0, 1, 1], [], []>} : vector<56x128xbf16>, vector<128x128xbf16>, vector<56x128xf32> -> vector<56x128xf32>
    %26 = vector.broadcast %1 : vector<1x128xf32> to vector<56x128xf32>
    %27 = arith.addf %25, %26 : vector<56x128xf32>
    %cst_22 = arith.constant 2.000000e-01 : f32
    %28 = vector.broadcast %cst_22 : f32 to vector<56x128xf32>
    %29 = arith.mulf %28, %27 : vector<56x128xf32>
    %30 = arith.maximumf %27, %29 : vector<56x128xf32>
    %31 = arith.maximumf %22, %30 : vector<56x128xf32>
    %c0_23 = arith.constant 0 : index
    %c0_24 = arith.constant 0 : index
    %32 = vector.load %arg4[%c0_23, %c0_24] : memref<56x128xf32, #tpu.memory_space<vmem>>, vector<56x128xf32>
    tpu.vector_store %arg4[%c0_23, %c0_24], %31 {strides = array<i32>} : memref<56x128xf32, #tpu.memory_space<vmem>>, vector<56x128xf32>,
    %c0_25 = arith.constant 0 : index
    %c0_26 = arith.constant 0 : index
    %33 = vector.load %arg4[%c0_25, %c0_26] : memref<56x128xf32, #tpu.memory_space<vmem>>, vector<56x128xf32>
    %c0_27 = arith.constant 0 : index
    %c3 = arith.constant 3 : index
    %c0_28 = arith.constant 0 : index
    %34 = vector.load %arg1[%c0_27, %c3, %c0_28] : memref<56x6x128xbf16, #tpu.memory_space<vmem>>, vector<56x1x128xbf16>
    %35 = vector.shape_cast %34 : vector<56x1x128xbf16> to vector<56x128xbf16>
    %cst_29 = arith.constant dense<0.000000e+00> : vector<56x128xf32>
    %36 = tpu.matmul %35, %0, %cst_29 {dimension_numbers = #tpu.dot_dimension_numbers<[1], [0], [0], [1], [0, 0, 1, 1], [], []>} : vector<56x128xbf16>, vector<128x128xbf16>, vector<56x128xf32> -> vector<56x128xf32>
    %37 = vector.broadcast %1 : vector<1x128xf32> to vector<56x128xf32>
    %38 = arith.addf %36, %37 : vector<56x128xf32>
    %cst_30 = arith.constant 2.000000e-01 : f32
    %39 = vector.broadcast %cst_30 : f32 to vector<56x128xf32>
    %40 = arith.mulf %39, %38 : vector<56x128xf32>
    %41 = arith.maximumf %38, %40 : vector<56x128xf32>
    %42 = arith.maximumf %33, %41 : vector<56x128xf32>
    %c0_31 = arith.constant 0 : index
    %c0_32 = arith.constant 0 : index
    %43 = vector.load %arg4[%c0_31, %c0_32] : memref<56x128xf32, #tpu.memory_space<vmem>>, vector<56x128xf32>
    tpu.vector_store %arg4[%c0_31, %c0_32], %42 {strides = array<i32>} : memref<56x128xf32, #tpu.memory_space<vmem>>, vector<56x128xf32>,
    %c0_33 = arith.constant 0 : index
    %c0_34 = arith.constant 0 : index
    %44 = vector.load %arg4[%c0_33, %c0_34] : memref<56x128xf32, #tpu.memory_space<vmem>>, vector<56x128xf32>
    %c0_35 = arith.constant 0 : index
    %c4 = arith.constant 4 : index
    %c0_36 = arith.constant 0 : index
    %45 = vector.load %arg1[%c0_35, %c4, %c0_36] : memref<56x6x128xbf16, #tpu.memory_space<vmem>>, vector<56x1x128xbf16>
    %46 = vector.shape_cast %45 : vector<56x1x128xbf16> to vector<56x128xbf16>
    %cst_37 = arith.constant dense<0.000000e+00> : vector<56x128xf32>
    %47 = tpu.matmul %46, %0, %cst_37 {dimension_numbers = #tpu.dot_dimension_numbers<[1], [0], [0], [1], [0, 0, 1, 1], [], []>} : vector<56x128xbf16>, vector<128x128xbf16>, vector<56x128xf32> -> vector<56x128xf32>
    %48 = vector.broadcast %1 : vector<1x128xf32> to vector<56x128xf32>
    %49 = arith.addf %47, %48 : vector<56x128xf32>
    %cst_38 = arith.constant 2.000000e-01 : f32
    %50 = vector.broadcast %cst_38 : f32 to vector<56x128xf32>
    %51 = arith.mulf %50, %49 : vector<56x128xf32>
    %52 = arith.maximumf %49, %51 : vector<56x128xf32>
    %53 = arith.maximumf %44, %52 : vector<56x128xf32>
    %c0_39 = arith.constant 0 : index
    %c0_40 = arith.constant 0 : index
    %54 = vector.load %arg4[%c0_39, %c0_40] : memref<56x128xf32, #tpu.memory_space<vmem>>, vector<56x128xf32>
    tpu.vector_store %arg4[%c0_39, %c0_40], %53 {strides = array<i32>} : memref<56x128xf32, #tpu.memory_space<vmem>>, vector<56x128xf32>,
    %c0_41 = arith.constant 0 : index
    %c0_42 = arith.constant 0 : index
    %55 = vector.load %arg4[%c0_41, %c0_42] : memref<56x128xf32, #tpu.memory_space<vmem>>, vector<56x128xf32>
    %c0_43 = arith.constant 0 : index
    %c5 = arith.constant 5 : index
    %c0_44 = arith.constant 0 : index
    %56 = vector.load %arg1[%c0_43, %c5, %c0_44] : memref<56x6x128xbf16, #tpu.memory_space<vmem>>, vector<56x1x128xbf16>
    %57 = vector.shape_cast %56 : vector<56x1x128xbf16> to vector<56x128xbf16>
    %cst_45 = arith.constant dense<0.000000e+00> : vector<56x128xf32>
    %58 = tpu.matmul %57, %0, %cst_45 {dimension_numbers = #tpu.dot_dimension_numbers<[1], [0], [0], [1], [0, 0, 1, 1], [], []>} : vector<56x128xbf16>, vector<128x128xbf16>, vector<56x128xf32> -> vector<56x128xf32>
    %59 = vector.broadcast %1 : vector<1x128xf32> to vector<56x128xf32>
    %60 = arith.addf %58, %59 : vector<56x128xf32>
    %cst_46 = arith.constant 2.000000e-01 : f32
    %61 = vector.broadcast %cst_46 : f32 to vector<56x128xf32>
    %62 = arith.mulf %61, %60 : vector<56x128xf32>
    %63 = arith.maximumf %60, %62 : vector<56x128xf32>
    %64 = arith.maximumf %55, %63 : vector<56x128xf32>
    %c0_47 = arith.constant 0 : index
    %c0_48 = arith.constant 0 : index
    %65 = vector.load %arg4[%c0_47, %c0_48] : memref<56x128xf32, #tpu.memory_space<vmem>>, vector<56x128xf32>
    tpu.vector_store %arg4[%c0_47, %c0_48], %64 {strides = array<i32>} : memref<56x128xf32, #tpu.memory_space<vmem>>, vector<56x128xf32>,
    return
  }
  func.func @transform_0(%arg0: i32) -> (i32, i32, i32) {
    %c0_i32 = arith.constant 0 : i32
    %c0_i32_0 = arith.constant 0 : i32
    %c0_i32_1 = arith.constant 0 : i32
    return %arg0, %c0_i32, %c0_i32_0 : i32, i32, i32
  }
  func.func @transform_1(%arg0: i32) -> (i32, i32) {
    %c0_i32 = arith.constant 0 : i32
    %c0_i32_0 = arith.constant 0 : i32
    %c0_i32_1 = arith.constant 0 : i32
    return %c0_i32, %c0_i32_0 : i32, i32
  }
  func.func @transform_2(%arg0: i32) -> (i32, i32) {
    %c0_i32 = arith.constant 0 : i32
    %c0_i32_0 = arith.constant 0 : i32
    %c0_i32_1 = arith.constant 0 : i32
    return %c0_i32, %c0_i32_0 : i32, i32
  }
  func.func @transform_3(%arg0: i32) -> (i32, i32) {
    %c0_i32 = arith.constant 0 : i32
    %c0_i32_0 = arith.constant 0 : i32
    return %arg0, %c0_i32 : i32, i32
  }
}

module attributes {stable_mosaic.version = 11 : i64} {
  func.func @_fused_conv_kernel(%arg0: i32, %arg1: memref<8x7x128xbf16, #tpu.memory_space<vmem>>, %arg2: memref<128x128xbf16, #tpu.memory_space<vmem>>, %arg3: memref<1x128xf32, #tpu.memory_space<vmem>>, %arg4: memref<8x128xf32, #tpu.memory_space<vmem>>) attributes {dimension_semantics = [#tpu.dimension_semantics<parallel>], iteration_bounds = array<i64: 1>, scalar_prefetch = 0 : i64, scratch_operands = 0 : i64, tpu.core_type = #tpu.core_type<tc>, window_params = [{transform_indices = @transform_0, window_bounds = array<i64: 8, 7, 128>}, {pipeline_mode = #tpu.pipeline_mode<synchronous>, transform_indices = @transform_1, window_bounds = array<i64: 128, 128>}, {pipeline_mode = #tpu.pipeline_mode<synchronous>, transform_indices = @transform_2, window_bounds = array<i64: 1, 128>}, {transform_indices = @transform_3, window_bounds = array<i64: 8, 128>}]} {
    %c0 = arith.constant 0 : index
    %c0_0 = arith.constant 0 : index
    %0 = vector.load %arg2[%c0, %c0_0] : memref<128x128xbf16, #tpu.memory_space<vmem>>, vector<128x128xbf16>
    %c0_1 = arith.constant 0 : index
    %c0_2 = arith.constant 0 : index
    %1 = vector.load %arg3[%c0_1, %c0_2] : memref<1x128xf32, #tpu.memory_space<vmem>>, vector<1x128xf32>
    %c0_3 = arith.constant 0 : index
    %c0_4 = arith.constant 0 : index
    %c0_5 = arith.constant 0 : index
    %2 = vector.load %arg1[%c0_3, %c0_4, %c0_5] : memref<8x7x128xbf16, #tpu.memory_space<vmem>>, vector<8x1x128xbf16>
    %3 = vector.shape_cast %2 : vector<8x1x128xbf16> to vector<8x128xbf16>
    %cst = arith.constant dense<0.000000e+00> : vector<8x128xf32>
    %4 = tpu.matmul %3, %0, %cst {dimension_numbers = #tpu.dot_dimension_numbers<[1], [0], [0], [1], [0, 0, 1, 1], [], []>} : vector<8x128xbf16>, vector<128x128xbf16>, vector<8x128xf32> -> vector<8x128xf32>
    %5 = vector.broadcast %1 : vector<1x128xf32> to vector<8x128xf32>
    %6 = arith.addf %4, %5 : vector<8x128xf32>
    %cst_6 = arith.constant 2.000000e-01 : f32
    %7 = vector.broadcast %cst_6 : f32 to vector<8x128xf32>
    %8 = arith.mulf %7, %6 : vector<8x128xf32>
    %9 = arith.maximumf %6, %8 : vector<8x128xf32>
    %c0_7 = arith.constant 0 : index
    %c0_8 = arith.constant 0 : index
    %10 = vector.load %arg4[%c0_7, %c0_8] : memref<8x128xf32, #tpu.memory_space<vmem>>, vector<8x128xf32>
    tpu.vector_store %arg4[%c0_7, %c0_8], %9 {strides = array<i32>} : memref<8x128xf32, #tpu.memory_space<vmem>>, vector<8x128xf32>,
    %c0_9 = arith.constant 0 : index
    %c0_10 = arith.constant 0 : index
    %11 = vector.load %arg4[%c0_9, %c0_10] : memref<8x128xf32, #tpu.memory_space<vmem>>, vector<8x128xf32>
    %c0_11 = arith.constant 0 : index
    %c1 = arith.constant 1 : index
    %c0_12 = arith.constant 0 : index
    %12 = vector.load %arg1[%c0_11, %c1, %c0_12] : memref<8x7x128xbf16, #tpu.memory_space<vmem>>, vector<8x1x128xbf16>
    %13 = vector.shape_cast %12 : vector<8x1x128xbf16> to vector<8x128xbf16>
    %cst_13 = arith.constant dense<0.000000e+00> : vector<8x128xf32>
    %14 = tpu.matmul %13, %0, %cst_13 {dimension_numbers = #tpu.dot_dimension_numbers<[1], [0], [0], [1], [0, 0, 1, 1], [], []>} : vector<8x128xbf16>, vector<128x128xbf16>, vector<8x128xf32> -> vector<8x128xf32>
    %15 = vector.broadcast %1 : vector<1x128xf32> to vector<8x128xf32>
    %16 = arith.addf %14, %15 : vector<8x128xf32>
    %cst_14 = arith.constant 2.000000e-01 : f32
    %17 = vector.broadcast %cst_14 : f32 to vector<8x128xf32>
    %18 = arith.mulf %17, %16 : vector<8x128xf32>
    %19 = arith.maximumf %16, %18 : vector<8x128xf32>
    %20 = arith.maximumf %11, %19 : vector<8x128xf32>
    %c0_15 = arith.constant 0 : index
    %c0_16 = arith.constant 0 : index
    %21 = vector.load %arg4[%c0_15, %c0_16] : memref<8x128xf32, #tpu.memory_space<vmem>>, vector<8x128xf32>
    tpu.vector_store %arg4[%c0_15, %c0_16], %20 {strides = array<i32>} : memref<8x128xf32, #tpu.memory_space<vmem>>, vector<8x128xf32>,
    %c0_17 = arith.constant 0 : index
    %c0_18 = arith.constant 0 : index
    %22 = vector.load %arg4[%c0_17, %c0_18] : memref<8x128xf32, #tpu.memory_space<vmem>>, vector<8x128xf32>
    %c0_19 = arith.constant 0 : index
    %c2 = arith.constant 2 : index
    %c0_20 = arith.constant 0 : index
    %23 = vector.load %arg1[%c0_19, %c2, %c0_20] : memref<8x7x128xbf16, #tpu.memory_space<vmem>>, vector<8x1x128xbf16>
    %24 = vector.shape_cast %23 : vector<8x1x128xbf16> to vector<8x128xbf16>
    %cst_21 = arith.constant dense<0.000000e+00> : vector<8x128xf32>
    %25 = tpu.matmul %24, %0, %cst_21 {dimension_numbers = #tpu.dot_dimension_numbers<[1], [0], [0], [1], [0, 0, 1, 1], [], []>} : vector<8x128xbf16>, vector<128x128xbf16>, vector<8x128xf32> -> vector<8x128xf32>
    %26 = vector.broadcast %1 : vector<1x128xf32> to vector<8x128xf32>
    %27 = arith.addf %25, %26 : vector<8x128xf32>
    %cst_22 = arith.constant 2.000000e-01 : f32
    %28 = vector.broadcast %cst_22 : f32 to vector<8x128xf32>
    %29 = arith.mulf %28, %27 : vector<8x128xf32>
    %30 = arith.maximumf %27, %29 : vector<8x128xf32>
    %31 = arith.maximumf %22, %30 : vector<8x128xf32>
    %c0_23 = arith.constant 0 : index
    %c0_24 = arith.constant 0 : index
    %32 = vector.load %arg4[%c0_23, %c0_24] : memref<8x128xf32, #tpu.memory_space<vmem>>, vector<8x128xf32>
    tpu.vector_store %arg4[%c0_23, %c0_24], %31 {strides = array<i32>} : memref<8x128xf32, #tpu.memory_space<vmem>>, vector<8x128xf32>,
    %c0_25 = arith.constant 0 : index
    %c0_26 = arith.constant 0 : index
    %33 = vector.load %arg4[%c0_25, %c0_26] : memref<8x128xf32, #tpu.memory_space<vmem>>, vector<8x128xf32>
    %c0_27 = arith.constant 0 : index
    %c3 = arith.constant 3 : index
    %c0_28 = arith.constant 0 : index
    %34 = vector.load %arg1[%c0_27, %c3, %c0_28] : memref<8x7x128xbf16, #tpu.memory_space<vmem>>, vector<8x1x128xbf16>
    %35 = vector.shape_cast %34 : vector<8x1x128xbf16> to vector<8x128xbf16>
    %cst_29 = arith.constant dense<0.000000e+00> : vector<8x128xf32>
    %36 = tpu.matmul %35, %0, %cst_29 {dimension_numbers = #tpu.dot_dimension_numbers<[1], [0], [0], [1], [0, 0, 1, 1], [], []>} : vector<8x128xbf16>, vector<128x128xbf16>, vector<8x128xf32> -> vector<8x128xf32>
    %37 = vector.broadcast %1 : vector<1x128xf32> to vector<8x128xf32>
    %38 = arith.addf %36, %37 : vector<8x128xf32>
    %cst_30 = arith.constant 2.000000e-01 : f32
    %39 = vector.broadcast %cst_30 : f32 to vector<8x128xf32>
    %40 = arith.mulf %39, %38 : vector<8x128xf32>
    %41 = arith.maximumf %38, %40 : vector<8x128xf32>
    %42 = arith.maximumf %33, %41 : vector<8x128xf32>
    %c0_31 = arith.constant 0 : index
    %c0_32 = arith.constant 0 : index
    %43 = vector.load %arg4[%c0_31, %c0_32] : memref<8x128xf32, #tpu.memory_space<vmem>>, vector<8x128xf32>
    tpu.vector_store %arg4[%c0_31, %c0_32], %42 {strides = array<i32>} : memref<8x128xf32, #tpu.memory_space<vmem>>, vector<8x128xf32>,
    %c0_33 = arith.constant 0 : index
    %c0_34 = arith.constant 0 : index
    %44 = vector.load %arg4[%c0_33, %c0_34] : memref<8x128xf32, #tpu.memory_space<vmem>>, vector<8x128xf32>
    %c0_35 = arith.constant 0 : index
    %c4 = arith.constant 4 : index
    %c0_36 = arith.constant 0 : index
    %45 = vector.load %arg1[%c0_35, %c4, %c0_36] : memref<8x7x128xbf16, #tpu.memory_space<vmem>>, vector<8x1x128xbf16>
    %46 = vector.shape_cast %45 : vector<8x1x128xbf16> to vector<8x128xbf16>
    %cst_37 = arith.constant dense<0.000000e+00> : vector<8x128xf32>
    %47 = tpu.matmul %46, %0, %cst_37 {dimension_numbers = #tpu.dot_dimension_numbers<[1], [0], [0], [1], [0, 0, 1, 1], [], []>} : vector<8x128xbf16>, vector<128x128xbf16>, vector<8x128xf32> -> vector<8x128xf32>
    %48 = vector.broadcast %1 : vector<1x128xf32> to vector<8x128xf32>
    %49 = arith.addf %47, %48 : vector<8x128xf32>
    %cst_38 = arith.constant 2.000000e-01 : f32
    %50 = vector.broadcast %cst_38 : f32 to vector<8x128xf32>
    %51 = arith.mulf %50, %49 : vector<8x128xf32>
    %52 = arith.maximumf %49, %51 : vector<8x128xf32>
    %53 = arith.maximumf %44, %52 : vector<8x128xf32>
    %c0_39 = arith.constant 0 : index
    %c0_40 = arith.constant 0 : index
    %54 = vector.load %arg4[%c0_39, %c0_40] : memref<8x128xf32, #tpu.memory_space<vmem>>, vector<8x128xf32>
    tpu.vector_store %arg4[%c0_39, %c0_40], %53 {strides = array<i32>} : memref<8x128xf32, #tpu.memory_space<vmem>>, vector<8x128xf32>,
    %c0_41 = arith.constant 0 : index
    %c0_42 = arith.constant 0 : index
    %55 = vector.load %arg4[%c0_41, %c0_42] : memref<8x128xf32, #tpu.memory_space<vmem>>, vector<8x128xf32>
    %c0_43 = arith.constant 0 : index
    %c5 = arith.constant 5 : index
    %c0_44 = arith.constant 0 : index
    %56 = vector.load %arg1[%c0_43, %c5, %c0_44] : memref<8x7x128xbf16, #tpu.memory_space<vmem>>, vector<8x1x128xbf16>
    %57 = vector.shape_cast %56 : vector<8x1x128xbf16> to vector<8x128xbf16>
    %cst_45 = arith.constant dense<0.000000e+00> : vector<8x128xf32>
    %58 = tpu.matmul %57, %0, %cst_45 {dimension_numbers = #tpu.dot_dimension_numbers<[1], [0], [0], [1], [0, 0, 1, 1], [], []>} : vector<8x128xbf16>, vector<128x128xbf16>, vector<8x128xf32> -> vector<8x128xf32>
    %59 = vector.broadcast %1 : vector<1x128xf32> to vector<8x128xf32>
    %60 = arith.addf %58, %59 : vector<8x128xf32>
    %cst_46 = arith.constant 2.000000e-01 : f32
    %61 = vector.broadcast %cst_46 : f32 to vector<8x128xf32>
    %62 = arith.mulf %61, %60 : vector<8x128xf32>
    %63 = arith.maximumf %60, %62 : vector<8x128xf32>
    %64 = arith.maximumf %55, %63 : vector<8x128xf32>
    %c0_47 = arith.constant 0 : index
    %c0_48 = arith.constant 0 : index
    %65 = vector.load %arg4[%c0_47, %c0_48] : memref<8x128xf32, #tpu.memory_space<vmem>>, vector<8x128xf32>
    tpu.vector_store %arg4[%c0_47, %c0_48], %64 {strides = array<i32>} : memref<8x128xf32, #tpu.memory_space<vmem>>, vector<8x128xf32>,
    %c0_49 = arith.constant 0 : index
    %c0_50 = arith.constant 0 : index
    %66 = vector.load %arg4[%c0_49, %c0_50] : memref<8x128xf32, #tpu.memory_space<vmem>>, vector<8x128xf32>
    %c0_51 = arith.constant 0 : index
    %c6 = arith.constant 6 : index
    %c0_52 = arith.constant 0 : index
    %67 = vector.load %arg1[%c0_51, %c6, %c0_52] : memref<8x7x128xbf16, #tpu.memory_space<vmem>>, vector<8x1x128xbf16>
    %68 = vector.shape_cast %67 : vector<8x1x128xbf16> to vector<8x128xbf16>
    %cst_53 = arith.constant dense<0.000000e+00> : vector<8x128xf32>
    %69 = tpu.matmul %68, %0, %cst_53 {dimension_numbers = #tpu.dot_dimension_numbers<[1], [0], [0], [1], [0, 0, 1, 1], [], []>} : vector<8x128xbf16>, vector<128x128xbf16>, vector<8x128xf32> -> vector<8x128xf32>
    %70 = vector.broadcast %1 : vector<1x128xf32> to vector<8x128xf32>
    %71 = arith.addf %69, %70 : vector<8x128xf32>
    %cst_54 = arith.constant 2.000000e-01 : f32
    %72 = vector.broadcast %cst_54 : f32 to vector<8x128xf32>
    %73 = arith.mulf %72, %71 : vector<8x128xf32>
    %74 = arith.maximumf %71, %73 : vector<8x128xf32>
    %75 = arith.maximumf %66, %74 : vector<8x128xf32>
    %c0_55 = arith.constant 0 : index
    %c0_56 = arith.constant 0 : index
    %76 = vector.load %arg4[%c0_55, %c0_56] : memref<8x128xf32, #tpu.memory_space<vmem>>, vector<8x128xf32>
    tpu.vector_store %arg4[%c0_55, %c0_56], %75 {strides = array<i32>} : memref<8x128xf32, #tpu.memory_space<vmem>>, vector<8x128xf32>,
    return
  }
  func.func @transform_0(%arg0: i32) -> (i32, i32, i32) {
    %c0_i32 = arith.constant 0 : i32
    %c0_i32_0 = arith.constant 0 : i32
    %c0_i32_1 = arith.constant 0 : i32
    return %arg0, %c0_i32, %c0_i32_0 : i32, i32, i32
  }
  func.func @transform_1(%arg0: i32) -> (i32, i32) {
    %c0_i32 = arith.constant 0 : i32
    %c0_i32_0 = arith.constant 0 : i32
    %c0_i32_1 = arith.constant 0 : i32
    return %c0_i32, %c0_i32_0 : i32, i32
  }
  func.func @transform_2(%arg0: i32) -> (i32, i32) {
    %c0_i32 = arith.constant 0 : i32
    %c0_i32_0 = arith.constant 0 : i32
    %c0_i32_1 = arith.constant 0 : i32
    return %c0_i32, %c0_i32_0 : i32, i32
  }
  func.func @transform_3(%arg0: i32) -> (i32, i32) {
    %c0_i32 = arith.constant 0 : i32
    %c0_i32_0 = arith.constant 0 : i32
    return %arg0, %c0_i32 : i32, i32
  }
}

</mosaic_0001>

<bundles_post_ra>
// kernel: _lambda_.5
= control target key start
LH: loop header
LB: loop body
LE: loop exit
PB: predicated region body
PF: predicated region fallthrough
CT: control target
= control target key end

     0   :  { %s899_s6 = smov 0   ;;  %s1081_s0 = inlined_call_operand.vmem [shape: f32[16,16,8], index: 0, kind: input, shape index: {}]   ;;  %s1082_s1 = inlined_call_operand.vmem [shape: f32[16,16,16], index: 1, kind: output, shape index: {}]  }
   0x1 LB: > { %s825_s7 = sadd.s32 4294967295, %s887_s6   ;;  %p829_p0 = scmp.ge.s32.totalorder %s887_s6, 1  ;;  %s887_s6 = sphi %s899_s6, %s11_s6  }
   0x2   : > { %p89_p1 = scmp.lt.s32.totalorder %s887_s6, 3 }
   0x4   : > { %p90_p2 = pnand %p829_p0, %p89_p1 }
   0x5   : > { %s830_s8 = sshll.u32 (!%p90_p2), %s825_s7, 3 }
   0x6   : > { %93 = sbr.rel (%p90_p2) target bundleno = 341 (0x155), region = 24  ;;  %p112_p3 = scmp.lt.s32.totalorder (!%p90_p2), %s830_s8, 15 }
   0xb   : > { %s1084_s8 = smov (!%p112_p3, %s830_s8), 15  ;;  %vm141_vm0 = vcmask 64512   ;;  %vm750_vm1 = vcmask 130048  }
   0xc   : > { %s870_s9 = sshll.u32 %s1084_s8, 4 }
   0xd   : > { %s915_s12 = scalar_lea.vmem %s1081_s0, %s870_s9  ;;  %s1031_s15 = scalar_lea.vmem %s1082_s1, %s870_s9 }
   0xe   : > { %v126_v0 = vld [vmem:[%s915_s12 + $0x8] sm:$0xff]  ;;  %v128_v1 = vld [vmem:[%s915_s12 + $0x18] sm:$0xff]  ;;  %v129_v4 = vld [vmem:[%s915_s12 + $0x20] sm:$0xff] }
   0xf   : > { %v130_v2 = vld [vmem:[%s915_s12 + $0x28] sm:$0xff]  ;;  %836 = vmatpush.xpose.msk.msra.mxu0 %vm141_vm0, %v126_v0  ;;  %840 = vmatpush.xpose.msk.msra.mxu1 %vm141_vm0, %v128_v1  ;;  %v132_v3 = vld [vmem:[%s915_s12 + $0x38] sm:$0xff]  ;;  %v127_v5 = vld [vmem:[%s915_s12 + $0x10] sm:$0xff]  ;;  %v378_v6 = vmul.f32 %v129_v4, %v129_v4  ;;  %v377_v16 = vmul.f32 %v128_v1, %v128_v1  ;;  %v375_v18 = vmul.f32 %v126_v0, %v126_v0 }
  0x10   : > { %844 = vmatpush.xpose.msk.msra.mxu2 %vm141_vm0, %v130_v2  ;;  %848 = vmatpush.xpose.msk.msra.mxu3 %vm141_vm0, %v132_v3  ;;  %v376_v7 = vmul.f32 %v127_v5, %v127_v5  ;;  %v125_v8 = vld [vmem:[%s915_s12] sm:$0xff]  ;;  %v131_v13 = vld [vmem:[%s915_s12 + $0x30] sm:$0xff]  ;;  %v933_v14 = vld [vmem:[%s915_s12 + $0x48] sm:$0xff]  ;;  %v379_v15 = vmul.f32 %v130_v2, %v130_v2  ;;  %v381_v29 = vmul.f32 %v132_v3, %v132_v3 }
  0x11   : > { %v374_v9 = vmul.f32 %v125_v8, %v125_v8  ;;  %v402_v10 = vsel %vm141_vm0, %v378_v6, 0.0  ;;  %v136_v17 = vld [vmem:[%s915_s12 + $0x58] sm:$0xff]  ;;  %v138_v19 = vld [vmem:[%s915_s12 + $0x68] sm:$0xff]  ;;  %v399_v22 = vsel %vm141_vm0, %v377_v16, 0.0  ;;  %v393_v23 = vsel %vm141_vm0, %v375_v18, 0.0  ;;  %v133_v24 = vld [vmem:[%s915_s12 + $0x40] sm:$0xff] }
  0x12   : > { %v396_v11 = vsel %vm141_vm0, %v376_v7, 0.0  ;;  %403 = vadd.xlane.f32.xlu2 %v402_v10  ;;  %v140_v20 = vld [vmem:[%s915_s12 + $0x78] sm:$0xff]  ;;  %v405_v21 = vsel %vm141_vm0, %v379_v15, 0.0  ;;  %v135_v25 = vld [vmem:[%s915_s12 + $0x50] sm:$0xff]  ;;  %v137_v26 = vld [vmem:[%s915_s12 + $0x60] sm:$0xff]  ;;  %v382_v28 = vmul.f32 %v133_v24, %v133_v24  ;;  %v380_v30 = vmul.f32 %v131_v13, %v131_v13 }
  0x13   : > { %397 = vadd.xlane.f32.xlu1 %v396_v11  ;;  %v390_v12 = vsel %vm141_vm0, %v374_v9, 0.0  ;;  %837 = vmatpush.xpose.msk.msra.mxu0 %vm141_vm0, %v125_v8  ;;  %v139_v27 = vld [vmem:[%s915_s12 + $0x70] sm:$0xff]  ;;  %v411_v32 = vsel %vm141_vm0, %v381_v29, 0.0  ;;  %v385_v34 = vmul.f32 %v136_v17, %v136_v17  ;;  %v384_v35 = vmul.f32 %v135_v25, %v135_v25 }
  0x14   : > { %391 = vadd.xlane.f32.xlu0 %v390_v12  ;;  %841 = vmatpush.xpose.msk.msra.mxu1 %vm141_vm0, %v127_v5  ;;  %v414_v31 = vsel %vm141_vm0, %v382_v28, 0.0  ;;  %v408_v33 = vsel %vm141_vm0, %v380_v30, 0.0  ;;  %v383_v36 = vmul.f32 %v933_v14, %v933_v14  ;;  %v388_v40 = vmul.f32 %v139_v27, %v139_v27 }
  0x15   : > { %845 = vmatpush.xpose.msk.msra.mxu2 %vm141_vm0, %v129_v4  ;;  %849 = vmatpush.xpose.msk.msra.mxu3 %vm141_vm0, %v131_v13  ;;  %v423_v37 = vsel %vm141_vm0, %v385_v34, 0.0  ;;  %v420_v38 = vsel %vm141_vm0, %v384_v35, 0.0  ;;  %v387_v41 = vmul.f32 %v138_v19, %v138_v19  ;;  %v386_v42 = vmul.f32 %v137_v26, %v137_v26 }
  0x16   : > { %838 = vmatmul.msk.f32.vlgmr.msra.gmra.mxu0 %vm141_vm0, %v125_v8  ;;  %v417_v39 = vsel %vm141_vm0, %v383_v36, 0.0  ;;  %v432_v43 = vsel %vm141_vm0, %v388_v40, 0.0  ;;  %v389_v46 = vmul.f32 %v140_v20, %v140_v20 }
  0x17   : > { %852 = vmatpush.xpose.msk.msrb.mxu0 %vm141_vm0, %v933_v14  ;;  %842 = vmatmul.msk.f32.vlgmr.msra.gmra.mxu1 %vm141_vm0, %v127_v5  ;;  %v429_v44 = vsel %vm141_vm0, %v387_v41, 0.0  ;;  %v426_v45 = vsel %vm141_vm0, %v386_v42, 0.0 }
  0x18   : > { %856 = vmatpush.xpose.msk.msrb.mxu1 %vm141_vm0, %v136_v17  ;;  %846 = vmatmul.msk.f32.vlgmr.msra.gmra.mxu2 %vm141_vm0, %v129_v4  ;;  %v435_v47 = vsel %vm141_vm0, %v389_v46, 0.0 }
  0x19   : > { %850 = vmatmul.msk.f32.vlgmr.msra.gmra.mxu3 %vm141_vm0, %v131_v13  ;;  %860 = vmatpush.xpose.msk.msrb.mxu2 %vm141_vm0, %v138_v19 }
  0x1a   : > { %864 = vmatpush.xpose.msk.msrb.mxu3 %vm141_vm0, %v140_v20  ;;  %406 = vadd.xlane.f32.xlu2 %v405_v21 }
  0x1b   : > { %853 = vmatpush.xpose.msk.msrb.mxu0 %vm141_vm0, %v133_v24  ;;  %400 = vadd.xlane.f32.xlu1 %v399_v22 }
  0x1c   : > { %394 = vadd.xlane.f32.xlu0 %v393_v23  ;;  %857 = vmatpush.xpose.msk.msrb.mxu1 %vm141_vm0, %v135_v25 }
  0x1d   : > { %861 = vmatpush.xpose.msk.msrb.mxu2 %vm141_vm0, %v137_v26 }
  0x1e   : > { %865 = vmatpush.xpose.msk.msrb.mxu3 %vm141_vm0, %v139_v27  ;;  %839 = vmatmul.msk.f32.gmra.mxu0 %vm141_vm0, %v126_v0 }
  0x1f   : > { %843 = vmatmul.msk.f32.gmra.mxu1 %vm141_vm0, %v128_v1 }
  0x20   : > { %847 = vmatmul.msk.f32.gmra.mxu2 %vm141_vm0, %v130_v2 }
  0x21   : > { %851 = vmatmul.msk.f32.gmra.mxu3 %vm141_vm0, %v132_v3 }
  0x22   : > { %415 = vadd.xlane.f32.xlu2 %v414_v31 }
  0x23   : > { %412 = vadd.xlane.f32.xlu1 %v411_v32 }
  0x24   : > { %409 = vadd.xlane.f32.xlu0 %v408_v33 }
  0x26   : > { %854 = vmatmul.msk.f32.vlgmr.msrb.gmra.mxu0 %vm141_vm0, %v133_v24 }
  0x27   : > { %858 = vmatmul.msk.f32.vlgmr.msrb.gmra.mxu1 %vm141_vm0, %v135_v25 }
  0x28   : > { %862 = vmatmul.msk.f32.vlgmr.msrb.gmra.mxu2 %vm141_vm0, %v137_v26 }
  0x29   : > { %866 = vmatmul.msk.f32.vlgmr.msrb.gmra.mxu3 %vm141_vm0, %v139_v27 }
  0x2a   : > { %424 = vadd.xlane.f32.xlu2 %v423_v37 }
  0x2b   : > { %421 = vadd.xlane.f32.xlu1 %v420_v38 }
  0x2c   : > { %418 = vadd.xlane.f32.xlu0 %v417_v39 }
  0x2e   : > { %855 = vmatmul.msk.f32.gmra.mxu0 %vm141_vm0, %v933_v14 }
  0x2f   : > { %859 = vmatmul.msk.f32.gmra.mxu1 %vm141_vm0, %v136_v17 }
  0x30   : > { %863 = vmatmul.msk.f32.gmra.mxu2 %vm141_vm0, %v138_v19 }
  0x31   : > { %867 = vmatmul.msk.f32.gmra.mxu3 %vm141_vm0, %v140_v20 }
  0x32   : > { %433 = vadd.xlane.f32.xlu2 %v432_v43 }
  0x33   : > { %430 = vadd.xlane.f32.xlu1 %v429_v44 }
  0x34   : > { %427 = vadd.xlane.f32.xlu0 %v426_v45 }
  0x3c   : > { %436 = vadd.xlane.f32.xlu0 %v435_v47 }
  0x85   : > { %v987_v48 = vpop.xlane.xlu2 %403 }
  0x86   : > { %v398_v49 = vpop.xlane.xlu1 %397  ;;  %534 = vxpose.xlu0.b32.start [1/2] (short) (narrow) %v987_v48, 8 }
  0x87   : > { %v989_v50 = vpop.xlane.xlu0 %391  ;;  %502 = vxpose.xlu2.b32.start [1/2] (short) (narrow) %v398_v49, 8 }
  0x88   : > { %470 = vxpose.xlu1.b32.start [1/2] (short) (narrow) %v989_v50, 8 }
  0x8d   : > { %v993_v51 = vpop.xlane.xlu2 %406 }
  0x8e   : > { %v401_v52 = vpop.xlane.xlu1 %400  ;;  %535 = vxpose.xlu0.b32.end [2/2] (short) (narrow) %v993_v51, 8 }
  0x8f   : > { %v395_v53 = vpop.xlane.xlu0 %394  ;;  %503 = vxpose.xlu2.b32.end [2/2] (short) (narrow) %v401_v52, 8 }
  0x90   : > { %471 = vxpose.xlu1.b32.end [2/2] (short) (narrow) %v395_v53, 8 }
  0x93   : > { %v165_v1 = vpop.f32.mrf.mxu0 }
  0x94   : > { %v194_v0 = vpop.f32.mrf.mxu1  ;;  %v438_v16 = vmul.f32 2.0, %v165_v1 }
  0x95   : > { %v996_v54 = vpop.xlane.xlu2 %415  ;;  %v440_v4 = vmul.f32 2.0, %v194_v0 }
  0x96   : > { %598 = vxpose.xlu0.b32.start [1/2] (short) (narrow) %v996_v54, 8  ;;  %v1002_v56 = vpop.xlane.xlu1 %412  ;;  %v454_v25 = vsub.f32 %v438_v16, %v989_v50 }
  0x97   : > { %v998_v55 = vpop.xlane.xlu0 %409  ;;  %v456_v7 = vsub.f32 %v440_v4, %v398_v49 }
  0x98   : > { %566 = vxpose.xlu2.b32.start [1/2] (short) (narrow) %v998_v55, 8 }
  0x9b   : > { %v223_v3 = vpop.f32.mrf.mxu2  ;;  %v168_v11 = vpop.f32.mrf.mxu0 }
  0x9c   : > { %v197_v2 = vpop.f32.mrf.mxu1  ;;  %v252_v8 = vpop.f32.mrf.mxu3  ;;  %v442_v15 = vmul.f32 2.0, %v223_v3  ;;  %v439_v17 = vmul.f32 2.0, %v168_v11 }
  0x9d   : > { %v1004_v57 = vpop.xlane.xlu2 %424  ;;  %v441_v5 = vmul.f32 2.0, %v197_v2  ;;  %v444_v29 = vmul.f32 2.0, %v252_v8 }
  0x9e   : > { %v1010_v59 = vpop.xlane.xlu1 %421  ;;  %v458_v21 = vsub.f32 %v442_v15, %v987_v48  ;;  %v455_v26 = vsub.f32 %v439_v17, %v395_v53 }
  0x9f   : > { %v1006_v58 = vpop.xlane.xlu0 %418  ;;  %v457_v9 = vsub.f32 %v441_v5, %v401_v52  ;;  %v460_v37 = vsub.f32 %v444_v29, %v998_v55 }
  0xa0   : > { %567 = vxpose.xlu2.b32.end [2/2] (short) (narrow) %v1002_v56, 8  ;;  %599 = vxpose.xlu0.b32.end [2/2] (short) (narrow) %v1006_v58, 8 }
  0xa3   : > { %v226_v14 = vpop.f32.mrf.mxu2  ;;  %v281_v22 = vpop.f32.mrf.mxu0 }
  0xa4   : > { %v443_v18 = vmul.f32 2.0, %v226_v14  ;;  %v255_v19 = vpop.f32.mrf.mxu3  ;;  %v310_v35 = vpop.f32.mrf.mxu1  ;;  %v446_v43 = vmul.f32 2.0, %v281_v22 }
  0xa5   : > { %v1012_v60 = vpop.xlane.xlu2 %433  ;;  %v445_v30 = vmul.f32 2.0, %v255_v19  ;;  %v448_v52 = vmul.f32 2.0, %v310_v35 }
  0xa6   : > { %v1019_v62 = vpop.xlane.xlu1 %430  ;;  %v459_v27 = vsub.f32 %v443_v18, %v993_v51  ;;  %v462_v47 = vsub.f32 %v446_v43, %v996_v54 }
  0xa7   : > { %v1014_v61 = vpop.xlane.xlu0 %427  ;;  %v461_v38 = vsub.f32 %v445_v30, %v1002_v56  ;;  %v464_v1 = vsub.f32 %v448_v52, %v1010_v59 }
  0xa8   : > { %630 = vxpose.xlu2.b32.start [1/2] (short) (narrow) %v1010_v59, 8  ;;  %694 = vxpose.xlu0.b32.start [1/2] (short) (narrow) %v1012_v60, 8 }
  0xa9   : > { %662 = vxpose.xlu1.b32.start [1/2] (short) (narrow) %v1014_v61, 8 }
  0xab   : > { %v284_v42 = vpop.f32.mrf.mxu0  ;;  %v339_v48 = vpop.f32.mrf.mxu2 }
  0xac   : > { %v447_v44 = vmul.f32 2.0, %v284_v42  ;;  %v313_v45 = vpop.f32.mrf.mxu1  ;;  %v368_v49 = vpop.f32.mrf.mxu3 }
  0xad   : > { %v449_v53 = vmul.f32 2.0, %v313_v45 }
  0xae   : > { %v463_v50 = vsub.f32 %v447_v44, %v1006_v58 }
  0xaf   : > { %v1021_v63 = vpop.xlane.xlu0 %436  ;;  %v465_v2 = vsub.f32 %v449_v53, %v1004_v57 }
  0xb0   : > { %631 = vxpose.xlu2.b32.end [2/2] (short) (narrow) %v1004_v57, 8  ;;  %695 = vxpose.xlu0.b32.end [2/2] (short) (narrow) %v1021_v63, 8 }
  0xb1   : > { %663 = vxpose.xlu1.b32.end [2/2] (short) (narrow) %v1019_v62, 8 }
  0xb3   : > { %v342_v58 = vpop.f32.mrf.mxu2 }
  0xb4   : > { %v371_v5 = vpop.f32.mrf.mxu3  ;;  %v451_v8 = vmul.f32 2.0, %v342_v58 }
  0xb5   : > { %v453_v59 = vmul.f32 2.0, %v371_v5 }
  0xb7   : > { %v469_v14 = vsub.f32 %v453_v59, %v1021_v63 }
 0x120   : > { %v518_v6 = vpop.trf.xlu2 }
 0x121   : > { %v727_v10 = vperm.slane %v518_v6, 0  ;;  %v452_v6 = vmul.f32 2.0, %v368_v49 }
 0x123   : > { %v736_v12 = vsub.f32 %v456_v7, %v727_v10  ;;  %v737_v13 = vsub.f32 %v457_v9, %v727_v10  ;;  %v450_v7 = vmul.f32 2.0, %v339_v48  ;;  %v468_v9 = vsub.f32 %v452_v6, %v1012_v60 }
 0x125   : > { %753 = vst.msk [vmem:[%s1031_s15 + $0x10] sm:$0xff] %vm750_vm1, %v736_v12  ;;  %v466_v12 = vsub.f32 %v450_v7, %v1014_v61 }
 0x126   : > { %754 = vst.msk [vmem:[%s1031_s15 + $0x18] sm:$0xff] %vm750_vm1, %v737_v13  ;;  %v467_v13 = vsub.f32 %v451_v8, %v1019_v62 }
 0x12a   : > { %v550_v20 = vpop.trf.xlu0 }
 0x12b   : > { %v728_v24 = vperm.slane %v550_v20, 0 }
 0x12c   : > { %v486_v23 = vpop.trf.xlu1 }
 0x12d   : > { %v726_v28 = vperm.slane %v486_v23, 0  ;;  %v738_v31 = vsub.f32 %v458_v21, %v728_v24  ;;  %v739_v34 = vsub.f32 %v459_v27, %v728_v24 }
 0x12f   : > { %v734_v32 = vsub.f32 %v454_v25, %v726_v28  ;;  %v735_v33 = vsub.f32 %v455_v26, %v726_v28  ;;  %755 = vst.msk [vmem:[%s1031_s15 + $0x20] sm:$0xff] %vm750_vm1, %v738_v31 }
 0x130   : > { %756 = vst.msk [vmem:[%s1031_s15 + $0x28] sm:$0xff] %vm750_vm1, %v739_v34 }
 0x131   : > { %751 = vst.msk [vmem:[%s1031_s15] sm:$0xff] %vm750_vm1, %v734_v32  ;;  %v582_v36 = vpop.trf.xlu2 }
 0x132   : > { %752 = vst.msk [vmem:[%s1031_s15 + $0x8] sm:$0xff] %vm750_vm1, %v735_v33  ;;  %v729_v39 = vperm.slane %v582_v36, 0 }
 0x134   : > { %v740_v40 = vsub.f32 %v460_v37, %v729_v39  ;;  %v741_v41 = vsub.f32 %v461_v38, %v729_v39 }
 0x136   : > { %757 = vst.msk [vmem:[%s1031_s15 + $0x30] sm:$0xff] %vm750_vm1, %v740_v40 }
 0x137   : > { %758 = vst.msk [vmem:[%s1031_s15 + $0x38] sm:$0xff] %vm750_vm1, %v741_v41 }
 0x13c   : > { %v614_v46 = vpop.trf.xlu0 }
 0x13d   : > { %v730_v51 = vperm.slane %v614_v46, 0 }
 0x13f   : > { %v742_v55 = vsub.f32 %v462_v47, %v730_v51  ;;  %v743_v56 = vsub.f32 %v463_v50, %v730_v51 }
 0x141   : > { %759 = vst.msk [vmem:[%s1031_s15 + $0x40] sm:$0xff] %vm750_vm1, %v742_v55  ;;  %v646_v0 = vpop.trf.xlu2 }
 0x142   : > { %760 = vst.msk [vmem:[%s1031_s15 + $0x48] sm:$0xff] %vm750_vm1, %v743_v56  ;;  %v731_v54 = vperm.slane %v646_v0, 0 }
 0x144   : > { %v744_v3 = vsub.f32 %v464_v1, %v731_v54  ;;  %v745_v4 = vsub.f32 %v465_v2, %v731_v54 }
 0x146   : > { %761 = vst.msk [vmem:[%s1031_s15 + $0x50] sm:$0xff] %vm750_vm1, %v744_v3 }
 0x147   : > { %762 = vst.msk [vmem:[%s1031_s15 + $0x58] sm:$0xff] %vm750_vm1, %v745_v4 }
 0x14c   : > { %v710_v57 = vpop.trf.xlu0 }
 0x14d   : > { %v678_v10 = vpop.trf.xlu1  ;;  %v733_v11 = vperm.slane %v710_v57, 0 }
 0x14e   : > { %v732_v15 = vperm.slane %v678_v10, 0 }
 0x14f   : > { %v748_v16 = vsub.f32 %v468_v9, %v733_v11  ;;  %v749_v19 = vsub.f32 %v469_v14, %v733_v11 }
 0x150   : > { %v746_v17 = vsub.f32 %v466_v12, %v732_v15  ;;  %v747_v18 = vsub.f32 %v467_v13, %v732_v15 }
 0x151   : > { %765 = vst.msk [vmem:[%s1031_s15 + $0x70] sm:$0xff] %vm750_vm1, %v748_v16 }
 0x152   : > { %763 = vst.msk [vmem:[%s1031_s15 + $0x60] sm:$0xff] %vm750_vm1, %v746_v17 }
 0x153   : > { %764 = vst.msk [vmem:[%s1031_s15 + $0x68] sm:$0xff] %vm750_vm1, %v747_v18 }
 0x154   : > { %766 = vst.msk [vmem:[%s1031_s15 + $0x78] sm:$0xff] %vm750_vm1, %v749_v19 }
 0x155 PF: > { %s11_s6 = sadd.s32 1, %s887_s6  }
 0x156   : > { %p8_p4 = scmp.ge.s32.totalorder %s11_s6, 4  }
 0x158   :  { %10 = sbr.rel (!%p8_p4) target bundleno = 1 (0x1), region = 54 }

// kernel: _lambda_.7
= control target key start
LH: loop header
LB: loop body
LE: loop exit
PB: predicated region body
PF: predicated region fallthrough
CT: control target
= control target key end

     0   :  { %vm16_vm0 = vcmask 523264   ;;  %vm209_vm1 = vcmask 522240   ;;  %vm522_vm2 = vcmask 55296   ;;  %s646_s0 = inlined_call_operand.vmem [shape: f32[8,7,64], index: 0, kind: input, shape index: {}]   ;;  %s647_s1 = inlined_call_operand.vmem [shape: f32[8,7,7], index: 1, kind: output, shape index: {}]  }
   0x1   :  { %v8_v0 = vld [vmem:[%s646_s0] sm:$0x7f]  ;;  %v9_v1 = vld [vmem:[%s646_s0 + $0x8] sm:$0x7f]  ;;  %v10_v2 = vld [vmem:[%s646_s0 + $0x10] sm:$0x7f] }
   0x2   :  { %535 = vmatpush.xpose.msk.msra.mxu0 %vm16_vm0, %v8_v0  ;;  %537 = vmatpush.xpose.msk.msra.mxu1 %vm16_vm0, %v9_v1  ;;  %v11_v3 = vld [vmem:[%s646_s0 + $0x18] sm:$0x7f]  ;;  %v203_v4 = vmul.f32 %v10_v2, %v10_v2  ;;  %v201_v5 = vmul.f32 %v8_v0, %v8_v0  ;;  %v12_v6 = vld [vmem:[%s646_s0 + $0x20] sm:$0x7f]  ;;  %v14_v7 = vld [vmem:[%s646_s0 + $0x30] sm:$0x7f]  ;;  %v202_v15 = vmul.f32 %v9_v1, %v9_v1 }
   0x3   :  { %539 = vmatpush.xpose.msk.msra.mxu2 %vm16_vm0, %v10_v2  ;;  %541 = vmatpush.xpose.msk.msra.mxu3 %vm16_vm0, %v11_v3  ;;  %v205_v8 = vmul.f32 %v12_v6, %v12_v6  ;;  %v13_v12 = vld [vmem:[%s646_s0 + $0x28] sm:$0x7f]  ;;  %v204_v13 = vmul.f32 %v11_v3, %v11_v3  ;;  %v15_v14 = vld [vmem:[%s646_s0 + $0x38] sm:$0x7f]  ;;  %v207_v21 = vmul.f32 %v14_v7, %v14_v7 }
   0x4   :  { %v216_v9 = vsel %vm209_vm1, %v203_v4, 0.0  ;;  %v210_v10 = vsel %vm209_vm1, %v201_v5, 0.0  ;;  %v206_v16 = vmul.f32 %v13_v12, %v13_v12  ;;  %v213_v18 = vsel %vm209_vm1, %v202_v15, 0.0 }
   0x5   :  { %217 = vadd.xlane.f32.xlu1 %v216_v9  ;;  %538 = vmatmul.msk.f32.vlgmr.msra.gmra.mxu1 %vm16_vm0, %v9_v1  ;;  %v222_v11 = vsel %vm209_vm1, %v205_v8, 0.0  ;;  %v219_v17 = vsel %vm209_vm1, %v204_v13, 0.0  ;;  %v208_v20 = vmul.f32 %v15_v14, %v15_v14  ;;  %v228_v23 = vsel %vm209_vm1, %v207_v21, 0.0 }
   0x6   :  { %543 = vmatpush.xpose.msk.msrb.mxu0 %vm16_vm0, %v12_v6  ;;  %540 = vmatmul.msk.f32.vlgmr.msra.gmra.mxu2 %vm16_vm0, %v10_v2  ;;  %v225_v19 = vsel %vm209_vm1, %v206_v16, 0.0 }
   0x7   :  { %547 = vmatpush.xpose.msk.msrb.mxu2 %vm16_vm0, %v14_v7  ;;  %211 = vadd.xlane.f32.xlu0 %v210_v10  ;;  %v231_v22 = vsel %vm209_vm1, %v208_v20, 0.0 }
   0x8   :  { %536 = vmatmul.msk.f32.vlgmr.msra.gmra.mxu0 %vm16_vm0, %v8_v0  ;;  %542 = vmatmul.msk.f32.vlgmr.msra.gmra.mxu3 %vm16_vm0, %v11_v3 }
   0x9   :  { %223 = vadd.xlane.f32.xlu2 %v222_v11  ;;  %545 = vmatpush.xpose.msk.msrb.mxu1 %vm16_vm0, %v13_v12 }
   0xa   :  { %549 = vmatpush.xpose.msk.msrb.mxu3 %vm16_vm0, %v15_v14 }
   0xd   :  { %220 = vadd.xlane.f32.xlu1 %v219_v17  ;;  %546 = vmatmul.msk.f32.vlgmr.msrb.gmra.mxu1 %vm16_vm0, %v13_v12 }
   0xe   :  { %548 = vmatmul.msk.f32.vlgmr.msrb.gmra.mxu2 %vm16_vm0, %v14_v7 }
   0xf   :  { %214 = vadd.xlane.f32.xlu0 %v213_v18 }
  0x10   :  { %544 = vmatmul.msk.f32.vlgmr.msrb.gmra.mxu0 %vm16_vm0, %v12_v6  ;;  %550 = vmatmul.msk.f32.vlgmr.msrb.gmra.mxu3 %vm16_vm0, %v15_v14 }
  0x11   :  { %226 = vadd.xlane.f32.xlu2 %v225_v19 }
  0x15   :  { %232 = vadd.xlane.f32.xlu1 %v231_v22 }
  0x17   :  { %229 = vadd.xlane.f32.xlu0 %v228_v23 }
  0x78   :  { %v218_v24 = vpop.xlane.xlu1 %217 }
  0x79   :  { %314 = vxpose.xlu1.b32.start.end [1/1] (short) (narrow) %v218_v24, 8 }
  0x7a   :  { %v212_v25 = vpop.xlane.xlu0 %211 }
  0x7b   :  { %250 = vxpose.xlu2.b32.start.end [1/1] (short) (narrow) %v212_v25, 8 }
  0x7c   :  { %v610_v26 = vpop.xlane.xlu2 %223 }
  0x80   :  { %v221_v27 = vpop.xlane.xlu1 %220 }
  0x82   :  { %v215_v28 = vpop.xlane.xlu0 %214  ;;  %v60_v37 = vpop.f32.mrf.mxu1 }
  0x83   :  { %346 = vxpose.xlu2.b32.start.end [1/1] (short) (narrow) %v221_v27, 8  ;;  %282 = vxpose.xlu0.b32.start.end [1/1] (short) (narrow) %v215_v28, 8  ;;  %v235_v53 = vmul.f32 2.0, %v60_v37 }
  0x84   :  { %v227_v29 = vpop.xlane.xlu2 %226 }
  0x85   :  { %v37_v32 = vpop.f32.mrf.mxu0  ;;  %v243_v60 = vsub.f32 %v235_v53, %v215_v28 }
  0x86   :  { %v234_v33 = vmul.f32 2.0, %v37_v32 }
  0x88   :  { %v233_v30 = vpop.xlane.xlu1 %232  ;;  %v242_v35 = vsub.f32 %v234_v33, %v212_v25 }
  0x89   :  { %v83_v40 = vpop.f32.mrf.mxu2 }
  0x8a   :  { %v230_v31 = vpop.xlane.xlu0 %229  ;;  %v236_v42 = vmul.f32 2.0, %v83_v40  ;;  %v152_v46 = vpop.f32.mrf.mxu1 }
  0x8b   :  { %410 = vxpose.xlu2.b32.start.end [1/1] (short) (narrow) %v227_v29, 8  ;;  %378 = vxpose.xlu0.b32.start.end [1/1] (short) (narrow) %v610_v26, 8  ;;  %v106_v38 = vpop.f32.mrf.mxu3  ;;  %v239_v51 = vmul.f32 2.0, %v152_v46 }
  0x8c   :  { %v237_v41 = vmul.f32 2.0, %v106_v38  ;;  %v244_v48 = vsub.f32 %v236_v42, %v218_v24 }
  0x8d   :  { %v247_v55 = vsub.f32 %v239_v51, %v227_v29  ;;  %v129_v62 = vpop.f32.mrf.mxu0 }
  0x8e   :  { %v245_v44 = vsub.f32 %v237_v41, %v221_v27  ;;  %v238_v1 = vmul.f32 2.0, %v129_v62 }
  0x90   :  { %v246_v7 = vsub.f32 %v238_v1, %v610_v26 }
  0x91   :  { %v175_v9 = vpop.f32.mrf.mxu2 }
  0x92   :  { %v240_v11 = vmul.f32 2.0, %v175_v9 }
  0x93   :  { %474 = vxpose.xlu2.b32.start.end [1/1] (short) (narrow) %v233_v30, 8  ;;  %442 = vxpose.xlu0.b32.start.end [1/1] (short) (narrow) %v230_v31, 8  ;;  %v198_v57 = vpop.f32.mrf.mxu3 }
  0x94   :  { %v241_v63 = vmul.f32 2.0, %v198_v57  ;;  %v248_v13 = vsub.f32 %v240_v11, %v230_v31 }
  0x96   :  { %v249_v3 = vsub.f32 %v241_v63, %v233_v30 }
 0x114   :  { %v266_v34 = vpop.trf.xlu2 }
 0x115   :  { %v506_v36 = vperm.slane %v266_v34, 0 }
 0x117   :  { %v514_v39 = vsub.f32 %v242_v35, %v506_v36 }
 0x119   :  { %523 = vst.msk [vmem:[%s647_s1] sm:$0x7f] %vm522_vm2, %v514_v39 }
 0x11c   :  { %v362_v43 = vpop.trf.xlu2 }
 0x11d   :  { %v509_v45 = vperm.slane %v362_v43, 0  ;;  %v330_v47 = vpop.trf.xlu1 }
 0x11e   :  { %v508_v50 = vperm.slane %v330_v47, 0 }
 0x11f   :  { %v517_v49 = vsub.f32 %v245_v44, %v509_v45 }
 0x120   :  { %v516_v52 = vsub.f32 %v244_v48, %v508_v50 }
 0x121   :  { %526 = vst.msk [vmem:[%s647_s1 + $0x18] sm:$0x7f] %vm522_vm2, %v517_v49 }
 0x122   :  { %525 = vst.msk [vmem:[%s647_s1 + $0x10] sm:$0x7f] %vm522_vm2, %v516_v52 }
 0x124   :  { %v426_v54 = vpop.trf.xlu2 }
 0x125   :  { %v511_v56 = vperm.slane %v426_v54, 0 }
 0x127   :  { %v519_v58 = vsub.f32 %v247_v55, %v511_v56  ;;  %v298_v59 = vpop.trf.xlu0 }
 0x128   :  { %v507_v61 = vperm.slane %v298_v59, 0 }
 0x129   :  { %528 = vst.msk [vmem:[%s647_s1 + $0x28] sm:$0x7f] %vm522_vm2, %v519_v58 }
 0x12a   :  { %v515_v0 = vsub.f32 %v243_v60, %v507_v61 }
 0x12c   :  { %524 = vst.msk [vmem:[%s647_s1 + $0x8] sm:$0x7f] %vm522_vm2, %v515_v0  ;;  %v490_v2 = vpop.trf.xlu2 }
 0x12d   :  { %v513_v4 = vperm.slane %v490_v2, 0 }
 0x12f   :  { %v521_v5 = vsub.f32 %v249_v3, %v513_v4  ;;  %v394_v6 = vpop.trf.xlu0 }
 0x130   :  { %v510_v8 = vperm.slane %v394_v6, 0 }
 0x131   :  { %530 = vst.msk [vmem:[%s647_s1 + $0x38] sm:$0x7f] %vm522_vm2, %v521_v5 }
 0x132   :  { %v518_v10 = vsub.f32 %v246_v7, %v510_v8 }
 0x134   :  { %527 = vst.msk [vmem:[%s647_s1 + $0x20] sm:$0x7f] %vm522_vm2, %v518_v10 }
 0x137   :  { %v458_v12 = vpop.trf.xlu0 }
 0x138   :  { %v512_v14 = vperm.slane %v458_v12, 0 }
 0x13a   :  { %v520_v15 = vsub.f32 %v248_v13, %v512_v14 }
 0x13c   :  { %529 = vst.msk [vmem:[%s647_s1 + $0x30] sm:$0x7f] %vm522_vm2, %v520_v15 }

// kernel: _lambda_.6
= control target key start
LH: loop header
LB: loop body
LE: loop exit
PB: predicated region body
PF: predicated region fallthrough
CT: control target
= control target key end

     0   :  { %vm372_vm0 = vcmask 1041409   ;;  %vm375_vm1 = vcmask 1042434   ;;  %vm378_vm2 = vcmask 1043459   ;;  %vm381_vm3 = vcmask 1044484   ;;  %s3556_s1 = inlined_call_operand.vmem [shape: bf16[128,128], index: 1, kind: input, shape index: {}]   ;;  %s3557_s0 = inlined_call_operand.vmem [shape: bf16[56,4,128], index: 0, kind: input, shape index: {}]   ;;  %s3558_s2 = inlined_call_operand.vmem [shape: f32[1,128], index: 2, kind: input, shape index: {}]   ;;  %s3559_s3 = inlined_call_operand.vmem [shape: f32[56,128], index: 3, kind: output, shape index: {}]  }
   0x1   :  { %v2142_v0 = vld [vmem:[%s3556_s1 + $0x38] sm:$0xff]  ;;  %v2141_v1 = vld [vmem:[%s3556_s1 + $0x30] sm:$0xff]  ;;  %v2140_v2 = vld [vmem:[%s3556_s1 + $0x28] sm:$0xff]  ;;  %vm384_vm4 = vcmask 1045509   ;;  %vm387_vm5 = vcmask 1046534   ;;  %vm390_vm6 = vcmask 1047559  }
   0x2   :  { %532 = vmatpush.bf16.msra.mxu0 %v2142_v0  ;;  %1031 = vmatpush.bf16.msra.mxu1 %v2142_v0  ;;  %v2139_v3 = vld [vmem:[%s3556_s1 + $0x20] sm:$0xff]  ;;  %v2138_v6 = vld [vmem:[%s3556_s1 + $0x18] sm:$0xff]  ;;  %v2137_v7 = vld [vmem:[%s3556_s1 + $0x10] sm:$0xff] }
   0x3   :  { %1537 = vmatpush.bf16.msra.mxu2 %v2142_v0  ;;  %2043 = vmatpush.bf16.msra.mxu3 %v2142_v0  ;;  %v31_v4 = vld [vmem:[%s3557_s0] sm:$0x1]  ;;  %v32_v5 = vld [vmem:[%s3557_s0 + $0x2] sm:$0x1]  ;;  %v33_v8 = vld [vmem:[%s3557_s0 + $0x4] sm:$0x1] }
   0x4   :  { %91 = vst [vmem:[#allocation1] ss:$4 sm:$0xff] %v31_v4  ;;  %v34_v9 = vld [vmem:[%s3557_s0 + $0x6] sm:$0x1]  ;;  %v2136_v11 = vld [vmem:[%s3556_s1 + $0x8] sm:$0xff] }
   0x5   :  { %96 = vst [vmem:[#allocation1 + $0x20] ss:$4 sm:$0xff] %v32_v5  ;;  %v2135_v13 = vld [vmem:[%s3556_s1] sm:$0xff]  ;;  %v35_v14 = vld [vmem:[%s3557_s0 + $0x8] sm:$0x1] }
   0x6   :  { %533 = vmatpush.bf16.msra.mxu0 %v2141_v1  ;;  %1032 = vmatpush.bf16.msra.mxu1 %v2141_v1  ;;  %v36_v15 = vld [vmem:[%s3557_s0 + $0xa] sm:$0x1]  ;;  %v37_v18 = vld [vmem:[%s3557_s0 + $0xc] sm:$0x1]  ;;  %v38_v19 = vld [vmem:[%s3557_s0 + $0xe] sm:$0x1] }
   0x7   :  { %1538 = vmatpush.bf16.msra.mxu2 %v2141_v1  ;;  %2044 = vmatpush.bf16.msra.mxu3 %v2141_v1  ;;  %v39_v22 = vld [vmem:[%s3557_s0 + $0x10] sm:$0x1]  ;;  %v40_v23 = vld [vmem:[%s3557_s0 + $0x12] sm:$0x1]  ;;  %v41_v26 = vld [vmem:[%s3557_s0 + $0x14] sm:$0x1] }
   0x8   :  { %v42_v27 = vld [vmem:[%s3557_s0 + $0x16] sm:$0x1]  ;;  %v43_v30 = vld [vmem:[%s3557_s0 + $0x18] sm:$0x1]  ;;  %v44_v31 = vld [vmem:[%s3557_s0 + $0x1a] sm:$0x1] }
   0x9   :  { %v45_v34 = vld [vmem:[%s3557_s0 + $0x1c] sm:$0x1]  ;;  %v46_v35 = vld [vmem:[%s3557_s0 + $0x1e] sm:$0x1]  ;;  %v47_v38 = vld [vmem:[%s3557_s0 + $0x20] sm:$0x1] }
   0xa   :  { %534 = vmatpush.bf16.msra.mxu0 %v2140_v2  ;;  %1033 = vmatpush.bf16.msra.mxu1 %v2140_v2  ;;  %v48_v39 = vld [vmem:[%s3557_s0 + $0x22] sm:$0x1]  ;;  %v49_v42 = vld [vmem:[%s3557_s0 + $0x24] sm:$0x1]  ;;  %v50_v43 = vld [vmem:[%s3557_s0 + $0x26] sm:$0x1] }
   0xb   :  { %1539 = vmatpush.bf16.msra.mxu2 %v2140_v2  ;;  %2045 = vmatpush.bf16.msra.mxu3 %v2140_v2  ;;  %v2194_v10 = vld.sshfl [vmem:[#allocation1] sm:$0xff pattern:$0x73625140]  ;;  %v51_v46 = vld [vmem:[%s3557_s0 + $0x28] sm:$0x1] }
   0xc   :  { %v2199_v12 = vld.sshfl [vmem:[#allocation1 + $0x20] sm:$0xff pattern:$0x73625140]  ;;  %100 = vst [vmem:[#allocation1] ss:$4 sm:$0xff] %v33_v8  ;;  %v315_v8 = vunpack.c.l.b16 %v2194_v10 }
   0xd   :  { %104 = vst [vmem:[#allocation1 + $0x20] ss:$4 sm:$0xff] %v34_v9  ;;  %v52_v47 = vld [vmem:[%s3557_s0 + $0x2a] sm:$0x1]  ;;  %v53_v50 = vld [vmem:[%s3557_s0 + $0x2c] sm:$0x1] }
   0xe   :  { %535 = vmatpush.bf16.msra.mxu0 %v2139_v3  ;;  %1034 = vmatpush.bf16.msra.mxu1 %v2139_v3  ;;  %v54_v51 = vld [vmem:[%s3557_s0 + $0x2e] sm:$0x1]  ;;  %v55_v54 = vld [vmem:[%s3557_s0 + $0x30] sm:$0x1]  ;;  %v56_v55 = vld [vmem:[%s3557_s0 + $0x32] sm:$0x1] }
   0xf   :  { %1540 = vmatpush.bf16.msra.mxu2 %v2139_v3  ;;  %2046 = vmatpush.bf16.msra.mxu3 %v2139_v3  ;;  %v57_v58 = vld [vmem:[%s3557_s0 + $0x34] sm:$0x1]  ;;  %v58_v59 = vld [vmem:[%s3557_s0 + $0x36] sm:$0x1]  ;;  %v59_v62 = vld [vmem:[%s3557_s0 + $0x38] sm:$0x1] }
  0x10   :  { %v60_v63 = vld [vmem:[%s3557_s0 + $0x3a] sm:$0x1]  ;;  %v61_v2 = vld [vmem:[%s3557_s0 + $0x3c] sm:$0x1]  ;;  %v62_v3 = vld [vmem:[%s3557_s0 + $0x3e] sm:$0x1] }
  0x12   :  { %536 = vmatpush.bf16.msra.mxu0 %v2138_v6  ;;  %1035 = vmatpush.bf16.msra.mxu1 %v2138_v6 }
  0x13   :  { %1541 = vmatpush.bf16.msra.mxu2 %v2138_v6  ;;  %2047 = vmatpush.bf16.msra.mxu3 %v2138_v6  ;;  %v2210_v16 = vld.sshfl [vmem:[#allocation1] sm:$0xff pattern:$0x73625140]  ;;  %v316_v6 = vunpack.c.l.b16 %v2199_v12 }
  0x14   :  { %v2212_v17 = vld.sshfl [vmem:[#allocation1 + $0x20] sm:$0xff pattern:$0x73625140]  ;;  %108 = vst [vmem:[#allocation1] ss:$4 sm:$0xff] %v35_v14 }
  0x15   :  { %112 = vst [vmem:[#allocation1 + $0x20] ss:$4 sm:$0xff] %v36_v15  ;;  %v318_v9 = vunpack.c.l.b16 %v2212_v17 }
  0x16   :  { %537 = vmatpush.bf16.msra.mxu0 %v2137_v7  ;;  %1036 = vmatpush.bf16.msra.mxu1 %v2137_v7 }
  0x17   :  { %1542 = vmatpush.bf16.msra.mxu2 %v2137_v7  ;;  %2048 = vmatpush.bf16.msra.mxu3 %v2137_v7  ;;  %v317_v7 = vunpack.c.l.b16 %v2210_v16 }
  0x1a   :  { %538 = vmatpush.bf16.msra.mxu0 %v2136_v11  ;;  %1037 = vmatpush.bf16.msra.mxu1 %v2136_v11 }
  0x1b   :  { %1543 = vmatpush.bf16.msra.mxu2 %v2136_v11  ;;  %2049 = vmatpush.bf16.msra.mxu3 %v2136_v11  ;;  %v2220_v20 = vld.sshfl [vmem:[#allocation1] sm:$0xff pattern:$0x73625140] }
  0x1c   :  { %v2222_v21 = vld.sshfl [vmem:[#allocation1 + $0x20] sm:$0xff pattern:$0x73625140]  ;;  %116 = vst [vmem:[#allocation1] ss:$4 sm:$0xff] %v37_v18  ;;  %v319_v11 = vunpack.c.l.b16 %v2220_v20 }
  0x1d   :  { %120 = vst [vmem:[#allocation1 + $0x20] ss:$4 sm:$0xff] %v38_v19 }
  0x1e   :  { %539 = vmatpush.bf16.msra.mxu0 %v2135_v13  ;;  %1038 = vmatpush.bf16.msra.mxu1 %v2135_v13 }
  0x1f   :  { %1544 = vmatpush.bf16.msra.mxu2 %v2135_v13  ;;  %2050 = vmatpush.bf16.msra.mxu3 %v2135_v13  ;;  %v320_v13 = vunpack.c.l.b16 %v2222_v21  ;;  %v374_v21 = vrot.slane %v317_v7, 6 }
  0x23   :  { %v2230_v24 = vld.sshfl [vmem:[#allocation1] sm:$0xff pattern:$0x73625140] }
  0x24   :  { %v2232_v25 = vld.sshfl [vmem:[#allocation1 + $0x20] sm:$0xff pattern:$0x73625140]  ;;  %124 = vst [vmem:[#allocation1] ss:$4 sm:$0xff] %v39_v22  ;;  %v321_v14 = vunpack.c.l.b16 %v2230_v24  ;;  %v371_v22 = vrot.slane %v316_v6, 7 }
  0x25   :  { %128 = vst [vmem:[#allocation1 + $0x20] ss:$4 sm:$0xff] %v40_v23  ;;  %v322_v15 = vunpack.c.l.b16 %v2232_v25  ;;  %v63_v23 = vld [vmem:[%s3557_s0 + $0x40] sm:$0x1]  ;;  %v377_v24 = vrot.slane %v318_v9, 5  ;;  %v380_v25 = vrot.slane %v319_v11, 4 }
  0x26   :  { %v67_v9 = vld [vmem:[%s3557_s0 + $0x48] sm:$0x1]  ;;  %v68_v11 = vld [vmem:[%s3557_s0 + $0x4a] sm:$0x1] }
  0x2b   :  { %v2240_v28 = vld.sshfl [vmem:[#allocation1] sm:$0xff pattern:$0x73625140] }
  0x2c   :  { %v2242_v29 = vld.sshfl [vmem:[#allocation1 + $0x20] sm:$0xff pattern:$0x73625140]  ;;  %132 = vst [vmem:[#allocation1] ss:$4 sm:$0xff] %v41_v26  ;;  %v323_v18 = vunpack.c.l.b16 %v2240_v28  ;;  %v383_v28 = vrot.slane %v320_v13, 3 }
  0x2d   :  { %136 = vst [vmem:[#allocation1 + $0x20] ss:$4 sm:$0xff] %v42_v27  ;;  %v324_v19 = vunpack.c.l.b16 %v2242_v29  ;;  %v64_v26 = vld [vmem:[%s3557_s0 + $0x42] sm:$0x1]  ;;  %v373_v27 = vsel %vm372_vm0, %v371_v22, %v315_v8  ;;  %v73_v22 = vld [vmem:[%s3557_s0 + $0x54] sm:$0x1] }
  0x33   :  { %v2250_v32 = vld.sshfl [vmem:[#allocation1] sm:$0xff pattern:$0x73625140] }
  0x34   :  { %v2252_v33 = vld.sshfl [vmem:[#allocation1 + $0x20] sm:$0xff pattern:$0x73625140]  ;;  %140 = vst [vmem:[#allocation1] ss:$4 sm:$0xff] %v43_v30  ;;  %v325_v12 = vunpack.c.l.b16 %v2250_v32  ;;  %v376_v30 = vsel %vm375_vm1, %v374_v21, %v373_v27 }
  0x35   :  { %144 = vst [vmem:[#allocation1 + $0x20] ss:$4 sm:$0xff] %v44_v31  ;;  %v326_v16 = vunpack.c.l.b16 %v2252_v33  ;;  %v386_v31 = vrot.slane %v321_v14, 2  ;;  %v74_v21 = vld [vmem:[%s3557_s0 + $0x56] sm:$0x1] }
  0x3b   :  { %v2260_v36 = vld.sshfl [vmem:[#allocation1] sm:$0xff pattern:$0x73625140] }
  0x3c   :  { %v2262_v37 = vld.sshfl [vmem:[#allocation1 + $0x20] sm:$0xff pattern:$0x73625140]  ;;  %148 = vst [vmem:[#allocation1] ss:$4 sm:$0xff] %v45_v34  ;;  %v327_v10 = vunpack.c.l.b16 %v2260_v36  ;;  %v379_v34 = vsel %vm378_vm2, %v377_v24, %v376_v30 }
  0x3d   :  { %152 = vst [vmem:[#allocation1 + $0x20] ss:$4 sm:$0xff] %v46_v35  ;;  %v328_v17 = vunpack.c.l.b16 %v2262_v37  ;;  %v392_v35 = vrot.slane %v324_v19, 7  ;;  %v382_v36 = vsel %vm381_vm3, %v380_v25, %v379_v34  ;;  %v394_v37 = vrot.slane %v325_v12, 6  ;;  %v75_v25 = vld [vmem:[%s3557_s0 + $0x58] sm:$0x1] }
  0x3e   :  { %v77_v30 = vld [vmem:[%s3557_s0 + $0x5c] sm:$0x1] }
  0x43   :  { %v2270_v40 = vld.sshfl [vmem:[#allocation1] sm:$0xff pattern:$0x73625140] }
  0x44   :  { %v2272_v41 = vld.sshfl [vmem:[#allocation1 + $0x20] sm:$0xff pattern:$0x73625140]  ;;  %156 = vst [vmem:[#allocation1] ss:$4 sm:$0xff] %v47_v38  ;;  %v329_v20 = vunpack.c.l.b16 %v2270_v40  ;;  %v396_v38 = vrot.slane %v326_v16, 5  ;;  %v385_v40 = vsel %vm384_vm4, %v383_v28, %v382_v36 }
  0x45   :  { %160 = vst [vmem:[#allocation1 + $0x20] ss:$4 sm:$0xff] %v48_v39  ;;  %v330_v33 = vunpack.c.l.b16 %v2272_v41  ;;  %v398_v39 = vrot.slane %v327_v10, 4  ;;  %v71_v16 = vld [vmem:[%s3557_s0 + $0x50] sm:$0x1] }
  0x46   :  { %v402_v41 = vrot.slane %v329_v20, 2  ;;  %v72_v10 = vld [vmem:[%s3557_s0 + $0x52] sm:$0x1]  ;;  %v80_v36 = vld [vmem:[%s3557_s0 + $0x62] sm:$0x1] }
  0x4b   :  { %v2280_v44 = vld.sshfl [vmem:[#allocation1] sm:$0xff pattern:$0x73625140] }
  0x4c   :  { %v2282_v45 = vld.sshfl [vmem:[#allocation1 + $0x20] sm:$0xff pattern:$0x73625140]  ;;  %164 = vst [vmem:[#allocation1] ss:$4 sm:$0xff] %v49_v42  ;;  %v389_v42 = vrot.slane %v322_v15, 1 }
  0x4d   :  { %168 = vst [vmem:[#allocation1 + $0x20] ss:$4 sm:$0xff] %v50_v43  ;;  %v393_v43 = vsel %vm372_vm0, %v392_v35, %v323_v18  ;;  %v69_v15 = vld [vmem:[%s3557_s0 + $0x4c] sm:$0x1]  ;;  %v70_v18 = vld [vmem:[%s3557_s0 + $0x4e] sm:$0x1] }
  0x4e   :  { %v79_v35 = vld [vmem:[%s3557_s0 + $0x60] sm:$0x1] }
  0x53   :  { %v2290_v48 = vld.sshfl [vmem:[#allocation1] sm:$0xff pattern:$0x73625140] }
  0x54   :  { %v2292_v49 = vld.sshfl [vmem:[#allocation1 + $0x20] sm:$0xff pattern:$0x73625140]  ;;  %172 = vst [vmem:[#allocation1] ss:$4 sm:$0xff] %v51_v46  ;;  %v400_v46 = vrot.slane %v328_v17, 3 }
  0x55   :  { %176 = vst [vmem:[#allocation1 + $0x20] ss:$4 sm:$0xff] %v52_v47  ;;  %v388_v47 = vsel %vm387_vm5, %v386_v31, %v385_v40  ;;  %v78_v31 = vld [vmem:[%s3557_s0 + $0x5e] sm:$0x1]  ;;  %v82_v40 = vld [vmem:[%s3557_s0 + $0x66] sm:$0x1] }
  0x5b   :  { %v2300_v52 = vld.sshfl [vmem:[#allocation1] sm:$0xff pattern:$0x73625140] }
  0x5c   :  { %v2302_v53 = vld.sshfl [vmem:[#allocation1 + $0x20] sm:$0xff pattern:$0x73625140]  ;;  %180 = vst [vmem:[#allocation1] ss:$4 sm:$0xff] %v53_v50  ;;  %v395_v50 = vsel %vm375_vm1, %v394_v37, %v393_v43 }
  0x5d   :  { %184 = vst [vmem:[#allocation1 + $0x20] ss:$4 sm:$0xff] %v54_v51  ;;  %v397_v51 = vsel %vm378_vm2, %v396_v38, %v395_v50 }
  0x63   :  { %v2310_v56 = vld.sshfl [vmem:[#allocation1] sm:$0xff pattern:$0x73625140] }
  0x64   :  { %v2312_v57 = vld.sshfl [vmem:[#allocation1 + $0x20] sm:$0xff pattern:$0x73625140]  ;;  %188 = vst [vmem:[#allocation1] ss:$4 sm:$0xff] %v55_v54  ;;  %v404_v54 = vrot.slane %v330_v33, 1 }
  0x65   :  { %192 = vst [vmem:[#allocation1 + $0x20] ss:$4 sm:$0xff] %v56_v55  ;;  %v65_v55 = vld [vmem:[%s3557_s0 + $0x44] sm:$0x1] }
  0x6b   :  { %v2320_v60 = vld.sshfl [vmem:[#allocation1] sm:$0xff pattern:$0x73625140] }
  0x6c   :  { %v2322_v61 = vld.sshfl [vmem:[#allocation1 + $0x20] sm:$0xff pattern:$0x73625140]  ;;  %196 = vst [vmem:[#allocation1] ss:$4 sm:$0xff] %v57_v58  ;;  %v399_v58 = vsel %vm381_vm3, %v398_v39, %v397_v51 }
  0x6d   :  { %200 = vst [vmem:[#allocation1 + $0x20] ss:$4 sm:$0xff] %v58_v59  ;;  %v66_v59 = vld [vmem:[%s3557_s0 + $0x46] sm:$0x1]  ;;  %v81_v39 = vld [vmem:[%s3557_s0 + $0x64] sm:$0x1] }
  0x6e   :  { %v85_v51 = vld [vmem:[%s3557_s0 + $0x6c] sm:$0x1] }
  0x73   :  { %v2330_v0 = vld.sshfl [vmem:[#allocation1] sm:$0xff pattern:$0x73625140] }
  0x74   :  { %v2332_v1 = vld.sshfl [vmem:[#allocation1 + $0x20] sm:$0xff pattern:$0x73625140]  ;;  %204 = vst [vmem:[#allocation1] ss:$4 sm:$0xff] %v59_v62  ;;  %v391_v62 = vsel %vm390_vm6, %v389_v42, %v388_v47 }
  0x75   :  { %208 = vst [vmem:[#allocation1 + $0x20] ss:$4 sm:$0xff] %v60_v63  ;;  %v401_v63 = vsel %vm384_vm4, %v400_v46, %v399_v58  ;;  %v83_v46 = vld [vmem:[%s3557_s0 + $0x68] sm:$0x1]  ;;  %v84_v47 = vld [vmem:[%s3557_s0 + $0x6a] sm:$0x1] }
  0x7b   :  { %v2340_v4 = vld.sshfl [vmem:[#allocation1] sm:$0xff pattern:$0x73625140] }
  0x7c   :  { %v2342_v5 = vld.sshfl [vmem:[#allocation1 + $0x20] sm:$0xff pattern:$0x73625140]  ;;  %212 = vst [vmem:[#allocation1] ss:$4 sm:$0xff] %v61_v2 }
  0x7d   :  { %216 = vst [vmem:[#allocation1 + $0x20] ss:$4 sm:$0xff] %v62_v3  ;;  %v403_v3 = vsel %vm387_vm5, %v402_v41, %v401_v63 }
  0x7e   :  { %v405_v7 = vsel %vm390_vm6, %v404_v54, %v403_v3  ;;  %v86_v54 = vld [vmem:[%s3557_s0 + $0x6e] sm:$0x1] }
  0x7f   :  { %v476_v8 = vpack.c.b16 %v405_v7, %v391_v62  ;;  %v589_v62 = vld [vmem:[%s3557_s0 + $0x2] sm:$0x1]  ;;  %v590_v7 = vld [vmem:[%s3557_s0 + $0x4] sm:$0x1] }
  0x81   :  { %540 = vmatmul.bf16.vlgmr.msra.gmra.mxu0 %v476_v8  ;;  %v591_v8 = vld [vmem:[%s3557_s0 + $0x6] sm:$0x1] }
  0x83   :  { %v2366_v29 = vld.sshfl [vmem:[#allocation1] sm:$0xff pattern:$0x73625140] }
  0x84   :  { %v2369_v32 = vld.sshfl [vmem:[#allocation1 + $0x20] sm:$0xff pattern:$0x73625140]  ;;  %220 = vst [vmem:[#allocation1] ss:$4 sm:$0xff] %v63_v23 }
  0x85   :  { %224 = vst [vmem:[#allocation1 + $0x20] ss:$4 sm:$0xff] %v64_v26  ;;  %v76_v26 = vld [vmem:[%s3557_s0 + $0x5a] sm:$0x1] }
  0x8b   :  { %v2388_v2 = vld.sshfl [vmem:[#allocation1] sm:$0xff pattern:$0x73625140] }
  0x8c   :  { %v2391_v6 = vld.sshfl [vmem:[#allocation1 + $0x20] sm:$0xff pattern:$0x73625140]  ;;  %228 = vst [vmem:[#allocation1] ss:$4 sm:$0xff] %v65_v55 }
  0x8d   :  { %232 = vst [vmem:[#allocation1 + $0x20] ss:$4 sm:$0xff] %v66_v59  ;;  %v588_v59 = vld [vmem:[%s3557_s0] sm:$0x1] }
  0x93   :  { %v2400_v13 = vld.sshfl [vmem:[#allocation1] sm:$0xff pattern:$0x73625140] }
  0x94   :  { %v2402_v14 = vld.sshfl [vmem:[#allocation1 + $0x20] sm:$0xff pattern:$0x73625140]  ;;  %236 = vst [vmem:[#allocation1] ss:$4 sm:$0xff] %v67_v9 }
  0x95   :  { %240 = vst [vmem:[#allocation1 + $0x20] ss:$4 sm:$0xff] %v68_v11 }
  0x9b   :  { %v2410_v19 = vld.sshfl [vmem:[#allocation1] sm:$0xff pattern:$0x73625140] }
  0x9c   :  { %v2412_v12 = vld.sshfl [vmem:[#allocation1 + $0x20] sm:$0xff pattern:$0x73625140]  ;;  %244 = vst [vmem:[#allocation1] ss:$4 sm:$0xff] %v69_v15 }
  0x9d   :  { %3560 = vst [vmem:[#allocation2_spill] sm:$0xff] %v2412_v12  ;;  %v592_v15 = vld [vmem:[%s3557_s0 + $0x8] sm:$0x1] }
  0x9e   :  { %248 = vst [vmem:[#allocation1 + $0x20] ss:$4 sm:$0xff] %v70_v18  ;;  %v593_v18 = vld [vmem:[%s3557_s0 + $0xa] sm:$0x1] }
  0xa3   :  { %v2420_v17 = vld.sshfl [vmem:[#allocation1] sm:$0xff pattern:$0x73625140] }
  0xa4   :  { %3561 = vst [vmem:[#allocation3_spill] sm:$0xff] %v2420_v17 }
  0xa5   :  { %v2422_v20 = vld.sshfl [vmem:[#allocation1 + $0x20] sm:$0xff pattern:$0x73625140]  ;;  %252 = vst [vmem:[#allocation1] ss:$4 sm:$0xff] %v71_v16 }
  0xa6   :  { %3562 = vst [vmem:[#allocation4_spill] sm:$0xff] %v2422_v20 }
  0xa7   :  { %256 = vst [vmem:[#allocation1 + $0x20] ss:$4 sm:$0xff] %v72_v10 }
  0xac   :  { %v2430_v23 = vld.sshfl [vmem:[#allocation1] sm:$0xff pattern:$0x73625140] }
  0xad   :  { %3563 = vst [vmem:[#allocation5_spill] sm:$0xff] %v2430_v23 }
  0xae   :  { %v2432_v24 = vld.sshfl [vmem:[#allocation1 + $0x20] sm:$0xff pattern:$0x73625140]  ;;  %260 = vst [vmem:[#allocation1] ss:$4 sm:$0xff] %v73_v22 }
  0xaf   :  { %3564 = vst [vmem:[#allocation6_spill] sm:$0xff] %v2432_v24  ;;  %v594_v22 = vld [vmem:[%s3557_s0 + $0xc] sm:$0x1] }
  0xb0   :  { %264 = vst [vmem:[#allocation1 + $0x20] ss:$4 sm:$0xff] %v74_v21  ;;  %v595_v21 = vld [vmem:[%s3557_s0 + $0xe] sm:$0x1] }
  0xb5   :  { %v2440_v27 = vld.sshfl [vmem:[#allocation1] sm:$0xff pattern:$0x73625140] }
  0xb6   :  { %3565 = vst [vmem:[#allocation7_spill] sm:$0xff] %v2440_v27 }
  0xb7   :  { %v2442_v28 = vld.sshfl [vmem:[#allocation1 + $0x20] sm:$0xff pattern:$0x73625140]  ;;  %268 = vst [vmem:[#allocation1] ss:$4 sm:$0xff] %v75_v25 }
  0xb8   :  { %3566 = vst [vmem:[#allocation8_spill] sm:$0xff] %v2442_v28 }
  0xb9   :  { %272 = vst [vmem:[#allocation1 + $0x20] ss:$4 sm:$0xff] %v76_v26 }
  0xbe   :  { %v2450_v33 = vld.sshfl [vmem:[#allocation1] sm:$0xff pattern:$0x73625140] }
  0xbf   :  { %3567 = vst [vmem:[#allocation9_spill] sm:$0xff] %v2450_v33 }
  0xc0   :  { %v2452_v34 = vld.sshfl [vmem:[#allocation1 + $0x20] sm:$0xff pattern:$0x73625140]  ;;  %276 = vst [vmem:[#allocation1] ss:$4 sm:$0xff] %v77_v30 }
  0xc1   :  { %3568 = vst [vmem:[#allocation10_spill] sm:$0xff] %v2452_v34  ;;  %v596_v30 = vld [vmem:[%s3557_s0 + $0x10] sm:$0x1] }
  0xc2   :  { %280 = vst [vmem:[#allocation1 + $0x20] ss:$4 sm:$0xff] %v78_v31  ;;  %v597_v31 = vld [vmem:[%s3557_s0 + $0x12] sm:$0x1] }
  0xc7   :  { %v2460_v37 = vld.sshfl [vmem:[#allocation1] sm:$0xff pattern:$0x73625140] }
  0xc8   :  { %3569 = vst [vmem:[#allocation11_spill] sm:$0xff] %v2460_v37 }
  0xc9   :  { %v2462_v38 = vld.sshfl [vmem:[#allocation1 + $0x20] sm:$0xff pattern:$0x73625140]  ;;  %284 = vst [vmem:[#allocation1] ss:$4 sm:$0xff] %v79_v35 }
  0xca   :  { %3570 = vst [vmem:[#allocation12_spill] sm:$0xff] %v2462_v38 }
  0xcb   :  { %288 = vst [vmem:[#allocation1 + $0x20] ss:$4 sm:$0xff] %v80_v36 }
  0xd0   :  { %v2470_v42 = vld.sshfl [vmem:[#allocation1] sm:$0xff pattern:$0x73625140] }
  0xd1   :  { %3571 = vst [vmem:[#allocation13_spill] sm:$0xff] %v2470_v42 }
  0xd2   :  { %v2472_v43 = vld.sshfl [vmem:[#allocation1 + $0x20] sm:$0xff pattern:$0x73625140]  ;;  %292 = vst [vmem:[#allocation1] ss:$4 sm:$0xff] %v81_v39 }
  0xd3   :  { %3572 = vst [vmem:[#allocation14_spill] sm:$0xff] %v2472_v43  ;;  %v598_v39 = vld [vmem:[%s3557_s0 + $0x14] sm:$0x1]  ;;  %v632_v43 = vld [vmem:[%s3557_s0 + $0x58] sm:$0x1] }
  0xd4   :  { %296 = vst [vmem:[#allocation1 + $0x20] ss:$4 sm:$0xff] %v82_v40  ;;  %v599_v40 = vld [vmem:[%s3557_s0 + $0x16] sm:$0x1] }
  0xd9   :  { %v2480_v50 = vld.sshfl [vmem:[#allocation1] sm:$0xff pattern:$0x73625140] }
  0xda   :  { %3573 = vst [vmem:[#allocation15_spill] sm:$0xff] %v2480_v50 }
  0xdb   :  { %v2482_v41 = vld.sshfl [vmem:[#allocation1 + $0x20] sm:$0xff pattern:$0x73625140]  ;;  %300 = vst [vmem:[#allocation1] ss:$4 sm:$0xff] %v83_v46 }
  0xdc   :  { %3574 = vst [vmem:[#allocation16_spill] sm:$0xff] %v2482_v41  ;;  %v630_v41 = vld [vmem:[%s3557_s0 + $0x54] sm:$0x1] }
  0xdd   :  { %304 = vst [vmem:[#allocation1 + $0x20] ss:$4 sm:$0xff] %v84_v47 }
  0xe2   :  { %v2490_v55 = vld.sshfl [vmem:[#allocation1] sm:$0xff pattern:$0x73625140] }
  0xe3   :  { %3575 = vst [vmem:[#allocation17_spill] sm:$0xff] %v2490_v55 }
  0xe4   :  { %v2492_v58 = vld.sshfl [vmem:[#allocation1 + $0x20] sm:$0xff pattern:$0x73625140]  ;;  %308 = vst [vmem:[#allocation1] ss:$4 sm:$0xff] %v85_v51 }
  0xe5   :  { %3576 = vst [vmem:[#allocation18_spill] sm:$0xff] %v2492_v58  ;;  %v628_v58 = vld [vmem:[%s3557_s0 + $0x50] sm:$0x1] }
  0xe6   :  { %312 = vst [vmem:[#allocation1 + $0x20] ss:$4 sm:$0xff] %v86_v54 }
  0xeb   :  { %v2500_v63 = vld.sshfl [vmem:[#allocation1] sm:$0xff pattern:$0x73625140] }
  0xec   :  { %3577 = vst [vmem:[#allocation19_spill] sm:$0xff] %v2500_v63  ;;  %v602_v63 = vld [vmem:[%s3557_s0 + $0x1c] sm:$0x1] }
  0xed   :  { %v2502_v3 = vld.sshfl [vmem:[#allocation1 + $0x20] sm:$0xff pattern:$0x73625140]  ;;  %645 = vst [vmem:[#allocation1] ss:$4 sm:$0xff] %v588_v59 }
  0xee   :  { %3578 = vst [vmem:[#allocation20_spill] sm:$0xff] %v2502_v3  ;;  %v600_v59 = vld [vmem:[%s3557_s0 + $0x18] sm:$0x1] }
  0xef   :  { %650 = vst [vmem:[#allocation1 + $0x20] ss:$4 sm:$0xff] %v589_v62 }
  0xf4   :  { %v646_v9 = vld.sshfl [vmem:[#allocation1] sm:$0xff pattern:$0x73625140] }
  0xf5   :  { %654 = vst [vmem:[#allocation1] ss:$4 sm:$0xff] %v590_v7  ;;  %v869_v51 = vunpack.c.l.b16 %v646_v9 }
  0xf6   :  { %v651_v11 = vld.sshfl [vmem:[#allocation1 + $0x20] sm:$0xff pattern:$0x73625140] }
  0xf7   :  { %658 = vst [vmem:[#allocation1 + $0x20] ss:$4 sm:$0xff] %v591_v8  ;;  %v870_v62 = vunpack.c.l.b16 %v651_v11  ;;  %v925_v8 = vrot.slane %v869_v51, 1 }
  0xfc   :  { %v655_v16 = vld.sshfl [vmem:[#allocation1] sm:$0xff pattern:$0x73625140] }
  0xfd   :  { %662 = vst [vmem:[#allocation1] ss:$4 sm:$0xff] %v592_v15  ;;  %v871_v54 = vunpack.c.l.b16 %v655_v16  ;;  %v601_v15 = vld [vmem:[%s3557_s0 + $0x1a] sm:$0x1]  ;;  %v926_v16 = vsel %vm372_vm0, %v870_v62, %v925_v8 }
  0xfe   :  { %v659_v10 = vld.sshfl [vmem:[#allocation1 + $0x20] sm:$0xff pattern:$0x73625140] }
  0xff   :  { %666 = vst [vmem:[#allocation1 + $0x20] ss:$4 sm:$0xff] %v593_v18 }
 0x104   :  { %v663_v25 = vld.sshfl [vmem:[#allocation1] sm:$0xff pattern:$0x73625140] }
 0x105   :  { %670 = vst [vmem:[#allocation1] ss:$4 sm:$0xff] %v594_v22  ;;  %v872_v22 = vunpack.c.l.b16 %v659_v10 }
 0x106   :  { %v667_v26 = vld.sshfl [vmem:[#allocation1 + $0x20] sm:$0xff pattern:$0x73625140] }
 0x107   :  { %674 = vst [vmem:[#allocation1 + $0x20] ss:$4 sm:$0xff] %v595_v21  ;;  %v929_v11 = vrot.slane %v872_v22, 6  ;;  %v874_v10 = vunpack.c.l.b16 %v667_v26 }
 0x109   :  { %v933_v26 = vrot.slane %v874_v10, 4 }
 0x10c   :  { %v671_v35 = vld.sshfl [vmem:[#allocation1] sm:$0xff pattern:$0x73625140] }
 0x10d   :  { %678 = vst [vmem:[#allocation1] ss:$4 sm:$0xff] %v596_v30 }
 0x10e   :  { %v675_v36 = vld.sshfl [vmem:[#allocation1 + $0x20] sm:$0xff pattern:$0x73625140] }
 0x10f   :  { %682 = vst [vmem:[#allocation1 + $0x20] ss:$4 sm:$0xff] %v597_v31  ;;  %v927_v31 = vrot.slane %v871_v54, 7 }
 0x114   :  { %v679_v46 = vld.sshfl [vmem:[#allocation1] sm:$0xff pattern:$0x73625140] }
 0x115   :  { %686 = vst [vmem:[#allocation1] ss:$4 sm:$0xff] %v598_v39  ;;  %v877_v7 = vunpack.c.l.b16 %v679_v46  ;;  %v928_v46 = vsel %vm375_vm1, %v927_v31, %v926_v16 }
 0x116   :  { %v683_v47 = vld.sshfl [vmem:[#allocation1 + $0x20] sm:$0xff pattern:$0x73625140] }
 0x117   :  { %690 = vst [vmem:[#allocation1 + $0x20] ss:$4 sm:$0xff] %v599_v40  ;;  %v878_v9 = vunpack.c.l.b16 %v683_v47  ;;  %v939_v39 = vrot.slane %v877_v7, 1  ;;  %v873_v40 = vunpack.c.l.b16 %v663_v25  ;;  %v603_v47 = vld [vmem:[%s3557_s0 + $0x1e] sm:$0x1]  ;;  %v930_v25 = vsel %vm378_vm2, %v929_v11, %v928_v46 }
 0x119   :  { %v931_v54 = vrot.slane %v873_v40, 5  ;;  %v605_v40 = vld [vmem:[%s3557_s0 + $0x22] sm:$0x1] }
 0x11c   :  { %v687_v18 = vld.sshfl [vmem:[#allocation1] sm:$0xff pattern:$0x73625140] }
 0x11d   :  { %694 = vst [vmem:[#allocation1] ss:$4 sm:$0xff] %v600_v59  ;;  %v879_v30 = vunpack.c.l.b16 %v687_v18  ;;  %v940_v59 = vsel %vm372_vm0, %v878_v9, %v939_v39  ;;  %v876_v9 = vunpack.c.l.b16 %v675_v36 }
 0x11e   :  { %v691_v21 = vld.sshfl [vmem:[#allocation1 + $0x20] sm:$0xff pattern:$0x73625140] }
 0x11f   :  { %698 = vst [vmem:[#allocation1 + $0x20] ss:$4 sm:$0xff] %v601_v15  ;;  %v880_v3 = vunpack.c.l.b16 %v691_v21  ;;  %v941_v51 = vrot.slane %v879_v30, 7  ;;  %v875_v15 = vunpack.c.l.b16 %v671_v35  ;;  %v932_v30 = vsel %vm381_vm3, %v931_v54, %v930_v25 }
 0x121   :  { %v943_v7 = vrot.slane %v880_v3, 6  ;;  %v942_v22 = vsel %vm375_vm1, %v941_v51, %v940_v59  ;;  %v935_v39 = vrot.slane %v875_v15, 3  ;;  %v604_v3 = vld [vmem:[%s3557_s0 + $0x20] sm:$0x1]  ;;  %v937_v51 = vrot.slane %v876_v9, 2 }
 0x122   :  { %v609_v9 = vld [vmem:[%s3557_s0 + $0x2a] sm:$0x1] }
 0x123   :  { %v944_v16 = vsel %vm378_vm2, %v943_v7, %v942_v22 }
 0x124   :  { %v695_v62 = vld.sshfl [vmem:[#allocation1] sm:$0xff pattern:$0x73625140] }
 0x125   :  { %702 = vst [vmem:[#allocation1] ss:$4 sm:$0xff] %v602_v63  ;;  %v881_v18 = vunpack.c.l.b16 %v695_v62  ;;  %v934_v63 = vsel %vm384_vm4, %v933_v26, %v932_v30 }
 0x126   :  { %v699_v8 = vld.sshfl [vmem:[#allocation1 + $0x20] sm:$0xff pattern:$0x73625140]  ;;  %v936_v59 = vsel %vm387_vm5, %v935_v39, %v934_v63  ;;  %v611_v63 = vld [vmem:[%s3557_s0 + $0x2e] sm:$0x1] }
 0x127   :  { %706 = vst [vmem:[#allocation1 + $0x20] ss:$4 sm:$0xff] %v603_v47  ;;  %v882_v21 = vunpack.c.l.b16 %v699_v8  ;;  %v945_v31 = vrot.slane %v881_v18, 5  ;;  %v938_v25 = vsel %vm390_vm6, %v937_v51, %v936_v59  ;;  %v606_v18 = vld [vmem:[%s3557_s0 + $0x24] sm:$0x1] }
 0x128   :  { %v615_v59 = vld [vmem:[%s3557_s0 + $0x36] sm:$0x1] }
 0x129   :  { %v947_v35 = vrot.slane %v882_v21, 4  ;;  %v946_v11 = vsel %vm381_vm3, %v945_v31, %v944_v16  ;;  %v607_v21 = vld [vmem:[%s3557_s0 + $0x26] sm:$0x1]  ;;  %v608_v31 = vld [vmem:[%s3557_s0 + $0x28] sm:$0x1] }
 0x12b   :  { %v948_v54 = vsel %vm384_vm4, %v947_v35, %v946_v11  ;;  %v612_v11 = vld [vmem:[%s3557_s0 + $0x30] sm:$0x1] }
 0x12c   :  { %v703_v46 = vld.sshfl [vmem:[#allocation1] sm:$0xff pattern:$0x73625140] }
 0x12d   :  { %710 = vst [vmem:[#allocation1] ss:$4 sm:$0xff] %v604_v3  ;;  %v883_v36 = vunpack.c.l.b16 %v703_v46  ;;  %v610_v3 = vld [vmem:[%s3557_s0 + $0x2c] sm:$0x1]  ;;  %v613_v46 = vld [vmem:[%s3557_s0 + $0x32] sm:$0x1] }
 0x12e   :  { %v707_v10 = vld.sshfl [vmem:[#allocation1 + $0x20] sm:$0xff pattern:$0x73625140] }
 0x12f   :  { %714 = vst [vmem:[#allocation1 + $0x20] ss:$4 sm:$0xff] %v605_v40  ;;  %v884_v47 = vunpack.c.l.b16 %v707_v10  ;;  %v949_v62 = vrot.slane %v883_v36, 3  ;;  %v614_v36 = vld [vmem:[%s3557_s0 + $0x34] sm:$0x1] }
 0x131   :  { %v951_v7 = vrot.slane %v884_v47, 2  ;;  %v950_v8 = vsel %vm387_vm5, %v949_v62, %v948_v54  ;;  %v616_v62 = vld [vmem:[%s3557_s0 + $0x38] sm:$0x1] }
 0x133   :  { %v952_v15 = vsel %vm390_vm6, %v951_v7, %v950_v8 }
 0x134   :  { %v1023_v22 = vpack.c.b16 %v952_v15, %v938_v25  ;;  %v2572_v26 = vld.sshfl [vmem:[#allocation1] sm:$0xff pattern:$0x73625140]  ;;  %v617_v25 = vld [vmem:[%s3557_s0 + $0x3a] sm:$0x1] }
 0x135   :  { %718 = vst [vmem:[#allocation1] ss:$4 sm:$0xff] %v606_v18  ;;  %v618_v15 = vld [vmem:[%s3557_s0 + $0x3c] sm:$0x1]  ;;  %v619_v18 = vld [vmem:[%s3557_s0 + $0x3e] sm:$0x1] }
 0x136   :  { %v2574_v30 = vld.sshfl [vmem:[#allocation1 + $0x20] sm:$0xff pattern:$0x73625140]  ;;  %1039 = vmatmul.bf16.vlgmr.msra.gmra.mxu1 %v1023_v22 }
 0x137   :  { %722 = vst [vmem:[#allocation1 + $0x20] ss:$4 sm:$0xff] %v607_v21 }
 0x13c   :  { %v2582_v16 = vld.sshfl [vmem:[#allocation1] sm:$0xff pattern:$0x73625140] }
 0x13d   :  { %726 = vst [vmem:[#allocation1] ss:$4 sm:$0xff] %v608_v31  ;;  %v620_v31 = vld [vmem:[%s3557_s0 + $0x40] sm:$0x1] }
 0x13e   :  { %v2584_v39 = vld.sshfl [vmem:[#allocation1 + $0x20] sm:$0xff pattern:$0x73625140] }
 0x13f   :  { %730 = vst [vmem:[#allocation1 + $0x20] ss:$4 sm:$0xff] %v609_v9  ;;  %v621_v9 = vld [vmem:[%s3557_s0 + $0x42] sm:$0x1] }
 0x144   :  { %v2592_v35 = vld.sshfl [vmem:[#allocation1] sm:$0xff pattern:$0x73625140] }
 0x145   :  { %734 = vst [vmem:[#allocation1] ss:$4 sm:$0xff] %v610_v3 }
 0x146   :  { %v2594_v40 = vld.sshfl [vmem:[#allocation1 + $0x20] sm:$0xff pattern:$0x73625140] }
 0x147   :  { %738 = vst [vmem:[#allocation1 + $0x20] ss:$4 sm:$0xff] %v611_v63 }
 0x14c   :  { %v2602_v51 = vld.sshfl [vmem:[#allocation1] sm:$0xff pattern:$0x73625140] }
 0x14d   :  { %742 = vst [vmem:[#allocation1] ss:$4 sm:$0xff] %v612_v11  ;;  %v622_v11 = vld [vmem:[%s3557_s0 + $0x44] sm:$0x1] }
 0x14e   :  { %v2604_v10 = vld.sshfl [vmem:[#allocation1 + $0x20] sm:$0xff pattern:$0x73625140] }
 0x14f   :  { %746 = vst [vmem:[#allocation1 + $0x20] ss:$4 sm:$0xff] %v613_v46  ;;  %v623_v46 = vld [vmem:[%s3557_s0 + $0x46] sm:$0x1] }
 0x154   :  { %v2612_v47 = vld.sshfl [vmem:[#allocation1] sm:$0xff pattern:$0x73625140] }
 0x155   :  { %750 = vst [vmem:[#allocation1] ss:$4 sm:$0xff] %v614_v36 }
 0x156   :  { %v2614_v54 = vld.sshfl [vmem:[#allocation1 + $0x20] sm:$0xff pattern:$0x73625140] }
 0x157   :  { %754 = vst [vmem:[#allocation1 + $0x20] ss:$4 sm:$0xff] %v615_v59 }
 0x15c   :  { %v2622_v7 = vld.sshfl [vmem:[#allocation1] sm:$0xff pattern:$0x73625140] }
 0x15d   :  { %758 = vst [vmem:[#allocation1] ss:$4 sm:$0xff] %v616_v62  ;;  %v624_v62 = vld [vmem:[%s3557_s0 + $0x48] sm:$0x1] }
 0x15e   :  { %v2624_v8 = vld.sshfl [vmem:[#allocation1 + $0x20] sm:$0xff pattern:$0x73625140] }
 0x15f   :  { %762 = vst [vmem:[#allocation1 + $0x20] ss:$4 sm:$0xff] %v617_v25  ;;  %v625_v25 = vld [vmem:[%s3557_s0 + $0x4a] sm:$0x1] }
 0x164   :  { %v2632_v22 = vld.sshfl [vmem:[#allocation1] sm:$0xff pattern:$0x73625140] }
 0x165   :  { %766 = vst [vmem:[#allocation1] ss:$4 sm:$0xff] %v618_v15 }
 0x166   :  { %v2634_v21 = vld.sshfl [vmem:[#allocation1 + $0x20] sm:$0xff pattern:$0x73625140] }
 0x167   :  { %770 = vst [vmem:[#allocation1 + $0x20] ss:$4 sm:$0xff] %v619_v18 }
 0x16c   :  { %v2642_v3 = vld.sshfl [vmem:[#allocation1] sm:$0xff pattern:$0x73625140] }
 0x16d   :  { %774 = vst [vmem:[#allocation1] ss:$4 sm:$0xff] %v620_v31  ;;  %v626_v31 = vld [vmem:[%s3557_s0 + $0x4c] sm:$0x1] }
 0x16e   :  { %v2644_v63 = vld.sshfl [vmem:[#allocation1 + $0x20] sm:$0xff pattern:$0x73625140] }
 0x16f   :  { %778 = vst [vmem:[#allocation1 + $0x20] ss:$4 sm:$0xff] %v621_v9  ;;  %v627_v9 = vld [vmem:[%s3557_s0 + $0x4e] sm:$0x1] }
 0x174   :  { %v2652_v36 = vld.sshfl [vmem:[#allocation1] sm:$0xff pattern:$0x73625140] }
 0x175   :  { %3579 = vst [vmem:[#allocation21_spill] sm:$0xff] %v2652_v36 }
 0x176   :  { %v2654_v59 = vld.sshfl [vmem:[#allocation1 + $0x20] sm:$0xff pattern:$0x73625140]  ;;  %782 = vst [vmem:[#allocation1] ss:$4 sm:$0xff] %v622_v11 }
 0x177   :  { %3580 = vst [vmem:[#allocation22_spill] sm:$0xff] %v2654_v59 }
 0x178   :  { %786 = vst [vmem:[#allocation1 + $0x20] ss:$4 sm:$0xff] %v623_v46 }
 0x17d   :  { %v2662_v15 = vld.sshfl [vmem:[#allocation1] sm:$0xff pattern:$0x73625140] }
 0x17e   :  { %3581 = vst [vmem:[#allocation23_spill] sm:$0xff] %v2662_v15 }
 0x17f   :  { %v2664_v18 = vld.sshfl [vmem:[#allocation1 + $0x20] sm:$0xff pattern:$0x73625140]  ;;  %790 = vst [vmem:[#allocation1] ss:$4 sm:$0xff] %v624_v62 }
 0x180   :  { %3582 = vst [vmem:[#allocation24_spill] sm:$0xff] %v2664_v18  ;;  %v629_v62 = vld [vmem:[%s3557_s0 + $0x52] sm:$0x1]  ;;  %v1104_v18 = vld [vmem:[%s3557_s0 + $0x14] sm:$0x2] }
 0x181   :  { %794 = vst [vmem:[#allocation1 + $0x20] ss:$4 sm:$0xff] %v625_v25 }
 0x186   :  { %v2672_v11 = vld.sshfl [vmem:[#allocation1] sm:$0xff pattern:$0x73625140] }
 0x187   :  { %3583 = vst [vmem:[#allocation25_spill] sm:$0xff] %v2672_v11 }
 0x188   :  { %v2674_v46 = vld.sshfl [vmem:[#allocation1 + $0x20] sm:$0xff pattern:$0x73625140]  ;;  %798 = vst [vmem:[#allocation1] ss:$4 sm:$0xff] %v626_v31 }
 0x189   :  { %3584 = vst [vmem:[#allocation26_spill] sm:$0xff] %v2674_v46  ;;  %v631_v31 = vld [vmem:[%s3557_s0 + $0x56] sm:$0x1]  ;;  %v1102_v46 = vld [vmem:[%s3557_s0 + $0x10] sm:$0x2] }
 0x18a   :  { %802 = vst [vmem:[#allocation1 + $0x20] ss:$4 sm:$0xff] %v627_v9 }
 0x18f   :  { %v2682_v25 = vld.sshfl [vmem:[#allocation1] sm:$0xff pattern:$0x73625140] }
 0x190   :  { %3585 = vst [vmem:[#allocation27_spill] sm:$0xff] %v2682_v25 }
 0x191   :  { %v2684_v55 = vld.sshfl [vmem:[#allocation1 + $0x20] sm:$0xff pattern:$0x73625140]  ;;  %806 = vst [vmem:[#allocation1] ss:$4 sm:$0xff] %v628_v58 }
 0x192   :  { %3586 = vst [vmem:[#allocation28_spill] sm:$0xff] %v2684_v55  ;;  %v633_v58 = vld [vmem:[%s3557_s0 + $0x5a] sm:$0x1]  ;;  %v1100_v55 = vld [vmem:[%s3557_s0 + $0xc] sm:$0x2] }
 0x193   :  { %810 = vst [vmem:[#allocation1 + $0x20] ss:$4 sm:$0xff] %v629_v62 }
 0x198   :  { %v2692_v9 = vld.sshfl [vmem:[#allocation1] sm:$0xff pattern:$0x73625140] }
 0x199   :  { %3587 = vst [vmem:[#allocation29_spill] sm:$0xff] %v2692_v9 }
 0x19a   :  { %v2694_v50 = vld.sshfl [vmem:[#allocation1 + $0x20] sm:$0xff pattern:$0x73625140]  ;;  %814 = vst [vmem:[#allocation1] ss:$4 sm:$0xff] %v630_v41 }
 0x19b   :  { %3588 = vst [vmem:[#allocation30_spill] sm:$0xff] %v2694_v50  ;;  %v634_v50 = vld [vmem:[%s3557_s0 + $0x5c] sm:$0x1]  ;;  %v635_v41 = vld [vmem:[%s3557_s0 + $0x5e] sm:$0x1] }
 0x19c   :  { %818 = vst [vmem:[#allocation1 + $0x20] ss:$4 sm:$0xff] %v631_v31 }
 0x1a1   :  { %v2702_v62 = vld.sshfl [vmem:[#allocation1] sm:$0xff pattern:$0x73625140] }
 0x1a2   :  { %3589 = vst [vmem:[#allocation31_spill] sm:$0xff] %v2702_v62 }
 0x1a3   :  { %v2704_v42 = vld.sshfl [vmem:[#allocation1 + $0x20] sm:$0xff pattern:$0x73625140]  ;;  %822 = vst [vmem:[#allocation1] ss:$4 sm:$0xff] %v632_v43 }
 0x1a4   :  { %3590 = vst [vmem:[#allocation32_spill] sm:$0xff] %v2704_v42  ;;  %v636_v42 = vld [vmem:[%s3557_s0 + $0x60] sm:$0x1]  ;;  %v637_v43 = vld [vmem:[%s3557_s0 + $0x62] sm:$0x1] }
 0x1a5   :  { %826 = vst [vmem:[#allocation1 + $0x20] ss:$4 sm:$0xff] %v633_v58 }
 0x1aa   :  { %v2712_v31 = vld.sshfl [vmem:[#allocation1] sm:$0xff pattern:$0x73625140] }
 0x1ab   :  { %3591 = vst [vmem:[#allocation33_spill] sm:$0xff] %v2712_v31 }
 0x1ac   :  { %v2714_v9 = vld.sshfl [vmem:[#allocation1 + $0x20] sm:$0xff pattern:$0x73625140]  ;;  %830 = vst [vmem:[#allocation1] ss:$4 sm:$0xff] %v634_v50 }
 0x1ad   :  { %3592 = vst [vmem:[#allocation34_spill] sm:$0xff] %v2714_v9  ;;  %v638_v9 = vld [vmem:[%s3557_s0 + $0x64] sm:$0x1]  ;;  %v639_v50 = vld [vmem:[%s3557_s0 + $0x66] sm:$0x1] }
 0x1ae   :  { %834 = vst [vmem:[#allocation1 + $0x20] ss:$4 sm:$0xff] %v635_v41 }
 0x1b3   :  { %v2722_v58 = vld.sshfl [vmem:[#allocation1] sm:$0xff pattern:$0x73625140] }
 0x1b4   :  { %3593 = vst [vmem:[#allocation35_spill] sm:$0xff] %v2722_v58 }
 0x1b5   :  { %v2724_v62 = vld.sshfl [vmem:[#allocation1 + $0x20] sm:$0xff pattern:$0x73625140]  ;;  %838 = vst [vmem:[#allocation1] ss:$4 sm:$0xff] %v636_v42 }
 0x1b6   :  { %3594 = vst [vmem:[#allocation36_spill] sm:$0xff] %v2724_v62  ;;  %v640_v62 = vld [vmem:[%s3557_s0 + $0x68] sm:$0x1]  ;;  %v641_v42 = vld [vmem:[%s3557_s0 + $0x6a] sm:$0x1] }
 0x1b7   :  { %842 = vst [vmem:[#allocation1 + $0x20] ss:$4 sm:$0xff] %v637_v43 }
 0x1bc   :  { %v2732_v41 = vld.sshfl [vmem:[#allocation1] sm:$0xff pattern:$0x73625140] }
 0x1bd   :  { %3595 = vst [vmem:[#allocation37_spill] sm:$0xff] %v2732_v41 }
 0x1be   :  { %v2734_v31 = vld.sshfl [vmem:[#allocation1 + $0x20] sm:$0xff pattern:$0x73625140]  ;;  %846 = vst [vmem:[#allocation1] ss:$4 sm:$0xff] %v638_v9 }
 0x1bf   :  { %3596 = vst [vmem:[#allocation38_spill] sm:$0xff] %v2734_v31  ;;  %v642_v31 = vld [vmem:[%s3557_s0 + $0x6c] sm:$0x1]  ;;  %v643_v9 = vld [vmem:[%s3557_s0 + $0x6e] sm:$0x1] }
 0x1c0   :  { %850 = vst [vmem:[#allocation1 + $0x20] ss:$4 sm:$0xff] %v639_v50 }
 0x1c5   :  { %v2742_v43 = vld.sshfl [vmem:[#allocation1] sm:$0xff pattern:$0x73625140] }
 0x1c6   :  { %3597 = vst [vmem:[#allocation39_spill] sm:$0xff] %v2742_v43 }
 0x1c7   :  { %v2744_v58 = vld.sshfl [vmem:[#allocation1 + $0x20] sm:$0xff pattern:$0x73625140]  ;;  %854 = vst [vmem:[#allocation1] ss:$4 sm:$0xff] %v640_v62 }
 0x1c8   :  { %3598 = vst [vmem:[#allocation40_spill] sm:$0xff] %v2744_v58  ;;  %v1094_v58 = vld [vmem:[%s3557_s0] sm:$0x2]  ;;  %v1095_v62 = vld [vmem:[%s3557_s0 + $0x2] sm:$0x2] }
 0x1c9   :  { %858 = vst [vmem:[#allocation1 + $0x20] ss:$4 sm:$0xff] %v641_v42 }
 0x1ce   :  { %v2752_v50 = vld.sshfl [vmem:[#allocation1] sm:$0xff pattern:$0x73625140] }
 0x1cf   :  { %3599 = vst [vmem:[#allocation41_spill] sm:$0xff] %v2752_v50 }
 0x1d0   :  { %v2754_v41 = vld.sshfl [vmem:[#allocation1 + $0x20] sm:$0xff pattern:$0x73625140]  ;;  %862 = vst [vmem:[#allocation1] ss:$4 sm:$0xff] %v642_v31 }
 0x1d1   :  { %3600 = vst [vmem:[#allocation42_spill] sm:$0xff] %v2754_v41  ;;  %v1096_v41 = vld [vmem:[%s3557_s0 + $0x4] sm:$0x2]  ;;  %v1097_v31 = vld [vmem:[%s3557_s0 + $0x6] sm:$0x2] }
 0x1d2   :  { %866 = vst [vmem:[#allocation1 + $0x20] ss:$4 sm:$0xff] %v643_v9 }
 0x1d7   :  { %v2762_v42 = vld.sshfl [vmem:[#allocation1] sm:$0xff pattern:$0x73625140] }
 0x1d8   :  { %3601 = vst [vmem:[#allocation43_spill] sm:$0xff] %v2762_v42  ;;  %v1098_v42 = vld [vmem:[%s3557_s0 + $0x8] sm:$0x2] }
 0x1d9   :  { %v2764_v43 = vld.sshfl [vmem:[#allocation1 + $0x20] sm:$0xff pattern:$0x73625140]  ;;  %1151 = vst [vmem:[#allocation1] ss:$4 sm:$0xff] %v1094_v58 }
 0x1da   :  { %3602 = vst [vmem:[#allocation44_spill] sm:$0xff] %v2764_v43  ;;  %v1099_v58 = vld [vmem:[%s3557_s0 + $0xa] sm:$0x2] }
 0x1db   :  { %1156 = vst [vmem:[#allocation1 + $0x20] ss:$4 sm:$0xff] %v1095_v62 }
 0x1e0   :  { %v1152_v9 = vld.sshfl [vmem:[#allocation1] sm:$0xff pattern:$0x73625140] }
 0x1e1   :  { %1160 = vst [vmem:[#allocation1] ss:$4 sm:$0xff] %v1096_v41  ;;  %v1101_v41 = vld [vmem:[%s3557_s0 + $0xe] sm:$0x2]  ;;  %v1375_v59 = vunpack.c.l.b16 %v1152_v9 }
 0x1e2   :  { %v1157_v50 = vld.sshfl [vmem:[#allocation1 + $0x20] sm:$0xff pattern:$0x73625140] }
 0x1e3   :  { %1164 = vst [vmem:[#allocation1 + $0x20] ss:$4 sm:$0xff] %v1097_v31  ;;  %v1376_v36 = vunpack.c.l.b16 %v1157_v50  ;;  %v1431_v23 = vrot.slane %v1375_v59, 2  ;;  %v332_v59 = vunpack.c.l.b16 %v2282_v45  ;;  %v333_v50 = vunpack.c.l.b16 %v2290_v48 }
 0x1e4   :  { %v339_v45 = vunpack.c.l.b16 %v2320_v60  ;;  %v340_v48 = vunpack.c.l.b16 %v2322_v61  ;;  %v1108_v60 = vld [vmem:[%s3557_s0 + $0x1c] sm:$0x2]  ;;  %v346_v61 = vunpack.c.l.b16 %v2369_v32 }
 0x1e5   :  { %v1432_v20 = vrot.slane %v1376_v36, 1 }
 0x1e7   :  { %v1433_v27 = vsel %vm372_vm0, %v1432_v20, %v1431_v23 }
 0x1e8   :  { %v1161_v62 = vld.sshfl [vmem:[#allocation1] sm:$0xff pattern:$0x73625140] }
 0x1e9   :  { %1168 = vst [vmem:[#allocation1] ss:$4 sm:$0xff] %v1098_v42  ;;  %v1103_v42 = vld [vmem:[%s3557_s0 + $0x12] sm:$0x2]  ;;  %v1377_v37 = vunpack.c.l.b16 %v1161_v62  ;;  %v334_v62 = vunpack.c.l.b16 %v2292_v49 }
 0x1ea   :  { %v1165_v43 = vld.sshfl [vmem:[#allocation1 + $0x20] sm:$0xff pattern:$0x73625140] }
 0x1eb   :  { %1172 = vst [vmem:[#allocation1 + $0x20] ss:$4 sm:$0xff] %v1099_v58  ;;  %v1378_v38 = vunpack.c.l.b16 %v1165_v43  ;;  %v1434_v43 = vsel %vm375_vm1, %v1377_v37, %v1433_v27 }
 0x1ed   :  { %v1435_v28 = vrot.slane %v1378_v38, 7 }
 0x1ef   :  { %v1436_v36 = vsel %vm378_vm2, %v1435_v28, %v1434_v43  ;;  %v335_v28 = vunpack.c.l.b16 %v2300_v52  ;;  %v343_v52 = vunpack.c.l.b16 %v2340_v4  ;;  %v1109_v4 = vld [vmem:[%s3557_s0 + $0x1e] sm:$0x2] }
 0x1f0   :  { %v1169_v31 = vld.sshfl [vmem:[#allocation1] sm:$0xff pattern:$0x73625140] }
 0x1f1   :  { %1176 = vst [vmem:[#allocation1] ss:$4 sm:$0xff] %v1100_v55  ;;  %v1105_v55 = vld [vmem:[%s3557_s0 + $0x16] sm:$0x2]  ;;  %v1379_v34 = vunpack.c.l.b16 %v1169_v31  ;;  %v341_v31 = vunpack.c.l.b16 %v2330_v0 }
 0x1f2   :  { %v1173_v25 = vld.sshfl [vmem:[#allocation1 + $0x20] sm:$0xff pattern:$0x73625140] }
 0x1f3   :  { %1180 = vst [vmem:[#allocation1 + $0x20] ss:$4 sm:$0xff] %v1101_v41  ;;  %v1380_v33 = vunpack.c.l.b16 %v1173_v25  ;;  %v1437_v24 = vrot.slane %v1379_v34, 6  ;;  %v1107_v25 = vld [vmem:[%s3557_s0 + $0x1a] sm:$0x2]  ;;  %v331_v34 = vunpack.c.l.b16 %v2280_v44  ;;  %v338_v44 = vunpack.c.l.b16 %v2312_v57 }
 0x1f4   :  { %v410_v57 = vrot.slane %v334_v62, 5 }
 0x1f5   :  { %v2810_v38 = vrot.slane %v1380_v33, 5  ;;  %v1438_v9 = vsel %vm381_vm3, %v1437_v24, %v1436_v36  ;;  %v336_v33 = vunpack.c.l.b16 %v2302_v53  ;;  %v342_v24 = vunpack.c.l.b16 %v2332_v1 }
 0x1f6   :  { %v406_v53 = vrot.slane %v332_v59, 7  ;;  %v426_v59 = vrot.slane %v343_v52, 4 }
 0x1f7   :  { %v414_v1 = vrot.slane %v336_v33, 3  ;;  %v424_v43 = vrot.slane %v342_v24, 5 }
 0x1f8   :  { %v2790_v58 = vld.sshfl [vmem:[#allocation1] sm:$0xff pattern:$0x73625140]  ;;  %v407_v0 = vsel %vm372_vm0, %v406_v53, %v331_v34 }
 0x1f9   :  { %1184 = vst [vmem:[#allocation1] ss:$4 sm:$0xff] %v1102_v46 }
 0x1fa   :  { %v2792_v11 = vld.sshfl [vmem:[#allocation1 + $0x20] sm:$0xff pattern:$0x73625140] }
 0x1fb   :  { %1188 = vst [vmem:[#allocation1 + $0x20] ss:$4 sm:$0xff] %v1103_v42  ;;  %v1382_v24 = vunpack.c.l.b16 %v2792_v11 }
 0x200   :  { %v1185_v41 = vld.sshfl [vmem:[#allocation1] sm:$0xff pattern:$0x73625140] }
 0x201   :  { %1192 = vst [vmem:[#allocation1] ss:$4 sm:$0xff] %v1104_v18  ;;  %v1383_v46 = vunpack.c.l.b16 %v1185_v41  ;;  %v1106_v18 = vld [vmem:[%s3557_s0 + $0x18] sm:$0x2]  ;;  %v408_v41 = vrot.slane %v333_v50, 6 }
 0x202   :  { %v1189_v15 = vld.sshfl [vmem:[#allocation1 + $0x20] sm:$0xff pattern:$0x73625140] }
 0x203   :  { %1196 = vst [vmem:[#allocation1 + $0x20] ss:$4 sm:$0xff] %v1105_v55  ;;  %v1384_v42 = vunpack.c.l.b16 %v1189_v15  ;;  %v1445_v17 = vrot.slane %v1383_v46, 2  ;;  %v1381_v15 = vunpack.c.l.b16 %v2790_v58  ;;  %v344_v55 = vunpack.c.l.b16 %v2342_v5 }
 0x204   :  { %v412_v46 = vrot.slane %v335_v28, 4  ;;  %v409_v5 = vsel %vm375_vm1, %v408_v41, %v407_v0 }
 0x205   :  { %v1446_v12 = vrot.slane %v1384_v42, 1 }
 0x207   :  { %v1447_v23 = vsel %vm372_vm0, %v1446_v12, %v1445_v17  ;;  %v337_v12 = vunpack.c.l.b16 %v2310_v56  ;;  %v345_v56 = vunpack.c.l.b16 %v2366_v29  ;;  %v420_v29 = vrot.slane %v340_v48, 7 }
 0x208   :  { %v1193_v20 = vld.sshfl [vmem:[#allocation1] sm:$0xff pattern:$0x73625140] }
 0x209   :  { %1200 = vst [vmem:[#allocation1] ss:$4 sm:$0xff] %v1106_v18  ;;  %v1385_v37 = vunpack.c.l.b16 %v1193_v20  ;;  %v416_v42 = vrot.slane %v337_v12, 2  ;;  %v422_v18 = vrot.slane %v341_v31, 6  ;;  %v411_v20 = vsel %vm378_vm2, %v410_v57, %v409_v5 }
 0x20a   :  { %v1197_v27 = vld.sshfl [vmem:[#allocation1 + $0x20] sm:$0xff pattern:$0x73625140]  ;;  %v413_v50 = vsel %vm381_vm3, %v412_v46, %v411_v20  ;;  %v430_v12 = vrot.slane %v345_v56, 2  ;;  %v432_v31 = vrot.slane %v346_v61, 1  ;;  %v1440_v57 = vsel %vm384_vm4, %v2810_v38, %v1438_v9 }
 0x20b   :  { %1204 = vst [vmem:[#allocation1 + $0x20] ss:$4 sm:$0xff] %v1107_v25  ;;  %v1386_v17 = vunpack.c.l.b16 %v1197_v27  ;;  %v1448_v49 = vsel %vm375_vm1, %v1385_v37, %v1447_v23  ;;  %v418_v23 = vrot.slane %v338_v44, 1  ;;  %v421_v27 = vsel %vm372_vm0, %v420_v29, %v339_v45  ;;  %v1110_v56 = vld [vmem:[%s3557_s0 + $0x20] sm:$0x2] }
 0x20c   :  { %v428_v37 = vrot.slane %v344_v55, 3  ;;  %v415_v28 = vsel %vm384_vm4, %v414_v1, %v413_v50  ;;  %v423_v33 = vsel %vm375_vm1, %v422_v18, %v421_v27  ;;  %v1441_v55 = vrot.slane %v1381_v15, 4  ;;  %v1115_v50 = vld [vmem:[%s3557_s0 + $0x2a] sm:$0x2] }
 0x20d   :  { %v1449_v36 = vrot.slane %v1386_v17, 7  ;;  %v417_v48 = vsel %vm387_vm5, %v416_v42, %v415_v28  ;;  %v425_v44 = vsel %vm378_vm2, %v424_v43, %v423_v33  ;;  %v1443_v61 = vrot.slane %v1382_v24, 3  ;;  %v1117_v28 = vld [vmem:[%s3557_s0 + $0x2e] sm:$0x2]  ;;  %v1120_v24 = vld [vmem:[%s3557_s0 + $0x34] sm:$0x2] }
 0x20e   :  { %v427_v45 = vsel %vm381_vm3, %v426_v59, %v425_v44  ;;  %v419_v53 = vsel %vm390_vm6, %v418_v23, %v417_v48  ;;  %v1113_v23 = vld [vmem:[%s3557_s0 + $0x26] sm:$0x2]  ;;  %v1119_v48 = vld [vmem:[%s3557_s0 + $0x32] sm:$0x2] }
 0x20f   :  { %v1450_v52 = vsel %vm378_vm2, %v1449_v36, %v1448_v49  ;;  %v429_v41 = vsel %vm384_vm4, %v428_v37, %v427_v45  ;;  %v1111_v49 = vld [vmem:[%s3557_s0 + $0x22] sm:$0x2]  ;;  %v1112_v36 = vld [vmem:[%s3557_s0 + $0x24] sm:$0x2] }
 0x210   :  { %v1201_v25 = vld.sshfl [vmem:[#allocation1] sm:$0xff pattern:$0x73625140]  ;;  %v431_v11 = vsel %vm387_vm5, %v430_v12, %v429_v41  ;;  %v1123_v41 = vld [vmem:[%s3557_s0 + $0x3a] sm:$0x2] }
 0x211   :  { %1208 = vst [vmem:[#allocation1] ss:$4 sm:$0xff] %v1108_v60  ;;  %v1387_v34 = vunpack.c.l.b16 %v1201_v25  ;;  %v433_v15 = vsel %vm390_vm6, %v432_v31, %v431_v11  ;;  %v1125_v11 = vld [vmem:[%s3557_s0 + $0x3e] sm:$0x2] }
 0x212   :  { %v1205_v32 = vld.sshfl [vmem:[#allocation1 + $0x20] sm:$0xff pattern:$0x73625140]  ;;  %v477_v0 = vpack.c.b16 %v433_v15, %v419_v53  ;;  %v1122_v53 = vld [vmem:[%s3557_s0 + $0x38] sm:$0x2] }
 0x213   :  { %1212 = vst [vmem:[#allocation1 + $0x20] ss:$4 sm:$0xff] %v1109_v4  ;;  %v1388_v62 = vunpack.c.l.b16 %v1205_v32  ;;  %v1451_v17 = vrot.slane %v1387_v34, 6  ;;  %v1442_v4 = vsel %vm387_vm5, %v1441_v55, %v1440_v57  ;;  %v1114_v34 = vld [vmem:[%s3557_s0 + $0x28] sm:$0x2] }
 0x214   :  { %545 = vmatmul.bf16.gmra.mxu0 %v477_v0  ;;  %v1444_v29 = vsel %vm390_vm6, %v1443_v61, %v1442_v4  ;;  %v1126_v15 = vld [vmem:[%s3557_s0 + $0x40] sm:$0x2] }
 0x215   :  { %v1453_v46 = vrot.slane %v1388_v62, 5  ;;  %v1452_v58 = vsel %vm381_vm3, %v1451_v17, %v1450_v52  ;;  %v1116_v62 = vld [vmem:[%s3557_s0 + $0x2c] sm:$0x2]  ;;  %v1118_v17 = vld [vmem:[%s3557_s0 + $0x30] sm:$0x2] }
 0x216   :  { %v1121_v52 = vld [vmem:[%s3557_s0 + $0x36] sm:$0x2] }
 0x217   :  { %v1454_v9 = vsel %vm384_vm4, %v1453_v46, %v1452_v58  ;;  %v1124_v46 = vld [vmem:[%s3557_s0 + $0x3c] sm:$0x2] }
 0x218   :  { %v1209_v60 = vld.sshfl [vmem:[#allocation1] sm:$0xff pattern:$0x73625140] }
 0x219   :  { %1216 = vst [vmem:[#allocation1] ss:$4 sm:$0xff] %v1110_v56  ;;  %v1389_v42 = vunpack.c.l.b16 %v1209_v60  ;;  %v1127_v60 = vld [vmem:[%s3557_s0 + $0x42] sm:$0x2] }
 0x21a   :  { %v1213_v1 = vld.sshfl [vmem:[#allocation1 + $0x20] sm:$0xff pattern:$0x73625140] }
 0x21b   :  { %1220 = vst [vmem:[#allocation1 + $0x20] ss:$4 sm:$0xff] %v1111_v49  ;;  %v1390_v38 = vunpack.c.l.b16 %v1213_v1  ;;  %v1455_v5 = vrot.slane %v1389_v42, 4  ;;  %v1128_v1 = vld [vmem:[%s3557_s0 + $0x44] sm:$0x2] }
 0x21c   :  { %v1129_v42 = vld [vmem:[%s3557_s0 + $0x46] sm:$0x2] }
 0x21d   :  { %v1457_v18 = vrot.slane %v1390_v38, 3  ;;  %v1456_v43 = vsel %vm387_vm5, %v1455_v5, %v1454_v9  ;;  %v1130_v9 = vld [vmem:[%s3557_s0 + $0x48] sm:$0x2]  ;;  %v1131_v5 = vld [vmem:[%s3557_s0 + $0x4a] sm:$0x2] }
 0x21f   :  { %v1458_v25 = vsel %vm390_vm6, %v1457_v18, %v1456_v43  ;;  %v1132_v43 = vld [vmem:[%s3557_s0 + $0x4c] sm:$0x2] }
 0x220   :  { %v1529_v20 = vpack.c.b16 %v1458_v25, %v1444_v29  ;;  %v2875_v59 = vld.sshfl [vmem:[#allocation1] sm:$0xff pattern:$0x73625140]  ;;  %v1133_v25 = vld [vmem:[%s3557_s0 + $0x4e] sm:$0x2] }
 0x221   :  { %1224 = vst [vmem:[#allocation1] ss:$4 sm:$0xff] %v1112_v36 }
 0x222   :  { %v2877_v32 = vld.sshfl [vmem:[#allocation1 + $0x20] sm:$0xff pattern:$0x73625140]  ;;  %1545 = vmatmul.bf16.vlgmr.msra.gmra.mxu2 %v1529_v20 }
 0x223   :  { %1228 = vst [vmem:[#allocation1 + $0x20] ss:$4 sm:$0xff] %v1113_v23  ;;  %v1134_v23 = vld [vmem:[%s3557_s0 + $0x50] sm:$0x2] }
 0x228   :  { %v2885_v27 = vld.sshfl [vmem:[#allocation1] sm:$0xff pattern:$0x73625140] }
 0x229   :  { %1232 = vst [vmem:[#allocation1] ss:$4 sm:$0xff] %v1114_v34  ;;  %v1135_v34 = vld [vmem:[%s3557_s0 + $0x52] sm:$0x2] }
 0x22a   :  { %v2887_v37 = vld.sshfl [vmem:[#allocation1 + $0x20] sm:$0xff pattern:$0x73625140] }
 0x22b   :  { %1236 = vst [vmem:[#allocation1 + $0x20] ss:$4 sm:$0xff] %v1115_v50 }
 0x230   :  { %v2895_v33 = vld.sshfl [vmem:[#allocation1] sm:$0xff pattern:$0x73625140] }
 0x231   :  { %1240 = vst [vmem:[#allocation1] ss:$4 sm:$0xff] %v1116_v62 }
 0x232   :  { %v2897_v12 = vld.sshfl [vmem:[#allocation1 + $0x20] sm:$0xff pattern:$0x73625140] }
 0x233   :  { %1244 = vst [vmem:[#allocation1 + $0x20] ss:$4 sm:$0xff] %v1117_v28  ;;  %v1136_v28 = vld [vmem:[%s3557_s0 + $0x54] sm:$0x2] }
 0x238   :  { %v2905_v44 = vld.sshfl [vmem:[#allocation1] sm:$0xff pattern:$0x73625140] }
 0x239   :  { %1248 = vst [vmem:[#allocation1] ss:$4 sm:$0xff] %v1118_v17  ;;  %v1137_v17 = vld [vmem:[%s3557_s0 + $0x56] sm:$0x2] }
 0x23a   :  { %v2907_v31 = vld.sshfl [vmem:[#allocation1 + $0x20] sm:$0xff pattern:$0x73625140] }
 0x23b   :  { %1252 = vst [vmem:[#allocation1 + $0x20] ss:$4 sm:$0xff] %v1119_v48 }
 0x240   :  { %v2915_v45 = vld.sshfl [vmem:[#allocation1] sm:$0xff pattern:$0x73625140] }
 0x241   :  { %1256 = vst [vmem:[#allocation1] ss:$4 sm:$0xff] %v1120_v24 }
 0x242   :  { %v2917_v55 = vld.sshfl [vmem:[#allocation1 + $0x20] sm:$0xff pattern:$0x73625140] }
 0x243   :  { %1260 = vst [vmem:[#allocation1 + $0x20] ss:$4 sm:$0xff] %v1121_v52  ;;  %v1138_v52 = vld [vmem:[%s3557_s0 + $0x58] sm:$0x2] }
 0x248   :  { %v2925_v56 = vld.sshfl [vmem:[#allocation1] sm:$0xff pattern:$0x73625140] }
 0x249   :  { %1264 = vst [vmem:[#allocation1] ss:$4 sm:$0xff] %v1122_v53  ;;  %v1139_v53 = vld [vmem:[%s3557_s0 + $0x5a] sm:$0x2] }
 0x24a   :  { %v2927_v57 = vld.sshfl [vmem:[#allocation1 + $0x20] sm:$0xff pattern:$0x73625140] }
 0x24b   :  { %1268 = vst [vmem:[#allocation1 + $0x20] ss:$4 sm:$0xff] %v1123_v41 }
 0x250   :  { %v2935_v49 = vld.sshfl [vmem:[#allocation1] sm:$0xff pattern:$0x73625140] }
 0x251   :  { %1272 = vst [vmem:[#allocation1] ss:$4 sm:$0xff] %v1124_v46 }
 0x252   :  { %v2937_v58 = vld.sshfl [vmem:[#allocation1 + $0x20] sm:$0xff pattern:$0x73625140] }
 0x253   :  { %1276 = vst [vmem:[#allocation1 + $0x20] ss:$4 sm:$0xff] %v1125_v11  ;;  %v1140_v11 = vld [vmem:[%s3557_s0 + $0x5c] sm:$0x2] }
 0x258   :  { %v2945_v61 = vld.sshfl [vmem:[#allocation1] sm:$0xff pattern:$0x73625140] }
 0x259   :  { %1280 = vst [vmem:[#allocation1] ss:$4 sm:$0xff] %v1126_v15  ;;  %v1141_v15 = vld [vmem:[%s3557_s0 + $0x5e] sm:$0x2] }
 0x25a   :  { %v2947_v0 = vld.sshfl [vmem:[#allocation1 + $0x20] sm:$0xff pattern:$0x73625140] }
 0x25b   :  { %1284 = vst [vmem:[#allocation1 + $0x20] ss:$4 sm:$0xff] %v1127_v60 }
 0x260   :  { %v2955_v4 = vld.sshfl [vmem:[#allocation1] sm:$0xff pattern:$0x73625140] }
 0x261   :  { %1288 = vst [vmem:[#allocation1] ss:$4 sm:$0xff] %v1128_v1 }
 0x262   :  { %v2957_v38 = vld.sshfl [vmem:[#allocation1 + $0x20] sm:$0xff pattern:$0x73625140] }
 0x263   :  { %1292 = vst [vmem:[#allocation1 + $0x20] ss:$4 sm:$0xff] %v1129_v42  ;;  %v1142_v42 = vld [vmem:[%s3557_s0 + $0x60] sm:$0x2] }
 0x268   :  { %v2965_v29 = vld.sshfl [vmem:[#allocation1] sm:$0xff pattern:$0x73625140] }
 0x269   :  { %1296 = vst [vmem:[#allocation1] ss:$4 sm:$0xff] %v1130_v9  ;;  %v1143_v9 = vld [vmem:[%s3557_s0 + $0x62] sm:$0x2] }
 0x26a   :  { %v2967_v18 = vld.sshfl [vmem:[#allocation1 + $0x20] sm:$0xff pattern:$0x73625140] }
 0x26b   :  { %3603 = vst [vmem:[#allocation45_spill] sm:$0xff] %v2967_v18 }
 0x26c   :  { %1300 = vst [vmem:[#allocation1 + $0x20] ss:$4 sm:$0xff] %v1131_v5 }
 0x270   :  { %v2975_v36 = vld.sshfl [vmem:[#allocation1] sm:$0xff pattern:$0x73625140] }
 0x271   :  { %3604 = vst [vmem:[#allocation46_spill] sm:$0xff] %v2975_v36 }
 0x272   :  { %1304 = vst [vmem:[#allocation1] ss:$4 sm:$0xff] %v1132_v43 }
 0x273   :  { %v2977_v20 = vld.sshfl [vmem:[#allocation1 + $0x20] sm:$0xff pattern:$0x73625140] }
 0x274   :  { %3605 = vst [vmem:[#allocation47_spill] sm:$0xff] %v2977_v20 }
 0x275   :  { %1308 = vst [vmem:[#allocation1 + $0x20] ss:$4 sm:$0xff] %v1133_v25  ;;  %v1144_v25 = vld [vmem:[%s3557_s0 + $0x64] sm:$0x2] }
 0x279   :  { %v2985_v50 = vld.sshfl [vmem:[#allocation1] sm:$0xff pattern:$0x73625140] }
 0x27a   :  { %3606 = vst [vmem:[#allocation48_spill] sm:$0xff] %v2985_v50 }
 0x27b   :  { %1312 = vst [vmem:[#allocation1] ss:$4 sm:$0xff] %v1134_v23  ;;  %v1145_v23 = vld [vmem:[%s3557_s0 + $0x66] sm:$0x2] }
 0x27c   :  { %v2987_v62 = vld.sshfl [vmem:[#allocation1 + $0x20] sm:$0xff pattern:$0x73625140] }
 0x27d   :  { %3607 = vst [vmem:[#allocation49_spill] sm:$0xff] %v2987_v62 }
 0x27e   :  { %1316 = vst [vmem:[#allocation1 + $0x20] ss:$4 sm:$0xff] %v1135_v34 }
 0x282   :  { %v2995_v48 = vld.sshfl [vmem:[#allocation1] sm:$0xff pattern:$0x73625140] }
 0x283   :  { %3608 = vst [vmem:[#allocation50_spill] sm:$0xff] %v2995_v48 }
 0x284   :  { %1320 = vst [vmem:[#allocation1] ss:$4 sm:$0xff] %v1136_v28 }
 0x285   :  { %v2997_v24 = vld.sshfl [vmem:[#allocation1 + $0x20] sm:$0xff pattern:$0x73625140] }
 0x286   :  { %3609 = vst [vmem:[#allocation51_spill] sm:$0xff] %v2997_v24 }
 0x287   :  { %1324 = vst [vmem:[#allocation1 + $0x20] ss:$4 sm:$0xff] %v1137_v17  ;;  %v1146_v17 = vld [vmem:[%s3557_s0 + $0x68] sm:$0x2] }
 0x28b   :  { %v3005_v41 = vld.sshfl [vmem:[#allocation1] sm:$0xff pattern:$0x73625140] }
 0x28c   :  { %3610 = vst [vmem:[#allocation52_spill] sm:$0xff] %v3005_v41 }
 0x28d   :  { %1328 = vst [vmem:[#allocation1] ss:$4 sm:$0xff] %v1138_v52  ;;  %v1147_v52 = vld [vmem:[%s3557_s0 + $0x6a] sm:$0x2] }
 0x28e   :  { %v3007_v46 = vld.sshfl [vmem:[#allocation1 + $0x20] sm:$0xff pattern:$0x73625140] }
 0x28f   :  { %3611 = vst [vmem:[#allocation53_spill] sm:$0xff] %v3007_v46 }
 0x290   :  { %1332 = vst [vmem:[#allocation1 + $0x20] ss:$4 sm:$0xff] %v1139_v53 }
 0x294   :  { %v3015_v60 = vld.sshfl [vmem:[#allocation1] sm:$0xff pattern:$0x73625140] }
 0x295   :  { %3612 = vst [vmem:[#allocation54_spill] sm:$0xff] %v3015_v60 }
 0x296   :  { %1336 = vst [vmem:[#allocation1] ss:$4 sm:$0xff] %v1140_v11 }
 0x297   :  { %v3017_v1 = vld.sshfl [vmem:[#allocation1 + $0x20] sm:$0xff pattern:$0x73625140] }
 0x298   :  { %3613 = vst [vmem:[#allocation55_spill] sm:$0xff] %v3017_v1 }
 0x299   :  { %1340 = vst [vmem:[#allocation1 + $0x20] ss:$4 sm:$0xff] %v1141_v15  ;;  %v1148_v15 = vld [vmem:[%s3557_s0 + $0x6c] sm:$0x2] }
 0x29d   :  { %v3025_v5 = vld.sshfl [vmem:[#allocation1] sm:$0xff pattern:$0x73625140] }
 0x29e   :  { %3614 = vst [vmem:[#allocation56_spill] sm:$0xff] %v3025_v5 }
 0x29f   :  { %1344 = vst [vmem:[#allocation1] ss:$4 sm:$0xff] %v1142_v42  ;;  %v1149_v42 = vld [vmem:[%s3557_s0 + $0x6e] sm:$0x2] }
 0x2a0   :  { %v3027_v43 = vld.sshfl [vmem:[#allocation1 + $0x20] sm:$0xff pattern:$0x73625140] }
 0x2a1   :  { %3615 = vst [vmem:[#allocation57_spill] sm:$0xff] %v3027_v43 }
 0x2a2   :  { %1348 = vst [vmem:[#allocation1 + $0x20] ss:$4 sm:$0xff] %v1143_v9 }
 0x2a6   :  { %v3035_v34 = vld.sshfl [vmem:[#allocation1] sm:$0xff pattern:$0x73625140] }
 0x2a7   :  { %3616 = vst [vmem:[#allocation58_spill] sm:$0xff] %v3035_v34  ;;  %v1608_v34 = vld [vmem:[%s3557_s0 + $0x10] sm:$0x2] }
 0x2a8   :  { %1352 = vst [vmem:[#allocation1] ss:$4 sm:$0xff] %v1144_v25 }
 0x2a9   :  { %v3037_v28 = vld.sshfl [vmem:[#allocation1 + $0x20] sm:$0xff pattern:$0x73625140] }
 0x2aa   :  { %3617 = vst [vmem:[#allocation59_spill] sm:$0xff] %v3037_v28 }
 0x2ab   :  { %1356 = vst [vmem:[#allocation1 + $0x20] ss:$4 sm:$0xff] %v1145_v23  ;;  %v1600_v23 = vld [vmem:[%s3557_s0] sm:$0x2] }
 0x2af   :  { %v3045_v53 = vld.sshfl [vmem:[#allocation1] sm:$0xff pattern:$0x73625140] }
 0x2b0   :  { %3618 = vst [vmem:[#allocation60_spill] sm:$0xff] %v3045_v53 }
 0x2b1   :  { %1360 = vst [vmem:[#allocation1] ss:$4 sm:$0xff] %v1146_v17  ;;  %v1601_v17 = vld [vmem:[%s3557_s0 + $0x2] sm:$0x2] }
 0x2b2   :  { %v3047_v11 = vld.sshfl [vmem:[#allocation1 + $0x20] sm:$0xff pattern:$0x73625140] }
 0x2b3   :  { %3619 = vst [vmem:[#allocation61_spill] sm:$0xff] %v3047_v11  ;;  %v1606_v11 = vld [vmem:[%s3557_s0 + $0xc] sm:$0x2] }
 0x2b4   :  { %1364 = vst [vmem:[#allocation1 + $0x20] ss:$4 sm:$0xff] %v1147_v52 }
 0x2b8   :  { %v3055_v9 = vld.sshfl [vmem:[#allocation1] sm:$0xff pattern:$0x73625140] }
 0x2b9   :  { %3620 = vst [vmem:[#allocation62_spill] sm:$0xff] %v3055_v9 }
 0x2ba   :  { %1368 = vst [vmem:[#allocation1] ss:$4 sm:$0xff] %v1148_v15  ;;  %v1603_v15 = vld [vmem:[%s3557_s0 + $0x6] sm:$0x2] }
 0x2bb   :  { %v3057_v25 = vld.sshfl [vmem:[#allocation1 + $0x20] sm:$0xff pattern:$0x73625140] }
 0x2bc   :  { %3621 = vst [vmem:[#allocation63_spill] sm:$0xff] %v3057_v25  ;;  %v1602_v25 = vld [vmem:[%s3557_s0 + $0x4] sm:$0x2] }
 0x2bd   :  { %1372 = vst [vmem:[#allocation1 + $0x20] ss:$4 sm:$0xff] %v1149_v42 }
 0x2c1   :  { %v3065_v52 = vld.sshfl [vmem:[#allocation1] sm:$0xff pattern:$0x73625140] }
 0x2c2   :  { %3622 = vst [vmem:[#allocation64_spill] sm:$0xff] %v3065_v52  ;;  %v1604_v52 = vld [vmem:[%s3557_s0 + $0x8] sm:$0x2] }
 0x2c3   :  { %1657 = vst [vmem:[#allocation1] ss:$4 sm:$0xff] %v1600_v23  ;;  %v1605_v23 = vld [vmem:[%s3557_s0 + $0xa] sm:$0x2] }
 0x2c4   :  { %v3067_v53 = vld.sshfl [vmem:[#allocation1 + $0x20] sm:$0xff pattern:$0x73625140] }
 0x2c5   :  { %3623 = vst [vmem:[#allocation65_spill] sm:$0xff] %v3067_v53 }
 0x2c6   :  { %1662 = vst [vmem:[#allocation1 + $0x20] ss:$4 sm:$0xff] %v1601_v17 }
 0x2ca   :  { %v1658_v42 = vld.sshfl [vmem:[#allocation1] sm:$0xff pattern:$0x73625140] }
 0x2cb   :  { %1666 = vst [vmem:[#allocation1] ss:$4 sm:$0xff] %v1602_v25  ;;  %v1607_v25 = vld [vmem:[%s3557_s0 + $0xe] sm:$0x2]  ;;  %v1881_v5 = vunpack.c.l.b16 %v1658_v42 }
 0x2cd   :  { %v1663_v9 = vld.sshfl [vmem:[#allocation1 + $0x20] sm:$0xff pattern:$0x73625140] }
 0x2ce   :  { %1670 = vst [vmem:[#allocation1 + $0x20] ss:$4 sm:$0xff] %v1603_v15  ;;  %v1882_v1 = vunpack.c.l.b16 %v1663_v9 }
 0x2d0   :  { %v1938_v48 = vrot.slane %v1882_v1, 2 }
 0x2d2   :  { %v1667_v17 = vld.sshfl [vmem:[#allocation1] sm:$0xff pattern:$0x73625140] }
 0x2d3   :  { %1674 = vst [vmem:[#allocation1] ss:$4 sm:$0xff] %v1604_v52  ;;  %v1609_v52 = vld [vmem:[%s3557_s0 + $0x12] sm:$0x2]  ;;  %v1883_v60 = vunpack.c.l.b16 %v1667_v17 }
 0x2d5   :  { %v1671_v53 = vld.sshfl [vmem:[#allocation1 + $0x20] sm:$0xff pattern:$0x73625140]  ;;  %v1940_v62 = vrot.slane %v1883_v60, 1 }
 0x2d6   :  { %1678 = vst [vmem:[#allocation1 + $0x20] ss:$4 sm:$0xff] %v1605_v23 }
 0x2da   :  { %v1675_v15 = vld.sshfl [vmem:[#allocation1] sm:$0xff pattern:$0x73625140] }
 0x2db   :  { %1682 = vst [vmem:[#allocation1] ss:$4 sm:$0xff] %v1606_v11  ;;  %v1885_v46 = vunpack.c.l.b16 %v1675_v15  ;;  %v1884_v11 = vunpack.c.l.b16 %v1671_v53  ;;  %v887_v15 = vunpack.c.l.b16 %v2582_v16  ;;  %v895_v16 = vunpack.c.l.b16 %v2622_v7 }
 0x2dd   :  { %v1679_v28 = vld.sshfl [vmem:[#allocation1 + $0x20] sm:$0xff pattern:$0x73625140]  ;;  %v1943_v50 = vrot.slane %v1885_v46, 7 }
 0x2de   :  { %1686 = vst [vmem:[#allocation1 + $0x20] ss:$4 sm:$0xff] %v1607_v25  ;;  %v1886_v41 = vunpack.c.l.b16 %v1679_v28  ;;  %v1937_v25 = vrot.slane %v1881_v5, 3  ;;  %v1611_v28 = vld [vmem:[%s3557_s0 + $0x16] sm:$0x2] }
 0x2e0   :  { %v1939_v36 = vsel %vm372_vm0, %v1938_v48, %v1937_v25  ;;  %v1945_v18 = vrot.slane %v1886_v41, 6 }
 0x2e1   :  { %v1941_v9 = vsel %vm375_vm1, %v1940_v62, %v1939_v36  ;;  %v885_v62 = vunpack.c.l.b16 %v2572_v26  ;;  %v893_v26 = vunpack.c.l.b16 %v2612_v47  ;;  %v1613_v47 = vld [vmem:[%s3557_s0 + $0x1a] sm:$0x2] }
 0x2e2   :  { %v1683_v23 = vld.sshfl [vmem:[#allocation1] sm:$0xff pattern:$0x73625140]  ;;  %v1942_v5 = vsel %vm378_vm2, %v1884_v11, %v1941_v9  ;;  %v890_v11 = vunpack.c.l.b16 %v2594_v40  ;;  %v896_v40 = vunpack.c.l.b16 %v2624_v8 }
 0x2e3   :  { %1690 = vst [vmem:[#allocation1] ss:$4 sm:$0xff] %v1608_v34  ;;  %v1887_v24 = vunpack.c.l.b16 %v1683_v23  ;;  %v1610_v34 = vld [vmem:[%s3557_s0 + $0x14] sm:$0x2]  ;;  %v1944_v46 = vsel %vm381_vm3, %v1943_v50, %v1942_v5  ;;  %v889_v50 = vunpack.c.l.b16 %v2592_v35 }
 0x2e4   :  { %v1946_v41 = vsel %vm384_vm4, %v1945_v18, %v1944_v46  ;;  %v891_v18 = vunpack.c.l.b16 %v2602_v51  ;;  %v897_v51 = vunpack.c.l.b16 %v2632_v22  ;;  %v961_v5 = vrot.slane %v890_v11, 4 }
 0x2e5   :  { %v1687_v43 = vld.sshfl [vmem:[#allocation1 + $0x20] sm:$0xff pattern:$0x73625140]  ;;  %v1947_v42 = vrot.slane %v1887_v24, 5  ;;  %v886_v24 = vunpack.c.l.b16 %v2574_v30  ;;  %v894_v30 = vunpack.c.l.b16 %v2614_v54  ;;  %v955_v54 = vrot.slane %v887_v15, 7 }
 0x2e6   :  { %1694 = vst [vmem:[#allocation1 + $0x20] ss:$4 sm:$0xff] %v1609_v52  ;;  %v1888_v20 = vunpack.c.l.b16 %v1687_v43  ;;  %v888_v52 = vunpack.c.l.b16 %v2584_v39  ;;  %v1612_v39 = vld [vmem:[%s3557_s0 + $0x18] sm:$0x2]  ;;  %v959_v7 = vrot.slane %v889_v50, 5  ;;  %v900_v22 = vunpack.c.l.b16 %v2644_v63 }
 0x2e7   :  { %v1948_v36 = vsel %vm387_vm5, %v1947_v42, %v1946_v41  ;;  %v973_v15 = vrot.slane %v897_v51, 5 }
 0x2e8   :  { %v1949_v43 = vrot.slane %v1888_v20, 4  ;;  %v892_v20 = vunpack.c.l.b16 %v2604_v10  ;;  %v898_v10 = vunpack.c.l.b16 %v2634_v21  ;;  %v957_v9 = vrot.slane %v888_v52, 6 }
 0x2ea   :  { %v1691_v1 = vld.sshfl [vmem:[#allocation1] sm:$0xff pattern:$0x73625140]  ;;  %v3114_v25 = vsel %vm390_vm6, %v1949_v43, %v1948_v36  ;;  %v965_v46 = vrot.slane %v892_v20, 2  ;;  %v971_v36 = vrot.slane %v896_v40, 6  ;;  %v975_v63 = vrot.slane %v898_v10, 4 }
 0x2eb   :  { %1698 = vst [vmem:[#allocation1] ss:$4 sm:$0xff] %v1610_v34  ;;  %v1889_v48 = vunpack.c.l.b16 %v1691_v1  ;;  %v953_v34 = vrot.slane %v885_v62, 1  ;;  %v963_v1 = vrot.slane %v891_v18, 3  ;;  %v979_v20 = vrot.slane %v900_v22, 2 }
 0x2ec   :  { %v1392_v40 = vunpack.c.l.b16 %v2877_v32  ;;  %v1396_v32 = vunpack.c.l.b16 %v2897_v12  ;;  %v1402_v12 = vunpack.c.l.b16 %v2927_v57 }
 0x2ed   :  { %v1695_v60 = vld.sshfl [vmem:[#allocation1 + $0x20] sm:$0xff pattern:$0x73625140]  ;;  %v1951_v17 = vrot.slane %v1889_v48, 3  ;;  %v954_v21 = vsel %vm372_vm0, %v886_v24, %v953_v34  ;;  %v967_v48 = vrot.slane %v893_v26, 1  ;;  %v1393_v34 = vunpack.c.l.b16 %v2885_v27 }
 0x2ee   :  { %1702 = vst [vmem:[#allocation1 + $0x20] ss:$4 sm:$0xff] %v1611_v28  ;;  %v1890_v53 = vunpack.c.l.b16 %v1695_v60  ;;  %v899_v28 = vunpack.c.l.b16 %v2642_v3  ;;  %v956_v43 = vsel %vm375_vm1, %v955_v54, %v954_v21  ;;  %v1614_v26 = vld [vmem:[%s3557_s0 + $0x1c] sm:$0x2]  ;;  %v1403_v21 = vunpack.c.l.b16 %v2935_v49  ;;  %v1616_v49 = vld [vmem:[%s3557_s0 + $0x20] sm:$0x2] }
 0x2ef   :  { %v958_v3 = vsel %vm378_vm2, %v957_v9, %v956_v43 }
 0x2f0   :  { %v1952_v23 = vrot.slane %v1890_v53, 2  ;;  %v969_v53 = vrot.slane %v895_v16, 7  ;;  %v960_v52 = vsel %vm381_vm3, %v959_v7, %v958_v3  ;;  %v1394_v7 = vunpack.c.l.b16 %v2887_v37 }
 0x2f1   :  { %v962_v11 = vsel %vm384_vm4, %v961_v5, %v960_v52  ;;  %v1400_v37 = vunpack.c.l.b16 %v2917_v55  ;;  %v1406_v55 = vunpack.c.l.b16 %v2947_v0 }
 0x2f2   :  { %v1953_v35 = vsel %vm372_vm0, %v1952_v23, %v1951_v17  ;;  %v1699_v42 = vld.sshfl [vmem:[#allocation1] sm:$0xff pattern:$0x73625140]  ;;  %v968_v17 = vsel %vm372_vm0, %v894_v30, %v967_v48  ;;  %v977_v23 = vrot.slane %v899_v28, 3  ;;  %v964_v30 = vsel %vm387_vm5, %v963_v1, %v962_v11 }
 0x2f3   :  { %1706 = vst [vmem:[#allocation1] ss:$4 sm:$0xff] %v1612_v39  ;;  %v1891_v8 = vunpack.c.l.b16 %v1699_v42  ;;  %v970_v50 = vsel %vm375_vm1, %v969_v53, %v968_v17  ;;  %v1391_v39 = vunpack.c.l.b16 %v2875_v59  ;;  %v966_v10 = vsel %vm390_vm6, %v965_v46, %v964_v30 }
 0x2f4   :  { %v972_v18 = vsel %vm378_vm2, %v971_v36, %v970_v50  ;;  %v1395_v59 = vunpack.c.l.b16 %v2895_v33  ;;  %v1397_v1 = vunpack.c.l.b16 %v2905_v44  ;;  %v1398_v46 = vunpack.c.l.b16 %v2907_v31 }
 0x2f5   :  { %v1703_v60 = vld.sshfl [vmem:[#allocation1 + $0x20] sm:$0xff pattern:$0x73625140]  ;;  %v1954_v62 = vrot.slane %v1891_v8, 1  ;;  %v974_v16 = vsel %vm381_vm3, %v973_v15, %v972_v18  ;;  %v1399_v8 = vunpack.c.l.b16 %v2915_v45  ;;  %v1401_v33 = vunpack.c.l.b16 %v2925_v56 }
 0x2f6   :  { %1710 = vst [vmem:[#allocation1 + $0x20] ss:$4 sm:$0xff] %v1613_v47  ;;  %v1892_v41 = vunpack.c.l.b16 %v1703_v60  ;;  %v976_v47 = vsel %vm384_vm4, %v975_v63, %v974_v16  ;;  %v1404_v44 = vunpack.c.l.b16 %v2937_v58  ;;  %v1460_v31 = vrot.slane %v1392_v40, 1 }
 0x2f7   :  { %v1955_v24 = vsel %vm375_vm1, %v1954_v62, %v1953_v35  ;;  %v1615_v35 = vld [vmem:[%s3557_s0 + $0x1e] sm:$0x2]  ;;  %v978_v9 = vsel %vm387_vm5, %v977_v23, %v976_v47  ;;  %v1405_v53 = vunpack.c.l.b16 %v2945_v61  ;;  %v1463_v45 = vrot.slane %v1394_v7, 7  ;;  %v1617_v61 = vld [vmem:[%s3557_s0 + $0x22] sm:$0x2] }
 0x2f8   :  { %v1956_v51 = vsel %vm378_vm2, %v1892_v41, %v1955_v24  ;;  %v980_v5 = vsel %vm390_vm6, %v979_v20, %v978_v9  ;;  %v1459_v41 = vrot.slane %v1391_v39, 2  ;;  %v1465_v36 = vrot.slane %v1395_v59, 6 }
 0x2f9   :  { %v1024_v60 = vpack.c.b16 %v980_v5, %v966_v10  ;;  %v1467_v62 = vrot.slane %v1396_v32, 5  ;;  %v1469_v57 = vrot.slane %v1397_v1, 4  ;;  %v1473_v3 = vrot.slane %v1399_v8, 2  ;;  %v3624_v8 = vld [vmem:[#allocation2_spill] sm:$0xff] }
 0x2fa   :  { %v1707_v54 = vld.sshfl [vmem:[#allocation1] sm:$0xff pattern:$0x73625140]  ;;  %v1461_v56 = vsel %vm372_vm0, %v1460_v31, %v1459_v41  ;;  %v1474_v17 = vrot.slane %v1400_v37, 1  ;;  %v1477_v15 = vrot.slane %v1402_v12, 7  ;;  %v1471_v63 = vrot.slane %v1398_v46, 3 }
 0x2fb   :  { %1714 = vst [vmem:[#allocation1] ss:$4 sm:$0xff] %v1614_v26  ;;  %v1893_v28 = vunpack.c.l.b16 %v1707_v54  ;;  %1044 = vmatmul.bf16.gmra.mxu1 %v1024_v60  ;;  %v1462_v58 = vsel %vm375_vm1, %v1393_v34, %v1461_v56  ;;  %v1479_v23 = vrot.slane %v1403_v21, 6  ;;  %v1481_v26 = vrot.slane %v1404_v44, 5  ;;  %v3628_v44 = vld [vmem:[#allocation8_spill] sm:$0xff]  ;;  %v3632_v56 = vld [vmem:[#allocation10_spill] sm:$0xff] }
 0x2fc   :  { %v1464_v50 = vsel %vm378_vm2, %v1463_v45, %v1462_v58  ;;  %v1475_v20 = vsel %vm372_vm0, %v1474_v17, %v1473_v3  ;;  %v1483_v40 = vrot.slane %v1405_v53, 4  ;;  %v1485_v47 = vrot.slane %v1406_v55, 3  ;;  %v3630_v53 = vld [vmem:[#allocation5_spill] sm:$0xff] }
 0x2fd   :  { %v1711_v42 = vld.sshfl [vmem:[#allocation1 + $0x20] sm:$0xff pattern:$0x73625140]  ;;  %v1957_v22 = vrot.slane %v1893_v28, 7  ;;  %v1466_v18 = vsel %vm381_vm3, %v1465_v36, %v1464_v50  ;;  %v1476_v39 = vsel %vm375_vm1, %v1401_v33, %v1475_v20  ;;  %v347_v9 = vunpack.c.l.b16 %v2388_v2 }
 0x2fe   :  { %1718 = vst [vmem:[#allocation1 + $0x20] ss:$4 sm:$0xff] %v1615_v35  ;;  %v1894_v27 = vunpack.c.l.b16 %v1711_v42  ;;  %v1468_v16 = vsel %vm384_vm4, %v1467_v62, %v1466_v18  ;;  %v1478_v10 = vsel %vm378_vm2, %v1477_v15, %v1476_v39  ;;  %v348_v7 = vunpack.c.l.b16 %v2391_v6  ;;  %v1618_v2 = vld [vmem:[%s3557_s0 + $0x24] sm:$0x2]  ;;  %v1619_v33 = vld [vmem:[%s3557_s0 + $0x26] sm:$0x2] }
 0x2ff   :  { %v1958_v43 = vsel %vm381_vm3, %v1957_v22, %v1956_v51  ;;  %v1470_v51 = vsel %vm387_vm5, %v1469_v57, %v1468_v16  ;;  %v1480_v54 = vsel %vm381_vm3, %v1479_v23, %v1478_v10  ;;  %v349_v28 = vunpack.c.l.b16 %v2400_v13  ;;  %v3625_v22 = vld [vmem:[#allocation3_spill] sm:$0xff]  ;;  %v3631_v36 = vld [vmem:[#allocation9_spill] sm:$0xff]  ;;  %v1620_v10 = vld [vmem:[%s3557_s0 + $0x28] sm:$0x2] }
 0x300   :  { %v1959_v48 = vrot.slane %v1894_v27, 6  ;;  %v1472_v32 = vsel %vm390_vm6, %v1471_v63, %v1470_v51  ;;  %v1482_v42 = vsel %vm384_vm4, %v1481_v26, %v1480_v54  ;;  %v350_v46 = vunpack.c.l.b16 %v2402_v14  ;;  %v3626_v14 = vld [vmem:[#allocation6_spill] sm:$0xff] }
 0x301   :  { %v1484_v1 = vsel %vm387_vm5, %v1483_v40, %v1482_v42  ;;  %v351_v27 = vunpack.c.l.b16 %v2410_v19  ;;  %v352_v37 = vunpack.c.l.b16 %v3624_v8  ;;  %v353_v13 = vunpack.c.l.b16 %v3625_v22  ;;  %v3627_v19 = vld [vmem:[#allocation7_spill] sm:$0xff] }
 0x302   :  { %v1715_v52 = vld.sshfl [vmem:[#allocation1] sm:$0xff pattern:$0x73625140]  ;;  %v1960_v0 = vsel %vm384_vm4, %v1959_v48, %v1958_v43  ;;  %v1486_v60 = vsel %vm390_vm6, %v1485_v47, %v1484_v1  ;;  %v356_v21 = vunpack.c.l.b16 %v3626_v14  ;;  %v357_v48 = vunpack.c.l.b16 %v3627_v19  ;;  %v1624_v22 = vld [vmem:[%s3557_s0 + $0x30] sm:$0x2] }
 0x303   :  { %v1895_v11 = vunpack.c.l.b16 %v1715_v52  ;;  %1722 = vst [vmem:[#allocation1] ss:$4 sm:$0xff] %v1616_v49  ;;  %v1530_v12 = vpack.c.b16 %v1486_v60, %v1472_v32  ;;  %v358_v41 = vunpack.c.l.b16 %v3628_v44  ;;  %v355_v45 = vunpack.c.l.b16 %v3630_v53  ;;  %v3633_v49 = vld [vmem:[#allocation11_spill] sm:$0xff]  ;;  %v1623_v60 = vld [vmem:[%s3557_s0 + $0x2e] sm:$0x2] }
 0x304   :  { %v359_v55 = vunpack.c.l.b16 %v3631_v36  ;;  %v360_v62 = vunpack.c.l.b16 %v3632_v56  ;;  %v361_v58 = vunpack.c.l.b16 %v3633_v49  ;;  %v434_v3 = vrot.slane %v348_v7, 7 }
 0x305   :  { %v1719_v24 = vld.sshfl [vmem:[#allocation1 + $0x20] sm:$0xff pattern:$0x73625140]  ;;  %v1961_v35 = vrot.slane %v1895_v11, 5  ;;  %1550 = vmatmul.bf16.gmra.mxu2 %v1530_v12  ;;  %v436_v17 = vrot.slane %v349_v28, 6  ;;  %v438_v15 = vrot.slane %v350_v46, 5 }
 0x306   :  { %v1896_v30 = vunpack.c.l.b16 %v1719_v24  ;;  %1726 = vst [vmem:[#allocation1 + $0x20] ss:$4 sm:$0xff] %v1617_v61  ;;  %v3634_v61 = vld [vmem:[#allocation12_spill] sm:$0xff]  ;;  %v442_v50 = vrot.slane %v352_v37, 3  ;;  %v448_v63 = vrot.slane %v356_v21, 7  ;;  %v435_v23 = vsel %vm372_vm0, %v434_v3, %v347_v9 }
 0x307   :  { %v1962_v59 = vsel %vm387_vm5, %v1961_v35, %v1960_v0  ;;  %v362_v52 = vunpack.c.l.b16 %v3634_v61  ;;  %v440_v0 = vrot.slane %v351_v27, 4  ;;  %v450_v24 = vrot.slane %v357_v48, 6  ;;  %v1621_v9 = vld [vmem:[%s3557_s0 + $0x2a] sm:$0x2] }
 0x308   :  { %v1963_v34 = vrot.slane %v1896_v30, 4  ;;  %v452_v11 = vrot.slane %v358_v41, 5  ;;  %v454_v18 = vrot.slane %v359_v55, 4  ;;  %v437_v20 = vsel %vm375_vm1, %v436_v17, %v435_v23 }
 0x309   :  { %v444_v26 = vrot.slane %v353_v13, 2  ;;  %v449_v30 = vsel %vm372_vm0, %v448_v63, %v355_v45  ;;  %v456_v16 = vrot.slane %v360_v62, 3  ;;  %v439_v39 = vsel %vm378_vm2, %v438_v15, %v437_v20  ;;  %v1625_v13 = vld [vmem:[%s3557_s0 + $0x32] sm:$0x2]  ;;  %v3635_v63 = vld [vmem:[#allocation21_spill] sm:$0xff] }
 0x30a   :  { %v1964_v5 = vsel %vm390_vm6, %v1963_v34, %v1962_v59  ;;  %v3210_v31 = vld.sshfl [vmem:[#allocation1] sm:$0xff pattern:$0x73625140]  ;;  %v451_v35 = vsel %vm375_vm1, %v450_v24, %v449_v30  ;;  %v458_v51 = vrot.slane %v361_v58, 2  ;;  %v441_v47 = vsel %vm381_vm3, %v440_v0, %v439_v39  ;;  %v1627_v58 = vld [vmem:[%s3557_s0 + $0x36] sm:$0x2] }
 0x30b   :  { %v2035_v6 = vpack.c.b16 %v1964_v5, %v3114_v25  ;;  %v3629_v25 = vld [vmem:[#allocation4_spill] sm:$0xff]  ;;  %1730 = vst [vmem:[#allocation1] ss:$4 sm:$0xff] %v1618_v2  ;;  %v453_v34 = vsel %vm378_vm2, %v452_v11, %v451_v35  ;;  %v460_v54 = vrot.slane %v362_v52, 1  ;;  %v443_v7 = vsel %vm384_vm4, %v442_v50, %v441_v47  ;;  %v3636_v24 = vld [vmem:[#allocation22_spill] sm:$0xff] }
 0x30c   :  { %v354_v43 = vunpack.c.l.b16 %v3629_v25  ;;  %v455_v59 = vsel %vm381_vm3, %v454_v18, %v453_v34  ;;  %v445_v42 = vsel %vm387_vm5, %v444_v26, %v443_v7  ;;  %v1897_v14 = vunpack.c.l.b16 %v3210_v31  ;;  %v1626_v31 = vld [vmem:[%s3557_s0 + $0x34] sm:$0x2]  ;;  %v3640_v47 = vld [vmem:[#allocation26_spill] sm:$0xff] }
 0x30d   :  { %2051 = vmatmul.bf16.vlgmr.msra.gmra.mxu3 %v2035_v6  ;;  %v3216_v57 = vld.sshfl [vmem:[#allocation1 + $0x20] sm:$0xff pattern:$0x73625140]  ;;  %v457_v28 = vsel %vm384_vm4, %v456_v16, %v455_v59  ;;  %v1622_v6 = vld [vmem:[%s3557_s0 + $0x2c] sm:$0x2]  ;;  %v901_v23 = vunpack.c.l.b16 %v3635_v63  ;;  %v902_v11 = vunpack.c.l.b16 %v3636_v24  ;;  %v3637_v26 = vld [vmem:[#allocation23_spill] sm:$0xff]  ;;  %v906_v34 = vunpack.c.l.b16 %v3640_v47 }
 0x30e   :  { %1734 = vst [vmem:[#allocation1 + $0x20] ss:$4 sm:$0xff] %v1619_v33  ;;  %v446_v40 = vrot.slane %v354_v43, 1  ;;  %v459_v46 = vsel %vm387_vm5, %v458_v51, %v457_v28  ;;  %v1898_v21 = vunpack.c.l.b16 %v3216_v57  ;;  %v1965_v53 = vrot.slane %v1897_v14, 3  ;;  %v3638_v16 = vld [vmem:[#allocation24_spill] sm:$0xff]  ;;  %v3639_v51 = vld [vmem:[#allocation25_spill] sm:$0xff] }
 0x30f   :  { %v461_v27 = vsel %vm390_vm6, %v460_v54, %v459_v46  ;;  %v903_v30 = vunpack.c.l.b16 %v3637_v26  ;;  %v904_v39 = vunpack.c.l.b16 %v3638_v16  ;;  %v3642_v59 = vld [vmem:[#allocation28_spill] sm:$0xff]  ;;  %v3645_v46 = vld [vmem:[#allocation31_spill] sm:$0xff] }
 0x310   :  { %v447_v1 = vsel %vm390_vm6, %v446_v40, %v445_v42  ;;  %v1966_v45 = vrot.slane %v1898_v21, 2  ;;  %v3643_v42 = vld [vmem:[#allocation29_spill] sm:$0xff]  ;;  %v3650_v21 = vld [vmem:[#allocation36_spill] sm:$0xff] }
 0x311   :  { %v478_v2 = vpack.c.b16 %v461_v27, %v447_v1  ;;  %v909_v28 = vunpack.c.l.b16 %v3643_v42  ;;  %v911_v27 = vunpack.c.l.b16 %v3645_v46 }
 0x312   :  { %v1731_v32 = vld.sshfl [vmem:[#allocation1] sm:$0xff pattern:$0x73625140]  ;;  %v1967_v56 = vsel %vm372_vm0, %v1966_v45, %v1965_v53  ;;  %v989_v45 = vrot.slane %v906_v34, 4 }
 0x313   :  { %1738 = vst [vmem:[#allocation1] ss:$4 sm:$0xff] %v1620_v10  ;;  %550 = vmatmul.bf16.gmra.mxu0 %v478_v2  ;;  %v1899_v19 = vunpack.c.l.b16 %v1731_v32  ;;  %v905_v10 = vunpack.c.l.b16 %v3639_v51  ;;  %v908_v32 = vunpack.c.l.b16 %v3642_v59  ;;  %v3646_v2 = vld [vmem:[#allocation32_spill] sm:$0xff]  ;;  %v1409_v51 = vunpack.c.l.b16 %v2965_v29  ;;  %v3655_v29 = vld [vmem:[#allocation49_spill] sm:$0xff] }
 0x315   :  { %v1735_v5 = vld.sshfl [vmem:[#allocation1 + $0x20] sm:$0xff pattern:$0x73625140]  ;;  %v1968_v36 = vrot.slane %v1899_v19, 1  ;;  %v916_v19 = vunpack.c.l.b16 %v3650_v21 }
 0x316   :  { %1742 = vst [vmem:[#allocation1 + $0x20] ss:$4 sm:$0xff] %v1621_v9  ;;  %v1900_v48 = vunpack.c.l.b16 %v1735_v5  ;;  %v3641_v9 = vld [vmem:[#allocation27_spill] sm:$0xff]  ;;  %v3644_v5 = vld [vmem:[#allocation30_spill] sm:$0xff] }
 0x317   :  { %v1969_v57 = vsel %vm375_vm1, %v1968_v36, %v1967_v56  ;;  %v907_v7 = vunpack.c.l.b16 %v3641_v9  ;;  %v910_v1 = vunpack.c.l.b16 %v3644_v5  ;;  %v1407_v56 = vunpack.c.l.b16 %v2955_v4 }
 0x318   :  { %v1970_v3 = vsel %vm378_vm2, %v1900_v48, %v1969_v57  ;;  %v1629_v48 = vld [vmem:[%s3557_s0 + $0x3a] sm:$0x2]  ;;  %v1007_v26 = vrot.slane %v916_v19, 2  ;;  %v3659_v19 = vld [vmem:[#allocation53_spill] sm:$0xff] }
 0x319   :  { %v991_v36 = vrot.slane %v907_v7, 3  ;;  %v3652_v7 = vld [vmem:[#allocation46_spill] sm:$0xff] }
 0x31a   :  { %v1739_v8 = vld.sshfl [vmem:[#allocation1] sm:$0xff pattern:$0x73625140]  ;;  %v1411_v59 = vunpack.c.l.b16 %v3652_v7 }
 0x31b   :  { %1746 = vst [vmem:[#allocation1] ss:$4 sm:$0xff] %v1622_v6  ;;  %v1901_v44 = vunpack.c.l.b16 %v1739_v8  ;;  %v912_v6 = vunpack.c.l.b16 %v3646_v2 }
 0x31d   :  { %v1743_v37 = vld.sshfl [vmem:[#allocation1 + $0x20] sm:$0xff pattern:$0x73625140]  ;;  %v1971_v55 = vrot.slane %v1901_v44, 7  ;;  %v981_v44 = vrot.slane %v901_v23, 1 }
 0x31e   :  { %1750 = vst [vmem:[#allocation1 + $0x20] ss:$4 sm:$0xff] %v1623_v60  ;;  %v1902_v41 = vunpack.c.l.b16 %v1743_v37  ;;  %v3647_v60 = vld [vmem:[#allocation33_spill] sm:$0xff]  ;;  %v1628_v37 = vld [vmem:[%s3557_s0 + $0x38] sm:$0x2] }
 0x31f   :  { %v1972_v61 = vsel %vm381_vm3, %v1971_v55, %v1970_v3  ;;  %v913_v8 = vunpack.c.l.b16 %v3647_v60  ;;  %v993_v55 = vrot.slane %v908_v32, 2  ;;  %v982_v57 = vsel %vm372_vm0, %v902_v11, %v981_v44 }
 0x320   :  { %v1973_v62 = vrot.slane %v1902_v41, 6  ;;  %v983_v41 = vrot.slane %v903_v30, 7  ;;  %v1630_v30 = vld [vmem:[%s3557_s0 + $0x3c] sm:$0x2] }
 0x321   :  { %v1001_v4 = vrot.slane %v913_v8, 5  ;;  %v3656_v8 = vld [vmem:[#allocation50_spill] sm:$0xff] }
 0x322   :  { %v1747_v33 = vld.sshfl [vmem:[#allocation1] sm:$0xff pattern:$0x73625140]  ;;  %v1974_v50 = vsel %vm384_vm4, %v1973_v62, %v1972_v61  ;;  %v999_v61 = vrot.slane %v912_v6, 6 }
 0x323   :  { %1754 = vst [vmem:[#allocation1] ss:$4 sm:$0xff] %v1624_v22  ;;  %v1903_v25 = vunpack.c.l.b16 %v1747_v33 }
 0x325   :  { %v1751_v12 = vld.sshfl [vmem:[#allocation1 + $0x20] sm:$0xff pattern:$0x73625140]  ;;  %v1975_v49 = vrot.slane %v1903_v25, 5  ;;  %v985_v25 = vrot.slane %v904_v39, 6 }
 0x326   :  { %1758 = vst [vmem:[#allocation1 + $0x20] ss:$4 sm:$0xff] %v1625_v13  ;;  %v1904_v43 = vunpack.c.l.b16 %v1751_v12  ;;  %v3648_v13 = vld [vmem:[#allocation34_spill] sm:$0xff]  ;;  %v3649_v12 = vld [vmem:[#allocation35_spill] sm:$0xff] }
 0x327   :  { %v1976_v20 = vsel %vm387_vm5, %v1975_v49, %v1974_v50  ;;  %v914_v33 = vunpack.c.l.b16 %v3648_v13  ;;  %v915_v14 = vunpack.c.l.b16 %v3649_v12  ;;  %v995_v49 = vrot.slane %v909_v28, 1  ;;  %v3653_v28 = vld [vmem:[#allocation47_spill] sm:$0xff] }
 0x328   :  { %v1977_v17 = vrot.slane %v1904_v43, 4  ;;  %v987_v43 = vrot.slane %v905_v10, 5  ;;  %v1631_v10 = vld [vmem:[%s3557_s0 + $0x3e] sm:$0x2]  ;;  %v1412_v5 = vunpack.c.l.b16 %v3653_v28  ;;  %v3665_v28 = vld [vmem:[#allocation14_spill] sm:$0xff] }
 0x329   :  { %v996_v50 = vsel %vm372_vm0, %v910_v1, %v995_v49  ;;  %v1003_v24 = vrot.slane %v914_v33, 4  ;;  %v1005_v11 = vrot.slane %v915_v14, 3  ;;  %v3654_v1 = vld [vmem:[#allocation48_spill] sm:$0xff] }
 0x32a   :  { %v1755_v15 = vld.sshfl [vmem:[#allocation1] sm:$0xff pattern:$0x73625140]  ;;  %v3271_v40 = vsel %vm390_vm6, %v1977_v17, %v1976_v20  ;;  %v984_v17 = vsel %vm375_vm1, %v983_v41, %v982_v57  ;;  %v1413_v46 = vunpack.c.l.b16 %v3654_v1  ;;  %v3658_v14 = vld [vmem:[#allocation52_spill] sm:$0xff]  ;;  %v3660_v41 = vld [vmem:[#allocation54_spill] sm:$0xff]  ;;  %v1487_v57 = vrot.slane %v1407_v56, 2 }
 0x32b   :  { %1762 = vst [vmem:[#allocation1] ss:$4 sm:$0xff] %v1626_v31  ;;  %v1905_v0 = vunpack.c.l.b16 %v1755_v15  ;;  %v997_v15 = vrot.slane %v911_v27, 7  ;;  %v1414_v27 = vunpack.c.l.b16 %v3655_v29  ;;  %v1417_v21 = vunpack.c.l.b16 %v3658_v14  ;;  %v3669_v14 = vld [vmem:[#allocation18_spill] sm:$0xff] }
 0x32d   :  { %v1759_v52 = vld.sshfl [vmem:[#allocation1 + $0x20] sm:$0xff pattern:$0x73625140]  ;;  %v1979_v35 = vrot.slane %v1905_v0, 3  ;;  %v986_v0 = vsel %vm378_vm2, %v985_v25, %v984_v17  ;;  %v998_v23 = vsel %vm375_vm1, %v997_v15, %v996_v50  ;;  %v1419_v25 = vunpack.c.l.b16 %v3660_v41 }
 0x32e   :  { %1766 = vst [vmem:[#allocation1 + $0x20] ss:$4 sm:$0xff] %v1627_v58  ;;  %v1906_v18 = vunpack.c.l.b16 %v1759_v52  ;;  %v1408_v58 = vunpack.c.l.b16 %v2957_v38  ;;  %v988_v63 = vsel %vm381_vm3, %v987_v43, %v986_v0  ;;  %v1000_v20 = vsel %vm378_vm2, %v999_v61, %v998_v23  ;;  %v3661_v43 = vld [vmem:[#allocation55_spill] sm:$0xff] }
 0x32f   :  { %v1493_v15 = vrot.slane %v1411_v59, 6  ;;  %v1495_v61 = vrot.slane %v1412_v5, 5  ;;  %v1497_v50 = vrot.slane %v1413_v46, 4  ;;  %v364_v5 = vunpack.c.l.b16 %v3665_v28 }
 0x330   :  { %v1980_v54 = vrot.slane %v1906_v18, 2  ;;  %v990_v18 = vsel %vm384_vm4, %v989_v45, %v988_v63  ;;  %v3662_v45 = vld [vmem:[#allocation56_spill] sm:$0xff]  ;;  %v1488_v49 = vrot.slane %v1408_v58, 1  ;;  %v1632_v63 = vld [vmem:[%s3557_s0 + $0x40] sm:$0x2] }
 0x331   :  { %v992_v39 = vsel %vm387_vm5, %v991_v36, %v990_v18  ;;  %v1421_v36 = vunpack.c.l.b16 %v3662_v45  ;;  %v1634_v45 = vld [vmem:[%s3557_s0 + $0x44] sm:$0x2] }
 0x332   :  { %v1981_v22 = vsel %vm372_vm0, %v1980_v54, %v1979_v35  ;;  %v1763_v53 = vld.sshfl [vmem:[#allocation1] sm:$0xff pattern:$0x73625140]  ;;  %v1002_v35 = vsel %vm381_vm3, %v1001_v4, %v1000_v20  ;;  %v994_v47 = vsel %vm390_vm6, %v993_v55, %v992_v39  ;;  %v1489_v0 = vsel %vm372_vm0, %v1488_v49, %v1487_v57 }
 0x333   :  { %1770 = vst [vmem:[#allocation1] ss:$4 sm:$0xff] %v1628_v37  ;;  %v1907_v31 = vunpack.c.l.b16 %v1763_v53  ;;  %v1004_v34 = vsel %vm384_vm4, %v1003_v24, %v1002_v35  ;;  %v3651_v54 = vld [vmem:[#allocation45_spill] sm:$0xff]  ;;  %v1415_v37 = vunpack.c.l.b16 %v3656_v8  ;;  %v1420_v53 = vunpack.c.l.b16 %v3661_v43  ;;  %v3667_v8 = vld [vmem:[#allocation16_spill] sm:$0xff] }
 0x334   :  { %v1410_v9 = vunpack.c.l.b16 %v3651_v54  ;;  %v1006_v42 = vsel %vm387_vm5, %v1005_v11, %v1004_v34  ;;  %v1499_v4 = vrot.slane %v1414_v27, 3  ;;  %v1490_v23 = vsel %vm375_vm1, %v1409_v51, %v1489_v0  ;;  %v1633_v11 = vld [vmem:[%s3557_s0 + $0x42] sm:$0x2]  ;;  %v3666_v27 = vld [vmem:[#allocation15_spill] sm:$0xff] }
 0x335   :  { %v1767_v62 = vld.sshfl [vmem:[#allocation1 + $0x20] sm:$0xff pattern:$0x73625140]  ;;  %v1982_v52 = vrot.slane %v1907_v31, 1  ;;  %v1008_v60 = vsel %vm390_vm6, %v1007_v26, %v1006_v42  ;;  %v1501_v24 = vrot.slane %v1415_v37, 2  ;;  %v1507_v20 = vrot.slane %v1419_v25, 6 }
 0x336   :  { %1774 = vst [vmem:[#allocation1 + $0x20] ss:$4 sm:$0xff] %v1629_v48  ;;  %v1908_v3 = vunpack.c.l.b16 %v1767_v62  ;;  %v1025_v12 = vpack.c.b16 %v1008_v60, %v994_v47  ;;  %v1418_v48 = vunpack.c.l.b16 %v3659_v19  ;;  %v3663_v62 = vld [vmem:[#allocation57_spill] sm:$0xff]  ;;  %v1491_v17 = vrot.slane %v1410_v9, 7  ;;  %v3670_v19 = vld [vmem:[#allocation19_spill] sm:$0xff]  ;;  %v3671_v25 = vld [vmem:[#allocation20_spill] sm:$0xff] }
 0x337   :  { %v1983_v38 = vsel %vm375_vm1, %v1982_v52, %v1981_v22  ;;  %v3657_v22 = vld [vmem:[#allocation51_spill] sm:$0xff]  ;;  %v1422_v31 = vunpack.c.l.b16 %v3663_v62  ;;  %v1509_v26 = vrot.slane %v1420_v53, 5  ;;  %v3664_v9 = vld [vmem:[#allocation13_spill] sm:$0xff]  ;;  %v366_v37 = vunpack.c.l.b16 %v3667_v8 }
 0x338   :  { %v1984_v16 = vsel %vm378_vm2, %v1908_v3, %v1983_v38  ;;  %v1416_v13 = vunpack.c.l.b16 %v3657_v22  ;;  %1049 = vmatmul.bf16.gmra.mxu1 %v1025_v12  ;;  %v1505_v58 = vrot.slane %v1418_v48, 7  ;;  %v1492_v18 = vsel %vm378_vm2, %v1491_v17, %v1490_v23  ;;  %v3668_v22 = vld [vmem:[#allocation17_spill] sm:$0xff] }
 0x339   :  { %v1494_v35 = vsel %vm381_vm3, %v1493_v15, %v1492_v18  ;;  %v1513_v51 = vrot.slane %v1422_v31, 3  ;;  %v363_v7 = vunpack.c.l.b16 %v3664_v9  ;;  %v369_v48 = vunpack.c.l.b16 %v3670_v19  ;;  %v1638_v18 = vld [vmem:[%s3557_s0 + $0x4c] sm:$0x2]  ;;  %v3678_v19 = vld [vmem:[#allocation43_spill] sm:$0xff] }
 0x33a   :  { %v1771_v32 = vld.sshfl [vmem:[#allocation1] sm:$0xff pattern:$0x73625140]  ;;  %v1502_v56 = vrot.slane %v1416_v13, 1  ;;  %v1496_v34 = vsel %vm384_vm4, %v1495_v61, %v1494_v35  ;;  %v367_v13 = vunpack.c.l.b16 %v3668_v22  ;;  %v370_v43 = vunpack.c.l.b16 %v3671_v25 }
 0x33b   :  { %1778 = vst [vmem:[#allocation1] ss:$4 sm:$0xff] %v1630_v30  ;;  %v1909_v6 = vunpack.c.l.b16 %v1771_v32  ;;  %v1511_v30 = vrot.slane %v1421_v36, 4  ;;  %v1498_v32 = vsel %vm387_vm5, %v1497_v50, %v1496_v34  ;;  %v462_v53 = vrot.slane %v364_v5, 7  ;;  %v1635_v36 = vld [vmem:[%s3557_s0 + $0x46] sm:$0x2] }
 0x33c   :  { %v1500_v46 = vsel %vm390_vm6, %v1499_v4, %v1498_v32  ;;  %v466_v31 = vrot.slane %v366_v37, 5  ;;  %v468_v57 = vrot.slane %v367_v13, 4  ;;  %v472_v61 = vrot.slane %v369_v48, 2  ;;  %v1642_v34 = vld [vmem:[%s3557_s0 + $0x54] sm:$0x2]  ;;  %v3672_v5 = vld [vmem:[#allocation37_spill] sm:$0xff] }
 0x33d   :  { %v1775_v2 = vld.sshfl [vmem:[#allocation1 + $0x20] sm:$0xff pattern:$0x73625140]  ;;  %v1985_v44 = vrot.slane %v1909_v6, 7  ;;  %v474_v0 = vrot.slane %v370_v43, 1  ;;  %v923_v48 = vunpack.c.l.b16 %v3678_v19 }
 0x33e   :  { %1782 = vst [vmem:[#allocation1 + $0x20] ss:$4 sm:$0xff] %v1631_v10  ;;  %v1910_v33 = vunpack.c.l.b16 %v1775_v2  ;;  %v1503_v10 = vsel %vm372_vm0, %v1502_v56, %v1501_v24  ;;  %v365_v2 = vunpack.c.l.b16 %v3666_v27  ;;  %v1636_v24 = vld [vmem:[%s3557_s0 + $0x48] sm:$0x2]  ;;  %v3676_v13 = vld [vmem:[#allocation41_spill] sm:$0xff] }
 0x33f   :  { %v1986_v3 = vsel %vm381_vm3, %v1985_v44, %v1984_v16  ;;  %v1504_v54 = vsel %vm375_vm1, %v1417_v21, %v1503_v10  ;;  %v368_v21 = vunpack.c.l.b16 %v3669_v14 }
 0x340   :  { %v1987_v55 = vrot.slane %v1910_v33, 6  ;;  %v1506_v42 = vsel %vm378_vm2, %v1505_v58, %v1504_v54  ;;  %v464_v62 = vrot.slane %v365_v2, 6  ;;  %v1637_v58 = vld [vmem:[%s3557_s0 + $0x4a] sm:$0x2]  ;;  %v1643_v54 = vld [vmem:[%s3557_s0 + $0x56] sm:$0x2] }
 0x341   :  { %v1508_v29 = vsel %vm381_vm3, %v1507_v20, %v1506_v42  ;;  %v1639_v20 = vld [vmem:[%s3557_s0 + $0x4e] sm:$0x2]  ;;  %v3674_v2 = vld [vmem:[#allocation39_spill] sm:$0xff] }
 0x342   :  { %v1988_v52 = vsel %vm384_vm4, %v1987_v55, %v1986_v3  ;;  %v1779_v38 = vld.sshfl [vmem:[#allocation1] sm:$0xff pattern:$0x73625140]  ;;  %v1510_v60 = vsel %vm384_vm4, %v1509_v26, %v1508_v29  ;;  %v470_v3 = vrot.slane %v368_v21, 3  ;;  %v3673_v29 = vld [vmem:[#allocation38_spill] sm:$0xff] }
 0x343   :  { %v1911_v39 = vunpack.c.l.b16 %v1779_v38  ;;  %1786 = vst [vmem:[#allocation1] ss:$4 sm:$0xff] %v1632_v63  ;;  %v1512_v12 = vsel %vm387_vm5, %v1511_v30, %v1510_v60  ;;  %v918_v27 = vunpack.c.l.b16 %v3673_v29  ;;  %v3675_v60 = vld [vmem:[#allocation40_spill] sm:$0xff] }
 0x344   :  { %v1514_v41 = vsel %vm390_vm6, %v1513_v51, %v1512_v12  ;;  %v920_v8 = vunpack.c.l.b16 %v3675_v60  ;;  %v3677_v12 = vld [vmem:[#allocation42_spill] sm:$0xff] }
 0x345   :  { %v1783_v16 = vld.sshfl [vmem:[#allocation1 + $0x20] sm:$0xff pattern:$0x73625140]  ;;  %v1989_v59 = vrot.slane %v1911_v39, 5  ;;  %v1531_v55 = vpack.c.b16 %v1514_v41, %v1500_v46  ;;  %v1641_v39 = vld [vmem:[%s3557_s0 + $0x52] sm:$0x2]  ;;  %v922_v14 = vunpack.c.l.b16 %v3677_v12 }
 0x346   :  { %v1912_v47 = vunpack.c.l.b16 %v1783_v16  ;;  %1790 = vst [vmem:[#allocation1 + $0x20] ss:$4 sm:$0xff] %v1633_v11  ;;  %v1640_v16 = vld [vmem:[%s3557_s0 + $0x50] sm:$0x2] }
 0x347   :  { %v1990_v6 = vsel %vm387_vm5, %v1989_v59, %v1988_v52  ;;  %1555 = vmatmul.bf16.gmra.mxu2 %v1531_v55  ;;  %v1644_v55 = vld [vmem:[%s3557_s0 + $0x58] sm:$0x2] }
 0x348   :  { %v1991_v1 = vrot.slane %v1912_v47, 4 }
 0x34a   :  { %v1992_v33 = vsel %vm390_vm6, %v1991_v1, %v1990_v6  ;;  %v1787_v49 = vld.sshfl [vmem:[#allocation1] sm:$0xff pattern:$0x73625140]  ;;  %v917_v1 = vunpack.c.l.b16 %v3672_v5  ;;  %v919_v6 = vunpack.c.l.b16 %v3674_v2 }
 0x34b   :  { %v2036_v44 = vpack.c.b16 %v1992_v33, %v3271_v40  ;;  %v463_v40 = vsel %vm372_vm0, %v462_v53, %v363_v7  ;;  %1794 = vst [vmem:[#allocation1] ss:$4 sm:$0xff] %v1634_v45  ;;  %v1913_v51 = vunpack.c.l.b16 %v1787_v49  ;;  %v921_v33 = vunpack.c.l.b16 %v3676_v13 }
 0x34c   :  { %v465_v15 = vsel %vm375_vm1, %v464_v62, %v463_v40  ;;  %v1009_v25 = vrot.slane %v917_v1, 1  ;;  %v1011_v53 = vrot.slane %v919_v6, 7  ;;  %v1013_v45 = vrot.slane %v920_v8, 6  ;;  %v1645_v40 = vld [vmem:[%s3557_s0 + $0x5a] sm:$0x2] }
 0x34d   :  { %2056 = vmatmul.bf16.gmra.mxu3 %v2036_v44  ;;  %v1791_v17 = vld.sshfl [vmem:[#allocation1 + $0x20] sm:$0xff pattern:$0x73625140]  ;;  %v467_v52 = vsel %vm378_vm2, %v466_v31, %v465_v15  ;;  %v1993_v59 = vrot.slane %v1913_v51, 3  ;;  %v3679_v44 = vld [vmem:[#allocation44_spill] sm:$0xff]  ;;  %v1019_v49 = vrot.slane %v923_v48, 3 }
 0x34e   :  { %1798 = vst [vmem:[#allocation1 + $0x20] ss:$4 sm:$0xff] %v1635_v36  ;;  %v469_v50 = vsel %vm381_vm3, %v468_v57, %v467_v52  ;;  %v1914_v47 = vunpack.c.l.b16 %v1791_v17  ;;  %v924_v41 = vunpack.c.l.b16 %v3679_v44  ;;  %v1015_v36 = vrot.slane %v921_v33, 5  ;;  %v3680_v15 = vld [vmem:[#allocation58_spill] sm:$0xff]  ;;  %v3681_v52 = vld [vmem:[#allocation59_spill] sm:$0xff]  ;;  %v3686_v51 = vld [vmem:[#allocation64_spill] sm:$0xff] }
 0x34f   :  { %v471_v4 = vsel %vm384_vm4, %v470_v3, %v469_v50  ;;  %v1010_v31 = vsel %vm372_vm0, %v918_v27, %v1009_v25  ;;  %v1017_v57 = vrot.slane %v922_v14, 4  ;;  %v1647_v14 = vld [vmem:[%s3557_s0 + $0x5e] sm:$0x2] }
 0x350   :  { %v473_v63 = vsel %vm387_vm5, %v472_v61, %v471_v4  ;;  %v1994_v32 = vrot.slane %v1914_v47, 2  ;;  %v1012_v3 = vsel %vm375_vm1, %v1011_v53, %v1010_v31  ;;  %v1021_v17 = vrot.slane %v924_v41, 2 }
 0x351   :  { %v475_v23 = vsel %vm390_vm6, %v474_v0, %v473_v63  ;;  %v1423_v61 = vunpack.c.l.b16 %v3680_v15  ;;  %v1424_v0 = vunpack.c.l.b16 %v3681_v52  ;;  %v1014_v4 = vsel %vm378_vm2, %v1013_v45, %v1012_v3  ;;  %v3682_v63 = vld [vmem:[#allocation61_spill] sm:$0xff] }
 0x352   :  { %v479_v56 = vpack.c.b16 %v475_v23, %v475_v23  ;;  %v1795_v11 = vld.sshfl [vmem:[#allocation1] sm:$0xff pattern:$0x73625140]  ;;  %v1995_v21 = vsel %vm372_vm0, %v1994_v32, %v1993_v59  ;;  %v1426_v23 = vunpack.c.l.b16 %v3682_v63  ;;  %v1429_v47 = vunpack.c.l.b16 %v3686_v51 }
 0x353   :  { %1802 = vst [vmem:[#allocation1] ss:$4 sm:$0xff] %v1636_v24  ;;  %v1915_v9 = vunpack.c.l.b16 %v1795_v11  ;;  %v3683_v24 = vld [vmem:[#allocation62_spill] sm:$0xff]  ;;  %v1516_v59 = vrot.slane %v1424_v0, 1  ;;  %v1649_v0 = vld [vmem:[%s3557_s0 + $0x62] sm:$0x2] }
 0x354   :  { %555 = vmatmul.bf16.gmra.mxu0 %v479_v56  ;;  %v1427_v56 = vunpack.c.l.b16 %v3683_v24  ;;  %v1525_v8 = vrot.slane %v1429_v47, 4  ;;  %v1651_v51 = vld [vmem:[%s3557_s0 + $0x66] sm:$0x2] }
 0x355   :  { %v3382_v38 = vld.sshfl [vmem:[#allocation1 + $0x20] sm:$0xff pattern:$0x73625140]  ;;  %v1996_v22 = vrot.slane %v1915_v9, 1 }
 0x356   :  { %1806 = vst [vmem:[#allocation1 + $0x20] ss:$4 sm:$0xff] %v1637_v58  ;;  %v1916_v37 = vunpack.c.l.b16 %v3382_v38  ;;  %v3684_v58 = vld [vmem:[#allocation63_spill] sm:$0xff]  ;;  %v1521_v5 = vrot.slane %v1427_v56, 6 }
 0x357   :  { %v1428_v11 = vunpack.c.l.b16 %v3684_v58  ;;  %v1997_v1 = vsel %vm375_vm1, %v1996_v22, %v1995_v21 }
 0x358   :  { %v1998_v41 = vsel %vm378_vm2, %v1916_v37, %v1997_v1 }
 0x359   :  { %v1523_v27 = vrot.slane %v1428_v11, 5 }
 0x35a   :  { %v3390_v26 = vld.sshfl [vmem:[#allocation1] sm:$0xff pattern:$0x73625140] }
 0x35b   :  { %1810 = vst [vmem:[#allocation1] ss:$4 sm:$0xff] %v1638_v18  ;;  %v1917_v32 = vunpack.c.l.b16 %v3390_v26  ;;  %v1646_v26 = vld [vmem:[%s3557_s0 + $0x5c] sm:$0x2] }
 0x35d   :  { %v3392_v30 = vld.sshfl [vmem:[#allocation1 + $0x20] sm:$0xff pattern:$0x73625140]  ;;  %v1999_v21 = vrot.slane %v1917_v32, 7 }
 0x35e   :  { %1814 = vst [vmem:[#allocation1 + $0x20] ss:$4 sm:$0xff] %v1639_v20  ;;  %v1016_v20 = vsel %vm381_vm3, %v1015_v36, %v1014_v4  ;;  %v1918_v13 = vunpack.c.l.b16 %v3392_v30 }
 0x362   :  { %v3400_v35 = vld.sshfl [vmem:[#allocation1] sm:$0xff pattern:$0x73625140] }
 0x363   :  { %1818 = vst [vmem:[#allocation1] ss:$4 sm:$0xff] %v1640_v16  ;;  %v3685_v16 = vld [vmem:[#allocation60_spill] sm:$0xff] }
 0x365   :  { %v3402_v10 = vld.sshfl [vmem:[#allocation1 + $0x20] sm:$0xff pattern:$0x73625140] }
 0x366   :  { %1822 = vst [vmem:[#allocation1 + $0x20] ss:$4 sm:$0xff] %v1641_v39  ;;  %v1425_v39 = vunpack.c.l.b16 %v3685_v16  ;;  %v1650_v16 = vld [vmem:[%s3557_s0 + $0x64] sm:$0x2] }
 0x36a   :  { %v1819_v7 = vld.sshfl [vmem:[#allocation1] sm:$0xff pattern:$0x73625140] }
 0x36b   :  { %1826 = vst [vmem:[#allocation1] ss:$4 sm:$0xff] %v1642_v34  ;;  %v1921_v28 = vunpack.c.l.b16 %v1819_v7  ;;  %v1018_v34 = vsel %vm384_vm4, %v1017_v57, %v1016_v20  ;;  %v1515_v7 = vrot.slane %v1423_v61, 2  ;;  %v2000_v57 = vsel %vm381_vm3, %v1999_v21, %v1998_v41  ;;  %v1648_v61 = vld [vmem:[%s3557_s0 + $0x60] sm:$0x2] }
 0x36d   :  { %v1823_v42 = vld.sshfl [vmem:[#allocation1 + $0x20] sm:$0xff pattern:$0x73625140]  ;;  %v2007_v43 = vrot.slane %v1921_v28, 3  ;;  %v1519_v28 = vrot.slane %v1426_v23, 7  ;;  %v1517_v29 = vsel %vm372_vm0, %v1516_v59, %v1515_v7  ;;  %v1546_v59 = vpop.f32.mrf.mxu2 }
 0x36e   :  { %1830 = vst [vmem:[#allocation1 + $0x20] ss:$4 sm:$0xff] %v1643_v54  ;;  %v1922_v46 = vunpack.c.l.b16 %v1823_v42  ;;  %v3687_v54 = vld [vmem:[#allocation65_spill] sm:$0xff]  ;;  %v1020_v42 = vsel %vm387_vm5, %v1019_v49, %v1018_v34  ;;  %v1518_v60 = vsel %vm375_vm1, %v1425_v39, %v1517_v29 }
 0x36f   :  { %v1430_v9 = vunpack.c.l.b16 %v3687_v54  ;;  %v1520_v22 = vsel %vm378_vm2, %v1519_v28, %v1518_v60  ;;  %v541_v54 = vpop.f32.mrf.mxu0  ;;  %v3486_v7 = vld [vmem:[%s3558_s2] ss:$0 sm:$0xff] }
 0x370   :  { %v2008_v62 = vrot.slane %v1922_v46, 2  ;;  %v1022_v46 = vsel %vm390_vm6, %v1021_v17, %v1020_v42  ;;  %v1522_v19 = vsel %vm381_vm3, %v1521_v5, %v1520_v22  ;;  %v542_v28 = vadd.f32 %v3486_v7, %v541_v54 }
 0x371   :  { %v1026_v6 = vpack.c.b16 %v1022_v46, %v1022_v46  ;;  %v1527_v12 = vrot.slane %v1430_v9, 3  ;;  %v1524_v25 = vsel %vm384_vm4, %v1523_v27, %v1522_v19  ;;  %v1040_v9 = vpop.f32.mrf.mxu1  ;;  %v1547_v1 = vadd.f32 %v3486_v7, %v1546_v59  ;;  %v1652_v46 = vld [vmem:[%s3557_s0 + $0x68] sm:$0x2] }
 0x372   :  { %v1827_v50 = vld.sshfl [vmem:[#allocation1] sm:$0xff pattern:$0x73625140]  ;;  %v2009_v33 = vsel %vm372_vm0, %v2008_v62, %v2007_v43  ;;  %v1919_v43 = vunpack.c.l.b16 %v3400_v35  ;;  %v1526_v36 = vsel %vm387_vm5, %v1525_v8, %v1524_v25  ;;  %v2001_v62 = vrot.slane %v1918_v13, 6  ;;  %v1653_v8 = vld [vmem:[%s3557_s0 + $0x6a] sm:$0x2] }
 0x373   :  { %1834 = vst [vmem:[#allocation1] ss:$4 sm:$0xff] %v1644_v55  ;;  %v1923_v18 = vunpack.c.l.b16 %v1827_v50  ;;  %1054 = vmatmul.bf16.gmra.mxu1 %v1026_v6  ;;  %v1528_v31 = vsel %vm390_vm6, %v1527_v12, %v1526_v36  ;;  %v1041_v5 = vadd.f32 %v3486_v7, %v1040_v9  ;;  %v1565_v60 = vmul.f32 0.2, %v1547_v1 }
 0x374   :  { %v1532_v37 = vpack.c.b16 %v1528_v31, %v1528_v31  ;;  %v2003_v17 = vrot.slane %v1919_v43, 5  ;;  %v2002_v35 = vsel %vm384_vm4, %v2001_v62, %v2000_v57 }
 0x375   :  { %v1831_v38 = vld.sshfl [vmem:[#allocation1 + $0x20] sm:$0xff pattern:$0x73625140]  ;;  %v2010_v2 = vrot.slane %v1923_v18, 1  ;;  %v1059_v6 = vmul.f32 0.2, %v1041_v5 }
 0x376   :  { %1838 = vst [vmem:[#allocation1 + $0x20] ss:$4 sm:$0xff] %v1645_v40  ;;  %v1924_v44 = vunpack.c.l.b16 %v1831_v38  ;;  %v1920_v40 = vunpack.c.l.b16 %v3402_v10  ;;  %1560 = vmatmul.bf16.gmra.mxu2 %v1532_v37  ;;  %v2004_v23 = vsel %vm387_vm5, %v2003_v17, %v2002_v35 }
 0x377   :  { %v2011_v45 = vsel %vm375_vm1, %v2010_v2, %v2009_v33  ;;  %v560_v2 = vmul.f32 0.2, %v542_v28  ;;  %v1066_v12 = vmax.f32 %v1041_v5, %v1059_v6 }
 0x378   :  { %v2012_v3 = vsel %vm378_vm2, %v1924_v44, %v2011_v45  ;;  %v2005_v4 = vrot.slane %v1920_v40, 4  ;;  %v543_v44 = vpop.f32.mrf.mxu0 }
 0x379   :  { %v567_v22 = vmax.f32 %v542_v28, %v560_v2  ;;  %v1042_v41 = vpop.f32.mrf.mxu1  ;;  %v544_v25 = vadd.f32 %v3486_v7, %v543_v44 }
 0x37a   :  { %v1835_v48 = vld.sshfl [vmem:[#allocation1] sm:$0xff pattern:$0x73625140]  ;;  %v2006_v11 = vsel %vm390_vm6, %v2005_v4, %v2004_v23  ;;  %v1043_v43 = vadd.f32 %v3486_v7, %v1042_v41 }
 0x37b   :  { %1842 = vst [vmem:[#allocation1] ss:$4 sm:$0xff] %v1646_v26  ;;  %v1925_v53 = vunpack.c.l.b16 %v1835_v48  ;;  %v561_v62 = vmul.f32 0.2, %v544_v25 }
 0x37c   :  { %v1060_v31 = vmul.f32 0.2, %v1043_v43 }
 0x37d   :  { %v1839_v30 = vld.sshfl [vmem:[#allocation1 + $0x20] sm:$0xff pattern:$0x73625140]  ;;  %v2013_v49 = vrot.slane %v1925_v53, 7  ;;  %v1548_v53 = vpop.f32.mrf.mxu2  ;;  %v568_v35 = vmax.f32 %v544_v25, %v561_v62 }
 0x37e   :  { %1846 = vst [vmem:[#allocation1 + $0x20] ss:$4 sm:$0xff] %v1647_v14  ;;  %v1926_v55 = vunpack.c.l.b16 %v1839_v30  ;;  %v1572_v14 = vmax.f32 %v1547_v1, %v1565_v60  ;;  %v1073_v30 = vmax.f32 %v567_v22, %v1066_v12  ;;  %v1549_v36 = vadd.f32 %v3486_v7, %v1548_v53 }
 0x37f   :  { %v2014_v52 = vsel %vm381_vm3, %v2013_v49, %v2012_v3  ;;  %v1654_v3 = vld [vmem:[%s3557_s0 + $0x6c] sm:$0x2] }
 0x380   :  { %v2015_v15 = vrot.slane %v1926_v55, 6  ;;  %v1579_v57 = vmax.f32 %v1073_v30, %v1572_v14  ;;  %v1566_v40 = vmul.f32 0.2, %v1549_v36 }
 0x382   :  { %v1843_v50 = vld.sshfl [vmem:[#allocation1] sm:$0xff pattern:$0x73625140]  ;;  %v2016_v56 = vsel %vm384_vm4, %v2015_v15, %v2014_v52  ;;  %v1067_v15 = vmax.f32 %v1043_v43, %v1060_v31  ;;  %v1655_v52 = vld [vmem:[%s3557_s0 + $0x6e] sm:$0x2] }
 0x383   :  { %v1927_v63 = vunpack.c.l.b16 %v1843_v50  ;;  %1850 = vst [vmem:[#allocation1] ss:$4 sm:$0xff] %v1648_v61 }
 0x385   :  { %v1847_v10 = vld.sshfl [vmem:[#allocation1 + $0x20] sm:$0xff pattern:$0x73625140]  ;;  %v2017_v58 = vrot.slane %v1927_v63, 5  ;;  %v1074_v63 = vmax.f32 %v568_v35, %v1067_v15 }
 0x386   :  { %v1928_v24 = vunpack.c.l.b16 %v1847_v10  ;;  %1854 = vst [vmem:[#allocation1 + $0x20] ss:$4 sm:$0xff] %v1649_v0  ;;  %v1573_v0 = vmax.f32 %v1549_v36, %v1566_v40 }
 0x387   :  { %v2018_v18 = vsel %vm387_vm5, %v2017_v58, %v2016_v56 }
 0x388   :  { %v2019_v38 = vrot.slane %v1928_v24, 4 }
 0x38a   :  { %v2020_v20 = vsel %vm390_vm6, %v2019_v38, %v2018_v18  ;;  %v1851_v47 = vld.sshfl [vmem:[#allocation1] sm:$0xff pattern:$0x73625140]  ;;  %v1580_v38 = vmax.f32 %v1074_v63, %v1573_v0 }
 0x38b   :  { %v2037_v39 = vpack.c.b16 %v2020_v20, %v2006_v11  ;;  %1858 = vst [vmem:[#allocation1] ss:$4 sm:$0xff] %v1650_v16  ;;  %v1929_v42 = vunpack.c.l.b16 %v1851_v47 }
 0x38d   :  { %2061 = vmatmul.bf16.gmra.mxu3 %v2037_v39  ;;  %v1855_v34 = vld.sshfl [vmem:[#allocation1 + $0x20] sm:$0xff pattern:$0x73625140]  ;;  %v2021_v33 = vrot.slane %v1929_v42, 3 }
 0x38e   :  { %1862 = vst [vmem:[#allocation1 + $0x20] ss:$4 sm:$0xff] %v1651_v51  ;;  %v1930_v29 = vunpack.c.l.b16 %v1855_v34 }
 0x390   :  { %v2052_v32 = vpop.f32.mrf.mxu3  ;;  %v2022_v48 = vrot.slane %v1930_v29, 2 }
 0x391   :  { %v2053_v27 = vadd.f32 %v3486_v7, %v2052_v32 }
 0x392   :  { %v1859_v13 = vld.sshfl [vmem:[#allocation1] sm:$0xff pattern:$0x73625140]  ;;  %v2023_v17 = vsel %vm372_vm0, %v2022_v48, %v2021_v33 }
 0x393   :  { %v2071_v26 = vmul.f32 0.2, %v2053_v27  ;;  %1866 = vst [vmem:[#allocation1] ss:$4 sm:$0xff] %v1652_v46  ;;  %v1931_v19 = vunpack.c.l.b16 %v1859_v13  ;;  %v546_v46 = vpop.f32.mrf.mxu0 }
 0x394   :  { %v547_v6 = vadd.f32 %v3486_v7, %v546_v46 }
 0x395   :  { %v1863_v21 = vld.sshfl [vmem:[#allocation1 + $0x20] sm:$0xff pattern:$0x73625140]  ;;  %v2078_v45 = vmax.f32 %v2053_v27, %v2071_v26  ;;  %v2024_v37 = vrot.slane %v1931_v19, 1  ;;  %v1045_v27 = vpop.f32.mrf.mxu1 }
 0x396   :  { %1870 = vst [vmem:[#allocation1 + $0x20] ss:$4 sm:$0xff] %v1653_v8  ;;  %v1932_v10 = vunpack.c.l.b16 %v1863_v21  ;;  %v1046_v60 = vadd.f32 %v3486_v7, %v1045_v27  ;;  %v1551_v8 = vpop.f32.mrf.mxu2  ;;  %v562_v26 = vmul.f32 0.2, %v547_v6 }
 0x397   :  { %v2085_v61 = vmax.f32 %v1579_v57, %v2078_v45  ;;  %v2025_v56 = vsel %vm375_vm1, %v2024_v37, %v2023_v17  ;;  %v1552_v33 = vadd.f32 %v3486_v7, %v1551_v8 }
 0x398   :  { %v2054_v55 = vpop.f32.mrf.mxu3  ;;  %v2026_v20 = vsel %vm378_vm2, %v1932_v10, %v2025_v56  ;;  %v1061_v13 = vmul.f32 0.2, %v1046_v60  ;;  %v569_v12 = vmax.f32 %v547_v6, %v562_v26 }
 0x399   :  { %v2055_v49 = vadd.f32 %v3486_v7, %v2054_v55  ;;  %2092 = vst [vmem:[%s3559_s3] sm:$0xff] %v2085_v61  ;;  %v1567_v21 = vmul.f32 0.2, %v1552_v33 }
 0x39a   :  { %v1867_v4 = vld.sshfl [vmem:[#allocation1] sm:$0xff pattern:$0x73625140]  ;;  %v1068_v14 = vmax.f32 %v1046_v60, %v1061_v13 }
 0x39b   :  { %v2072_v50 = vmul.f32 0.2, %v2055_v49  ;;  %1874 = vst [vmem:[#allocation1] ss:$4 sm:$0xff] %v1654_v3  ;;  %v1933_v24 = vunpack.c.l.b16 %v1867_v4  ;;  %v548_v29 = vpop.f32.mrf.mxu0  ;;  %v1574_v30 = vmax.f32 %v1552_v33, %v1567_v21 }
 0x39c   :  { %v549_v19 = vadd.f32 %v3486_v7, %v548_v29  ;;  %v1075_v25 = vmax.f32 %v569_v12, %v1068_v14 }
 0x39d   :  { %v1871_v23 = vld.sshfl [vmem:[#allocation1 + $0x20] sm:$0xff pattern:$0x73625140]  ;;  %v2079_v58 = vmax.f32 %v2055_v49, %v2072_v50  ;;  %v2027_v18 = vrot.slane %v1933_v24, 7  ;;  %v1047_v22 = vpop.f32.mrf.mxu1 }
 0x39e   :  { %1878 = vst [vmem:[#allocation1 + $0x20] ss:$4 sm:$0xff] %v1655_v52  ;;  %v1934_v11 = vunpack.c.l.b16 %v1871_v23  ;;  %v1048_v48 = vadd.f32 %v3486_v7, %v1047_v22  ;;  %v1553_v41 = vpop.f32.mrf.mxu2  ;;  %v563_v43 = vmul.f32 0.2, %v549_v19  ;;  %v1581_v62 = vmax.f32 %v1075_v25, %v1574_v30 }
 0x39f   :  { %v2086_v16 = vmax.f32 %v1580_v38, %v2079_v58  ;;  %v2028_v51 = vsel %vm381_vm3, %v2027_v18, %v2026_v20  ;;  %v1554_v45 = vadd.f32 %v3486_v7, %v1553_v41 }
 0x3a0   :  { %v2029_v39 = vrot.slane %v1934_v11, 6  ;;  %v1062_v53 = vmul.f32 0.2, %v1048_v48  ;;  %v570_v31 = vmax.f32 %v549_v19, %v563_v43 }
 0x3a1   :  { %2093 = vst [vmem:[%s3559_s3 + $0x8] sm:$0xff] %v2086_v16  ;;  %v1568_v49 = vmul.f32 0.2, %v1554_v45 }
 0x3a2   :  { %v1875_v47 = vld.sshfl [vmem:[#allocation1] sm:$0xff pattern:$0x73625140]  ;;  %v2030_v59 = vsel %vm384_vm4, %v2029_v39, %v2028_v51  ;;  %v1069_v57 = vmax.f32 %v1048_v48, %v1062_v53 }
 0x3a3   :  { %v1935_v54 = vunpack.c.l.b16 %v1875_v47  ;;  %v551_v2 = vpop.f32.mrf.mxu0  ;;  %v1575_v35 = vmax.f32 %v1554_v45, %v1568_v49 }
 0x3a4   :  { %v1076_v17 = vmax.f32 %v570_v31, %v1069_v57  ;;  %v552_v18 = vadd.f32 %v3486_v7, %v551_v2 }
 0x3a5   :  { %v1879_v34 = vld.sshfl [vmem:[#allocation1 + $0x20] sm:$0xff pattern:$0x73625140]  ;;  %v2031_v32 = vrot.slane %v1935_v54, 5 }
 0x3a6   :  { %v1936_v9 = vunpack.c.l.b16 %v1879_v34  ;;  %v1582_v0 = vmax.f32 %v1076_v17, %v1575_v35  ;;  %v564_v39 = vmul.f32 0.2, %v552_v18 }
 0x3a7   :  { %v2032_v28 = vsel %vm387_vm5, %v2031_v32, %v2030_v59 }
 0x3a8   :  { %v2033_v42 = vrot.slane %v1936_v9, 4  ;;  %v571_v54 = vmax.f32 %v552_v18, %v564_v39 }
 0x3aa   :  { %v2034_v5 = vsel %vm390_vm6, %v2033_v42, %v2032_v28 }
 0x3ab   :  { %v2038_v1 = vpack.c.b16 %v2034_v5, %v2034_v5  ;;  %v553_v44 = vpop.f32.mrf.mxu0 }
 0x3ac   :  { %v554_v34 = vadd.f32 %v3486_v7, %v553_v44 }
 0x3ad   :  { %2066 = vmatmul.bf16.gmra.mxu3 %v2038_v1 }
 0x3ae   :  { %v565_v28 = vmul.f32 0.2, %v554_v34 }
 0x3b0   :  { %v572_v6 = vmax.f32 %v554_v34, %v565_v28 }
 0x3b5   :  { %v1050_v23 = vpop.f32.mrf.mxu1 }
 0x3b6   :  { %v1051_v20 = vadd.f32 %v3486_v7, %v1050_v23 }
 0x3b8   :  { %v1063_v51 = vmul.f32 0.2, %v1051_v20 }
 0x3ba   :  { %v1070_v9 = vmax.f32 %v1051_v20, %v1063_v51 }
 0x3bc   :  { %v1077_v5 = vmax.f32 %v571_v54, %v1070_v9 }
 0x3bd   :  { %v1052_v24 = vpop.f32.mrf.mxu1 }
 0x3be   :  { %v1053_v59 = vadd.f32 %v3486_v7, %v1052_v24 }
 0x3c0   :  { %v1064_v1 = vmul.f32 0.2, %v1053_v59 }
 0x3c2   :  { %v1071_v60 = vmax.f32 %v1053_v59, %v1064_v1 }
 0x3c4   :  { %v1078_v22 = vmax.f32 %v572_v6, %v1071_v60 }
 0x3ca   :  { %v1556_v56 = vpop.f32.mrf.mxu2 }
 0x3cb   :  { %v1557_v47 = vadd.f32 %v3486_v7, %v1556_v56 }
 0x3cd   :  { %v1569_v32 = vmul.f32 0.2, %v1557_v47 }
 0x3cf   :  { %v1576_v46 = vmax.f32 %v1557_v47, %v1569_v32 }
 0x3d0   :  { %v2057_v36 = vpop.f32.mrf.mxu3 }
 0x3d1   :  { %v2058_v55 = vadd.f32 %v3486_v7, %v2057_v36  ;;  %v556_v40 = vpop.f32.mrf.mxu0  ;;  %v1583_v8 = vmax.f32 %v1077_v5, %v1576_v46 }
 0x3d2   :  { %v1558_v11 = vpop.f32.mrf.mxu2  ;;  %v557_v30 = vadd.f32 %v3486_v7, %v556_v40 }
 0x3d3   :  { %v2073_v37 = vmul.f32 0.2, %v2058_v55  ;;  %v1559_v29 = vadd.f32 %v3486_v7, %v1558_v11 }
 0x3d4   :  { %v566_v53 = vmul.f32 0.2, %v557_v30 }
 0x3d5   :  { %v2080_v3 = vmax.f32 %v2058_v55, %v2073_v37  ;;  %v1570_v26 = vmul.f32 0.2, %v1559_v29 }
 0x3d6   :  { %v573_v55 = vmax.f32 %v557_v30, %v566_v53 }
 0x3d7   :  { %v2087_v15 = vmax.f32 %v1581_v62, %v2080_v3  ;;  %v1577_v12 = vmax.f32 %v1559_v29, %v1570_v26 }
 0x3d8   :  { %v2059_v61 = vpop.f32.mrf.mxu3 }
 0x3d9   :  { %2094 = vst [vmem:[%s3559_s3 + $0x10] sm:$0xff] %v2087_v15  ;;  %v2060_v52 = vadd.f32 %v3486_v7, %v2059_v61  ;;  %v558_v4 = vpop.f32.mrf.mxu0  ;;  %v1584_v48 = vmax.f32 %v1078_v22, %v1577_v12 }
 0x3db   :  { %v2074_v50 = vmul.f32 0.2, %v2060_v52 }
 0x3dd   :  { %v2081_v10 = vmax.f32 %v2060_v52, %v2074_v50 }
 0x3df   :  { %v2088_v63 = vmax.f32 %v1582_v0, %v2081_v10 }
 0x3e1   :  { %2095 = vst [vmem:[%s3559_s3 + $0x18] sm:$0xff] %v2088_v63 }
 0x3f0   :  { %v1055_v58 = vpop.f32.mrf.mxu1 }
 0x3f1   :  { %v1056_v43 = vadd.f32 %v3486_v7, %v1055_v58 }
 0x3f3   :  { %v1065_v45 = vmul.f32 0.2, %v1056_v43 }
 0x3f5   :  { %v1072_v62 = vmax.f32 %v1056_v43, %v1065_v45 }
 0x3f7   :  { %v1079_v49 = vmax.f32 %v573_v55, %v1072_v62 }
 0x3f8   :  { %v1057_v38 = vpop.f32.mrf.mxu1 }
 0x3f9   :  { %v1561_v16 = vpop.f32.mrf.mxu2 }
 0x3fa   :  { %v1562_v36 = vadd.f32 %v3486_v7, %v1561_v16 }
 0x3fc   :  { %v1571_v31 = vmul.f32 0.2, %v1562_v36 }
 0x3fe   :  { %v1578_v37 = vmax.f32 %v1562_v36, %v1571_v31 }
 0x400   :  { %v1585_v35 = vmax.f32 %v1079_v49, %v1578_v37 }
 0x401   :  { %v1563_v42 = vpop.f32.mrf.mxu2 }
 0x410   :  { %v2062_v27 = vpop.f32.mrf.mxu3 }
 0x411   :  { %v2063_v2 = vadd.f32 %v3486_v7, %v2062_v27 }
 0x413   :  { %v2075_v13 = vmul.f32 0.2, %v2063_v2 }
 0x415   :  { %v2082_v33 = vmax.f32 %v2063_v2, %v2075_v13 }
 0x417   :  { %v2089_v14 = vmax.f32 %v1583_v8, %v2082_v33 }
 0x418   :  { %v2064_v21 = vpop.f32.mrf.mxu3 }
 0x419   :  { %2096 = vst [vmem:[%s3559_s3 + $0x20] sm:$0xff] %v2089_v14  ;;  %v2065_v19 = vadd.f32 %v3486_v7, %v2064_v21 }
 0x41b   :  { %v2076_v44 = vmul.f32 0.2, %v2065_v19 }
 0x41d   :  { %v2083_v41 = vmax.f32 %v2065_v19, %v2076_v44 }
 0x41f   :  { %v2090_v25 = vmax.f32 %v1584_v48, %v2083_v41 }
 0x421   :  { %2097 = vst [vmem:[%s3559_s3 + $0x28] sm:$0xff] %v2090_v25 }
 0x430   :  { %v2067_v57 = vpop.f32.mrf.mxu3 }
 0x431   :  { %v2068_v3 = vadd.f32 %v3486_v7, %v2067_v57 }
 0x433   :  { %v2077_v17 = vmul.f32 0.2, %v2068_v3 }
 0x435   :  { %v2084_v15 = vmax.f32 %v2068_v3, %v2077_v17 }
 0x437   :  { %v2091_v61 = vmax.f32 %v1585_v35, %v2084_v15 }
 0x438   :  { %v2069_v52 = vpop.f32.mrf.mxu3 }
 0x439   :  { %2098 = vst [vmem:[%s3559_s3 + $0x30] sm:$0xff] %v2091_v61 }

// kernel: _lambda_.9
= control target key start
LH: loop header
LB: loop body
LE: loop exit
PB: predicated region body
PF: predicated region fallthrough
CT: control target
= control target key end

     0   :  { %vm76_vm0 = vcmask 1041409   ;;  %vm79_vm1 = vcmask 1042434   ;;  %vm82_vm2 = vcmask 1043459   ;;  %vm85_vm3 = vcmask 1044484   ;;  %s1100_s0 = inlined_call_operand.vmem [shape: bf16[8,7,128], index: 0, kind: input, shape index: {}]   ;;  %s1101_s1 = inlined_call_operand.vmem [shape: bf16[128,128], index: 1, kind: input, shape index: {}]   ;;  %s1102_s2 = inlined_call_operand.vmem [shape: f32[1,128], index: 2, kind: input, shape index: {}]   ;;  %s1103_s3 = inlined_call_operand.hbm [shape: f32[8,128], index: 3, kind: output, shape index: {}]  }
   0x1   :  { %v770_v0 = vld [vmem:[%s1101_s1 + $0x38] sm:$0xff]  ;;  %v777_v1 = vld [vmem:[%s1101_s1 + $0x30] sm:$0xff]  ;;  %v32_v2 = vld [vmem:[%s1100_s0] sm:$0x1]  ;;  %vm88_vm4 = vcmask 1045509   ;;  %vm91_vm5 = vcmask 1046534  }
   0x2   :  { %146 = vmatpush.bf16.msra.mxu0 %v770_v0  ;;  %219 = vmatpush.bf16.msra.mxu1 %v770_v0  ;;  %v33_v3 = vld [vmem:[%s1100_s0 + $0x4] sm:$0x1]  ;;  %v34_v4 = vld [vmem:[%s1100_s0 + $0x8] sm:$0x1]  ;;  %v35_v5 = vld [vmem:[%s1100_s0 + $0xc] sm:$0x1]  ;;  %v51_v6 = vunpack.c.l.b16 %v32_v2 }
   0x3   :  { %293 = vmatpush.bf16.msra.mxu2 %v770_v0  ;;  %367 = vmatpush.bf16.msra.mxu3 %v770_v0  ;;  %v36_v7 = vld [vmem:[%s1100_s0 + $0x10] sm:$0x1]  ;;  %v37_v8 = vld [vmem:[%s1100_s0 + $0x14] sm:$0x1]  ;;  %v38_v9 = vld [vmem:[%s1100_s0 + $0x18] sm:$0x1]  ;;  %v52_v10 = vunpack.c.l.b16 %v33_v3  ;;  %v53_v11 = vunpack.c.l.b16 %v34_v4  ;;  %v54_v12 = vunpack.c.l.b16 %v35_v5 }
   0x4   :  { %v39_v13 = vld [vmem:[%s1100_s0 + $0x1c] sm:$0x1]  ;;  %v55_v14 = vunpack.c.l.b16 %v36_v7  ;;  %v56_v15 = vunpack.c.l.b16 %v37_v8  ;;  %v57_v16 = vunpack.c.l.b16 %v38_v9  ;;  %v622_v17 = vunpack.i.l.s16 %v51_v6  ;;  %v163_v18 = vld [vmem:[%s1100_s0] sm:$0x1]  ;;  %v813_v19 = vld [vmem:[%s1101_s1 + $0x28] sm:$0xff] }
   0x5   :  { %v58_v20 = vunpack.c.l.b16 %v39_v13  ;;  %v623_v21 = vunpack.i.l.s16 %v52_v10  ;;  %v624_v22 = vunpack.i.l.s16 %v53_v11  ;;  %v625_v23 = vunpack.i.l.s16 %v54_v12  ;;  %v164_v24 = vld [vmem:[%s1100_s0 + $0x4] sm:$0x1]  ;;  %v165_v25 = vld [vmem:[%s1100_s0 + $0x8] sm:$0x1]  ;;  %v166_v29 = vld [vmem:[%s1100_s0 + $0xc] sm:$0x1] }
   0x6   :  { %147 = vmatpush.bf16.msra.mxu0 %v777_v1  ;;  %220 = vmatpush.bf16.msra.mxu1 %v777_v1  ;;  %v626_v26 = vunpack.i.l.s16 %v55_v14  ;;  %v627_v27 = vunpack.i.l.s16 %v56_v15  ;;  %v628_v28 = vunpack.i.l.s16 %v57_v16  ;;  %vm94_vm6 = vcmask 1047559   ;;  %v167_v30 = vld [vmem:[%s1100_s0 + $0x10] sm:$0x1]  ;;  %v168_v31 = vld [vmem:[%s1100_s0 + $0x14] sm:$0x1]  ;;  %v843_v43 = vld [vmem:[%s1101_s1 + $0x20] sm:$0xff] }
   0x7   :  { %294 = vmatpush.bf16.msra.mxu2 %v777_v1  ;;  %368 = vmatpush.bf16.msra.mxu3 %v777_v1  ;;  %v179_v32 = vunpack.c.l.b16 %v163_v18  ;;  %v629_v33 = vunpack.i.l.s16 %v58_v20  ;;  %v75_v34 = vrot.slane %v623_v21, 7  ;;  %v78_v35 = vrot.slane %v624_v22, 6  ;;  %v169_v37 = vld [vmem:[%s1100_s0 + $0x18] sm:$0x1]  ;;  %v170_v41 = vld [vmem:[%s1100_s0 + $0x1c] sm:$0x1] }
   0x8   :  { %v81_v36 = vrot.slane %v625_v23, 5  ;;  %v84_v38 = vrot.slane %v626_v26, 4  ;;  %v87_v39 = vrot.slane %v627_v27, 3  ;;  %v90_v40 = vrot.slane %v628_v28, 2  ;;  %v852_v52 = vld [vmem:[%s1101_s1 + $0x18] sm:$0xff] }
   0x9   :  { %v180_v42 = vunpack.c.l.b16 %v164_v24  ;;  %v77_v44 = vsel %vm76_vm0, %v75_v34, %v622_v17  ;;  %v93_v45 = vrot.slane %v629_v33, 1  ;;  %v181_v46 = vunpack.c.l.b16 %v165_v25  ;;  %v237_v57 = vld [vmem:[%s1100_s0] sm:$0x2]  ;;  %v238_v62 = vld [vmem:[%s1100_s0 + $0x4] sm:$0x2] }
   0xa   :  { %148 = vmatpush.bf16.msra.mxu0 %v813_v19  ;;  %221 = vmatpush.bf16.msra.mxu1 %v813_v19  ;;  %v182_v47 = vunpack.c.l.b16 %v166_v29  ;;  %v80_v48 = vsel %vm79_vm1, %v78_v35, %v77_v44  ;;  %v183_v49 = vunpack.c.l.b16 %v167_v30  ;;  %v184_v50 = vunpack.c.l.b16 %v168_v31  ;;  %v239_v63 = vld [vmem:[%s1100_s0 + $0x8] sm:$0x2]  ;;  %v240_v2 = vld [vmem:[%s1100_s0 + $0xc] sm:$0x2]  ;;  %v241_v7 = vld [vmem:[%s1100_s0 + $0x10] sm:$0x2] }
   0xb   :  { %295 = vmatpush.bf16.msra.mxu2 %v813_v19  ;;  %369 = vmatpush.bf16.msra.mxu3 %v813_v19  ;;  %v185_v51 = vunpack.c.l.b16 %v169_v37  ;;  %v83_v53 = vsel %vm82_vm2, %v81_v36, %v80_v48  ;;  %v186_v54 = vunpack.c.l.b16 %v170_v41  ;;  %v662_v55 = vunpack.i.l.s16 %v179_v32  ;;  %v242_v8 = vld [vmem:[%s1100_s0 + $0x14] sm:$0x2]  ;;  %v243_v9 = vld [vmem:[%s1100_s0 + $0x18] sm:$0x2] }
   0xc   :  { %v663_v56 = vunpack.i.l.s16 %v180_v42  ;;  %v86_v58 = vsel %vm85_vm3, %v84_v38, %v83_v53  ;;  %v664_v59 = vunpack.i.l.s16 %v181_v46  ;;  %v665_v60 = vunpack.i.l.s16 %v182_v47 }
   0xd   :  { %v666_v61 = vunpack.i.l.s16 %v183_v49  ;;  %v89_v3 = vsel %vm88_vm4, %v87_v39, %v86_v58  ;;  %v667_v4 = vunpack.i.l.s16 %v184_v50  ;;  %v668_v5 = vunpack.i.l.s16 %v185_v51 }
   0xe   :  { %149 = vmatpush.bf16.msra.mxu0 %v843_v43  ;;  %222 = vmatpush.bf16.msra.mxu1 %v843_v43  ;;  %v669_v6 = vunpack.i.l.s16 %v186_v54  ;;  %v92_v10 = vsel %vm91_vm5, %v90_v40, %v89_v3  ;;  %v203_v11 = vrot.slane %v662_v55, 1  ;;  %v205_v12 = vrot.slane %v664_v59, 7 }
   0xf   :  { %296 = vmatpush.bf16.msra.mxu2 %v843_v43  ;;  %370 = vmatpush.bf16.msra.mxu3 %v843_v43  ;;  %v207_v13 = vrot.slane %v665_v60, 6  ;;  %v884_v14 = vsel %vm94_vm6, %v93_v45, %v92_v10  ;;  %v209_v15 = vrot.slane %v666_v61, 5  ;;  %v211_v16 = vrot.slane %v667_v4, 4 }
  0x10   :  { %v213_v17 = vrot.slane %v668_v5, 3 }
  0x11   :  { %8 = vsyncpa [#allocation3], 0  ;;  %v96_v18 = vpack.c.b16 %v884_v14, %v884_v14  ;;  %v204_v20 = vsel %vm76_vm0, %v663_v56, %v203_v11  ;;  %v215_v21 = vrot.slane %v669_v6, 2  ;;  %v244_v22 = vld [vmem:[%s1100_s0 + $0x1c] sm:$0x2]  ;;  %v253_v23 = vunpack.c.l.b16 %v237_v57  ;;  %v897_v24 = vld [vmem:[%s1101_s1 + $0x10] sm:$0xff] }
  0x12   :  { %150 = vmatpush.bf16.msra.mxu0 %v852_v52  ;;  %223 = vmatpush.bf16.msra.mxu1 %v852_v52  ;;  %v206_v25 = vsel %vm79_vm1, %v205_v12, %v204_v20  ;;  %v254_v26 = vunpack.c.l.b16 %v238_v62  ;;  %v255_v27 = vunpack.c.l.b16 %v239_v63  ;;  %v256_v28 = vunpack.c.l.b16 %v240_v2  ;;  %v906_v33 = vld [vmem:[%s1101_s1 + $0x8] sm:$0xff]  ;;  %v311_v42 = vld [vmem:[%s1100_s0] sm:$0x2]  ;;  %v312_v44 = vld [vmem:[%s1100_s0 + $0x4] sm:$0x2]  ;;  %s613_s7 = sshll.u32 %s1103_s3, 4  ;;  %s614_s7 = int_to_ptr.hbm [resolvable:$true] %s613_s7 }
  0x13   :  { %297 = vmatpush.bf16.msra.mxu2 %v852_v52  ;;  %371 = vmatpush.bf16.msra.mxu3 %v852_v52  ;;  %v208_v29 = vsel %vm82_vm2, %v207_v13, %v206_v25  ;;  %v257_v30 = vunpack.c.l.b16 %v241_v7  ;;  %v258_v31 = vunpack.c.l.b16 %v242_v8  ;;  %v259_v32 = vunpack.c.l.b16 %v243_v9  ;;  %v313_v45 = vld [vmem:[%s1100_s0 + $0x8] sm:$0x2]  ;;  %v314_v50 = vld [vmem:[%s1100_s0 + $0xc] sm:$0x2]  ;;  %v315_v51 = vld [vmem:[%s1100_s0 + $0x10] sm:$0x2] }
  0x14   :  { %v210_v34 = vsel %vm85_vm3, %v209_v15, %v208_v29  ;;  %v260_v35 = vunpack.c.l.b16 %v244_v22  ;;  %v670_v36 = vunpack.i.l.s16 %v253_v23  ;;  %v671_v37 = vunpack.i.l.s16 %v254_v26  ;;  %v316_v53 = vld [vmem:[%s1100_s0 + $0x14] sm:$0x2]  ;;  %v317_v58 = vld [vmem:[%s1100_s0 + $0x18] sm:$0x2]  ;;  %v318_v63 = vld [vmem:[%s1100_s0 + $0x1c] sm:$0x2] }
  0x15   :  { %v212_v38 = vsel %vm88_vm4, %v211_v16, %v210_v34  ;;  %v672_v39 = vunpack.i.l.s16 %v255_v27  ;;  %v673_v40 = vunpack.i.l.s16 %v256_v28  ;;  %v674_v41 = vunpack.i.l.s16 %v257_v30  ;;  %v950_v6 = vld [vmem:[%s1101_s1] sm:$0xff]  ;;  %v387_v29 = vld [vmem:[%s1100_s0 + $0x8] sm:$0x4]  ;;  %v388_v30 = vld [vmem:[%s1100_s0 + $0xc] sm:$0x4] }
  0x16   :  { %151 = vmatpush.bf16.msra.mxu0 %v897_v24  ;;  %224 = vmatpush.bf16.msra.mxu1 %v897_v24  ;;  %v214_v46 = vsel %vm91_vm5, %v213_v17, %v212_v38  ;;  %v675_v47 = vunpack.i.l.s16 %v258_v31  ;;  %v676_v48 = vunpack.i.l.s16 %v259_v32  ;;  %v677_v49 = vunpack.i.l.s16 %v260_v35  ;;  %v385_v22 = vld [vmem:[%s1100_s0] sm:$0x4]  ;;  %v386_v28 = vld [vmem:[%s1100_s0 + $0x4] sm:$0x4] }
  0x17   :  { %298 = vmatpush.bf16.msra.mxu2 %v897_v24  ;;  %v933_v54 = vsel %vm94_vm6, %v215_v21, %v214_v46  ;;  %372 = vmatpush.bf16.msra.mxu3 %v897_v24  ;;  %v277_v55 = vrot.slane %v670_v36, 2  ;;  %v278_v56 = vrot.slane %v671_v37, 1  ;;  %v281_v57 = vrot.slane %v673_v40, 7  ;;  %v389_v36 = vld [vmem:[%s1100_s0 + $0x10] sm:$0x4] }
  0x18   :  { %v217_v59 = vpack.c.b16 %v933_v54, %v933_v54  ;;  %v283_v60 = vrot.slane %v674_v41, 6  ;;  %v285_v61 = vrot.slane %v675_v47, 5  ;;  %v287_v62 = vrot.slane %v676_v48, 4  ;;  %v390_v37 = vld [vmem:[%s1100_s0 + $0x14] sm:$0x4] }
  0x19   :  { %v279_v2 = vsel %vm76_vm0, %v278_v56, %v277_v55  ;;  %v289_v3 = vrot.slane %v677_v49, 3  ;;  %v327_v4 = vunpack.c.l.b16 %v311_v42  ;;  %v328_v5 = vunpack.c.l.b16 %v312_v44  ;;  %v391_v42 = vld [vmem:[%s1100_s0 + $0x18] sm:$0x4]  ;;  %v392_v48 = vld [vmem:[%s1100_s0 + $0x1c] sm:$0x4] }
  0x1a   :  { %152 = vmatpush.bf16.msra.mxu0 %v906_v33  ;;  %225 = vmatpush.bf16.msra.mxu1 %v906_v33  ;;  %v280_v7 = vsel %vm79_vm1, %v672_v39, %v279_v2  ;;  %v329_v8 = vunpack.c.l.b16 %v313_v45  ;;  %v330_v9 = vunpack.c.l.b16 %v314_v50  ;;  %v331_v10 = vunpack.c.l.b16 %v315_v51 }
  0x1b   :  { %299 = vmatpush.bf16.msra.mxu2 %v906_v33  ;;  %v282_v11 = vsel %vm82_vm2, %v281_v57, %v280_v7  ;;  %373 = vmatpush.bf16.msra.mxu3 %v906_v33  ;;  %v332_v12 = vunpack.c.l.b16 %v316_v53  ;;  %v333_v13 = vunpack.c.l.b16 %v317_v58  ;;  %v334_v15 = vunpack.c.l.b16 %v318_v63 }
  0x1c   :  { %v284_v16 = vsel %vm85_vm3, %v283_v60, %v282_v11  ;;  %v678_v17 = vunpack.i.l.s16 %v327_v4  ;;  %v679_v20 = vunpack.i.l.s16 %v328_v5  ;;  %v680_v21 = vunpack.i.l.s16 %v329_v8  ;;  %v460_v5 = vld [vmem:[%s1100_s0 + $0x4] sm:$0x4]  ;;  %v461_v11 = vld [vmem:[%s1100_s0 + $0x8] sm:$0x4] }
  0x1d   :  { %v286_v23 = vsel %vm88_vm4, %v285_v61, %v284_v16  ;;  %v681_v25 = vunpack.i.l.s16 %v330_v9  ;;  %v682_v26 = vunpack.i.l.s16 %v331_v10  ;;  %v683_v27 = vunpack.i.l.s16 %v332_v12  ;;  %v462_v12 = vld [vmem:[%s1100_s0 + $0xc] sm:$0x4] }
  0x1e   :  { %153 = vmatpush.bf16.msra.mxu0 %v950_v6  ;;  %226 = vmatpush.bf16.msra.mxu1 %v950_v6  ;;  %v288_v31 = vsel %vm91_vm5, %v287_v62, %v286_v23  ;;  %v684_v32 = vunpack.i.l.s16 %v333_v13  ;;  %v685_v34 = vunpack.i.l.s16 %v334_v15  ;;  %v351_v35 = vrot.slane %v678_v17, 3 }
  0x1f   :  { %300 = vmatpush.bf16.msra.mxu2 %v950_v6  ;;  %v290_v38 = vsel %vm94_vm6, %v289_v3, %v288_v31  ;;  %v352_v39 = vrot.slane %v679_v20, 2  ;;  %v354_v40 = vrot.slane %v680_v21, 1  ;;  %v357_v41 = vrot.slane %v682_v26, 7  ;;  %374 = vmatpush.bf16.msra.mxu3 %v950_v6  ;;  %v463_v20 = vld [vmem:[%s1100_s0 + $0x10] sm:$0x4] }
  0x20   :  { %v291_v44 = vpack.c.b16 %v290_v38, %v290_v38  ;;  %v359_v45 = vrot.slane %v683_v27, 6  ;;  %v361_v46 = vrot.slane %v684_v32, 5  ;;  %v363_v47 = vrot.slane %v685_v34, 4  ;;  %v464_v21 = vld [vmem:[%s1100_s0 + $0x14] sm:$0x4] }
  0x21   :  { %154 = vmatmul.bf16.vlgmr.msra.gmra.mxu0 %v96_v18  ;;  %227 = vmatmul.bf16.vlgmr.msra.gmra.mxu1 %v217_v59  ;;  %v353_v49 = vsel %vm76_vm0, %v352_v39, %v351_v35  ;;  %v401_v50 = vunpack.c.l.b16 %v385_v22  ;;  %v402_v51 = vunpack.c.l.b16 %v386_v28  ;;  %v403_v53 = vunpack.c.l.b16 %v387_v29  ;;  %v466_v27 = vld [vmem:[%s1100_s0 + $0x1c] sm:$0x4] }
  0x22   :  { %441 = vmatpush.bf16.msrb.mxu0 %v770_v0  ;;  %515 = vmatpush.bf16.msrb.mxu1 %v770_v0  ;;  %v355_v54 = vsel %vm79_vm1, %v354_v40, %v353_v49  ;;  %v404_v55 = vunpack.c.l.b16 %v388_v30  ;;  %v405_v56 = vunpack.c.l.b16 %v389_v36  ;;  %v406_v57 = vunpack.c.l.b16 %v390_v37  ;;  %v535_v49 = vld [vmem:[%s1100_s0 + $0x8] sm:$0x8] }
  0x23   :  { %301 = vmatmul.bf16.vlgmr.msra.gmra.mxu2 %v291_v44  ;;  %v356_v58 = vsel %vm82_vm2, %v681_v25, %v355_v54  ;;  %v407_v14 = vunpack.c.l.b16 %v391_v42  ;;  %v408_v18 = vunpack.c.l.b16 %v392_v48  ;;  %v686_v59 = vunpack.i.l.s16 %v401_v50  ;;  %v536_v50 = vld [vmem:[%s1100_s0 + $0xc] sm:$0x8] }
  0x24   :  { %589 = vmatpush.bf16.msrb.mxu2 %v770_v0  ;;  %v358_v60 = vsel %vm85_vm3, %v357_v41, %v356_v58  ;;  %v687_v61 = vunpack.i.l.s16 %v402_v51  ;;  %v688_v62 = vunpack.i.l.s16 %v403_v53  ;;  %v689_v63 = vunpack.i.l.s16 %v404_v55  ;;  %v459_v0 = vld [vmem:[%s1100_s0] sm:$0x4] }
  0x25   :  { %v360_v2 = vsel %vm88_vm4, %v359_v45, %v358_v60  ;;  %v691_v3 = vunpack.i.l.s16 %v406_v57  ;;  %v692_v4 = vunpack.i.l.s16 %v407_v14  ;;  %v690_v8 = vunpack.i.l.s16 %v405_v56  ;;  %v537_v56 = vld [vmem:[%s1100_s0 + $0x10] sm:$0x8] }
  0x26   :  { %442 = vmatpush.bf16.msrb.mxu0 %v777_v1  ;;  %516 = vmatpush.bf16.msrb.mxu1 %v777_v1  ;;  %v362_v7 = vsel %vm91_vm5, %v361_v46, %v360_v2  ;;  %v425_v9 = vrot.slane %v686_v59, 4  ;;  %v426_v10 = vrot.slane %v687_v61, 3  ;;  %v1017_v15 = vunpack.i.l.s16 %v408_v18  ;;  %v533_v46 = vld [vmem:[%s1100_s0] sm:$0x8]  ;;  %v538_v59 = vld [vmem:[%s1100_s0 + $0x14] sm:$0x8] }
  0x27   :  { %v364_v13 = vsel %vm94_vm6, %v363_v47, %v362_v7  ;;  %v428_v16 = vrot.slane %v688_v62, 2  ;;  %v430_v17 = vrot.slane %v689_v63, 1  ;;  %v433_v25 = vrot.slane %v691_v3, 7  ;;  %v540_v63 = vld [vmem:[%s1100_s0 + $0x1c] sm:$0x8] }
  0x28   :  { %590 = vmatpush.bf16.msrb.mxu2 %v777_v1  ;;  %v365_v22 = vpack.c.b16 %v364_v13, %v364_v13  ;;  %v427_v23 = vsel %vm76_vm0, %v426_v10, %v425_v9  ;;  %v435_v26 = vrot.slane %v692_v4, 6  ;;  %v465_v1 = vld [vmem:[%s1100_s0 + $0x18] sm:$0x4]  ;;  %v475_v29 = vunpack.c.l.b16 %v459_v0 }
  0x29   :  { %v429_v28 = vsel %vm79_vm1, %v428_v16, %v427_v23  ;;  %v476_v30 = vunpack.c.l.b16 %v460_v5  ;;  %v477_v31 = vunpack.c.l.b16 %v461_v11  ;;  %v478_v34 = vunpack.c.l.b16 %v462_v12 }
  0x2a   :  { %443 = vmatpush.bf16.msrb.mxu0 %v813_v19  ;;  %517 = vmatpush.bf16.msrb.mxu1 %v813_v19  ;;  %v431_v32 = vsel %vm82_vm2, %v430_v17, %v429_v28  ;;  %v479_v35 = vunpack.c.l.b16 %v463_v20  ;;  %v480_v36 = vunpack.c.l.b16 %v464_v21  ;;  %v481_v38 = vunpack.c.l.b16 %v465_v1 }
  0x2b   :  { %375 = vmatmul.bf16.vlgmr.msra.gmra.mxu3 %v365_v22  ;;  %v432_v37 = vsel %vm85_vm3, %v690_v8, %v431_v32  ;;  %v482_v39 = vunpack.c.l.b16 %v466_v27  ;;  %v694_v40 = vunpack.i.l.s16 %v475_v29  ;;  %v695_v42 = vunpack.i.l.s16 %v476_v30  ;;  %v539_v8 = vld [vmem:[%s1100_s0 + $0x18] sm:$0x8] }
  0x2c   :  { %591 = vmatpush.bf16.msrb.mxu2 %v813_v19  ;;  %v434_v41 = vsel %vm88_vm4, %v433_v25, %v432_v37  ;;  %v696_v44 = vunpack.i.l.s16 %v477_v31  ;;  %v697_v45 = vunpack.i.l.s16 %v478_v34  ;;  %v698_v47 = vunpack.i.l.s16 %v479_v35  ;;  %v534_v19 = vld [vmem:[%s1100_s0 + $0x4] sm:$0x8] }
  0x2d   :  { %v700_v48 = vunpack.i.l.s16 %v481_v38  ;;  %v437_v51 = vrot.slane %v1017_v15, 5  ;;  %v701_v53 = vunpack.i.l.s16 %v482_v39  ;;  %v499_v54 = vrot.slane %v694_v40, 5 }
  0x2e   :  { %444 = vmatpush.bf16.msrb.mxu0 %v843_v43  ;;  %518 = vmatpush.bf16.msrb.mxu1 %v843_v43  ;;  %v500_v55 = vrot.slane %v695_v42, 4  ;;  %v436_v57 = vsel %vm91_vm5, %v435_v26, %v434_v41  ;;  %v502_v58 = vrot.slane %v696_v44, 3  ;;  %v504_v14 = vrot.slane %v697_v45, 2 }
  0x2f   :  { %v506_v18 = vrot.slane %v698_v47, 1  ;;  %v699_v60 = vunpack.i.l.s16 %v480_v36  ;;  %v509_v62 = vrot.slane %v700_v48, 7  ;;  %v550_v3 = vunpack.c.l.b16 %v534_v19 }
  0x30   :  { %592 = vmatpush.bf16.msrb.mxu2 %v843_v43  ;;  %v501_v61 = vsel %vm76_vm0, %v500_v55, %v499_v54  ;;  %v549_v43 = vunpack.c.l.b16 %v533_v46  ;;  %v551_v4 = vunpack.c.l.b16 %v535_v49  ;;  %v552_v0 = vunpack.c.l.b16 %v536_v50  ;;  %v719_v49 = vld [vmem:[%s1102_s2] ss:$0 sm:$0xff]  ;;  %s746_s2 = smov [#allocation2]  }
  0x31   :  { %v503_v2 = vsel %vm79_vm1, %v502_v58, %v501_v61  ;;  %v511_v7 = vrot.slane %v701_v53, 6  ;;  %v553_v9 = vunpack.c.l.b16 %v537_v56  ;;  %v554_v10 = vunpack.c.l.b16 %v538_v59  ;;  %s611_s4 = sshll.u32 %s746_s2, 4  ;;  %s612_s4 = int_to_ptr.vmem [resolvable:$true] %s611_s4 }
  0x32   :  { %445 = vmatpush.bf16.msrb.mxu0 %v852_v52  ;;  %519 = vmatpush.bf16.msrb.mxu1 %v852_v52  ;;  %v505_v5 = vsel %vm82_vm2, %v504_v14, %v503_v2  ;;  %v556_v12 = vunpack.c.l.b16 %v540_v63  ;;  %v702_v13 = vunpack.i.l.s16 %v549_v43  ;;  %v703_v15 = vunpack.i.l.s16 %v550_v3 }
  0x33   :  { %v507_v11 = vsel %vm85_vm3, %v506_v18, %v505_v5  ;;  %v704_v17 = vunpack.i.l.s16 %v551_v4  ;;  %v705_v20 = vunpack.i.l.s16 %v552_v0  ;;  %v706_v21 = vunpack.i.l.s16 %v553_v9 }
  0x34   :  { %593 = vmatpush.bf16.msrb.mxu2 %v852_v52  ;;  %v508_v16 = vsel %vm88_vm4, %v699_v60, %v507_v11  ;;  %v555_v23 = vunpack.c.l.b16 %v539_v8  ;;  %v707_v25 = vunpack.i.l.s16 %v554_v10  ;;  %v709_v26 = vunpack.i.l.s16 %v556_v12 }
  0x35   :  { %v510_v22 = vsel %vm91_vm5, %v509_v62, %v508_v16  ;;  %v573_v1 = vrot.slane %v702_v13, 6  ;;  %v574_v27 = vrot.slane %v703_v15, 5  ;;  %v576_v52 = vrot.slane %v704_v17, 4 }
  0x36   :  { %446 = vmatpush.bf16.msrb.mxu0 %v897_v24  ;;  %520 = vmatpush.bf16.msrb.mxu1 %v897_v24  ;;  %v438_v28 = vsel %vm94_vm6, %v437_v51, %v436_v57  ;;  %v578_v29 = vrot.slane %v705_v20, 3  ;;  %v580_v30 = vrot.slane %v706_v21, 2  ;;  %v512_v31 = vsel %vm94_vm6, %v511_v7, %v510_v22 }
  0x37   :  { %v575_v32 = vsel %vm76_vm0, %v574_v27, %v573_v1  ;;  %v582_v34 = vrot.slane %v707_v25, 1  ;;  %v708_v35 = vunpack.i.l.s16 %v555_v23  ;;  %v439_v37 = vpack.c.b16 %v438_v28, %v438_v28 }
  0x38   :  { %594 = vmatpush.bf16.msrb.mxu2 %v897_v24  ;;  %v577_v36 = vsel %vm79_vm1, %v576_v52, %v575_v32  ;;  %v585_v39 = vrot.slane %v709_v26, 7  ;;  %v513_v24 = vpack.c.b16 %v512_v31, %v512_v31 }
  0x39   :  { %v579_v38 = vsel %vm82_vm2, %v578_v29, %v577_v36 }
  0x3a   :  { %447 = vmatpush.bf16.msrb.mxu0 %v906_v33  ;;  %521 = vmatpush.bf16.msrb.mxu1 %v906_v33  ;;  %v581_v40 = vsel %vm85_vm3, %v580_v30, %v579_v38 }
  0x3b   :  { %v583_v41 = vsel %vm88_vm4, %v582_v34, %v581_v40 }
  0x3c   :  { %595 = vmatpush.bf16.msrb.mxu2 %v906_v33  ;;  %v584_v42 = vsel %vm91_vm5, %v708_v35, %v583_v41 }
  0x3d   :  { %v586_v44 = vsel %vm94_vm6, %v585_v39, %v584_v42 }
  0x3e   :  { %448 = vmatpush.bf16.msrb.mxu0 %v950_v6  ;;  %522 = vmatpush.bf16.msrb.mxu1 %v950_v6  ;;  %v587_v45 = vpack.c.b16 %v586_v44, %v586_v44 }
  0x40   :  { %596 = vmatpush.bf16.msrb.mxu2 %v950_v6 }
  0x41   :  { %449 = vmatmul.bf16.vlgmr.msrb.gmra.mxu0 %v439_v37  ;;  %523 = vmatmul.bf16.vlgmr.msrb.gmra.mxu1 %v513_v24 }
  0x43   :  { %597 = vmatmul.bf16.vlgmr.msrb.gmra.mxu2 %v587_v45 }
  0x9e   :  { %v155_v46 = vpop.f32.mrf.mxu0  ;;  %v228_v47 = vpop.f32.mrf.mxu1 }
  0x9f   :  { %v156_v53 = vadd.f32 %v719_v49, %v155_v46  ;;  %v229_v54 = vadd.f32 %v719_v49, %v228_v47 }
  0xa1   :  { %v159_v55 = vmul.f32 0.2, %v156_v53  ;;  %v232_v56 = vmul.f32 0.2, %v229_v54 }
  0xa3   :  { %v160_v6 = vmax.f32 %v156_v53, %v159_v55  ;;  %v233_v14 = vmax.f32 %v229_v54, %v232_v56 }
  0xa5   :  { %v234_v61 = vmax.f32 %v160_v6, %v233_v14 }
  0xa6   :  { %v302_v33 = vpop.f32.mrf.mxu2  ;;  %v157_v48 = vpop.f32.mrf.mxu0 }
  0xa7   :  { %v230_v19 = vpop.f32.mrf.mxu1  ;;  %v303_v57 = vadd.f32 %v719_v49, %v302_v33 }
  0xa9   :  { %v306_v18 = vmul.f32 0.2, %v303_v57 }
  0xab   :  { %v307_v62 = vmax.f32 %v303_v57, %v306_v18 }
  0xad   :  { %v308_v0 = vmax.f32 %v234_v61, %v307_v62 }
  0xae   :  { %v304_v50 = vpop.f32.mrf.mxu2  ;;  %v376_v51 = vpop.f32.mrf.mxu3 }
  0xaf   :  { %v377_v59 = vadd.f32 %v719_v49, %v376_v51 }
  0xb1   :  { %v380_v63 = vmul.f32 0.2, %v377_v59 }
  0xb3   :  { %v381_v5 = vmax.f32 %v377_v59, %v380_v63 }
  0xb5   :  { %v382_v10 = vmax.f32 %v308_v0, %v381_v5 }
  0xb6   :  { %v378_v58 = vpop.f32.mrf.mxu3 }
  0xbe   :  { %v450_v60 = vpop.f32.mrf.mxu0  ;;  %v524_v2 = vpop.f32.mrf.mxu1 }
  0xbf   :  { %v451_v43 = vadd.f32 %v719_v49, %v450_v60  ;;  %v525_v4 = vadd.f32 %v719_v49, %v524_v2 }
  0xc1   :  { %v454_v3 = vmul.f32 0.2, %v451_v43  ;;  %v528_v8 = vmul.f32 0.2, %v525_v4 }
  0xc3   :  { %v455_v7 = vmax.f32 %v451_v43, %v454_v3  ;;  %v529_v15 = vmax.f32 %v525_v4, %v528_v8 }
  0xc5   :  { %v456_v13 = vmax.f32 %v382_v10, %v455_v7 }
  0xc6   :  { %v452_v9 = vpop.f32.mrf.mxu0  ;;  %v526_v11 = vpop.f32.mrf.mxu1 }
  0xc7   :  { %v598_v12 = vpop.f32.mrf.mxu2  ;;  %v530_v20 = vmax.f32 %v456_v13, %v529_v15 }
  0xc8   :  { %v599_v16 = vadd.f32 %v719_v49, %v598_v12 }
  0xca   :  { %v602_v17 = vmul.f32 0.2, %v599_v16 }
  0xcc   :  { %v603_v21 = vmax.f32 %v599_v16, %v602_v17 }
  0xce   :  { %v604_v22 = vmax.f32 %v530_v20, %v603_v21 }
  0xcf   :  { %v600_v23 = vpop.f32.mrf.mxu2 }
  0xd0   :  { %605 = vst [vmem:[#allocation2] sm:$0xff] %v604_v22 }
  0xd1   :  { %616 = dma.vmem_to_hbm [thread:$0]  %s612_s4, 128, %s614_s7, [#allocation3]  }
  0xd2   :  { %744 = dma.done.wait [#allocation3], 128  }
  0xd3   :  { %745 = vsyncadd [#allocation3], 4294967168 }
  0xd4   :  { %621 = vsyncpa [#allocation3], 1 }

// kernel: _lambda_.8
= control target key start
LH: loop header
LB: loop body
LE: loop exit
PB: predicated region body
PF: predicated region fallthrough
CT: control target
= control target key end

     0   :  { %vm315_vm0 = vcmask 1041409   ;;  %vm318_vm1 = vcmask 1042434   ;;  %vm321_vm2 = vcmask 1043459   ;;  %vm324_vm3 = vcmask 1044484   ;;  %s4750_s1 = inlined_call_operand.vmem [shape: bf16[128,128], index: 1, kind: input, shape index: {}]   ;;  %s4751_s0 = inlined_call_operand.vmem [shape: bf16[56,6,128], index: 0, kind: input, shape index: {}]   ;;  %s4752_s2 = inlined_call_operand.vmem [shape: f32[1,128], index: 2, kind: input, shape index: {}]   ;;  %s4753_s3 = inlined_call_operand.vmem [shape: f32[56,128], index: 3, kind: output, shape index: {}]  }
   0x1   :  { %v3189_v0 = vld [vmem:[%s4750_s1 + $0x38] sm:$0xff]  ;;  %v3196_v1 = vld [vmem:[%s4750_s1 + $0x30] sm:$0xff]  ;;  %v63_v2 = vld [vmem:[%s4751_s0 + $0x80] sm:$0x1]  ;;  %vm327_vm4 = vcmask 1045509   ;;  %vm330_vm5 = vcmask 1046534  }
   0x2   :  { %3149 = vmatpush.bf16.msra.mxu2 %v3189_v0  ;;  %3157 = vmatpush.bf16.msra.mxu3 %v3189_v0  ;;  %v64_v3 = vld [vmem:[%s4751_s0 + $0x84] sm:$0x1]  ;;  %v65_v4 = vld [vmem:[%s4751_s0 + $0x88] sm:$0x1]  ;;  %v66_v5 = vld [vmem:[%s4751_s0 + $0x8c] sm:$0x1]  ;;  %v178_v6 = vunpack.c.l.b16 %v63_v2 }
   0x3   :  { %475 = vmatpush.bf16.msra.mxu0 %v3189_v0  ;;  %917 = vmatpush.bf16.msra.mxu1 %v3189_v0  ;;  %v3215_v7 = vld [vmem:[%s4750_s1 + $0x28] sm:$0xff]  ;;  %v67_v8 = vld [vmem:[%s4751_s0 + $0x90] sm:$0x1]  ;;  %v68_v9 = vld [vmem:[%s4751_s0 + $0x94] sm:$0x1]  ;;  %v179_v11 = vunpack.c.l.b16 %v64_v3  ;;  %v180_v12 = vunpack.c.l.b16 %v65_v4  ;;  %v181_v13 = vunpack.c.l.b16 %v66_v5  ;;  %vm333_vm6 = vcmask 1047559  }
   0x4   :  { %v69_v10 = vld [vmem:[%s4751_s0 + $0x98] sm:$0x1]  ;;  %v70_v14 = vld [vmem:[%s4751_s0 + $0x9c] sm:$0x1]  ;;  %v71_v15 = vld [vmem:[%s4751_s0 + $0xa0] sm:$0x1]  ;;  %v182_v17 = vunpack.c.l.b16 %v67_v8  ;;  %v183_v18 = vunpack.c.l.b16 %v68_v9  ;;  %v2805_v20 = vunpack.i.l.s16 %v178_v6 }
   0x5   :  { %v72_v16 = vld [vmem:[%s4751_s0 + $0xa4] sm:$0x1]  ;;  %v184_v19 = vunpack.c.l.b16 %v69_v10  ;;  %v73_v21 = vld [vmem:[%s4751_s0 + $0xa8] sm:$0x1]  ;;  %v74_v22 = vld [vmem:[%s4751_s0 + $0xac] sm:$0x1]  ;;  %v185_v24 = vunpack.c.l.b16 %v70_v14  ;;  %v186_v25 = vunpack.c.l.b16 %v71_v15  ;;  %v2806_v27 = vunpack.i.l.s16 %v179_v11 }
   0x6   :  { %3150 = vmatpush.bf16.msra.mxu2 %v3196_v1  ;;  %3158 = vmatpush.bf16.msra.mxu3 %v3196_v1  ;;  %v75_v23 = vld [vmem:[%s4751_s0 + $0xb0] sm:$0x1]  ;;  %v187_v26 = vunpack.c.l.b16 %v72_v16  ;;  %v76_v28 = vld [vmem:[%s4751_s0 + $0xb4] sm:$0x1]  ;;  %v77_v29 = vld [vmem:[%s4751_s0 + $0xb8] sm:$0x1]  ;;  %v188_v31 = vunpack.c.l.b16 %v73_v21  ;;  %v189_v32 = vunpack.c.l.b16 %v74_v22  ;;  %v2807_v34 = vunpack.i.l.s16 %v180_v12 }
   0x7   :  { %476 = vmatpush.bf16.msra.mxu0 %v3196_v1  ;;  %918 = vmatpush.bf16.msra.mxu1 %v3196_v1  ;;  %v78_v30 = vld [vmem:[%s4751_s0 + $0xbc] sm:$0x1]  ;;  %v190_v33 = vunpack.c.l.b16 %v75_v23  ;;  %v191_v35 = vunpack.c.l.b16 %v76_v28  ;;  %v192_v36 = vunpack.c.l.b16 %v77_v29  ;;  %v2808_v38 = vunpack.i.l.s16 %v181_v13  ;;  %v3266_v43 = vld [vmem:[%s4750_s1 + $0x20] sm:$0xff]  ;;  %v565_v5 = vld [vmem:[%s4751_s0 + $0x88] sm:$0x1] }
   0x8   :  { %v193_v37 = vunpack.c.l.b16 %v78_v30  ;;  %v2809_v39 = vunpack.i.l.s16 %v182_v17  ;;  %v2810_v40 = vunpack.i.l.s16 %v183_v18  ;;  %v3257_v41 = vunpack.i.l.s16 %v184_v19  ;;  %v3277_v56 = vld [vmem:[%s4751_s0 + $0x80] sm:$0x1]  ;;  %v3284_v61 = vld [vmem:[%s4751_s0 + $0x84] sm:$0x1]  ;;  %v3291_v62 = vld [vmem:[%s4750_s1 + $0x18] sm:$0xff] }
   0x9   :  { %v3259_v42 = vunpack.i.l.s16 %v185_v24  ;;  %v2813_v44 = vunpack.i.l.s16 %v186_v25  ;;  %v2814_v45 = vunpack.i.l.s16 %v187_v26  ;;  %v2815_v46 = vunpack.i.l.s16 %v188_v31  ;;  %v566_v11 = vld [vmem:[%s4751_s0 + $0x8c] sm:$0x1]  ;;  %v567_v12 = vld [vmem:[%s4751_s0 + $0x90] sm:$0x1]  ;;  %v568_v16 = vld [vmem:[%s4751_s0 + $0x94] sm:$0x1] }
   0xa   :  { %3151 = vmatpush.bf16.msra.mxu2 %v3215_v7  ;;  %3159 = vmatpush.bf16.msra.mxu3 %v3215_v7  ;;  %v2816_v47 = vunpack.i.l.s16 %v189_v32  ;;  %v2817_v48 = vunpack.i.l.s16 %v190_v33  ;;  %v2818_v49 = vunpack.i.l.s16 %v191_v35  ;;  %v3269_v50 = vunpack.i.l.s16 %v192_v36  ;;  %v569_v17 = vld [vmem:[%s4751_s0 + $0x98] sm:$0x1]  ;;  %v3321_v19 = vld [vmem:[%s4750_s1 + $0x10] sm:$0xff]  ;;  %v570_v22 = vld [vmem:[%s4751_s0 + $0x9c] sm:$0x1] }
   0xb   :  { %477 = vmatpush.bf16.msra.mxu0 %v3215_v7  ;;  %v3271_v51 = vunpack.i.l.s16 %v193_v37  ;;  %919 = vmatpush.bf16.msra.mxu1 %v3215_v7  ;;  %v377_v52 = vrot.slane %v2806_v27, 7  ;;  %v379_v53 = vrot.slane %v2807_v34, 6  ;;  %v381_v54 = vrot.slane %v2808_v38, 5  ;;  %v571_v23 = vld [vmem:[%s4751_s0 + $0xa0] sm:$0x1] }
   0xc   :  { %v383_v55 = vrot.slane %v2809_v39, 4  ;;  %v385_v57 = vrot.slane %v2810_v40, 3  ;;  %v387_v58 = vrot.slane %v3257_v41, 2  ;;  %v389_v59 = vrot.slane %v3259_v42, 1  ;;  %v572_v28 = vld [vmem:[%s4751_s0 + $0xa4] sm:$0x1] }
   0xd   :  { %v391_v60 = vrot.slane %v2814_v45, 7  ;;  %v378_v63 = vsel %vm315_vm0, %v377_v52, %v2805_v20  ;;  %v393_v2 = vrot.slane %v2815_v46, 6  ;;  %v395_v3 = vrot.slane %v2816_v47, 5  ;;  %v573_v29 = vld [vmem:[%s4751_s0 + $0xa8] sm:$0x1] }
   0xe   :  { %3152 = vmatpush.bf16.msra.mxu2 %v3266_v43  ;;  %3160 = vmatpush.bf16.msra.mxu3 %v3266_v43  ;;  %v397_v4 = vrot.slane %v2817_v48, 4  ;;  %v380_v6 = vsel %vm318_vm1, %v379_v53, %v378_v63  ;;  %v399_v9 = vrot.slane %v2818_v49, 3  ;;  %v401_v10 = vrot.slane %v3269_v50, 2  ;;  %v574_v30 = vld [vmem:[%s4751_s0 + $0xac] sm:$0x1] }
   0xf   :  { %478 = vmatpush.bf16.msra.mxu0 %v3266_v43  ;;  %v392_v8 = vsel %vm315_vm0, %v391_v60, %v2813_v44  ;;  %920 = vmatpush.bf16.msra.mxu1 %v3266_v43  ;;  %v382_v13 = vsel %vm321_vm2, %v381_v54, %v380_v6  ;;  %v403_v15 = vrot.slane %v3271_v51, 1  ;;  %v675_v18 = vunpack.c.l.b16 %v3277_v56  ;;  %v575_v35 = vld [vmem:[%s4751_s0 + $0xb0] sm:$0x1]  ;;  %v576_v36 = vld [vmem:[%s4751_s0 + $0xb4] sm:$0x1]  ;;  %v3373_v50 = vld [vmem:[%s4750_s1 + $0x8] sm:$0xff] }
  0x10   :  { %v394_v14 = vsel %vm318_vm1, %v393_v2, %v392_v8  ;;  %v384_v20 = vsel %vm324_vm3, %v383_v55, %v382_v13  ;;  %v676_v24 = vunpack.c.l.b16 %v3284_v61  ;;  %v677_v25 = vunpack.c.l.b16 %v565_v5  ;;  %v577_v37 = vld [vmem:[%s4751_s0 + $0xb8] sm:$0x1]  ;;  %v578_v42 = vld [vmem:[%s4751_s0 + $0xbc] sm:$0x1]  ;;  %v3388_v6 = vld [vmem:[%s4750_s1] sm:$0xff] }
  0x11   :  { %v396_v21 = vsel %vm321_vm2, %v395_v3, %v394_v14  ;;  %v386_v26 = vsel %vm327_vm4, %v385_v57, %v384_v20  ;;  %v678_v31 = vunpack.c.l.b16 %v566_v11  ;;  %v679_v32 = vunpack.c.l.b16 %v567_v12  ;;  %v3397_v12 = vld [vmem:[%s4751_s0] sm:$0x1] }
  0x12   :  { %3153 = vmatpush.bf16.msra.mxu2 %v3291_v62  ;;  %3161 = vmatpush.bf16.msra.mxu3 %v3291_v62  ;;  %v398_v27 = vsel %vm324_vm3, %v397_v4, %v396_v21  ;;  %v388_v33 = vsel %vm330_vm5, %v387_v58, %v386_v26  ;;  %v680_v38 = vunpack.c.l.b16 %v568_v16  ;;  %v681_v39 = vunpack.c.l.b16 %v569_v17  ;;  %v3405_v17 = vld [vmem:[%s4751_s0 + $0x4] sm:$0x1] }
  0x13   :  { %v400_v34 = vsel %vm327_vm4, %v399_v9, %v398_v27  ;;  %479 = vmatpush.bf16.msra.mxu0 %v3291_v62  ;;  %921 = vmatpush.bf16.msra.mxu1 %v3291_v62  ;;  %v3359_v40 = vsel %vm333_vm6, %v389_v59, %v388_v33  ;;  %v682_v44 = vunpack.c.l.b16 %v570_v22  ;;  %v683_v45 = vunpack.c.l.b16 %v571_v23  ;;  %v3413_v23 = vld [vmem:[%s4751_s0 + $0x8] sm:$0x1]  ;;  %v35_v33 = vld [vmem:[%s4751_s0 + $0x10] sm:$0x1] }
  0x14   :  { %v402_v41 = vsel %vm330_vm5, %v401_v10, %v400_v34  ;;  %v684_v47 = vunpack.c.l.b16 %v572_v28  ;;  %v685_v48 = vunpack.c.l.b16 %v573_v29  ;;  %v686_v49 = vunpack.c.l.b16 %v574_v30  ;;  %v3419_v28 = vld [vmem:[%s4751_s0 + $0xc] sm:$0x1] }
  0x15   :  { %v3366_v46 = vsel %vm333_vm6, %v403_v15, %v402_v41  ;;  %v687_v52 = vunpack.c.l.b16 %v575_v35  ;;  %v688_v53 = vunpack.c.l.b16 %v576_v36  ;;  %v689_v54 = vunpack.c.l.b16 %v577_v37  ;;  %v36_v37 = vld [vmem:[%s4751_s0 + $0x14] sm:$0x1] }
  0x16   :  { %3154 = vmatpush.bf16.msra.mxu2 %v3321_v19  ;;  %3162 = vmatpush.bf16.msra.mxu3 %v3321_v19  ;;  %v421_v51 = vpack.c.b16 %v3366_v46, %v3359_v40  ;;  %v690_v55 = vunpack.c.l.b16 %v578_v42  ;;  %v2893_v56 = vunpack.i.l.s16 %v675_v18  ;;  %v2894_v57 = vunpack.i.l.s16 %v676_v24 }
  0x17   :  { %v2895_v58 = vunpack.i.l.s16 %v677_v25  ;;  %480 = vmatpush.bf16.msra.mxu0 %v3321_v19  ;;  %922 = vmatpush.bf16.msra.mxu1 %v3321_v19  ;;  %v2896_v59 = vunpack.i.l.s16 %v678_v31  ;;  %v2897_v60 = vunpack.i.l.s16 %v679_v32  ;;  %v2898_v61 = vunpack.i.l.s16 %v680_v38  ;;  %v37_v38 = vld [vmem:[%s4751_s0 + $0x18] sm:$0x1] }
  0x18   :  { %v3379_v63 = vunpack.i.l.s16 %v681_v39  ;;  %v3381_v2 = vunpack.i.l.s16 %v682_v44  ;;  %v2901_v3 = vunpack.i.l.s16 %v683_v45  ;;  %v2902_v4 = vunpack.i.l.s16 %v684_v47  ;;  %v38_v44 = vld [vmem:[%s4751_s0 + $0x1c] sm:$0x1]  ;;  %v39_v45 = vld [vmem:[%s4751_s0 + $0x20] sm:$0x1] }
  0x19   :  { %v2903_v5 = vunpack.i.l.s16 %v685_v48  ;;  %v2904_v8 = vunpack.i.l.s16 %v686_v49  ;;  %v2905_v9 = vunpack.i.l.s16 %v687_v52  ;;  %v3390_v10 = vunpack.i.l.s16 %v688_v53  ;;  %v40_v53 = vld [vmem:[%s4751_s0 + $0x24] sm:$0x1] }
  0x1a   :  { %3155 = vmatpush.bf16.msra.mxu2 %v3373_v50  ;;  %3163 = vmatpush.bf16.msra.mxu3 %v3373_v50  ;;  %v3392_v11 = vunpack.i.l.s16 %v689_v54  ;;  %v3399_v13 = vunpack.i.l.s16 %v690_v55  ;;  %v867_v14 = vrot.slane %v2893_v56, 1  ;;  %v869_v15 = vrot.slane %v2895_v58, 7  ;;  %v41_v54 = vld [vmem:[%s4751_s0 + $0x28] sm:$0x1]  ;;  %v42_v55 = vld [vmem:[%s4751_s0 + $0x2c] sm:$0x1] }
  0x1b   :  { %v871_v16 = vrot.slane %v2896_v59, 6  ;;  %481 = vmatpush.bf16.msra.mxu0 %v3373_v50  ;;  %923 = vmatpush.bf16.msra.mxu1 %v3373_v50  ;;  %v873_v18 = vrot.slane %v2897_v60, 5  ;;  %v875_v20 = vrot.slane %v2898_v61, 4  ;;  %v877_v21 = vrot.slane %v3379_v63, 3  ;;  %v44_v58 = vld [vmem:[%s4751_s0 + $0x34] sm:$0x1] }
  0x1c   :  { %v879_v22 = vrot.slane %v3381_v2, 2  ;;  %v868_v24 = vsel %vm315_vm0, %v2894_v57, %v867_v14  ;;  %v881_v25 = vrot.slane %v2901_v3, 1  ;;  %v883_v26 = vrot.slane %v2903_v5, 7  ;;  %v43_v57 = vld [vmem:[%s4751_s0 + $0x30] sm:$0x1] }
  0x1d   :  { %v885_v27 = vrot.slane %v2904_v8, 6  ;;  %v870_v29 = vsel %vm318_vm1, %v869_v15, %v868_v24  ;;  %v887_v30 = vrot.slane %v2905_v9, 5  ;;  %v889_v31 = vrot.slane %v3390_v10, 4  ;;  %v45_v59 = vld [vmem:[%s4751_s0 + $0x38] sm:$0x1] }
  0x1e   :  { %3156 = vmatpush.bf16.msra.mxu2 %v3388_v6  ;;  %3164 = vmatpush.bf16.msra.mxu3 %v3388_v6  ;;  %v891_v32 = vrot.slane %v3392_v11, 3  ;;  %v872_v34 = vsel %vm321_vm2, %v871_v16, %v870_v29  ;;  %v882_v35 = vsel %vm315_vm0, %v2902_v4, %v881_v25  ;;  %v893_v36 = vrot.slane %v3399_v13, 2  ;;  %v46_v3 = vld [vmem:[%s4751_s0 + $0x3c] sm:$0x1] }
  0x1f   :  { %v146_v39 = vunpack.c.l.b16 %v3397_v12  ;;  %v874_v41 = vsel %vm324_vm3, %v873_v18, %v872_v34  ;;  %v884_v42 = vsel %vm318_vm1, %v883_v26, %v882_v35  ;;  %482 = vmatpush.bf16.msra.mxu0 %v3388_v6  ;;  %v147_v47 = vunpack.c.l.b16 %v3405_v17  ;;  %924 = vmatpush.bf16.msra.mxu1 %v3388_v6  ;;  %v79_v35 = vld [vmem:[%s4751_s0 + $0xc0] sm:$0x1] }
  0x20   :  { %v148_v48 = vunpack.c.l.b16 %v3413_v23  ;;  %v876_v49 = vsel %vm327_vm4, %v875_v20, %v874_v41  ;;  %v886_v52 = vsel %vm321_vm2, %v885_v27, %v884_v42  ;;  %v149_v56 = vunpack.c.l.b16 %v3419_v28  ;;  %v80_v41 = vld [vmem:[%s4751_s0 + $0xc4] sm:$0x1] }
  0x21   :  { %493 = vmatmul.bf16.vlgmr.msra.gmra.mxu2 %v421_v51  ;;  %v150_v40 = vunpack.c.l.b16 %v35_v33  ;;  %v878_v46 = vsel %vm330_vm5, %v877_v21, %v876_v49  ;;  %v888_v51 = vsel %vm324_vm3, %v887_v30, %v886_v52  ;;  %v151_v60 = vunpack.c.l.b16 %v36_v37 }
  0x22   :  { %1366 = vmatpush.bf16.msrb.mxu2 %v3189_v0  ;;  %1815 = vmatpush.bf16.msrb.mxu3 %v3189_v0  ;;  %v152_v61 = vunpack.c.l.b16 %v37_v38  ;;  %v880_v63 = vsel %vm333_vm6, %v879_v22, %v878_v46  ;;  %v890_v2 = vsel %vm327_vm4, %v889_v31, %v888_v51  ;;  %v153_v4 = vunpack.c.l.b16 %v38_v44  ;;  %v83_v51 = vld [vmem:[%s4751_s0 + $0xd0] sm:$0x1] }
  0x23   :  { %2264 = vmatpush.bf16.msrb.mxu0 %v3189_v0  ;;  %2713 = vmatpush.bf16.msrb.mxu1 %v3189_v0  ;;  %v154_v5 = vunpack.c.l.b16 %v39_v45  ;;  %v892_v8 = vsel %vm330_vm5, %v891_v32, %v890_v2  ;;  %v155_v9 = vunpack.c.l.b16 %v40_v53  ;;  %v156_v10 = vunpack.c.l.b16 %v41_v54  ;;  %v82_v54 = vld [vmem:[%s4751_s0 + $0xcc] sm:$0x1] }
  0x24   :  { %v157_v11 = vunpack.c.l.b16 %v42_v55  ;;  %v894_v0 = vsel %vm333_vm6, %v893_v36, %v892_v8  ;;  %v158_v12 = vunpack.c.l.b16 %v43_v57  ;;  %v159_v13 = vunpack.c.l.b16 %v44_v58  ;;  %v84_v57 = vld [vmem:[%s4751_s0 + $0xd4] sm:$0x1] }
  0x25   :  { %v160_v14 = vunpack.c.l.b16 %v45_v59  ;;  %v911_v15 = vpack.c.b16 %v894_v0, %v880_v63  ;;  %v161_v16 = vunpack.c.l.b16 %v46_v3  ;;  %v2773_v17 = vunpack.i.l.s16 %v146_v39 }
  0x26   :  { %1367 = vmatpush.bf16.msrb.mxu2 %v3196_v1  ;;  %1816 = vmatpush.bf16.msrb.mxu3 %v3196_v1  ;;  %v2774_v18 = vunpack.i.l.s16 %v147_v47  ;;  %v2775_v20 = vunpack.i.l.s16 %v148_v48  ;;  %v2776_v21 = vunpack.i.l.s16 %v149_v56  ;;  %v2777_v22 = vunpack.i.l.s16 %v150_v40 }
  0x27   :  { %2265 = vmatpush.bf16.msrb.mxu0 %v3196_v1  ;;  %2714 = vmatpush.bf16.msrb.mxu1 %v3196_v1  ;;  %v2778_v23 = vunpack.i.l.s16 %v151_v60  ;;  %v2779_v24 = vunpack.i.l.s16 %v152_v61  ;;  %v2780_v25 = vunpack.i.l.s16 %v153_v4  ;;  %v2781_v26 = vunpack.i.l.s16 %v154_v5  ;;  %v85_v60 = vld [vmem:[%s4751_s0 + $0xd8] sm:$0x1]  ;;  %v86_v61 = vld [vmem:[%s4751_s0 + $0xdc] sm:$0x1] }
  0x28   :  { %935 = vmatmul.bf16.vlgmr.msra.gmra.mxu3 %v911_v15  ;;  %v2782_v27 = vunpack.i.l.s16 %v155_v9  ;;  %v2783_v28 = vunpack.i.l.s16 %v156_v10  ;;  %v2784_v29 = vunpack.i.l.s16 %v157_v11  ;;  %v2785_v30 = vunpack.i.l.s16 %v158_v12 }
  0x29   :  { %v2786_v31 = vunpack.i.l.s16 %v159_v13  ;;  %v2787_v1 = vunpack.i.l.s16 %v160_v14  ;;  %v2788_v32 = vunpack.i.l.s16 %v161_v16  ;;  %v314_v33 = vrot.slane %v2774_v18, 7 }
  0x2a   :  { %1368 = vmatpush.bf16.msrb.mxu2 %v3215_v7  ;;  %1817 = vmatpush.bf16.msrb.mxu3 %v3215_v7  ;;  %v317_v34 = vrot.slane %v2775_v20, 6  ;;  %v320_v36 = vrot.slane %v2776_v21, 5  ;;  %v323_v37 = vrot.slane %v2777_v22, 4  ;;  %v326_v38 = vrot.slane %v2778_v23, 3  ;;  %v579_v20 = vld [vmem:[%s4751_s0 + $0xc0] sm:$0x1] }
  0x2b   :  { %2266 = vmatpush.bf16.msrb.mxu0 %v3215_v7  ;;  %2715 = vmatpush.bf16.msrb.mxu1 %v3215_v7  ;;  %v329_v39 = vrot.slane %v2779_v24, 2  ;;  %v316_v42 = vsel %vm315_vm0, %v314_v33, %v2773_v17  ;;  %v332_v44 = vrot.slane %v2780_v25, 1  ;;  %v335_v45 = vrot.slane %v2782_v27, 7  ;;  %v81_v7 = vld [vmem:[%s4751_s0 + $0xc8] sm:$0x1] }
  0x2c   :  { %v337_v47 = vrot.slane %v2783_v28, 6  ;;  %v319_v48 = vsel %vm318_vm1, %v317_v34, %v316_v42  ;;  %v339_v49 = vrot.slane %v2784_v29, 5  ;;  %v341_v52 = vrot.slane %v2785_v30, 4  ;;  %v581_v25 = vld [vmem:[%s4751_s0 + $0xc8] sm:$0x1] }
  0x2d   :  { %v343_v53 = vrot.slane %v2786_v31, 3  ;;  %v322_v55 = vsel %vm321_vm2, %v320_v36, %v319_v48  ;;  %v336_v56 = vsel %vm315_vm0, %v335_v45, %v2781_v26  ;;  %v345_v40 = vrot.slane %v2787_v1, 2  ;;  %v582_v26 = vld [vmem:[%s4751_s0 + $0xcc] sm:$0x1]  ;;  %v583_v31 = vld [vmem:[%s4751_s0 + $0xd0] sm:$0x1] }
  0x2e   :  { %1369 = vmatpush.bf16.msrb.mxu2 %v3266_v43  ;;  %1818 = vmatpush.bf16.msrb.mxu3 %v3266_v43  ;;  %v347_v46 = vrot.slane %v2788_v32, 1  ;;  %v325_v58 = vsel %vm324_vm3, %v323_v37, %v322_v55  ;;  %v338_v59 = vsel %vm318_vm1, %v337_v47, %v336_v56  ;;  %v194_v63 = vunpack.c.l.b16 %v79_v35  ;;  %v584_v1 = vld [vmem:[%s4751_s0 + $0xd4] sm:$0x1]  ;;  %v585_v36 = vld [vmem:[%s4751_s0 + $0xd8] sm:$0x1] }
  0x2f   :  { %2267 = vmatpush.bf16.msrb.mxu0 %v3266_v43  ;;  %2716 = vmatpush.bf16.msrb.mxu1 %v3266_v43  ;;  %v195_v2 = vunpack.c.l.b16 %v80_v41  ;;  %v328_v43 = vsel %vm327_vm4, %v326_v38, %v325_v58  ;;  %v340_v3 = vsel %vm321_vm2, %v339_v49, %v338_v59  ;;  %v196_v4 = vunpack.c.l.b16 %v81_v7  ;;  %v586_v41 = vld [vmem:[%s4751_s0 + $0xdc] sm:$0x1]  ;;  %v532_v59 = vld [vmem:[%s4751_s0 + $0x4] sm:$0x1] }
  0x30   :  { %v197_v5 = vunpack.c.l.b16 %v82_v54  ;;  %v331_v8 = vsel %vm330_vm5, %v329_v39, %v328_v43  ;;  %v342_v9 = vsel %vm324_vm3, %v341_v52, %v340_v3  ;;  %v198_v10 = vunpack.c.l.b16 %v83_v51  ;;  %v535_v3 = vld [vmem:[%s4751_s0 + $0x10] sm:$0x1] }
  0x31   :  { %v199_v11 = vunpack.c.l.b16 %v84_v57  ;;  %v334_v0 = vsel %vm333_vm6, %v332_v44, %v331_v8  ;;  %v344_v12 = vsel %vm327_vm4, %v343_v53, %v342_v9  ;;  %v200_v13 = vunpack.c.l.b16 %v85_v60  ;;  %v533_v60 = vld [vmem:[%s4751_s0 + $0x8] sm:$0x1] }
  0x32   :  { %1370 = vmatpush.bf16.msrb.mxu2 %v3291_v62  ;;  %1819 = vmatpush.bf16.msrb.mxu3 %v3291_v62  ;;  %v201_v14 = vunpack.c.l.b16 %v86_v61  ;;  %v346_v15 = vsel %vm330_vm5, %v345_v40, %v344_v12  ;;  %v2821_v16 = vunpack.i.l.s16 %v194_v63  ;;  %v2822_v17 = vunpack.i.l.s16 %v195_v2  ;;  %v531_v40 = vld [vmem:[%s4751_s0] sm:$0x1]  ;;  %v534_v61 = vld [vmem:[%s4751_s0 + $0xc] sm:$0x1] }
  0x33   :  { %2268 = vmatpush.bf16.msrb.mxu0 %v3291_v62  ;;  %2717 = vmatpush.bf16.msrb.mxu1 %v3291_v62  ;;  %v2823_v18 = vunpack.i.l.s16 %v196_v4  ;;  %v348_v21 = vsel %vm333_vm6, %v347_v46, %v346_v15  ;;  %v2824_v22 = vunpack.i.l.s16 %v197_v5  ;;  %v2825_v23 = vunpack.i.l.s16 %v198_v10  ;;  %v580_v62 = vld [vmem:[%s4751_s0 + $0xc4] sm:$0x1]  ;;  %v536_v4 = vld [vmem:[%s4751_s0 + $0x14] sm:$0x1]  ;;  %v537_v5 = vld [vmem:[%s4751_s0 + $0x18] sm:$0x1] }
  0x34   :  { %v2826_v24 = vunpack.i.l.s16 %v199_v11  ;;  %v419_v27 = vpack.c.b16 %v348_v21, %v334_v0  ;;  %v2827_v28 = vunpack.i.l.s16 %v200_v13  ;;  %v2828_v29 = vunpack.i.l.s16 %v201_v14  ;;  %v538_v0 = vld [vmem:[%s4751_s0 + $0x1c] sm:$0x1]  ;;  %v541_v21 = vld [vmem:[%s4751_s0 + $0x28] sm:$0x1] }
  0x35   :  { %v405_v30 = vrot.slane %v2822_v17, 7  ;;  %v407_v32 = vrot.slane %v2823_v18, 6  ;;  %v409_v33 = vrot.slane %v2824_v22, 5  ;;  %v411_v34 = vrot.slane %v2825_v23, 4 }
  0x36   :  { %1371 = vmatpush.bf16.msrb.mxu2 %v3321_v19  ;;  %1820 = vmatpush.bf16.msrb.mxu3 %v3321_v19  ;;  %v413_v35 = vrot.slane %v2826_v24, 3  ;;  %v415_v38 = vrot.slane %v2827_v28, 2  ;;  %v417_v39 = vrot.slane %v2828_v29, 1  ;;  %v691_v42 = vunpack.c.l.b16 %v579_v20  ;;  %v540_v20 = vld [vmem:[%s4751_s0 + $0x24] sm:$0x1] }
  0x37   :  { %2269 = vmatpush.bf16.msrb.mxu0 %v3321_v19  ;;  %2718 = vmatpush.bf16.msrb.mxu1 %v3321_v19  ;;  %v406_v37 = vsel %vm315_vm0, %v405_v30, %v2821_v16  ;;  %v692_v45 = vunpack.c.l.b16 %v580_v62  ;;  %v693_v47 = vunpack.c.l.b16 %v581_v25  ;;  %v694_v7 = vunpack.c.l.b16 %v582_v26  ;;  %v539_v16 = vld [vmem:[%s4751_s0 + $0x20] sm:$0x1]  ;;  %v543_v62 = vld [vmem:[%s4751_s0 + $0x30] sm:$0x1]  ;;  %v544_v25 = vld [vmem:[%s4751_s0 + $0x34] sm:$0x1] }
  0x38   :  { %483 = vmatmul.bf16.vlgmr.msra.gmra.mxu0 %v419_v27  ;;  %v408_v44 = vsel %vm318_vm1, %v407_v32, %v406_v37  ;;  %v695_v48 = vunpack.c.l.b16 %v583_v31  ;;  %v696_v49 = vunpack.c.l.b16 %v584_v1  ;;  %v697_v52 = vunpack.c.l.b16 %v585_v36  ;;  %v545_v30 = vld [vmem:[%s4751_s0 + $0x38] sm:$0x1]  ;;  %v546_v31 = vld [vmem:[%s4751_s0 + $0x3c] sm:$0x1] }
  0x39   :  { %v410_v19 = vsel %vm321_vm2, %v409_v33, %v408_v44  ;;  %v698_v54 = vunpack.c.l.b16 %v586_v41  ;;  %v2909_v55 = vunpack.i.l.s16 %v691_v42  ;;  %v2910_v56 = vunpack.i.l.s16 %v692_v45 }
  0x3a   :  { %1372 = vmatpush.bf16.msrb.mxu2 %v3373_v50  ;;  %1821 = vmatpush.bf16.msrb.mxu3 %v3373_v50  ;;  %v412_v53 = vsel %vm324_vm3, %v411_v34, %v410_v19  ;;  %v2911_v51 = vunpack.i.l.s16 %v693_v47  ;;  %v2912_v57 = vunpack.i.l.s16 %v694_v7  ;;  %v2913_v58 = vunpack.i.l.s16 %v695_v48 }
  0x3b   :  { %2270 = vmatpush.bf16.msrb.mxu0 %v3373_v50  ;;  %2719 = vmatpush.bf16.msrb.mxu1 %v3373_v50  ;;  %v414_v46 = vsel %vm327_vm4, %v413_v35, %v412_v53  ;;  %v2914_v63 = vunpack.i.l.s16 %v696_v49  ;;  %v2915_v2 = vunpack.i.l.s16 %v697_v52  ;;  %v2916_v43 = vunpack.i.l.s16 %v698_v54 }
  0x3c   :  { %v416_v50 = vsel %vm330_vm5, %v415_v38, %v414_v46  ;;  %v895_v9 = vrot.slane %v2909_v55, 1  ;;  %v897_v10 = vrot.slane %v2911_v51, 7  ;;  %v899_v11 = vrot.slane %v2912_v57, 6 }
  0x3d   :  { %v418_v8 = vsel %vm333_vm6, %v417_v39, %v416_v50  ;;  %v901_v13 = vrot.slane %v2913_v58, 5  ;;  %v903_v14 = vrot.slane %v2914_v63, 4  ;;  %v905_v15 = vrot.slane %v2915_v2, 3  ;;  %v47_v50 = vld [vmem:[%s4751_s0 + $0x40] sm:$0x1] }
  0x3e   :  { %1373 = vmatpush.bf16.msrb.mxu2 %v3388_v6  ;;  %1822 = vmatpush.bf16.msrb.mxu3 %v3388_v6  ;;  %v422_v12 = vpack.c.b16 %v418_v8, %v418_v8  ;;  %v896_v17 = vsel %vm315_vm0, %v2910_v56, %v895_v9  ;;  %v907_v18 = vrot.slane %v2916_v43, 2  ;;  %v643_v22 = vunpack.c.l.b16 %v531_v40 }
  0x3f   :  { %2271 = vmatpush.bf16.msrb.mxu0 %v3388_v6  ;;  %2720 = vmatpush.bf16.msrb.mxu1 %v3388_v6  ;;  %v644_v23 = vunpack.c.l.b16 %v532_v59  ;;  %v898_v24 = vsel %vm318_vm1, %v897_v10, %v896_v17  ;;  %v542_v6 = vld [vmem:[%s4751_s0 + $0x2c] sm:$0x1]  ;;  %v645_v26 = vunpack.c.l.b16 %v533_v60  ;;  %v646_v27 = vunpack.c.l.b16 %v534_v61 }
  0x40   :  { %498 = vmatmul.bf16.gmra.mxu2 %v422_v12  ;;  %v647_v28 = vunpack.c.l.b16 %v535_v3  ;;  %v900_v29 = vsel %vm321_vm2, %v899_v11, %v898_v24  ;;  %v648_v1 = vunpack.c.l.b16 %v536_v4  ;;  %v649_v32 = vunpack.c.l.b16 %v537_v5  ;;  %v48_v4 = vld [vmem:[%s4751_s0 + $0x44] sm:$0x1]  ;;  %v49_v11 = vld [vmem:[%s4751_s0 + $0x48] sm:$0x1] }
  0x41   :  { %v650_v33 = vunpack.c.l.b16 %v538_v0  ;;  %v902_v34 = vsel %vm324_vm3, %v901_v13, %v900_v29  ;;  %v651_v35 = vunpack.c.l.b16 %v539_v16  ;;  %v652_v36 = vunpack.c.l.b16 %v540_v20  ;;  %v55_v29 = vld [vmem:[%s4751_s0 + $0x60] sm:$0x1] }
  0x42   :  { %v653_v37 = vunpack.c.l.b16 %v541_v21  ;;  %v904_v38 = vsel %vm327_vm4, %v903_v14, %v902_v34  ;;  %v654_v39 = vunpack.c.l.b16 %v542_v6  ;;  %v655_v41 = vunpack.c.l.b16 %v543_v62  ;;  %v51_v21 = vld [vmem:[%s4751_s0 + $0x50] sm:$0x1]  ;;  %v52_v6 = vld [vmem:[%s4751_s0 + $0x54] sm:$0x1]  ;;  %v53_v62 = vld [vmem:[%s4751_s0 + $0x58] sm:$0x1] }
  0x43   :  { %v656_v42 = vunpack.c.l.b16 %v544_v25  ;;  %v906_v44 = vsel %vm330_vm5, %v905_v15, %v904_v38  ;;  %v657_v45 = vunpack.c.l.b16 %v545_v30  ;;  %v658_v47 = vunpack.c.l.b16 %v546_v31  ;;  %v50_v15 = vld [vmem:[%s4751_s0 + $0x4c] sm:$0x1]  ;;  %v57_v34 = vld [vmem:[%s4751_s0 + $0x68] sm:$0x1] }
  0x44   :  { %v2861_v7 = vunpack.i.l.s16 %v643_v22  ;;  %v908_v19 = vsel %vm333_vm6, %v907_v18, %v906_v44  ;;  %v2862_v48 = vunpack.i.l.s16 %v644_v23  ;;  %v2863_v49 = vunpack.i.l.s16 %v645_v26  ;;  %v61_v44 = vld [vmem:[%s4751_s0 + $0x78] sm:$0x1] }
  0x45   :  { %v2864_v52 = vunpack.i.l.s16 %v646_v27  ;;  %v912_v53 = vpack.c.b16 %v908_v19, %v908_v19  ;;  %v2865_v54 = vunpack.i.l.s16 %v647_v28  ;;  %v2866_v55 = vunpack.i.l.s16 %v648_v1  ;;  %v54_v28 = vld [vmem:[%s4751_s0 + $0x5c] sm:$0x1] }
  0x46   :  { %v2867_v56 = vunpack.i.l.s16 %v649_v32  ;;  %v2868_v40 = vunpack.i.l.s16 %v650_v33  ;;  %v2869_v46 = vunpack.i.l.s16 %v651_v35  ;;  %v2870_v51 = vunpack.i.l.s16 %v652_v36  ;;  %v56_v33 = vld [vmem:[%s4751_s0 + $0x64] sm:$0x1]  ;;  %v58_v35 = vld [vmem:[%s4751_s0 + $0x6c] sm:$0x1] }
  0x47   :  { %v2871_v57 = vunpack.i.l.s16 %v653_v37  ;;  %940 = vmatmul.bf16.gmra.mxu3 %v912_v53  ;;  %v2872_v58 = vunpack.i.l.s16 %v654_v39  ;;  %v2873_v59 = vunpack.i.l.s16 %v655_v41  ;;  %v2874_v60 = vunpack.i.l.s16 %v656_v42  ;;  %v59_v41 = vld [vmem:[%s4751_s0 + $0x70] sm:$0x1]  ;;  %v60_v42 = vld [vmem:[%s4751_s0 + $0x74] sm:$0x1] }
  0x48   :  { %v2875_v61 = vunpack.i.l.s16 %v657_v45  ;;  %v2876_v63 = vunpack.i.l.s16 %v658_v47  ;;  %v811_v2 = vrot.slane %v2861_v7, 1  ;;  %v813_v43 = vrot.slane %v2863_v49, 7 }
  0x49   :  { %v815_v3 = vrot.slane %v2864_v52, 6  ;;  %v817_v5 = vrot.slane %v2865_v54, 5  ;;  %v819_v8 = vrot.slane %v2866_v55, 4  ;;  %v821_v9 = vrot.slane %v2867_v56, 3 }
  0x4a   :  { %v823_v10 = vrot.slane %v2868_v40, 2  ;;  %v812_v0 = vsel %vm315_vm0, %v2862_v48, %v811_v2  ;;  %v825_v12 = vrot.slane %v2869_v46, 1  ;;  %v827_v13 = vrot.slane %v2871_v57, 7  ;;  %v62_v48 = vld [vmem:[%s4751_s0 + $0x7c] sm:$0x1] }
  0x4b   :  { %v829_v14 = vrot.slane %v2872_v58, 6  ;;  %v814_v16 = vsel %vm318_vm1, %v813_v43, %v812_v0  ;;  %v831_v17 = vrot.slane %v2873_v59, 5  ;;  %v833_v18 = vrot.slane %v2874_v60, 4 }
  0x4c   :  { %v835_v20 = vrot.slane %v2875_v61, 3  ;;  %v816_v22 = vsel %vm321_vm2, %v815_v3, %v814_v16  ;;  %v826_v23 = vsel %vm315_vm0, %v2870_v51, %v825_v12  ;;  %v837_v24 = vrot.slane %v2876_v63, 2  ;;  %v980_v16 = vld [vmem:[%s4751_s0] sm:$0x2] }
  0x4d   :  { %v162_v25 = vunpack.c.l.b16 %v47_v50  ;;  %v818_v26 = vsel %vm324_vm3, %v817_v5, %v816_v22  ;;  %v828_v27 = vsel %vm318_vm1, %v827_v13, %v826_v23  ;;  %v163_v30 = vunpack.c.l.b16 %v48_v4  ;;  %v981_v22 = vld [vmem:[%s4751_s0 + $0x4] sm:$0x2] }
  0x4e   :  { %v164_v31 = vunpack.c.l.b16 %v49_v11  ;;  %v820_v1 = vsel %vm327_vm4, %v819_v8, %v818_v26  ;;  %v830_v32 = vsel %vm321_vm2, %v829_v14, %v828_v27  ;;  %v165_v36 = vunpack.c.l.b16 %v50_v15 }
  0x4f   :  { %v166_v37 = vunpack.c.l.b16 %v51_v21  ;;  %v822_v38 = vsel %vm330_vm5, %v821_v9, %v820_v1  ;;  %v832_v39 = vsel %vm324_vm3, %v831_v17, %v830_v32  ;;  %v167_v45 = vunpack.c.l.b16 %v52_v6 }
  0x50   :  { %v168_v47 = vunpack.c.l.b16 %v53_v62  ;;  %v824_v7 = vsel %vm333_vm6, %v823_v10, %v822_v38  ;;  %v834_v19 = vsel %vm327_vm4, %v833_v18, %v832_v39  ;;  %v169_v49 = vunpack.c.l.b16 %v54_v28  ;;  %v986_v38 = vld [vmem:[%s4751_s0 + $0x18] sm:$0x2]  ;;  %v987_v39 = vld [vmem:[%s4751_s0 + $0x1c] sm:$0x2] }
  0x51   :  { %v170_v52 = vunpack.c.l.b16 %v55_v29  ;;  %v836_v53 = vsel %vm330_vm5, %v835_v20, %v834_v19  ;;  %v171_v54 = vunpack.c.l.b16 %v56_v33  ;;  %v172_v55 = vunpack.c.l.b16 %v57_v34  ;;  %v984_v34 = vld [vmem:[%s4751_s0 + $0x10] sm:$0x2]  ;;  %v990_v19 = vld [vmem:[%s4751_s0 + $0x28] sm:$0x2] }
  0x52   :  { %v173_v56 = vunpack.c.l.b16 %v58_v35  ;;  %v838_v40 = vsel %vm333_vm6, %v837_v24, %v836_v53  ;;  %v174_v46 = vunpack.c.l.b16 %v59_v41  ;;  %v175_v51 = vunpack.c.l.b16 %v60_v42  ;;  %v985_v35 = vld [vmem:[%s4751_s0 + $0x14] sm:$0x2] }
  0x53   :  { %v176_v57 = vunpack.c.l.b16 %v61_v44  ;;  %v909_v58 = vpack.c.b16 %v838_v40, %v824_v7  ;;  %v177_v59 = vunpack.c.l.b16 %v62_v48  ;;  %v2789_v60 = vunpack.i.l.s16 %v162_v25  ;;  %v982_v25 = vld [vmem:[%s4751_s0 + $0x8] sm:$0x2]  ;;  %v989_v7 = vld [vmem:[%s4751_s0 + $0x24] sm:$0x2] }
  0x54   :  { %v2790_v61 = vunpack.i.l.s16 %v163_v30  ;;  %v2791_v50 = vunpack.i.l.s16 %v164_v31  ;;  %v2792_v63 = vunpack.i.l.s16 %v165_v36  ;;  %v2793_v2 = vunpack.i.l.s16 %v166_v37  ;;  %v983_v30 = vld [vmem:[%s4751_s0 + $0xc] sm:$0x2] }
  0x55   :  { %v2794_v43 = vunpack.i.l.s16 %v167_v45  ;;  %925 = vmatmul.bf16.vlgmr.msra.gmra.mxu1 %v909_v58  ;;  %v2795_v3 = vunpack.i.l.s16 %v168_v47  ;;  %v2796_v4 = vunpack.i.l.s16 %v169_v49  ;;  %v2797_v5 = vunpack.i.l.s16 %v170_v52  ;;  %v988_v47 = vld [vmem:[%s4751_s0 + $0x20] sm:$0x2]  ;;  %v994_v58 = vld [vmem:[%s4751_s0 + $0x38] sm:$0x2] }
  0x56   :  { %v2798_v8 = vunpack.i.l.s16 %v171_v54  ;;  %v2799_v9 = vunpack.i.l.s16 %v172_v55  ;;  %v2800_v10 = vunpack.i.l.s16 %v173_v56  ;;  %v2801_v11 = vunpack.i.l.s16 %v174_v46  ;;  %v991_v54 = vld [vmem:[%s4751_s0 + $0x2c] sm:$0x2]  ;;  %v992_v55 = vld [vmem:[%s4751_s0 + $0x30] sm:$0x2]  ;;  %v993_v56 = vld [vmem:[%s4751_s0 + $0x34] sm:$0x2] }
  0x57   :  { %v2802_v0 = vunpack.i.l.s16 %v175_v51  ;;  %v2803_v12 = vunpack.i.l.s16 %v176_v57  ;;  %v2804_v13 = vunpack.i.l.s16 %v177_v59  ;;  %v349_v14 = vrot.slane %v2790_v61, 7  ;;  %v995_v59 = vld [vmem:[%s4751_s0 + $0x3c] sm:$0x2] }
  0x58   :  { %v351_v15 = vrot.slane %v2791_v50, 6  ;;  %v353_v17 = vrot.slane %v2792_v63, 5  ;;  %v355_v18 = vrot.slane %v2793_v2, 4  ;;  %v357_v20 = vrot.slane %v2794_v43, 3 }
  0x59   :  { %v359_v21 = vrot.slane %v2795_v3, 2  ;;  %v350_v23 = vsel %vm315_vm0, %v349_v14, %v2789_v60  ;;  %v361_v24 = vrot.slane %v2796_v4, 1  ;;  %v363_v6 = vrot.slane %v2798_v8, 7 }
  0x5a   :  { %v365_v62 = vrot.slane %v2799_v9, 6  ;;  %v352_v26 = vsel %vm318_vm1, %v351_v15, %v350_v23  ;;  %v367_v27 = vrot.slane %v2800_v10, 5  ;;  %v369_v28 = vrot.slane %v2801_v11, 4 }
  0x5b   :  { %v371_v29 = vrot.slane %v2802_v0, 3  ;;  %v354_v31 = vsel %vm321_vm2, %v353_v17, %v352_v26  ;;  %v364_v1 = vsel %vm315_vm0, %v363_v6, %v2797_v5  ;;  %v373_v32 = vrot.slane %v2803_v12, 2 }
  0x5c   :  { %v375_v33 = vrot.slane %v2804_v13, 1  ;;  %v356_v36 = vsel %vm324_vm3, %v355_v18, %v354_v31  ;;  %v366_v37 = vsel %vm318_vm1, %v365_v62, %v364_v1  ;;  %v1092_v41 = vunpack.c.l.b16 %v980_v16  ;;  %v1430_v1 = vld [vmem:[%s4751_s0 + $0x4] sm:$0x2] }
  0x5d   :  { %v1093_v42 = vunpack.c.l.b16 %v981_v22  ;;  %v358_v44 = vsel %vm327_vm4, %v357_v20, %v356_v36  ;;  %v368_v45 = vsel %vm321_vm2, %v367_v27, %v366_v37  ;;  %v1094_v48 = vunpack.c.l.b16 %v982_v25  ;;  %v1429_v27 = vld [vmem:[%s4751_s0] sm:$0x2]  ;;  %v1431_v36 = vld [vmem:[%s4751_s0 + $0x8] sm:$0x2] }
  0x5e   :  { %v1095_v49 = vunpack.c.l.b16 %v983_v30  ;;  %v360_v52 = vsel %vm330_vm5, %v359_v21, %v358_v44  ;;  %v370_v53 = vsel %vm324_vm3, %v369_v28, %v368_v45  ;;  %v1096_v40 = vunpack.c.l.b16 %v984_v34 }
  0x5f   :  { %v1097_v46 = vunpack.c.l.b16 %v985_v35  ;;  %v362_v51 = vsel %vm333_vm6, %v361_v24, %v360_v52  ;;  %v372_v57 = vsel %vm327_vm4, %v371_v29, %v370_v53  ;;  %v1098_v60 = vunpack.c.l.b16 %v986_v38  ;;  %v1435_v53 = vld [vmem:[%s4751_s0 + $0x18] sm:$0x2] }
  0x60   :  { %v1099_v61 = vunpack.c.l.b16 %v987_v39  ;;  %v374_v50 = vsel %vm330_vm5, %v373_v32, %v372_v57  ;;  %v1100_v63 = vunpack.c.l.b16 %v988_v47  ;;  %v1101_v2 = vunpack.c.l.b16 %v989_v7  ;;  %v1438_v57 = vld [vmem:[%s4751_s0 + $0x24] sm:$0x2] }
  0x61   :  { %v1102_v43 = vunpack.c.l.b16 %v990_v19  ;;  %v376_v3 = vsel %vm333_vm6, %v375_v33, %v374_v50  ;;  %v1103_v4 = vunpack.c.l.b16 %v991_v54  ;;  %v1104_v5 = vunpack.c.l.b16 %v992_v55  ;;  %v1433_v19 = vld [vmem:[%s4751_s0 + $0x10] sm:$0x2]  ;;  %v1436_v54 = vld [vmem:[%s4751_s0 + $0x1c] sm:$0x2]  ;;  %v1439_v50 = vld [vmem:[%s4751_s0 + $0x28] sm:$0x2] }
  0x62   :  { %v1105_v8 = vunpack.c.l.b16 %v993_v56  ;;  %v420_v9 = vpack.c.b16 %v376_v3, %v362_v51  ;;  %v1106_v10 = vunpack.c.l.b16 %v994_v58  ;;  %v1107_v11 = vunpack.c.l.b16 %v995_v59  ;;  %v1437_v51 = vld [vmem:[%s4751_s0 + $0x20] sm:$0x2] }
  0x63   :  { %v2917_v0 = vunpack.i.l.s16 %v1092_v41  ;;  %v2918_v12 = vunpack.i.l.s16 %v1093_v42  ;;  %v2919_v13 = vunpack.i.l.s16 %v1094_v48  ;;  %v2920_v14 = vunpack.i.l.s16 %v1095_v49  ;;  %v1432_v42 = vld [vmem:[%s4751_s0 + $0xc] sm:$0x2]  ;;  %v1434_v48 = vld [vmem:[%s4751_s0 + $0x14] sm:$0x2] }
  0x64   :  { %v2921_v15 = vunpack.i.l.s16 %v1096_v40  ;;  %488 = vmatmul.bf16.gmra.mxu0 %v420_v9  ;;  %v2922_v16 = vunpack.i.l.s16 %v1097_v46  ;;  %v2923_v17 = vunpack.i.l.s16 %v1098_v60  ;;  %v2924_v18 = vunpack.i.l.s16 %v1099_v61  ;;  %v1443_v9 = vld [vmem:[%s4751_s0 + $0x38] sm:$0x2] }
  0x65   :  { %v2925_v20 = vunpack.i.l.s16 %v1100_v63  ;;  %v2926_v21 = vunpack.i.l.s16 %v1101_v2  ;;  %v2927_v22 = vunpack.i.l.s16 %v1102_v43  ;;  %v2928_v23 = vunpack.i.l.s16 %v1103_v4  ;;  %v1440_v63 = vld [vmem:[%s4751_s0 + $0x2c] sm:$0x2]  ;;  %v1441_v2 = vld [vmem:[%s4751_s0 + $0x30] sm:$0x2] }
  0x66   :  { %v2929_v24 = vunpack.i.l.s16 %v1104_v5  ;;  %v2930_v6 = vunpack.i.l.s16 %v1105_v8  ;;  %v2931_v62 = vunpack.i.l.s16 %v1106_v10  ;;  %v2932_v25 = vunpack.i.l.s16 %v1107_v11  ;;  %v1442_v8 = vld [vmem:[%s4751_s0 + $0x34] sm:$0x2]  ;;  %v1444_v10 = vld [vmem:[%s4751_s0 + $0x3c] sm:$0x2] }
  0x67   :  { %v1260_v26 = vrot.slane %v2917_v0, 2  ;;  %v1261_v28 = vrot.slane %v2918_v12, 1  ;;  %v1264_v29 = vrot.slane %v2920_v14, 7  ;;  %v1266_v30 = vrot.slane %v2921_v15, 6 }
  0x68   :  { %v1268_v31 = vrot.slane %v2922_v16, 5  ;;  %v1270_v32 = vrot.slane %v2923_v17, 4  ;;  %v1272_v33 = vrot.slane %v2924_v18, 3  ;;  %v1274_v34 = vrot.slane %v2925_v20, 2 }
  0x69   :  { %v1275_v35 = vrot.slane %v2926_v21, 1  ;;  %v1262_v37 = vsel %vm315_vm0, %v1261_v28, %v1260_v26  ;;  %v1278_v38 = vrot.slane %v2928_v23, 7  ;;  %v1280_v39 = vrot.slane %v2929_v24, 6 }
  0x6a   :  { %v1282_v41 = vrot.slane %v2930_v6, 5  ;;  %v1263_v44 = vsel %vm318_vm1, %v2919_v13, %v1262_v37  ;;  %v1284_v47 = vrot.slane %v2931_v62, 4  ;;  %v1286_v7 = vrot.slane %v2932_v25, 3 }
  0x6b   :  { %v1276_v45 = vsel %vm315_vm0, %v1275_v35, %v1274_v34  ;;  %v1265_v49 = vsel %vm321_vm2, %v1264_v29, %v1263_v44  ;;  %v1541_v55 = vunpack.c.l.b16 %v1429_v27  ;;  %v1542_v56 = vunpack.c.l.b16 %v1430_v1 }
  0x6c   :  { %v1277_v52 = vsel %vm318_vm1, %v2927_v22, %v1276_v45  ;;  %v1267_v40 = vsel %vm324_vm3, %v1266_v30, %v1265_v49  ;;  %v1543_v58 = vunpack.c.l.b16 %v1431_v36  ;;  %v1544_v59 = vunpack.c.l.b16 %v1432_v42 }
  0x6d   :  { %v1279_v46 = vsel %vm321_vm2, %v1278_v38, %v1277_v52  ;;  %v1269_v60 = vsel %vm327_vm4, %v1268_v31, %v1267_v40  ;;  %v1545_v43 = vunpack.c.l.b16 %v1433_v19  ;;  %v1546_v3 = vunpack.c.l.b16 %v1434_v48  ;;  %v547_v38 = vld [vmem:[%s4751_s0 + $0x40] sm:$0x1]  ;;  %v550_v52 = vld [vmem:[%s4751_s0 + $0x4c] sm:$0x1]  ;;  %v551_v40 = vld [vmem:[%s4751_s0 + $0x50] sm:$0x1] }
  0x6e   :  { %v1281_v61 = vsel %vm324_vm3, %v1280_v39, %v1279_v46  ;;  %v1271_v4 = vsel %vm330_vm5, %v1270_v32, %v1269_v60  ;;  %v1547_v11 = vunpack.c.l.b16 %v1435_v53  ;;  %v1548_v0 = vunpack.c.l.b16 %v1436_v54  ;;  %v548_v39 = vld [vmem:[%s4751_s0 + $0x44] sm:$0x1] }
  0x6f   :  { %v1283_v5 = vsel %vm327_vm4, %v1282_v41, %v1281_v61  ;;  %v1273_v12 = vsel %vm333_vm6, %v1272_v33, %v1271_v4  ;;  %v1549_v14 = vunpack.c.l.b16 %v1437_v51  ;;  %v1550_v15 = vunpack.c.l.b16 %v1438_v57 }
  0x70   :  { %v1285_v13 = vsel %vm330_vm5, %v1284_v47, %v1283_v5  ;;  %v1551_v17 = vunpack.c.l.b16 %v1439_v50  ;;  %v1552_v18 = vunpack.c.l.b16 %v1440_v63  ;;  %v1553_v20 = vunpack.c.l.b16 %v1441_v2  ;;  %v549_v47 = vld [vmem:[%s4751_s0 + $0x48] sm:$0x1]  ;;  %v553_v50 = vld [vmem:[%s4751_s0 + $0x58] sm:$0x1]  ;;  %v554_v63 = vld [vmem:[%s4751_s0 + $0x5c] sm:$0x1] }
  0x71   :  { %v1287_v16 = vsel %vm333_vm6, %v1286_v7, %v1285_v13  ;;  %v1554_v22 = vunpack.c.l.b16 %v1442_v8  ;;  %v1555_v23 = vunpack.c.l.b16 %v1443_v9  ;;  %v1556_v24 = vunpack.c.l.b16 %v1444_v10  ;;  %v555_v5 = vld [vmem:[%s4751_s0 + $0x60] sm:$0x1]  ;;  %v556_v8 = vld [vmem:[%s4751_s0 + $0x64] sm:$0x1]  ;;  %v558_v13 = vld [vmem:[%s4751_s0 + $0x6c] sm:$0x1] }
  0x72   :  { %v1358_v21 = vpack.c.b16 %v1287_v16, %v1273_v12  ;;  %v2973_v6 = vunpack.i.l.s16 %v1541_v55  ;;  %v2974_v62 = vunpack.i.l.s16 %v1542_v56  ;;  %v2975_v25 = vunpack.i.l.s16 %v1543_v58  ;;  %v557_v12 = vld [vmem:[%s4751_s0 + $0x68] sm:$0x1] }
  0x73   :  { %v2976_v26 = vunpack.i.l.s16 %v1544_v59  ;;  %v2977_v27 = vunpack.i.l.s16 %v1545_v43  ;;  %v2978_v28 = vunpack.i.l.s16 %v1546_v3  ;;  %v2979_v29 = vunpack.i.l.s16 %v1547_v11  ;;  %v552_v59 = vld [vmem:[%s4751_s0 + $0x54] sm:$0x1] }
  0x74   :  { %1374 = vmatmul.bf16.vlgmr.msrb.gmra.mxu2 %v1358_v21  ;;  %v2980_v30 = vunpack.i.l.s16 %v1548_v0  ;;  %v2981_v31 = vunpack.i.l.s16 %v1549_v14  ;;  %v2982_v1 = vunpack.i.l.s16 %v1550_v15  ;;  %v2983_v32 = vunpack.i.l.s16 %v1551_v17  ;;  %v559_v14 = vld [vmem:[%s4751_s0 + $0x70] sm:$0x1]  ;;  %v561_v21 = vld [vmem:[%s4751_s0 + $0x78] sm:$0x1] }
  0x75   :  { %v2984_v33 = vunpack.i.l.s16 %v1552_v18  ;;  %v2985_v34 = vunpack.i.l.s16 %v1553_v20  ;;  %v2986_v35 = vunpack.i.l.s16 %v1554_v22  ;;  %v2987_v36 = vunpack.i.l.s16 %v1555_v23  ;;  %v560_v20 = vld [vmem:[%s4751_s0 + $0x74] sm:$0x1]  ;;  %v562_v22 = vld [vmem:[%s4751_s0 + $0x7c] sm:$0x1] }
  0x76   :  { %v2988_v37 = vunpack.i.l.s16 %v1556_v24  ;;  %v1709_v41 = vrot.slane %v2973_v6, 3  ;;  %v1710_v42 = vrot.slane %v2974_v62, 2  ;;  %v1712_v44 = vrot.slane %v2975_v25, 1 }
  0x77   :  { %v1715_v45 = vrot.slane %v2977_v27, 7  ;;  %v1717_v7 = vrot.slane %v2978_v28, 6  ;;  %v1719_v19 = vrot.slane %v2979_v29, 5  ;;  %v1721_v48 = vrot.slane %v2980_v30, 4 }
  0x78   :  { %v1723_v49 = vrot.slane %v2981_v31, 3  ;;  %v1711_v53 = vsel %vm315_vm0, %v1710_v42, %v1709_v41  ;;  %v1724_v54 = vrot.slane %v2982_v1, 2  ;;  %v1726_v55 = vrot.slane %v2983_v32, 1 }
  0x79   :  { %v1729_v56 = vrot.slane %v2985_v34, 7  ;;  %v1713_v46 = vsel %vm318_vm1, %v1712_v44, %v1711_v53  ;;  %v1731_v51 = vrot.slane %v2986_v35, 6  ;;  %v1733_v57 = vrot.slane %v2987_v36, 5  ;;  %v996_v53 = vld [vmem:[%s4751_s0 + $0x40] sm:$0x2] }
  0x7a   :  { %v1735_v58 = vrot.slane %v2988_v37, 4  ;;  %v1714_v60 = vsel %vm321_vm2, %v2976_v26, %v1713_v46  ;;  %v1725_v61 = vsel %vm315_vm0, %v1724_v54, %v1723_v49  ;;  %v659_v2 = vunpack.c.l.b16 %v547_v38  ;;  %v997_v46 = vld [vmem:[%s4751_s0 + $0x44] sm:$0x2] }
  0x7b   :  { %v660_v43 = vunpack.c.l.b16 %v548_v39  ;;  %v1716_v3 = vsel %vm324_vm3, %v1715_v45, %v1714_v60  ;;  %v1727_v4 = vsel %vm318_vm1, %v1726_v55, %v1725_v61  ;;  %v661_v9 = vunpack.c.l.b16 %v549_v47  ;;  %v998_v60 = vld [vmem:[%s4751_s0 + $0x48] sm:$0x2] }
  0x7c   :  { %v662_v10 = vunpack.c.l.b16 %v550_v52  ;;  %v1718_v11 = vsel %vm327_vm4, %v1717_v7, %v1716_v3  ;;  %v1728_v0 = vsel %vm321_vm2, %v2984_v33, %v1727_v4  ;;  %v663_v15 = vunpack.c.l.b16 %v551_v40 }
  0x7d   :  { %v664_v16 = vunpack.c.l.b16 %v552_v59  ;;  %v1720_v17 = vsel %vm330_vm5, %v1719_v19, %v1718_v11  ;;  %v1730_v18 = vsel %vm324_vm3, %v1729_v56, %v1728_v0  ;;  %v665_v23 = vunpack.c.l.b16 %v553_v50 }
  0x7e   :  { %v666_v24 = vunpack.c.l.b16 %v554_v63  ;;  %v1722_v6 = vsel %vm333_vm6, %v1721_v48, %v1720_v17  ;;  %v1732_v62 = vsel %vm327_vm4, %v1731_v51, %v1730_v18  ;;  %v667_v25 = vunpack.c.l.b16 %v555_v5  ;;  %v1003_v17 = vld [vmem:[%s4751_s0 + $0x5c] sm:$0x2]  ;;  %v1004_v18 = vld [vmem:[%s4751_s0 + $0x60] sm:$0x2] }
  0x7f   :  { %v668_v26 = vunpack.c.l.b16 %v556_v8  ;;  %v1734_v27 = vsel %vm330_vm5, %v1733_v57, %v1732_v62  ;;  %v669_v28 = vunpack.c.l.b16 %v557_v12  ;;  %v670_v29 = vunpack.c.l.b16 %v558_v13  ;;  %v1001_v12 = vld [vmem:[%s4751_s0 + $0x54] sm:$0x2]  ;;  %v1002_v13 = vld [vmem:[%s4751_s0 + $0x58] sm:$0x2]  ;;  %v1007_v62 = vld [vmem:[%s4751_s0 + $0x6c] sm:$0x2] }
  0x80   :  { %v671_v30 = vunpack.c.l.b16 %v559_v14  ;;  %v1736_v31 = vsel %vm333_vm6, %v1735_v58, %v1734_v27  ;;  %v672_v1 = vunpack.c.l.b16 %v560_v20  ;;  %v673_v32 = vunpack.c.l.b16 %v561_v21 }
  0x81   :  { %v674_v33 = vunpack.c.l.b16 %v562_v22  ;;  %v1807_v34 = vpack.c.b16 %v1736_v31, %v1722_v6  ;;  %v2877_v35 = vunpack.i.l.s16 %v659_v2  ;;  %v2878_v36 = vunpack.i.l.s16 %v660_v43  ;;  %v999_v43 = vld [vmem:[%s4751_s0 + $0x4c] sm:$0x2]  ;;  %v1006_v6 = vld [vmem:[%s4751_s0 + $0x68] sm:$0x2]  ;;  %v1010_v31 = vld [vmem:[%s4751_s0 + $0x78] sm:$0x2] }
  0x82   :  { %v2879_v37 = vunpack.i.l.s16 %v661_v9  ;;  %v2880_v38 = vunpack.i.l.s16 %v662_v10  ;;  %v2881_v39 = vunpack.i.l.s16 %v663_v15  ;;  %v2882_v41 = vunpack.i.l.s16 %v664_v16  ;;  %v1000_v9 = vld [vmem:[%s4751_s0 + $0x50] sm:$0x2] }
  0x83   :  { %v2883_v42 = vunpack.i.l.s16 %v665_v23  ;;  %1823 = vmatmul.bf16.vlgmr.msrb.gmra.mxu3 %v1807_v34  ;;  %v2884_v44 = vunpack.i.l.s16 %v666_v24  ;;  %v2885_v45 = vunpack.i.l.s16 %v667_v25  ;;  %v2886_v47 = vunpack.i.l.s16 %v668_v26  ;;  %v1005_v24 = vld [vmem:[%s4751_s0 + $0x64] sm:$0x2] }
  0x84   :  { %v2887_v7 = vunpack.i.l.s16 %v669_v28  ;;  %v2888_v19 = vunpack.i.l.s16 %v670_v29  ;;  %v2889_v48 = vunpack.i.l.s16 %v671_v30  ;;  %v2890_v49 = vunpack.i.l.s16 %v672_v1  ;;  %v1008_v29 = vld [vmem:[%s4751_s0 + $0x70] sm:$0x2]  ;;  %v1009_v30 = vld [vmem:[%s4751_s0 + $0x74] sm:$0x2] }
  0x85   :  { %v2891_v52 = vunpack.i.l.s16 %v673_v32  ;;  %v2892_v54 = vunpack.i.l.s16 %v674_v33  ;;  %v839_v55 = vrot.slane %v2877_v35, 1  ;;  %v841_v56 = vrot.slane %v2879_v37, 7  ;;  %v1011_v35 = vld [vmem:[%s4751_s0 + $0x7c] sm:$0x2] }
  0x86   :  { %v843_v40 = vrot.slane %v2880_v38, 6  ;;  %v845_v51 = vrot.slane %v2881_v39, 5  ;;  %v847_v57 = vrot.slane %v2882_v41, 4  ;;  %v849_v58 = vrot.slane %v2883_v42, 3 }
  0x87   :  { %v851_v59 = vrot.slane %v2884_v44, 2  ;;  %v840_v61 = vsel %vm315_vm0, %v2878_v36, %v839_v55  ;;  %v853_v50 = vrot.slane %v2885_v45, 1  ;;  %v855_v63 = vrot.slane %v2887_v7, 7 }
  0x88   :  { %v857_v2 = vrot.slane %v2888_v19, 6  ;;  %v842_v3 = vsel %vm318_vm1, %v841_v56, %v840_v61  ;;  %v859_v4 = vrot.slane %v2889_v48, 5  ;;  %v861_v5 = vrot.slane %v2890_v49, 4 }
  0x89   :  { %v863_v8 = vrot.slane %v2891_v52, 3  ;;  %v844_v10 = vsel %vm321_vm2, %v843_v40, %v842_v3  ;;  %v854_v11 = vsel %vm315_vm0, %v2886_v47, %v853_v50  ;;  %v865_v0 = vrot.slane %v2892_v54, 2  ;;  %v1445_v3 = vld [vmem:[%s4751_s0 + $0x40] sm:$0x2] }
  0x8a   :  { %v1108_v14 = vunpack.c.l.b16 %v996_v53  ;;  %v846_v15 = vsel %vm324_vm3, %v845_v51, %v844_v10  ;;  %v856_v16 = vsel %vm318_vm1, %v855_v63, %v854_v11  ;;  %v1109_v20 = vunpack.c.l.b16 %v997_v46  ;;  %v1446_v10 = vld [vmem:[%s4751_s0 + $0x44] sm:$0x2] }
  0x8b   :  { %v1110_v21 = vunpack.c.l.b16 %v998_v60  ;;  %v848_v22 = vsel %vm327_vm4, %v847_v57, %v846_v15  ;;  %v858_v23 = vsel %vm321_vm2, %v857_v2, %v856_v16  ;;  %v1111_v25 = vunpack.c.l.b16 %v999_v43 }
  0x8c   :  { %v1112_v26 = vunpack.c.l.b16 %v1000_v9  ;;  %v850_v27 = vsel %vm330_vm5, %v849_v58, %v848_v22  ;;  %v860_v28 = vsel %vm324_vm3, %v859_v4, %v858_v23  ;;  %v1113_v1 = vunpack.c.l.b16 %v1001_v12 }
  0x8d   :  { %v1114_v32 = vunpack.c.l.b16 %v1002_v13  ;;  %v852_v33 = vsel %vm333_vm6, %v851_v59, %v850_v27  ;;  %v862_v34 = vsel %vm327_vm4, %v861_v5, %v860_v28  ;;  %v1115_v36 = vunpack.c.l.b16 %v1003_v17  ;;  %v1451_v27 = vld [vmem:[%s4751_s0 + $0x58] sm:$0x2]  ;;  %v1452_v28 = vld [vmem:[%s4751_s0 + $0x5c] sm:$0x2] }
  0x8e   :  { %v1116_v37 = vunpack.c.l.b16 %v1004_v18  ;;  %v864_v38 = vsel %vm330_vm5, %v863_v8, %v862_v34  ;;  %v1117_v39 = vunpack.c.l.b16 %v1005_v24  ;;  %v1118_v41 = vunpack.c.l.b16 %v1006_v6  ;;  %v1449_v6 = vld [vmem:[%s4751_s0 + $0x50] sm:$0x2]  ;;  %v1455_v34 = vld [vmem:[%s4751_s0 + $0x68] sm:$0x2] }
  0x8f   :  { %v1119_v42 = vunpack.c.l.b16 %v1007_v62  ;;  %v866_v44 = vsel %vm333_vm6, %v865_v0, %v864_v38  ;;  %v1120_v45 = vunpack.c.l.b16 %v1008_v29  ;;  %v1121_v47 = vunpack.c.l.b16 %v1009_v30  ;;  %v1450_v62 = vld [vmem:[%s4751_s0 + $0x54] sm:$0x2] }
  0x90   :  { %v1122_v7 = vunpack.c.l.b16 %v1010_v31  ;;  %v910_v19 = vpack.c.b16 %v866_v44, %v852_v33  ;;  %v1123_v48 = vunpack.c.l.b16 %v1011_v35  ;;  %v2933_v49 = vunpack.i.l.s16 %v1108_v14  ;;  %v1447_v14 = vld [vmem:[%s4751_s0 + $0x48] sm:$0x2]  ;;  %v1454_v33 = vld [vmem:[%s4751_s0 + $0x64] sm:$0x2] }
  0x91   :  { %v2934_v52 = vunpack.i.l.s16 %v1109_v20  ;;  %v2935_v53 = vunpack.i.l.s16 %v1110_v21  ;;  %v2936_v54 = vunpack.i.l.s16 %v1111_v25  ;;  %v2937_v55 = vunpack.i.l.s16 %v1112_v26  ;;  %v1448_v20 = vld [vmem:[%s4751_s0 + $0x4c] sm:$0x2] }
  0x92   :  { %v2938_v56 = vunpack.i.l.s16 %v1113_v1  ;;  %930 = vmatmul.bf16.gmra.mxu1 %v910_v19  ;;  %v2939_v40 = vunpack.i.l.s16 %v1114_v32  ;;  %v2940_v46 = vunpack.i.l.s16 %v1115_v36  ;;  %v2941_v51 = vunpack.i.l.s16 %v1116_v37  ;;  %v1453_v32 = vld [vmem:[%s4751_s0 + $0x60] sm:$0x2]  ;;  %v1459_v19 = vld [vmem:[%s4751_s0 + $0x78] sm:$0x2] }
  0x93   :  { %v2942_v57 = vunpack.i.l.s16 %v1117_v39  ;;  %v2943_v58 = vunpack.i.l.s16 %v1118_v41  ;;  %v2944_v59 = vunpack.i.l.s16 %v1119_v42  ;;  %v2945_v60 = vunpack.i.l.s16 %v1120_v45  ;;  %v1456_v39 = vld [vmem:[%s4751_s0 + $0x6c] sm:$0x2]  ;;  %v1457_v41 = vld [vmem:[%s4751_s0 + $0x70] sm:$0x2]  ;;  %v1458_v42 = vld [vmem:[%s4751_s0 + $0x74] sm:$0x2] }
  0x94   :  { %v2946_v61 = vunpack.i.l.s16 %v1121_v47  ;;  %v2947_v50 = vunpack.i.l.s16 %v1122_v7  ;;  %v2948_v63 = vunpack.i.l.s16 %v1123_v48  ;;  %v1288_v2 = vrot.slane %v2933_v49, 2  ;;  %v1460_v48 = vld [vmem:[%s4751_s0 + $0x7c] sm:$0x2] }
  0x95   :  { %v1289_v43 = vrot.slane %v2934_v52, 1  ;;  %v1292_v4 = vrot.slane %v2936_v54, 7  ;;  %v1294_v5 = vrot.slane %v2937_v55, 6  ;;  %v1296_v8 = vrot.slane %v2938_v56, 5 }
  0x96   :  { %v1298_v9 = vrot.slane %v2939_v40, 4  ;;  %v1300_v0 = vrot.slane %v2940_v46, 3  ;;  %v1302_v12 = vrot.slane %v2941_v51, 2  ;;  %v1303_v13 = vrot.slane %v2942_v57, 1 }
  0x97   :  { %v1290_v11 = vsel %vm315_vm0, %v1289_v43, %v1288_v2  ;;  %v1306_v16 = vrot.slane %v2944_v59, 7  ;;  %v1308_v17 = vrot.slane %v2945_v60, 6  ;;  %v1310_v18 = vrot.slane %v2946_v61, 5 }
  0x98   :  { %v1291_v15 = vsel %vm318_vm1, %v2935_v53, %v1290_v11  ;;  %v1304_v22 = vsel %vm315_vm0, %v1303_v13, %v1302_v12  ;;  %v1312_v23 = vrot.slane %v2947_v50, 4  ;;  %v1314_v24 = vrot.slane %v2948_v63, 3 }
  0x99   :  { %v1293_v21 = vsel %vm321_vm2, %v1292_v4, %v1291_v15  ;;  %v1305_v26 = vsel %vm318_vm1, %v2943_v58, %v1304_v22  ;;  %v1557_v29 = vunpack.c.l.b16 %v1445_v3  ;;  %v1558_v30 = vunpack.c.l.b16 %v1446_v10  ;;  %v1879_v22 = vld [vmem:[%s4751_s0 + $0x4] sm:$0x4] }
  0x9a   :  { %v1295_v25 = vsel %vm324_vm3, %v1294_v5, %v1293_v21  ;;  %v1307_v1 = vsel %vm321_vm2, %v1306_v16, %v1305_v26  ;;  %v1559_v35 = vunpack.c.l.b16 %v1447_v14  ;;  %v1560_v36 = vunpack.c.l.b16 %v1448_v20  ;;  %v1878_v16 = vld [vmem:[%s4751_s0] sm:$0x4] }
  0x9b   :  { %v1297_v31 = vsel %vm327_vm4, %v1296_v8, %v1295_v25  ;;  %v1309_v38 = vsel %vm324_vm3, %v1308_v17, %v1307_v1  ;;  %v1561_v44 = vunpack.c.l.b16 %v1449_v6  ;;  %v1562_v45 = vunpack.c.l.b16 %v1450_v62  ;;  %v1880_v25 = vld [vmem:[%s4751_s0 + $0x8] sm:$0x4] }
  0x9c   :  { %v1299_v37 = vsel %vm330_vm5, %v1298_v9, %v1297_v31  ;;  %v1311_v7 = vsel %vm327_vm4, %v1310_v18, %v1309_v38  ;;  %v1563_v49 = vunpack.c.l.b16 %v1451_v27  ;;  %v1564_v52 = vunpack.c.l.b16 %v1452_v28  ;;  %v1884_v38 = vld [vmem:[%s4751_s0 + $0x18] sm:$0x4] }
  0x9d   :  { %v1301_v47 = vsel %vm333_vm6, %v1300_v0, %v1299_v37  ;;  %v1313_v53 = vsel %vm330_vm5, %v1312_v23, %v1311_v7  ;;  %v1565_v54 = vunpack.c.l.b16 %v1453_v32  ;;  %v1566_v55 = vunpack.c.l.b16 %v1454_v33  ;;  %v1887_v7 = vld [vmem:[%s4751_s0 + $0x24] sm:$0x4] }
  0x9e   :  { %v1567_v56 = vunpack.c.l.b16 %v1455_v34  ;;  %v1315_v40 = vsel %vm333_vm6, %v1314_v24, %v1313_v53  ;;  %v1568_v46 = vunpack.c.l.b16 %v1456_v39  ;;  %v1569_v51 = vunpack.c.l.b16 %v1457_v41  ;;  %v1882_v34 = vld [vmem:[%s4751_s0 + $0x10] sm:$0x4]  ;;  %v1885_v39 = vld [vmem:[%s4751_s0 + $0x1c] sm:$0x4]  ;;  %v1888_v53 = vld [vmem:[%s4751_s0 + $0x28] sm:$0x4] }
  0x9f   :  { %v1570_v57 = vunpack.c.l.b16 %v1458_v42  ;;  %v1359_v58 = vpack.c.b16 %v1315_v40, %v1301_v47  ;;  %v1571_v59 = vunpack.c.l.b16 %v1459_v19  ;;  %v1572_v60 = vunpack.c.l.b16 %v1460_v48  ;;  %v1886_v47 = vld [vmem:[%s4751_s0 + $0x20] sm:$0x4] }
  0xa0   :  { %v2989_v61 = vunpack.i.l.s16 %v1557_v29  ;;  %v2990_v50 = vunpack.i.l.s16 %v1558_v30  ;;  %v2991_v63 = vunpack.i.l.s16 %v1559_v35  ;;  %v2992_v2 = vunpack.i.l.s16 %v1560_v36  ;;  %v1881_v30 = vld [vmem:[%s4751_s0 + $0xc] sm:$0x4]  ;;  %v1883_v35 = vld [vmem:[%s4751_s0 + $0x14] sm:$0x4] }
  0xa1   :  { %v2993_v43 = vunpack.i.l.s16 %v1561_v44  ;;  %1379 = vmatmul.bf16.gmra.mxu2 %v1359_v58  ;;  %v2994_v3 = vunpack.i.l.s16 %v1562_v45  ;;  %v2995_v4 = vunpack.i.l.s16 %v1563_v49  ;;  %v2996_v5 = vunpack.i.l.s16 %v1564_v52  ;;  %v1892_v58 = vld [vmem:[%s4751_s0 + $0x38] sm:$0x4] }
  0xa2   :  { %v2997_v8 = vunpack.i.l.s16 %v1565_v54  ;;  %v2998_v9 = vunpack.i.l.s16 %v1566_v55  ;;  %v2999_v10 = vunpack.i.l.s16 %v1567_v56  ;;  %v3000_v11 = vunpack.i.l.s16 %v1568_v46  ;;  %v1889_v54 = vld [vmem:[%s4751_s0 + $0x2c] sm:$0x4]  ;;  %v1890_v55 = vld [vmem:[%s4751_s0 + $0x30] sm:$0x4] }
  0xa3   :  { %v3001_v0 = vunpack.i.l.s16 %v1569_v51  ;;  %v3002_v12 = vunpack.i.l.s16 %v1570_v57  ;;  %v3003_v13 = vunpack.i.l.s16 %v1571_v59  ;;  %v3004_v14 = vunpack.i.l.s16 %v1572_v60  ;;  %v1891_v57 = vld [vmem:[%s4751_s0 + $0x34] sm:$0x4]  ;;  %v1893_v59 = vld [vmem:[%s4751_s0 + $0x3c] sm:$0x4] }
  0xa4   :  { %v1737_v15 = vrot.slane %v2989_v61, 3  ;;  %v1738_v17 = vrot.slane %v2990_v50, 2  ;;  %v1740_v18 = vrot.slane %v2991_v63, 1  ;;  %v1743_v20 = vrot.slane %v2993_v43, 7 }
  0xa5   :  { %v1745_v21 = vrot.slane %v2994_v3, 6  ;;  %v1747_v23 = vrot.slane %v2995_v4, 5  ;;  %v1749_v24 = vrot.slane %v2996_v5, 4  ;;  %v1751_v6 = vrot.slane %v2997_v8, 3 }
  0xa6   :  { %v1752_v62 = vrot.slane %v2998_v9, 2  ;;  %v1739_v26 = vsel %vm315_vm0, %v1738_v17, %v1737_v15  ;;  %v1754_v27 = vrot.slane %v2999_v10, 1  ;;  %v1757_v28 = vrot.slane %v3001_v0, 7 }
  0xa7   :  { %v1759_v29 = vrot.slane %v3002_v12, 6  ;;  %v1741_v31 = vsel %vm318_vm1, %v1740_v18, %v1739_v26  ;;  %v1761_v32 = vrot.slane %v3003_v13, 5  ;;  %v1763_v33 = vrot.slane %v3004_v14, 4 }
  0xa8   :  { %v1753_v1 = vsel %vm315_vm0, %v1752_v62, %v1751_v6  ;;  %v1742_v36 = vsel %vm321_vm2, %v2992_v2, %v1741_v31  ;;  %v1990_v41 = vunpack.c.l.b16 %v1878_v16  ;;  %v1991_v42 = vunpack.c.l.b16 %v1879_v22 }
  0xa9   :  { %v1755_v37 = vsel %vm318_vm1, %v1754_v27, %v1753_v1  ;;  %v1744_v44 = vsel %vm324_vm3, %v1743_v20, %v1742_v36  ;;  %v1992_v19 = vunpack.c.l.b16 %v1880_v25  ;;  %v1993_v48 = vunpack.c.l.b16 %v1881_v30  ;;  %v2327_v27 = vld [vmem:[%s4751_s0] sm:$0x4] }
  0xaa   :  { %v1756_v45 = vsel %vm321_vm2, %v3000_v11, %v1755_v37  ;;  %v1746_v49 = vsel %vm327_vm4, %v1745_v21, %v1744_v44  ;;  %v1994_v56 = vunpack.c.l.b16 %v1882_v34  ;;  %v1995_v40 = vunpack.c.l.b16 %v1883_v35  ;;  %v2330_v37 = vld [vmem:[%s4751_s0 + $0xc] sm:$0x4]  ;;  %v2331_v44 = vld [vmem:[%s4751_s0 + $0x10] sm:$0x4] }
  0xab   :  { %v1758_v52 = vsel %vm324_vm3, %v1757_v28, %v1756_v45  ;;  %v1748_v46 = vsel %vm330_vm5, %v1747_v23, %v1746_v49  ;;  %v1996_v60 = vunpack.c.l.b16 %v1884_v38  ;;  %v1997_v61 = vunpack.c.l.b16 %v1885_v39  ;;  %v2328_v28 = vld [vmem:[%s4751_s0 + $0x4] sm:$0x4] }
  0xac   :  { %v1760_v51 = vsel %vm327_vm4, %v1759_v29, %v1758_v52  ;;  %v1750_v50 = vsel %vm333_vm6, %v1749_v24, %v1748_v46  ;;  %v1998_v2 = vunpack.c.l.b16 %v1886_v47  ;;  %v1999_v43 = vunpack.c.l.b16 %v1887_v7 }
  0xad   :  { %v1762_v63 = vsel %vm330_vm5, %v1761_v32, %v1760_v51  ;;  %v2000_v4 = vunpack.c.l.b16 %v1888_v53  ;;  %v2001_v5 = vunpack.c.l.b16 %v1889_v54  ;;  %v2002_v8 = vunpack.c.l.b16 %v1890_v55  ;;  %v2329_v32 = vld [vmem:[%s4751_s0 + $0x8] sm:$0x4]  ;;  %v2333_v53 = vld [vmem:[%s4751_s0 + $0x18] sm:$0x4]  ;;  %v2334_v54 = vld [vmem:[%s4751_s0 + $0x1c] sm:$0x4] }
  0xae   :  { %v1764_v3 = vsel %vm333_vm6, %v1763_v33, %v1762_v63  ;;  %v2003_v10 = vunpack.c.l.b16 %v1891_v57  ;;  %v2004_v11 = vunpack.c.l.b16 %v1892_v58  ;;  %v2005_v0 = vunpack.c.l.b16 %v1893_v59  ;;  %v2335_v51 = vld [vmem:[%s4751_s0 + $0x20] sm:$0x4]  ;;  %v2336_v57 = vld [vmem:[%s4751_s0 + $0x24] sm:$0x4]  ;;  %v2338_v63 = vld [vmem:[%s4751_s0 + $0x2c] sm:$0x4] }
  0xaf   :  { %v1808_v9 = vpack.c.b16 %v1764_v3, %v1750_v50  ;;  %v3029_v12 = vunpack.i.l.s16 %v1990_v41  ;;  %v3030_v13 = vunpack.i.l.s16 %v1991_v42  ;;  %v3031_v14 = vunpack.i.l.s16 %v1992_v19  ;;  %v2337_v50 = vld [vmem:[%s4751_s0 + $0x28] sm:$0x4] }
  0xb0   :  { %v3032_v15 = vunpack.i.l.s16 %v1993_v48  ;;  %v3033_v16 = vunpack.i.l.s16 %v1994_v56  ;;  %v3034_v17 = vunpack.i.l.s16 %v1995_v40  ;;  %v3035_v18 = vunpack.i.l.s16 %v1996_v60  ;;  %v2332_v48 = vld [vmem:[%s4751_s0 + $0x14] sm:$0x4] }
  0xb1   :  { %1828 = vmatmul.bf16.gmra.mxu3 %v1808_v9  ;;  %v3036_v20 = vunpack.i.l.s16 %v1997_v61  ;;  %v3037_v21 = vunpack.i.l.s16 %v1998_v2  ;;  %v3038_v22 = vunpack.i.l.s16 %v1999_v43  ;;  %v3039_v23 = vunpack.i.l.s16 %v2000_v4  ;;  %v2339_v2 = vld [vmem:[%s4751_s0 + $0x30] sm:$0x4]  ;;  %v2341_v9 = vld [vmem:[%s4751_s0 + $0x38] sm:$0x4] }
  0xb2   :  { %v3040_v24 = vunpack.i.l.s16 %v2001_v5  ;;  %v3041_v6 = vunpack.i.l.s16 %v2002_v8  ;;  %v3042_v62 = vunpack.i.l.s16 %v2003_v10  ;;  %v3043_v25 = vunpack.i.l.s16 %v2004_v11  ;;  %v2340_v8 = vld [vmem:[%s4751_s0 + $0x34] sm:$0x4]  ;;  %v2342_v10 = vld [vmem:[%s4751_s0 + $0x3c] sm:$0x4] }
  0xb3   :  { %v3044_v26 = vunpack.i.l.s16 %v2005_v0  ;;  %v2158_v29 = vrot.slane %v3029_v12, 4  ;;  %v2159_v30 = vrot.slane %v3030_v13, 3  ;;  %v2161_v31 = vrot.slane %v3031_v14, 2 }
  0xb4   :  { %v2163_v1 = vrot.slane %v3032_v15, 1  ;;  %v2166_v33 = vrot.slane %v3034_v17, 7  ;;  %v2168_v34 = vrot.slane %v3035_v18, 6  ;;  %v2170_v35 = vrot.slane %v3036_v20, 5 }
  0xb5   :  { %v2172_v36 = vrot.slane %v3037_v21, 4  ;;  %v2160_v38 = vsel %vm315_vm0, %v2159_v30, %v2158_v29  ;;  %v2173_v39 = vrot.slane %v3038_v22, 3  ;;  %v2175_v41 = vrot.slane %v3039_v23, 2 }
  0xb6   :  { %v2177_v42 = vrot.slane %v3040_v24, 1  ;;  %v2162_v45 = vsel %vm318_vm1, %v2161_v31, %v2160_v38  ;;  %v2180_v47 = vrot.slane %v3042_v62, 7  ;;  %v2182_v7 = vrot.slane %v3043_v25, 6  ;;  %v4139_v38 = vld [vmem:[%s4751_s0 + $0x80] sm:$0x2] }
  0xb7   :  { %v2184_v19 = vrot.slane %v3044_v26, 5  ;;  %v2164_v49 = vsel %vm321_vm2, %v2163_v1, %v2162_v45  ;;  %v2174_v52 = vsel %vm315_vm0, %v2173_v39, %v2172_v36  ;;  %v2439_v55 = vunpack.c.l.b16 %v2327_v27  ;;  %v1013_v45 = vld [vmem:[%s4751_s0 + $0x84] sm:$0x2] }
  0xb8   :  { %v2440_v56 = vunpack.c.l.b16 %v2328_v28  ;;  %v2165_v40 = vsel %vm324_vm3, %v3033_v16, %v2164_v49  ;;  %v2176_v46 = vsel %vm318_vm1, %v2175_v41, %v2174_v52  ;;  %v2441_v58 = vunpack.c.l.b16 %v2329_v32  ;;  %v1014_v49 = vld [vmem:[%s4751_s0 + $0x88] sm:$0x2] }
  0xb9   :  { %v2442_v59 = vunpack.c.l.b16 %v2330_v37  ;;  %v2167_v60 = vsel %vm327_vm4, %v2166_v33, %v2165_v40  ;;  %v2178_v61 = vsel %vm321_vm2, %v2177_v42, %v2176_v46  ;;  %v2443_v43 = vunpack.c.l.b16 %v2331_v44 }
  0xba   :  { %v2444_v3 = vunpack.c.l.b16 %v2332_v48  ;;  %v2169_v4 = vsel %vm330_vm5, %v2168_v34, %v2167_v60  ;;  %v2179_v5 = vsel %vm324_vm3, %v3041_v6, %v2178_v61  ;;  %v2445_v11 = vunpack.c.l.b16 %v2333_v53 }
  0xbb   :  { %v2446_v0 = vunpack.c.l.b16 %v2334_v54  ;;  %v2171_v12 = vsel %vm333_vm6, %v2170_v35, %v2169_v4  ;;  %v2181_v13 = vsel %vm327_vm4, %v2180_v47, %v2179_v5  ;;  %v2447_v14 = vunpack.c.l.b16 %v2335_v51  ;;  %v1019_v4 = vld [vmem:[%s4751_s0 + $0x9c] sm:$0x2]  ;;  %v1020_v5 = vld [vmem:[%s4751_s0 + $0xa0] sm:$0x2] }
  0xbc   :  { %v2448_v15 = vunpack.c.l.b16 %v2336_v57  ;;  %v2183_v16 = vsel %vm330_vm5, %v2182_v7, %v2181_v13  ;;  %v2449_v17 = vunpack.c.l.b16 %v2337_v50  ;;  %v2450_v18 = vunpack.c.l.b16 %v2338_v63  ;;  %v1017_v50 = vld [vmem:[%s4751_s0 + $0x94] sm:$0x2]  ;;  %v1018_v63 = vld [vmem:[%s4751_s0 + $0x98] sm:$0x2]  ;;  %v1023_v13 = vld [vmem:[%s4751_s0 + $0xac] sm:$0x2] }
  0xbd   :  { %v2451_v20 = vunpack.c.l.b16 %v2339_v2  ;;  %v2185_v21 = vsel %vm333_vm6, %v2184_v19, %v2183_v16  ;;  %v2452_v22 = vunpack.c.l.b16 %v2340_v8  ;;  %v2453_v23 = vunpack.c.l.b16 %v2341_v9 }
  0xbe   :  { %v2454_v24 = vunpack.c.l.b16 %v2342_v10  ;;  %v2256_v6 = vpack.c.b16 %v2185_v21, %v2171_v12  ;;  %v3085_v62 = vunpack.i.l.s16 %v2439_v55  ;;  %v3086_v25 = vunpack.i.l.s16 %v2440_v56  ;;  %v1015_v56 = vld [vmem:[%s4751_s0 + $0x8c] sm:$0x2]  ;;  %v1022_v12 = vld [vmem:[%s4751_s0 + $0xa8] sm:$0x2]  ;;  %v1026_v21 = vld [vmem:[%s4751_s0 + $0xb8] sm:$0x2] }
  0xbf   :  { %v3087_v26 = vunpack.i.l.s16 %v2441_v58  ;;  %v3088_v27 = vunpack.i.l.s16 %v2442_v59  ;;  %v3089_v28 = vunpack.i.l.s16 %v2443_v43  ;;  %v3090_v29 = vunpack.i.l.s16 %v2444_v3  ;;  %v1016_v58 = vld [vmem:[%s4751_s0 + $0x90] sm:$0x2] }
  0xc0   :  { %v3091_v30 = vunpack.i.l.s16 %v2445_v11  ;;  %2272 = vmatmul.bf16.vlgmr.msrb.gmra.mxu0 %v2256_v6  ;;  %v3092_v31 = vunpack.i.l.s16 %v2446_v0  ;;  %v3093_v1 = vunpack.i.l.s16 %v2447_v14  ;;  %v3094_v32 = vunpack.i.l.s16 %v2448_v15  ;;  %v1021_v0 = vld [vmem:[%s4751_s0 + $0xa4] sm:$0x2] }
  0xc1   :  { %v3095_v33 = vunpack.i.l.s16 %v2449_v17  ;;  %v3096_v34 = vunpack.i.l.s16 %v2450_v18  ;;  %v3097_v35 = vunpack.i.l.s16 %v2451_v20  ;;  %v3098_v36 = vunpack.i.l.s16 %v2452_v22  ;;  %v1024_v18 = vld [vmem:[%s4751_s0 + $0xb0] sm:$0x2]  ;;  %v1025_v20 = vld [vmem:[%s4751_s0 + $0xb4] sm:$0x2] }
  0xc2   :  { %v3099_v37 = vunpack.i.l.s16 %v2453_v23  ;;  %v3100_v39 = vunpack.i.l.s16 %v2454_v24  ;;  %v2607_v41 = vrot.slane %v3085_v62, 5  ;;  %v2608_v42 = vrot.slane %v3086_v25, 4  ;;  %v1027_v62 = vld [vmem:[%s4751_s0 + $0xbc] sm:$0x2] }
  0xc3   :  { %v2610_v44 = vrot.slane %v3087_v26, 3  ;;  %v2612_v47 = vrot.slane %v3088_v27, 2  ;;  %v2614_v7 = vrot.slane %v3089_v28, 1  ;;  %v2617_v19 = vrot.slane %v3091_v30, 7 }
  0xc4   :  { %v2619_v48 = vrot.slane %v3092_v31, 6  ;;  %v2609_v52 = vsel %vm315_vm0, %v2608_v42, %v2607_v41  ;;  %v2621_v53 = vrot.slane %v3093_v1, 5  ;;  %v2622_v54 = vrot.slane %v3094_v32, 4 }
  0xc5   :  { %v2624_v55 = vrot.slane %v3095_v33, 3  ;;  %v2611_v40 = vsel %vm318_vm1, %v2610_v44, %v2609_v52  ;;  %v2626_v46 = vrot.slane %v3096_v34, 2  ;;  %v2628_v51 = vrot.slane %v3097_v35, 1 }
  0xc6   :  { %v2631_v57 = vrot.slane %v3099_v37, 7  ;;  %v2613_v59 = vsel %vm321_vm2, %v2612_v47, %v2611_v40  ;;  %v2623_v60 = vsel %vm315_vm0, %v2622_v54, %v2621_v53  ;;  %v2633_v61 = vrot.slane %v3100_v39, 6  ;;  %v1461_v40 = vld [vmem:[%s4751_s0 + $0x80] sm:$0x2] }
  0xc7   :  { %v1124_v2 = vunpack.c.l.b16 %v4139_v38  ;;  %v2615_v43 = vsel %vm324_vm3, %v2614_v7, %v2613_v59  ;;  %v2625_v3 = vsel %vm318_vm1, %v2624_v55, %v2623_v60  ;;  %v1125_v8 = vunpack.c.l.b16 %v1013_v45  ;;  %v1462_v59 = vld [vmem:[%s4751_s0 + $0x84] sm:$0x2] }
  0xc8   :  { %v1126_v9 = vunpack.c.l.b16 %v1014_v49  ;;  %v2616_v10 = vsel %vm327_vm4, %v3090_v29, %v2615_v43  ;;  %v2627_v11 = vsel %vm321_vm2, %v2626_v46, %v2625_v3  ;;  %v1127_v14 = vunpack.c.l.b16 %v1015_v56 }
  0xc9   :  { %v1128_v15 = vunpack.c.l.b16 %v1016_v58  ;;  %v2618_v16 = vsel %vm330_vm5, %v2617_v19, %v2616_v10  ;;  %v2629_v17 = vsel %vm324_vm3, %v2628_v51, %v2627_v11  ;;  %v1129_v22 = vunpack.c.l.b16 %v1017_v50 }
  0xca   :  { %v1130_v23 = vunpack.c.l.b16 %v1018_v63  ;;  %v2620_v24 = vsel %vm333_vm6, %v2619_v48, %v2618_v16  ;;  %v2630_v6 = vsel %vm327_vm4, %v3098_v36, %v2629_v17  ;;  %v1131_v25 = vunpack.c.l.b16 %v1019_v4  ;;  %v1467_v16 = vld [vmem:[%s4751_s0 + $0x98] sm:$0x2]  ;;  %v1468_v17 = vld [vmem:[%s4751_s0 + $0x9c] sm:$0x2] }
  0xcb   :  { %v1132_v26 = vunpack.c.l.b16 %v1020_v5  ;;  %v2632_v27 = vsel %vm330_vm5, %v2631_v57, %v2630_v6  ;;  %v1133_v28 = vunpack.c.l.b16 %v1021_v0  ;;  %v1134_v29 = vunpack.c.l.b16 %v1022_v12  ;;  %v1465_v12 = vld [vmem:[%s4751_s0 + $0x90] sm:$0x2]  ;;  %v1471_v6 = vld [vmem:[%s4751_s0 + $0xa8] sm:$0x2] }
  0xcc   :  { %v1135_v30 = vunpack.c.l.b16 %v1023_v13  ;;  %v2634_v31 = vsel %vm333_vm6, %v2633_v61, %v2632_v27  ;;  %v1136_v1 = vunpack.c.l.b16 %v1024_v18  ;;  %v1137_v32 = vunpack.c.l.b16 %v1025_v20  ;;  %v1466_v13 = vld [vmem:[%s4751_s0 + $0x94] sm:$0x2] }
  0xcd   :  { %v1138_v33 = vunpack.c.l.b16 %v1026_v21  ;;  %v2705_v34 = vpack.c.b16 %v2634_v31, %v2620_v24  ;;  %v1139_v35 = vunpack.c.l.b16 %v1027_v62  ;;  %v2949_v37 = vunpack.i.l.s16 %v1124_v2  ;;  %v1463_v2 = vld [vmem:[%s4751_s0 + $0x88] sm:$0x2]  ;;  %v1470_v24 = vld [vmem:[%s4751_s0 + $0xa4] sm:$0x2] }
  0xce   :  { %v2950_v36 = vunpack.i.l.s16 %v1125_v8  ;;  %v2951_v38 = vunpack.i.l.s16 %v1126_v9  ;;  %v2952_v39 = vunpack.i.l.s16 %v1127_v14  ;;  %v2953_v41 = vunpack.i.l.s16 %v1128_v15  ;;  %v1464_v8 = vld [vmem:[%s4751_s0 + $0x8c] sm:$0x2] }
  0xcf   :  { %v2954_v42 = vunpack.i.l.s16 %v1129_v22  ;;  %2721 = vmatmul.bf16.vlgmr.msrb.gmra.mxu1 %v2705_v34  ;;  %v2955_v44 = vunpack.i.l.s16 %v1130_v23  ;;  %v2956_v45 = vunpack.i.l.s16 %v1131_v25  ;;  %v2957_v47 = vunpack.i.l.s16 %v1132_v26  ;;  %v1469_v23 = vld [vmem:[%s4751_s0 + $0xa0] sm:$0x2]  ;;  %v1475_v34 = vld [vmem:[%s4751_s0 + $0xb8] sm:$0x2] }
  0xd0   :  { %v2958_v7 = vunpack.i.l.s16 %v1133_v28  ;;  %v2959_v19 = vunpack.i.l.s16 %v1134_v29  ;;  %v2960_v48 = vunpack.i.l.s16 %v1135_v30  ;;  %v2961_v49 = vunpack.i.l.s16 %v1136_v1  ;;  %v1472_v28 = vld [vmem:[%s4751_s0 + $0xac] sm:$0x2]  ;;  %v1473_v29 = vld [vmem:[%s4751_s0 + $0xb0] sm:$0x2]  ;;  %v1474_v30 = vld [vmem:[%s4751_s0 + $0xb4] sm:$0x2] }
  0xd1   :  { %v2962_v52 = vunpack.i.l.s16 %v1137_v32  ;;  %v2963_v53 = vunpack.i.l.s16 %v1138_v33  ;;  %v2964_v54 = vunpack.i.l.s16 %v1139_v35  ;;  %v1316_v55 = vrot.slane %v2949_v37, 2  ;;  %v1476_v35 = vld [vmem:[%s4751_s0 + $0xbc] sm:$0x2] }
  0xd2   :  { %v1317_v56 = vrot.slane %v2950_v36, 1  ;;  %v1320_v46 = vrot.slane %v2952_v39, 7  ;;  %v1322_v51 = vrot.slane %v2953_v41, 6  ;;  %v1324_v57 = vrot.slane %v2954_v42, 5 }
  0xd3   :  { %v1326_v58 = vrot.slane %v2955_v44, 4  ;;  %v1328_v61 = vrot.slane %v2956_v45, 3  ;;  %v1330_v50 = vrot.slane %v2957_v47, 2  ;;  %v1331_v63 = vrot.slane %v2958_v7, 1 }
  0xd4   :  { %v1318_v60 = vsel %vm315_vm0, %v1317_v56, %v1316_v55  ;;  %v1334_v3 = vrot.slane %v2960_v48, 7  ;;  %v1336_v4 = vrot.slane %v2961_v49, 6  ;;  %v1338_v5 = vrot.slane %v2962_v52, 5 }
  0xd5   :  { %v1319_v43 = vsel %vm318_vm1, %v2951_v38, %v1318_v60  ;;  %v1332_v10 = vsel %vm315_vm0, %v1331_v63, %v1330_v50  ;;  %v1340_v11 = vrot.slane %v2963_v53, 4  ;;  %v1342_v0 = vrot.slane %v2964_v54, 3 }
  0xd6   :  { %v1321_v9 = vsel %vm321_vm2, %v1320_v46, %v1319_v43  ;;  %v1333_v15 = vsel %vm318_vm1, %v2959_v19, %v1332_v10  ;;  %v1573_v18 = vunpack.c.l.b16 %v1461_v40  ;;  %v1574_v20 = vunpack.c.l.b16 %v1462_v59  ;;  %v1895_v10 = vld [vmem:[%s4751_s0 + $0x44] sm:$0x4] }
  0xd7   :  { %v1323_v14 = vsel %vm324_vm3, %v1322_v51, %v1321_v9  ;;  %v1335_v22 = vsel %vm321_vm2, %v1334_v3, %v1333_v15  ;;  %v1575_v62 = vunpack.c.l.b16 %v1463_v2  ;;  %v1576_v25 = vunpack.c.l.b16 %v1464_v8  ;;  %v1894_v3 = vld [vmem:[%s4751_s0 + $0x40] sm:$0x4] }
  0xd8   :  { %v1325_v21 = vsel %vm327_vm4, %v1324_v57, %v1323_v14  ;;  %v1337_v27 = vsel %vm324_vm3, %v1336_v4, %v1335_v22  ;;  %v1577_v31 = vunpack.c.l.b16 %v1465_v12  ;;  %v1578_v1 = vunpack.c.l.b16 %v1466_v13  ;;  %v1896_v14 = vld [vmem:[%s4751_s0 + $0x48] sm:$0x4] }
  0xd9   :  { %v1327_v26 = vsel %vm330_vm5, %v1326_v58, %v1325_v21  ;;  %v1339_v33 = vsel %vm327_vm4, %v1338_v5, %v1337_v27  ;;  %v1579_v37 = vunpack.c.l.b16 %v1467_v16  ;;  %v1580_v36 = vunpack.c.l.b16 %v1468_v17  ;;  %v1900_v27 = vld [vmem:[%s4751_s0 + $0x58] sm:$0x4] }
  0xda   :  { %v1329_v32 = vsel %vm333_vm6, %v1328_v61, %v1327_v26  ;;  %v1341_v38 = vsel %vm330_vm5, %v1340_v11, %v1339_v33  ;;  %v1581_v39 = vunpack.c.l.b16 %v1469_v23  ;;  %v1582_v41 = vunpack.c.l.b16 %v1470_v24  ;;  %v1903_v33 = vld [vmem:[%s4751_s0 + $0x64] sm:$0x4] }
  0xdb   :  { %v1583_v42 = vunpack.c.l.b16 %v1471_v6  ;;  %v1343_v44 = vsel %vm333_vm6, %v1342_v0, %v1341_v38  ;;  %v1584_v45 = vunpack.c.l.b16 %v1472_v28  ;;  %v1585_v47 = vunpack.c.l.b16 %v1473_v29  ;;  %v1898_v6 = vld [vmem:[%s4751_s0 + $0x50] sm:$0x4]  ;;  %v1901_v28 = vld [vmem:[%s4751_s0 + $0x5c] sm:$0x4]  ;;  %v1904_v38 = vld [vmem:[%s4751_s0 + $0x68] sm:$0x4] }
  0xdc   :  { %v1586_v7 = vunpack.c.l.b16 %v1474_v30  ;;  %v1360_v19 = vpack.c.b16 %v1343_v44, %v1329_v32  ;;  %v1587_v48 = vunpack.c.l.b16 %v1475_v34  ;;  %v1588_v49 = vunpack.c.l.b16 %v1476_v35  ;;  %v1902_v32 = vld [vmem:[%s4751_s0 + $0x60] sm:$0x4] }
  0xdd   :  { %v3005_v52 = vunpack.i.l.s16 %v1573_v18  ;;  %v3006_v53 = vunpack.i.l.s16 %v1574_v20  ;;  %v3007_v54 = vunpack.i.l.s16 %v1575_v62  ;;  %v3008_v55 = vunpack.i.l.s16 %v1576_v25  ;;  %v1897_v20 = vld [vmem:[%s4751_s0 + $0x4c] sm:$0x4]  ;;  %v1899_v62 = vld [vmem:[%s4751_s0 + $0x54] sm:$0x4] }
  0xde   :  { %v3009_v56 = vunpack.i.l.s16 %v1577_v31  ;;  %1384 = vmatmul.bf16.gmra.mxu2 %v1360_v19  ;;  %v3010_v40 = vunpack.i.l.s16 %v1578_v1  ;;  %v3011_v46 = vunpack.i.l.s16 %v1579_v37  ;;  %v3012_v51 = vunpack.i.l.s16 %v1580_v36  ;;  %v1908_v19 = vld [vmem:[%s4751_s0 + $0x78] sm:$0x4] }
  0xdf   :  { %v3013_v57 = vunpack.i.l.s16 %v1581_v39  ;;  %v3014_v58 = vunpack.i.l.s16 %v1582_v41  ;;  %v3015_v59 = vunpack.i.l.s16 %v1583_v42  ;;  %v3016_v60 = vunpack.i.l.s16 %v1584_v45  ;;  %v1905_v39 = vld [vmem:[%s4751_s0 + $0x6c] sm:$0x4]  ;;  %v1906_v41 = vld [vmem:[%s4751_s0 + $0x70] sm:$0x4] }
  0xe0   :  { %v3017_v61 = vunpack.i.l.s16 %v1585_v47  ;;  %v3018_v50 = vunpack.i.l.s16 %v1586_v7  ;;  %v3019_v63 = vunpack.i.l.s16 %v1587_v48  ;;  %v3020_v2 = vunpack.i.l.s16 %v1588_v49  ;;  %v1907_v7 = vld [vmem:[%s4751_s0 + $0x74] sm:$0x4]  ;;  %v1909_v48 = vld [vmem:[%s4751_s0 + $0x7c] sm:$0x4] }
  0xe1   :  { %v1765_v43 = vrot.slane %v3005_v52, 3  ;;  %v1766_v4 = vrot.slane %v3006_v53, 2  ;;  %v1768_v5 = vrot.slane %v3007_v54, 1  ;;  %v1771_v8 = vrot.slane %v3009_v56, 7 }
  0xe2   :  { %v1773_v9 = vrot.slane %v3010_v40, 6  ;;  %v1775_v11 = vrot.slane %v3011_v46, 5  ;;  %v1777_v0 = vrot.slane %v3012_v51, 4  ;;  %v1779_v12 = vrot.slane %v3013_v57, 3 }
  0xe3   :  { %v1780_v13 = vrot.slane %v3014_v58, 2  ;;  %v1767_v15 = vsel %vm315_vm0, %v1766_v4, %v1765_v43  ;;  %v1782_v16 = vrot.slane %v3015_v59, 1  ;;  %v1785_v17 = vrot.slane %v3017_v61, 7 }
  0xe4   :  { %v1787_v18 = vrot.slane %v3018_v50, 6  ;;  %v1769_v21 = vsel %vm318_vm1, %v1768_v5, %v1767_v15  ;;  %v1789_v23 = vrot.slane %v3019_v63, 5  ;;  %v1791_v24 = vrot.slane %v3020_v2, 4 }
  0xe5   :  { %v1781_v22 = vsel %vm315_vm0, %v1780_v13, %v1779_v12  ;;  %v1770_v25 = vsel %vm321_vm2, %v3008_v55, %v1769_v21  ;;  %v2006_v29 = vunpack.c.l.b16 %v1894_v3  ;;  %v2007_v30 = vunpack.c.l.b16 %v1895_v10 }
  0xe6   :  { %v1783_v26 = vsel %vm318_vm1, %v1782_v16, %v1781_v22  ;;  %v1772_v31 = vsel %vm324_vm3, %v1771_v8, %v1770_v25  ;;  %v2008_v34 = vunpack.c.l.b16 %v1896_v14  ;;  %v2009_v35 = vunpack.c.l.b16 %v1897_v20  ;;  %v2343_v16 = vld [vmem:[%s4751_s0 + $0x40] sm:$0x4] }
  0xe7   :  { %v1784_v1 = vsel %vm321_vm2, %v3016_v60, %v1783_v26  ;;  %v1774_v37 = vsel %vm327_vm4, %v1773_v9, %v1772_v31  ;;  %v2010_v42 = vunpack.c.l.b16 %v1898_v6  ;;  %v2011_v44 = vunpack.c.l.b16 %v1899_v62  ;;  %v2346_v26 = vld [vmem:[%s4751_s0 + $0x4c] sm:$0x4]  ;;  %v2347_v31 = vld [vmem:[%s4751_s0 + $0x50] sm:$0x4] }
  0xe8   :  { %v1786_v36 = vsel %vm324_vm3, %v1785_v17, %v1784_v1  ;;  %v1776_v45 = vsel %vm330_vm5, %v1775_v11, %v1774_v37  ;;  %v2012_v49 = vunpack.c.l.b16 %v1900_v27  ;;  %v2013_v52 = vunpack.c.l.b16 %v1901_v28  ;;  %v2344_v17 = vld [vmem:[%s4751_s0 + $0x44] sm:$0x4] }
  0xe9   :  { %v1788_v47 = vsel %vm327_vm4, %v1787_v18, %v1786_v36  ;;  %v1778_v53 = vsel %vm333_vm6, %v1777_v0, %v1776_v45  ;;  %v2014_v55 = vunpack.c.l.b16 %v1902_v32  ;;  %v2015_v56 = vunpack.c.l.b16 %v1903_v33 }
  0xea   :  { %v1790_v54 = vsel %vm330_vm5, %v1789_v23, %v1788_v47  ;;  %v2016_v46 = vunpack.c.l.b16 %v1904_v38  ;;  %v2017_v51 = vunpack.c.l.b16 %v1905_v39  ;;  %v2018_v57 = vunpack.c.l.b16 %v1906_v41  ;;  %v2345_v23 = vld [vmem:[%s4751_s0 + $0x48] sm:$0x4]  ;;  %v2349_v38 = vld [vmem:[%s4751_s0 + $0x58] sm:$0x4]  ;;  %v2350_v39 = vld [vmem:[%s4751_s0 + $0x5c] sm:$0x4] }
  0xeb   :  { %v1792_v40 = vsel %vm333_vm6, %v1791_v24, %v1790_v54  ;;  %v2019_v59 = vunpack.c.l.b16 %v1907_v7  ;;  %v2020_v60 = vunpack.c.l.b16 %v1908_v19  ;;  %v2021_v61 = vunpack.c.l.b16 %v1909_v48  ;;  %v2351_v47 = vld [vmem:[%s4751_s0 + $0x60] sm:$0x4]  ;;  %v2352_v7 = vld [vmem:[%s4751_s0 + $0x64] sm:$0x4]  ;;  %v2354_v54 = vld [vmem:[%s4751_s0 + $0x6c] sm:$0x4] }
  0xec   :  { %v1809_v58 = vpack.c.b16 %v1792_v40, %v1778_v53  ;;  %v3045_v50 = vunpack.i.l.s16 %v2006_v29  ;;  %v3046_v63 = vunpack.i.l.s16 %v2007_v30  ;;  %v3047_v2 = vunpack.i.l.s16 %v2008_v34  ;;  %v2353_v53 = vld [vmem:[%s4751_s0 + $0x68] sm:$0x4] }
  0xed   :  { %v3048_v43 = vunpack.i.l.s16 %v2009_v35  ;;  %v3049_v3 = vunpack.i.l.s16 %v2010_v42  ;;  %v3050_v4 = vunpack.i.l.s16 %v2011_v44  ;;  %v3051_v5 = vunpack.i.l.s16 %v2012_v49  ;;  %v2348_v35 = vld [vmem:[%s4751_s0 + $0x54] sm:$0x4] }
  0xee   :  { %1833 = vmatmul.bf16.gmra.mxu3 %v1809_v58  ;;  %v3052_v8 = vunpack.i.l.s16 %v2013_v52  ;;  %v3053_v9 = vunpack.i.l.s16 %v2014_v55  ;;  %v3054_v10 = vunpack.i.l.s16 %v2015_v56  ;;  %v3055_v11 = vunpack.i.l.s16 %v2016_v46  ;;  %v2355_v55 = vld [vmem:[%s4751_s0 + $0x70] sm:$0x4]  ;;  %v2357_v58 = vld [vmem:[%s4751_s0 + $0x78] sm:$0x4] }
  0xef   :  { %v3056_v0 = vunpack.i.l.s16 %v2017_v51  ;;  %v3057_v12 = vunpack.i.l.s16 %v2018_v57  ;;  %v3058_v13 = vunpack.i.l.s16 %v2019_v59  ;;  %v3059_v14 = vunpack.i.l.s16 %v2020_v60  ;;  %v2356_v57 = vld [vmem:[%s4751_s0 + $0x74] sm:$0x4]  ;;  %v2358_v59 = vld [vmem:[%s4751_s0 + $0x7c] sm:$0x4] }
  0xf0   :  { %v3060_v15 = vunpack.i.l.s16 %v2021_v61  ;;  %v2186_v18 = vrot.slane %v3045_v50, 4  ;;  %v2187_v20 = vrot.slane %v3046_v63, 3  ;;  %v2189_v21 = vrot.slane %v3047_v2, 2 }
  0xf1   :  { %v2191_v22 = vrot.slane %v3048_v43, 1  ;;  %v2194_v24 = vrot.slane %v3050_v4, 7  ;;  %v2196_v6 = vrot.slane %v3051_v5, 6  ;;  %v2198_v62 = vrot.slane %v3052_v8, 5 }
  0xf2   :  { %v2200_v25 = vrot.slane %v3053_v9, 4  ;;  %v2188_v27 = vsel %vm315_vm0, %v2187_v20, %v2186_v18  ;;  %v2201_v28 = vrot.slane %v3054_v10, 3  ;;  %v2203_v29 = vrot.slane %v3055_v11, 2 }
  0xf3   :  { %v2205_v30 = vrot.slane %v3056_v0, 1  ;;  %v2190_v1 = vsel %vm318_vm1, %v2189_v21, %v2188_v27  ;;  %v2208_v32 = vrot.slane %v3058_v13, 7  ;;  %v2210_v33 = vrot.slane %v3059_v14, 6  ;;  %v1028_v27 = vld [vmem:[%s4751_s0 + $0xc0] sm:$0x2] }
  0xf4   :  { %v2212_v34 = vrot.slane %v3060_v15, 5  ;;  %v2192_v37 = vsel %vm321_vm2, %v2191_v22, %v2190_v1  ;;  %v2202_v36 = vsel %vm315_vm0, %v2201_v28, %v2200_v25  ;;  %v2455_v41 = vunpack.c.l.b16 %v2343_v16  ;;  %v1029_v1 = vld [vmem:[%s4751_s0 + $0xc4] sm:$0x2] }
  0xf5   :  { %v2456_v42 = vunpack.c.l.b16 %v2344_v17  ;;  %v2193_v44 = vsel %vm324_vm3, %v3049_v3, %v2192_v37  ;;  %v2204_v45 = vsel %vm318_vm1, %v2203_v29, %v2202_v36  ;;  %v2457_v19 = vunpack.c.l.b16 %v2345_v23  ;;  %v1030_v37 = vld [vmem:[%s4751_s0 + $0xc8] sm:$0x2] }
  0xf6   :  { %v2458_v48 = vunpack.c.l.b16 %v2346_v26  ;;  %v2195_v49 = vsel %vm327_vm4, %v2194_v24, %v2193_v44  ;;  %v2206_v52 = vsel %vm321_vm2, %v2205_v30, %v2204_v45  ;;  %v2459_v56 = vunpack.c.l.b16 %v2347_v31 }
  0xf7   :  { %v2460_v40 = vunpack.c.l.b16 %v2348_v35  ;;  %v2197_v46 = vsel %vm330_vm5, %v2196_v6, %v2195_v49  ;;  %v2207_v51 = vsel %vm324_vm3, %v3057_v12, %v2206_v52  ;;  %v2461_v60 = vunpack.c.l.b16 %v2349_v38 }
  0xf8   :  { %v2462_v61 = vunpack.c.l.b16 %v2350_v39  ;;  %v2199_v50 = vsel %vm333_vm6, %v2198_v62, %v2197_v46  ;;  %v2209_v63 = vsel %vm327_vm4, %v2208_v32, %v2207_v51  ;;  %v2463_v2 = vunpack.c.l.b16 %v2351_v47  ;;  %v1035_v46 = vld [vmem:[%s4751_s0 + $0xdc] sm:$0x2] }
  0xf9   :  { %v2464_v43 = vunpack.c.l.b16 %v2352_v7  ;;  %v2211_v3 = vsel %vm330_vm5, %v2210_v33, %v2209_v63  ;;  %v2465_v4 = vunpack.c.l.b16 %v2353_v53  ;;  %v2466_v5 = vunpack.c.l.b16 %v2354_v54  ;;  %v1033_v53 = vld [vmem:[%s4751_s0 + $0xd4] sm:$0x2]  ;;  %v1034_v54 = vld [vmem:[%s4751_s0 + $0xd8] sm:$0x2] }
  0xfa   :  { %v2467_v8 = vunpack.c.l.b16 %v2355_v55  ;;  %v2213_v9 = vsel %vm333_vm6, %v2212_v34, %v2211_v3  ;;  %v2468_v10 = vunpack.c.l.b16 %v2356_v57  ;;  %v2469_v11 = vunpack.c.l.b16 %v2357_v58 }
  0xfb   :  { %v2470_v0 = vunpack.c.l.b16 %v2358_v59  ;;  %v2257_v12 = vpack.c.b16 %v2213_v9, %v2199_v50  ;;  %v3101_v13 = vunpack.i.l.s16 %v2455_v41  ;;  %v3102_v14 = vunpack.i.l.s16 %v2456_v42  ;;  %v1031_v42 = vld [vmem:[%s4751_s0 + $0xcc] sm:$0x2] }
  0xfc   :  { %v3103_v15 = vunpack.i.l.s16 %v2457_v19  ;;  %v3104_v16 = vunpack.i.l.s16 %v2458_v48  ;;  %v3105_v17 = vunpack.i.l.s16 %v2459_v56  ;;  %v3106_v18 = vunpack.i.l.s16 %v2460_v40  ;;  %v1032_v19 = vld [vmem:[%s4751_s0 + $0xd0] sm:$0x2] }
  0xfd   :  { %v3107_v20 = vunpack.i.l.s16 %v2461_v60  ;;  %2277 = vmatmul.bf16.gmra.mxu0 %v2257_v12  ;;  %v3108_v21 = vunpack.i.l.s16 %v2462_v61  ;;  %v3109_v22 = vunpack.i.l.s16 %v2463_v2  ;;  %v3110_v23 = vunpack.i.l.s16 %v2464_v43  ;;  %v1910_v12 = vld [vmem:[%s4751_s0 + $0x80] sm:$0x4] }
  0xfe   :  { %v3111_v24 = vunpack.i.l.s16 %v2465_v4  ;;  %v3112_v6 = vunpack.i.l.s16 %v2466_v5  ;;  %v3113_v62 = vunpack.i.l.s16 %v2467_v8  ;;  %v3114_v25 = vunpack.i.l.s16 %v2468_v10 }
  0xff   :  { %v3115_v26 = vunpack.i.l.s16 %v2469_v11  ;;  %v3116_v28 = vunpack.i.l.s16 %v2470_v0  ;;  %v2635_v29 = vrot.slane %v3101_v13, 5  ;;  %v2636_v30 = vrot.slane %v3102_v14, 4  ;;  %v1911_v13 = vld [vmem:[%s4751_s0 + $0x84] sm:$0x4] }
 0x100   :  { %v2638_v31 = vrot.slane %v3103_v15, 3  ;;  %v2640_v32 = vrot.slane %v3104_v16, 2  ;;  %v2642_v33 = vrot.slane %v3105_v17, 1  ;;  %v2645_v34 = vrot.slane %v3107_v20, 7  ;;  %v1913_v20 = vld [vmem:[%s4751_s0 + $0x8c] sm:$0x4] }
 0x101   :  { %v2647_v35 = vrot.slane %v3108_v21, 6  ;;  %v2637_v36 = vsel %vm315_vm0, %v2636_v30, %v2635_v29  ;;  %v2649_v38 = vrot.slane %v3109_v22, 5  ;;  %v2650_v39 = vrot.slane %v3110_v23, 4  ;;  %v1914_v21 = vld [vmem:[%s4751_s0 + $0x90] sm:$0x4] }
 0x102   :  { %v2652_v41 = vrot.slane %v3111_v24, 3  ;;  %v2639_v44 = vsel %vm318_vm1, %v2638_v31, %v2637_v36  ;;  %v2654_v45 = vrot.slane %v3112_v6, 2  ;;  %v2656_v47 = vrot.slane %v3113_v62, 1  ;;  %v1915_v62 = vld [vmem:[%s4751_s0 + $0x94] sm:$0x4] }
 0x103   :  { %v2659_v7 = vrot.slane %v3115_v26, 7  ;;  %v2641_v48 = vsel %vm321_vm2, %v2640_v32, %v2639_v44  ;;  %v2651_v49 = vsel %vm315_vm0, %v2650_v39, %v2649_v38  ;;  %v2661_v52 = vrot.slane %v3116_v28, 6  ;;  %v1918_v26 = vld [vmem:[%s4751_s0 + $0xa0] sm:$0x4]  ;;  %v1917_v31 = vld [vmem:[%s4751_s0 + $0x9c] sm:$0x4] }
 0x104   :  { %v1140_v55 = vunpack.c.l.b16 %v1028_v27  ;;  %v2643_v56 = vsel %vm324_vm3, %v2642_v33, %v2641_v48  ;;  %v2653_v40 = vsel %vm318_vm1, %v2652_v41, %v2651_v49  ;;  %v1141_v51 = vunpack.c.l.b16 %v1029_v1  ;;  %v1919_v33 = vld [vmem:[%s4751_s0 + $0xa4] sm:$0x4]  ;;  %v1921_v38 = vld [vmem:[%s4751_s0 + $0xac] sm:$0x4]  ;;  %v1922_v39 = vld [vmem:[%s4751_s0 + $0xb0] sm:$0x4] }
 0x105   :  { %v1142_v57 = vunpack.c.l.b16 %v1030_v37  ;;  %v2644_v58 = vsel %vm327_vm4, %v3106_v18, %v2643_v56  ;;  %v2655_v59 = vsel %vm321_vm2, %v2654_v45, %v2653_v40  ;;  %v1143_v60 = vunpack.c.l.b16 %v1031_v42  ;;  %v1912_v18 = vld [vmem:[%s4751_s0 + $0x88] sm:$0x4]  ;;  %v1923_v41 = vld [vmem:[%s4751_s0 + $0xb4] sm:$0x4] }
 0x106   :  { %v1144_v61 = vunpack.c.l.b16 %v1032_v19  ;;  %v2646_v50 = vsel %vm330_vm5, %v2645_v34, %v2644_v58  ;;  %v2657_v63 = vsel %vm324_vm3, %v2656_v47, %v2655_v59  ;;  %v1145_v2 = vunpack.c.l.b16 %v1033_v53  ;;  %v1920_v34 = vld [vmem:[%s4751_s0 + $0xa8] sm:$0x4]  ;;  %v1925_v19 = vld [vmem:[%s4751_s0 + $0xbc] sm:$0x4] }
 0x107   :  { %v1146_v43 = vunpack.c.l.b16 %v1034_v54  ;;  %v2648_v3 = vsel %vm333_vm6, %v2647_v35, %v2646_v50  ;;  %v2658_v4 = vsel %vm327_vm4, %v3114_v25, %v2657_v63  ;;  %v1147_v5 = vunpack.c.l.b16 %v1035_v46  ;;  %v1916_v25 = vld [vmem:[%s4751_s0 + $0x98] sm:$0x4] }
 0x108   :  { %v2965_v8 = vunpack.i.l.s16 %v1140_v55  ;;  %v2660_v9 = vsel %vm330_vm5, %v2659_v7, %v2658_v4  ;;  %v2966_v10 = vunpack.i.l.s16 %v1141_v51  ;;  %v2967_v11 = vunpack.i.l.s16 %v1142_v57  ;;  %v1924_v7 = vld [vmem:[%s4751_s0 + $0xb8] sm:$0x4] }
 0x109   :  { %v2968_v0 = vunpack.i.l.s16 %v1143_v60  ;;  %v2662_v14 = vsel %vm333_vm6, %v2661_v52, %v2660_v9  ;;  %v2969_v15 = vunpack.i.l.s16 %v1144_v61  ;;  %v2970_v16 = vunpack.i.l.s16 %v1145_v2 }
 0x10a   :  { %v2971_v17 = vunpack.i.l.s16 %v1146_v43  ;;  %v2706_v22 = vpack.c.b16 %v2662_v14, %v2648_v3  ;;  %v2972_v23 = vunpack.i.l.s16 %v1147_v5  ;;  %v1344_v24 = vrot.slane %v2965_v8, 2 }
 0x10b   :  { %v1345_v6 = vrot.slane %v2966_v10, 1  ;;  %v1348_v27 = vrot.slane %v2968_v0, 7  ;;  %v1350_v28 = vrot.slane %v2969_v15, 6  ;;  %v1352_v29 = vrot.slane %v2970_v16, 5  ;;  %v1477_v16 = vld [vmem:[%s4751_s0 + $0xc0] sm:$0x2] }
 0x10c   :  { %v1354_v30 = vrot.slane %v2971_v17, 4  ;;  %2726 = vmatmul.bf16.gmra.mxu1 %v2706_v22  ;;  %v1356_v32 = vrot.slane %v2972_v23, 3  ;;  %v2022_v35 = vunpack.c.l.b16 %v1910_v12  ;;  %v2023_v37 = vunpack.c.l.b16 %v1911_v13  ;;  %v1478_v22 = vld [vmem:[%s4751_s0 + $0xc4] sm:$0x2] }
 0x10d   :  { %v1346_v1 = vsel %vm315_vm0, %v1345_v6, %v1344_v24  ;;  %v2024_v42 = vunpack.c.l.b16 %v1912_v18  ;;  %v2025_v44 = vunpack.c.l.b16 %v1913_v20  ;;  %v2026_v45 = vunpack.c.l.b16 %v1914_v21 }
 0x10e   :  { %v1347_v36 = vsel %vm318_vm1, %v2967_v11, %v1346_v1  ;;  %v2027_v48 = vunpack.c.l.b16 %v1915_v62  ;;  %v2028_v49 = vunpack.c.l.b16 %v1916_v25  ;;  %v2029_v52 = vunpack.c.l.b16 %v1917_v31  ;;  %v1479_v25 = vld [vmem:[%s4751_s0 + $0xc8] sm:$0x2] }
 0x10f   :  { %v1349_v47 = vsel %vm321_vm2, %v1348_v27, %v1347_v36  ;;  %v2030_v54 = vunpack.c.l.b16 %v1918_v26  ;;  %v2031_v55 = vunpack.c.l.b16 %v1919_v33  ;;  %v2032_v56 = vunpack.c.l.b16 %v1920_v34  ;;  %v1481_v34 = vld [vmem:[%s4751_s0 + $0xd0] sm:$0x2] }
 0x110   :  { %v1351_v53 = vsel %vm324_vm3, %v1350_v28, %v1349_v47  ;;  %v2033_v46 = vunpack.c.l.b16 %v1921_v38  ;;  %v2034_v51 = vunpack.c.l.b16 %v1922_v39  ;;  %v2035_v57 = vunpack.c.l.b16 %v1923_v41  ;;  %v1482_v38 = vld [vmem:[%s4751_s0 + $0xd4] sm:$0x2]  ;;  %v1483_v39 = vld [vmem:[%s4751_s0 + $0xd8] sm:$0x2] }
 0x111   :  { %v1353_v40 = vsel %vm327_vm4, %v1352_v29, %v1351_v53  ;;  %v2036_v59 = vunpack.c.l.b16 %v1924_v7  ;;  %v2037_v60 = vunpack.c.l.b16 %v1925_v19  ;;  %v3061_v61 = vunpack.i.l.s16 %v2022_v35 }
 0x112   :  { %v1355_v58 = vsel %vm330_vm5, %v1354_v30, %v1353_v40  ;;  %v3062_v63 = vunpack.i.l.s16 %v2023_v37  ;;  %v3063_v2 = vunpack.i.l.s16 %v2024_v42  ;;  %v3064_v43 = vunpack.i.l.s16 %v2025_v44  ;;  %v1480_v30 = vld [vmem:[%s4751_s0 + $0xcc] sm:$0x2] }
 0x113   :  { %v1357_v50 = vsel %vm333_vm6, %v1356_v32, %v1355_v58  ;;  %v3065_v4 = vunpack.i.l.s16 %v2026_v45  ;;  %v3066_v5 = vunpack.i.l.s16 %v2027_v48  ;;  %v3067_v8 = vunpack.i.l.s16 %v2028_v49  ;;  %v1484_v45 = vld [vmem:[%s4751_s0 + $0xdc] sm:$0x2] }
 0x114   :  { %v1361_v3 = vpack.c.b16 %v1357_v50, %v1357_v50  ;;  %v3068_v9 = vunpack.i.l.s16 %v2029_v52  ;;  %v3069_v10 = vunpack.i.l.s16 %v2030_v54  ;;  %v3070_v11 = vunpack.i.l.s16 %v2031_v55  ;;  %v2359_v50 = vld [vmem:[%s4751_s0 + $0x80] sm:$0x4] }
 0x115   :  { %v3071_v0 = vunpack.i.l.s16 %v2032_v56  ;;  %v3072_v12 = vunpack.i.l.s16 %v2033_v46  ;;  %v3073_v13 = vunpack.i.l.s16 %v2034_v51  ;;  %v3074_v14 = vunpack.i.l.s16 %v2035_v57 }
 0x116   :  { %1389 = vmatmul.bf16.gmra.mxu2 %v1361_v3  ;;  %v3075_v15 = vunpack.i.l.s16 %v2036_v59  ;;  %v3076_v17 = vunpack.i.l.s16 %v2037_v60  ;;  %v2214_v18 = vrot.slane %v3061_v61, 4  ;;  %v2215_v20 = vrot.slane %v3062_v63, 3  ;;  %v2360_v63 = vld [vmem:[%s4751_s0 + $0x84] sm:$0x4] }
 0x117   :  { %v2217_v21 = vrot.slane %v3063_v2, 2  ;;  %v2219_v23 = vrot.slane %v3064_v43, 1  ;;  %v2222_v24 = vrot.slane %v3066_v5, 7  ;;  %v2224_v6 = vrot.slane %v3067_v8, 6  ;;  %v2361_v5 = vld [vmem:[%s4751_s0 + $0x88] sm:$0x4] }
 0x118   :  { %v2226_v62 = vrot.slane %v3068_v9, 5  ;;  %v2216_v26 = vsel %vm315_vm0, %v2215_v20, %v2214_v18  ;;  %v2228_v27 = vrot.slane %v3069_v10, 4  ;;  %v2229_v28 = vrot.slane %v3070_v11, 3  ;;  %v2362_v8 = vld [vmem:[%s4751_s0 + $0x8c] sm:$0x4] }
 0x119   :  { %v2231_v29 = vrot.slane %v3071_v0, 2  ;;  %v2218_v31 = vsel %vm318_vm1, %v2217_v21, %v2216_v26  ;;  %v2233_v1 = vrot.slane %v3072_v12, 1  ;;  %v2236_v32 = vrot.slane %v3074_v14, 7  ;;  %v2363_v9 = vld [vmem:[%s4751_s0 + $0x90] sm:$0x4] }
 0x11a   :  { %v2238_v33 = vrot.slane %v3075_v15, 6  ;;  %v2220_v35 = vsel %vm321_vm2, %v2219_v23, %v2218_v31  ;;  %v2230_v37 = vsel %vm315_vm0, %v2229_v28, %v2228_v27  ;;  %v2240_v36 = vrot.slane %v3076_v17, 5  ;;  %v2365_v14 = vld [vmem:[%s4751_s0 + $0x98] sm:$0x4]  ;;  %v2367_v15 = vld [vmem:[%s4751_s0 + $0xa0] sm:$0x4] }
 0x11b   :  { %v1589_v41 = vunpack.c.l.b16 %v1477_v16  ;;  %v2221_v42 = vsel %vm324_vm3, %v3065_v4, %v2220_v35  ;;  %v2232_v44 = vsel %vm318_vm1, %v2231_v29, %v2230_v37  ;;  %v1590_v47 = vunpack.c.l.b16 %v1478_v22  ;;  %v2366_v21 = vld [vmem:[%s4751_s0 + $0x9c] sm:$0x4]  ;;  %v2370_v27 = vld [vmem:[%s4751_s0 + $0xac] sm:$0x4]  ;;  %v2371_v28 = vld [vmem:[%s4751_s0 + $0xb0] sm:$0x4] }
 0x11c   :  { %v1591_v7 = vunpack.c.l.b16 %v1479_v25  ;;  %v2223_v19 = vsel %vm327_vm4, %v2222_v24, %v2221_v42  ;;  %v2234_v48 = vsel %vm321_vm2, %v2233_v1, %v2232_v44  ;;  %v1592_v49 = vunpack.c.l.b16 %v1480_v30  ;;  %v2368_v24 = vld [vmem:[%s4751_s0 + $0xa4] sm:$0x4]  ;;  %v2372_v29 = vld [vmem:[%s4751_s0 + $0xb4] sm:$0x4] }
 0x11d   :  { %v1593_v52 = vunpack.c.l.b16 %v1481_v34  ;;  %v2225_v53 = vsel %vm330_vm5, %v2224_v6, %v2223_v19  ;;  %v2235_v54 = vsel %vm324_vm3, %v3073_v13, %v2234_v48  ;;  %v1594_v55 = vunpack.c.l.b16 %v1482_v38  ;;  %v2364_v13 = vld [vmem:[%s4751_s0 + $0x94] sm:$0x4]  ;;  %v2369_v6 = vld [vmem:[%s4751_s0 + $0xa8] sm:$0x4]  ;;  %v2374_v34 = vld [vmem:[%s4751_s0 + $0xbc] sm:$0x4] }
 0x11e   :  { %v1595_v56 = vunpack.c.l.b16 %v1483_v39  ;;  %v2227_v40 = vsel %vm333_vm6, %v2226_v62, %v2225_v53  ;;  %v2237_v46 = vsel %vm327_vm4, %v2236_v32, %v2235_v54  ;;  %v1596_v51 = vunpack.c.l.b16 %v1484_v45 }
 0x11f   :  { %v3021_v57 = vunpack.i.l.s16 %v1589_v41  ;;  %v2239_v58 = vsel %vm330_vm5, %v2238_v33, %v2237_v46  ;;  %v3022_v59 = vunpack.i.l.s16 %v1590_v47  ;;  %v3023_v60 = vunpack.i.l.s16 %v1591_v7  ;;  %v2373_v33 = vld [vmem:[%s4751_s0 + $0xb8] sm:$0x4] }
 0x120   :  { %v3024_v61 = vunpack.i.l.s16 %v1592_v49  ;;  %v2241_v2 = vsel %vm333_vm6, %v2240_v36, %v2239_v58  ;;  %v3025_v43 = vunpack.i.l.s16 %v1593_v52  ;;  %v3026_v3 = vunpack.i.l.s16 %v1594_v55 }
 0x121   :  { %v3027_v4 = vunpack.i.l.s16 %v1595_v56  ;;  %v2258_v10 = vpack.c.b16 %v2241_v2, %v2227_v40  ;;  %v3028_v11 = vunpack.i.l.s16 %v1596_v51  ;;  %v1793_v0 = vrot.slane %v3021_v57, 3 }
 0x122   :  { %v1794_v12 = vrot.slane %v3022_v59, 2  ;;  %v1796_v16 = vrot.slane %v3023_v60, 1  ;;  %v1799_v17 = vrot.slane %v3025_v43, 7  ;;  %v1801_v18 = vrot.slane %v3026_v3, 6 }
 0x123   :  { %v1803_v20 = vrot.slane %v3027_v4, 5  ;;  %2282 = vmatmul.bf16.gmra.mxu0 %v2258_v10  ;;  %v1805_v23 = vrot.slane %v3028_v11, 4  ;;  %v2471_v62 = vunpack.c.l.b16 %v2359_v50  ;;  %v2472_v25 = vunpack.c.l.b16 %v2360_v63  ;;  %v4573_v50 = vpop.f32.mrf.mxu2  ;;  %v4575_v63 = vpop.f32.mrf.mxu3 }
 0x124   :  { %v1795_v22 = vsel %vm315_vm0, %v1794_v12, %v1793_v0  ;;  %v2473_v30 = vunpack.c.l.b16 %v2361_v5  ;;  %v2474_v31 = vunpack.c.l.b16 %v2362_v8  ;;  %v2475_v1 = vunpack.c.l.b16 %v2363_v9  ;;  %v1926_v5 = vld [vmem:[%s4751_s0 + $0xc0] sm:$0x4]  ;;  %v4580_v8 = vpop.f32.mrf.mxu0  ;;  %v1927_v12 = vld [vmem:[%s4751_s0 + $0xc4] sm:$0x4] }
 0x125   :  { %v1797_v26 = vsel %vm318_vm1, %v1796_v16, %v1795_v22  ;;  %v2476_v35 = vunpack.c.l.b16 %v2364_v13  ;;  %v2477_v37 = vunpack.c.l.b16 %v2365_v14  ;;  %v2478_v36 = vunpack.c.l.b16 %v2366_v21 }
 0x126   :  { %v1798_v32 = vsel %vm321_vm2, %v3024_v61, %v1797_v26  ;;  %v2479_v39 = vunpack.c.l.b16 %v2367_v15  ;;  %v2480_v41 = vunpack.c.l.b16 %v2368_v24  ;;  %v2481_v42 = vunpack.c.l.b16 %v2369_v6  ;;  %v1929_v24 = vld [vmem:[%s4751_s0 + $0xcc] sm:$0x4] }
 0x127   :  { %v1800_v38 = vsel %vm324_vm3, %v1799_v17, %v1798_v32  ;;  %v2482_v45 = vunpack.c.l.b16 %v2370_v27  ;;  %v2483_v47 = vunpack.c.l.b16 %v2371_v28  ;;  %v2484_v7 = vunpack.c.l.b16 %v2372_v29  ;;  %v1928_v17 = vld [vmem:[%s4751_s0 + $0xc8] sm:$0x4]  ;;  %v1930_v27 = vld [vmem:[%s4751_s0 + $0xd0] sm:$0x4] }
 0x128   :  { %v1802_v44 = vsel %vm327_vm4, %v1801_v18, %v1800_v38  ;;  %v2485_v48 = vunpack.c.l.b16 %v2373_v33  ;;  %v2486_v49 = vunpack.c.l.b16 %v2374_v34  ;;  %v3117_v52 = vunpack.i.l.s16 %v2471_v62  ;;  %v4588_v18 = vpop.f32.mrf.mxu1 }
 0x129   :  { %v1804_v19 = vsel %vm330_vm5, %v1803_v20, %v1802_v44  ;;  %v3118_v54 = vunpack.i.l.s16 %v2472_v25  ;;  %v3119_v55 = vunpack.i.l.s16 %v2473_v30  ;;  %v3120_v56 = vunpack.i.l.s16 %v2474_v31  ;;  %v1931_v31 = vld [vmem:[%s4751_s0 + $0xd4] sm:$0x4] }
 0x12a   :  { %v1806_v53 = vsel %vm333_vm6, %v1805_v23, %v1804_v19  ;;  %v3121_v46 = vunpack.i.l.s16 %v2475_v1  ;;  %v3122_v51 = vunpack.i.l.s16 %v2476_v35  ;;  %v3123_v57 = vunpack.i.l.s16 %v2477_v37  ;;  %v1932_v1 = vld [vmem:[%s4751_s0 + $0xd8] sm:$0x4]  ;;  %v1933_v35 = vld [vmem:[%s4751_s0 + $0xdc] sm:$0x4] }
 0x12b   :  { %v1810_v40 = vpack.c.b16 %v1806_v53, %v1806_v53  ;;  %v3124_v58 = vunpack.i.l.s16 %v2478_v36  ;;  %v3125_v59 = vunpack.i.l.s16 %v2479_v39  ;;  %v3126_v60 = vunpack.i.l.s16 %v2480_v41  ;;  %v4613_v44 = vpop.f32.mrf.mxu2 }
 0x12c   :  { %v3127_v61 = vunpack.i.l.s16 %v2481_v42  ;;  %v3128_v2 = vunpack.i.l.s16 %v2482_v45  ;;  %v3129_v43 = vunpack.i.l.s16 %v2483_v47  ;;  %v3130_v3 = vunpack.i.l.s16 %v2484_v7  ;;  %v4615_v45 = vpop.f32.mrf.mxu3 }
 0x12d   :  { %1838 = vmatmul.bf16.gmra.mxu3 %v1810_v40  ;;  %v3131_v4 = vunpack.i.l.s16 %v2485_v48  ;;  %v3132_v9 = vunpack.i.l.s16 %v2486_v49  ;;  %v2663_v10 = vrot.slane %v3117_v52, 5  ;;  %v2664_v11 = vrot.slane %v3118_v54, 4  ;;  %v4619_v49 = vpop.f32.mrf.mxu0 }
 0x12e   :  { %v2666_v0 = vrot.slane %v3119_v55, 3  ;;  %v2668_v13 = vrot.slane %v3120_v56, 2  ;;  %v2670_v14 = vrot.slane %v3121_v46, 1  ;;  %v2673_v15 = vrot.slane %v3123_v57, 7  ;;  %v2375_v57 = vld [vmem:[%s4751_s0 + $0xc0] sm:$0x4] }
 0x12f   :  { %v2675_v16 = vrot.slane %v3124_v58, 6  ;;  %v2665_v20 = vsel %vm315_vm0, %v2664_v11, %v2663_v10  ;;  %v2677_v21 = vrot.slane %v3125_v59, 5  ;;  %v2678_v22 = vrot.slane %v3126_v60, 4  ;;  %v2376_v58 = vld [vmem:[%s4751_s0 + $0xc4] sm:$0x4] }
 0x130   :  { %v2680_v23 = vrot.slane %v3127_v61, 3  ;;  %v2667_v6 = vsel %vm318_vm1, %v2666_v0, %v2665_v20  ;;  %v2682_v62 = vrot.slane %v3128_v2, 2  ;;  %v2684_v25 = vrot.slane %v3129_v43, 1  ;;  %v4630_v59 = vpop.f32.mrf.mxu1  ;;  %v2382_v20 = vld [vmem:[%s4751_s0 + $0xdc] sm:$0x4] }
 0x131   :  { %v2687_v26 = vrot.slane %v3131_v4, 7  ;;  %v2669_v28 = vsel %vm321_vm2, %v2668_v13, %v2667_v6  ;;  %v2679_v29 = vsel %vm315_vm0, %v2678_v22, %v2677_v21  ;;  %v2689_v30 = vrot.slane %v3132_v9, 6  ;;  %v2378_v4 = vld [vmem:[%s4751_s0 + $0xcc] sm:$0x4]  ;;  %v2381_v13 = vld [vmem:[%s4751_s0 + $0xd8] sm:$0x4] }
 0x132   :  { %v2038_v32 = vunpack.c.l.b16 %v1926_v5  ;;  %v2671_v33 = vsel %vm324_vm3, %v2670_v14, %v2669_v28  ;;  %v2681_v34 = vsel %vm318_vm1, %v2680_v23, %v2679_v29  ;;  %v2039_v37 = vunpack.c.l.b16 %v1927_v12  ;;  %v2379_v5 = vld [vmem:[%s4751_s0 + $0xd0] sm:$0x4]  ;;  %v2380_v12 = vld [vmem:[%s4751_s0 + $0xd4] sm:$0x4] }
 0x133   :  { %v2040_v36 = vunpack.c.l.b16 %v1928_v17  ;;  %v2672_v38 = vsel %vm327_vm4, %v3122_v51, %v2671_v33  ;;  %v2683_v39 = vsel %vm321_vm2, %v2682_v62, %v2681_v34  ;;  %v2041_v41 = vunpack.c.l.b16 %v1929_v24 }
 0x134   :  { %v2042_v42 = vunpack.c.l.b16 %v1930_v27  ;;  %v2674_v47 = vsel %vm330_vm5, %v2673_v15, %v2672_v38  ;;  %v2685_v7 = vsel %vm324_vm3, %v2684_v25, %v2683_v39  ;;  %v2043_v19 = vunpack.c.l.b16 %v1931_v31  ;;  %v499_v27 = vpop.f32.mrf.mxu2  ;;  %v941_v28 = vpop.f32.mrf.mxu3 }
 0x135   :  { %v2044_v48 = vunpack.c.l.b16 %v1932_v1  ;;  %v2676_v52 = vsel %vm333_vm6, %v2675_v16, %v2674_v47  ;;  %v2686_v53 = vsel %vm327_vm4, %v3130_v3, %v2685_v7  ;;  %v2045_v54 = vunpack.c.l.b16 %v1933_v35  ;;  %v2377_v3 = vld [vmem:[%s4751_s0 + $0xc8] sm:$0x4] }
 0x136   :  { %v3077_v55 = vunpack.i.l.s16 %v2038_v32  ;;  %v2688_v56 = vsel %vm330_vm5, %v2687_v26, %v2686_v53  ;;  %v3078_v40 = vunpack.i.l.s16 %v2039_v37  ;;  %v3079_v46 = vunpack.i.l.s16 %v2040_v36  ;;  %v489_v32 = vpop.f32.mrf.mxu0 }
 0x137   :  { %v3080_v51 = vunpack.i.l.s16 %v2041_v41  ;;  %v2690_v60 = vsel %vm333_vm6, %v2689_v30, %v2688_v56  ;;  %v3081_v61 = vunpack.i.l.s16 %v2042_v42  ;;  %v3082_v2 = vunpack.i.l.s16 %v2043_v19  ;;  %v4659_v42 = vld [vmem:[%s4752_s2] ss:$0 sm:$0xff] }
 0x138   :  { %v3083_v43 = vunpack.i.l.s16 %v2044_v48  ;;  %v2707_v9 = vpack.c.b16 %v2690_v60, %v2676_v52  ;;  %v3084_v10 = vunpack.i.l.s16 %v2045_v54  ;;  %v2242_v11 = vrot.slane %v3077_v55, 4  ;;  %v931_v47 = vpop.f32.mrf.mxu1 }
 0x139   :  { %v2243_v0 = vrot.slane %v3078_v40, 3  ;;  %v2245_v14 = vrot.slane %v3079_v46, 2  ;;  %v2247_v15 = vrot.slane %v3080_v51, 1  ;;  %v2250_v16 = vrot.slane %v3082_v2, 7 }
 0x13a   :  { %v2252_v17 = vrot.slane %v3083_v43, 6  ;;  %2731 = vmatmul.bf16.gmra.mxu1 %v2707_v9  ;;  %v2254_v22 = vrot.slane %v3084_v10, 5  ;;  %v2487_v23 = vunpack.c.l.b16 %v2375_v57  ;;  %v2488_v24 = vunpack.c.l.b16 %v2376_v58 }
 0x13b   :  { %v2244_v21 = vsel %vm315_vm0, %v2243_v0, %v2242_v11  ;;  %v2489_v62 = vunpack.c.l.b16 %v2377_v3  ;;  %v2490_v25 = vunpack.c.l.b16 %v2378_v4  ;;  %v2491_v26 = vunpack.c.l.b16 %v2379_v5 }
 0x13c   :  { %v2246_v6 = vsel %vm318_vm1, %v2245_v14, %v2244_v21  ;;  %v2492_v30 = vunpack.c.l.b16 %v2380_v12  ;;  %v2493_v31 = vunpack.c.l.b16 %v2381_v13  ;;  %v2494_v1 = vunpack.c.l.b16 %v2382_v20  ;;  %v501_v9 = vpop.f32.mrf.mxu2  ;;  %v943_v10 = vpop.f32.mrf.mxu3 }
 0x13d   :  { %v2248_v29 = vsel %vm321_vm2, %v2247_v15, %v2246_v6  ;;  %v3133_v34 = vunpack.i.l.s16 %v2487_v23  ;;  %v3134_v35 = vunpack.i.l.s16 %v2488_v24  ;;  %v3135_v37 = vunpack.i.l.s16 %v2489_v62 }
 0x13e   :  { %v2249_v33 = vsel %vm324_vm3, %v3081_v61, %v2248_v29  ;;  %v3136_v38 = vunpack.i.l.s16 %v2490_v25  ;;  %v3137_v39 = vunpack.i.l.s16 %v2491_v26  ;;  %v3138_v41 = vunpack.i.l.s16 %v2492_v30  ;;  %v491_v12 = vpop.f32.mrf.mxu0 }
 0x13f   :  { %v2251_v36 = vsel %vm327_vm4, %v2250_v16, %v2249_v33  ;;  %v3139_v19 = vunpack.i.l.s16 %v2493_v31  ;;  %v3140_v48 = vunpack.i.l.s16 %v2494_v1  ;;  %v2691_v52 = vrot.slane %v3133_v34, 5 }
 0x140   :  { %v2253_v7 = vsel %vm330_vm5, %v2252_v17, %v2251_v36  ;;  %v2692_v54 = vrot.slane %v3134_v35, 4  ;;  %v2694_v55 = vrot.slane %v3135_v37, 3  ;;  %v2696_v56 = vrot.slane %v3136_v38, 2  ;;  %v933_v6 = vpop.f32.mrf.mxu1 }
 0x141   :  { %v2255_v53 = vsel %vm333_vm6, %v2254_v22, %v2253_v7  ;;  %v2698_v46 = vrot.slane %v3137_v39, 1  ;;  %v2701_v51 = vrot.slane %v3139_v19, 7  ;;  %v2703_v57 = vrot.slane %v3140_v48, 6 }
 0x142   :  { %v2259_v40 = vpack.c.b16 %v2255_v53, %v2255_v53  ;;  %v2693_v58 = vsel %vm315_vm0, %v2692_v54, %v2691_v52  ;;  %v495_v60 = vadd.f32 %v4659_v42, %v4573_v50  ;;  %v937_v61 = vadd.f32 %v4659_v42, %v4575_v63 }
 0x143   :  { %v497_v2 = vadd.f32 %v4659_v42, %v4613_v44  ;;  %v2695_v43 = vsel %vm318_vm1, %v2694_v55, %v2693_v58  ;;  %v939_v3 = vadd.f32 %v4659_v42, %v4615_v45  ;;  %v485_v4 = vadd.f32 %v4659_v42, %v4580_v8 }
 0x144   :  { %2287 = vmatmul.bf16.gmra.mxu0 %v2259_v40  ;;  %v500_v5 = vadd.f32 %v4659_v42, %v499_v27  ;;  %v2697_v50 = vsel %vm321_vm2, %v2696_v56, %v2695_v43  ;;  %v507_v11 = vmul.f32 0.2, %v495_v60  ;;  %v949_v63 = vmul.f32 0.2, %v937_v61  ;;  %v1375_v34 = vpop.f32.mrf.mxu2  ;;  %v1824_v35 = vpop.f32.mrf.mxu3 }
 0x145   :  { %v508_v0 = vmul.f32 0.2, %v497_v2  ;;  %v2699_v44 = vsel %vm324_vm3, %v2698_v46, %v2697_v50  ;;  %v950_v13 = vmul.f32 0.2, %v939_v3  ;;  %v503_v23 = vmul.f32 0.2, %v485_v4 }
 0x146   :  { %v509_v14 = vmul.f32 0.2, %v500_v5  ;;  %v2700_v15 = vsel %vm327_vm4, %v3138_v41, %v2699_v44  ;;  %v514_v45 = vmax.f32 %v495_v60, %v507_v11  ;;  %v956_v16 = vmax.f32 %v937_v61, %v949_v63  ;;  %v2273_v48 = vpop.f32.mrf.mxu0 }
 0x147   :  { %v515_v17 = vmax.f32 %v497_v2, %v508_v0  ;;  %v2702_v8 = vsel %vm330_vm5, %v2701_v51, %v2700_v15  ;;  %v957_v20 = vmax.f32 %v939_v3, %v950_v13  ;;  %v942_v24 = vadd.f32 %v4659_v42, %v941_v28 }
 0x148   :  { %v2704_v21 = vsel %vm333_vm6, %v2703_v57, %v2702_v8  ;;  %v4681_v22 = vmax.f32 %v514_v45, %v956_v16  ;;  %v927_v26 = vadd.f32 %v4659_v42, %v4588_v18  ;;  %v490_v27 = vadd.f32 %v4659_v42, %v489_v32 }
 0x149   :  { %v2708_v62 = vpack.c.b16 %v2704_v21, %v2704_v21  ;;  %v4684_v25 = vmax.f32 %v515_v17, %v957_v20  ;;  %v516_v29 = vmax.f32 %v500_v5, %v509_v14  ;;  %v951_v30 = vmul.f32 0.2, %v942_v24 }
 0x14a   :  { %v492_v31 = vadd.f32 %v4659_v42, %v491_v12  ;;  %v945_v1 = vmul.f32 0.2, %v927_v26  ;;  %v505_v33 = vmul.f32 0.2, %v490_v27  ;;  %v932_v28 = vadd.f32 %v4659_v42, %v931_v47 }
 0x14b   :  { %2736 = vmatmul.bf16.gmra.mxu1 %v2708_v62  ;;  %v934_v37 = vadd.f32 %v4659_v42, %v933_v6  ;;  %v510_v36 = vmax.f32 %v485_v4, %v503_v23  ;;  %v958_v38 = vmax.f32 %v942_v24, %v951_v30  ;;  %v487_v18 = vadd.f32 %v4659_v42, %v4619_v49 }
 0x14c   :  { %v1376_v32 = vadd.f32 %v4659_v42, %v1375_v34  ;;  %v952_v39 = vmax.f32 %v927_v26, %v945_v1  ;;  %v929_v41 = vadd.f32 %v4659_v42, %v4630_v59  ;;  %v1825_v7 = vadd.f32 %v4659_v42, %v1824_v35  ;;  %v2722_v58 = vpop.f32.mrf.mxu1  ;;  %v1377_v9 = vpop.f32.mrf.mxu2 }
 0x14d   :  { %v506_v19 = vmul.f32 0.2, %v492_v31  ;;  %v4698_v52 = vmax.f32 %v516_v29, %v958_v38  ;;  %v512_v47 = vmax.f32 %v490_v27, %v505_v33  ;;  %v947_v54 = vmul.f32 0.2, %v932_v28  ;;  %v1826_v10 = vpop.f32.mrf.mxu3 }
 0x14e   :  { %v1394_v53 = vmul.f32 0.2, %v1376_v32  ;;  %v1843_v55 = vmul.f32 0.2, %v1825_v7  ;;  %v948_v40 = vmul.f32 0.2, %v934_v37  ;;  %v959_v46 = vmax.f32 %v510_v36, %v952_v39  ;;  %v2275_v17 = vpop.f32.mrf.mxu0 }
 0x14f   :  { %v513_v56 = vmax.f32 %v492_v31, %v506_v19  ;;  %v954_v51 = vmax.f32 %v932_v28, %v947_v54  ;;  %v2274_v57 = vadd.f32 %v4659_v42, %v2273_v48  ;;  %v504_v60 = vmul.f32 0.2, %v487_v18 }
 0x150   :  { %v1401_v49 = vmax.f32 %v1376_v32, %v1394_v53  ;;  %v946_v59 = vmul.f32 0.2, %v929_v41  ;;  %v955_v61 = vmax.f32 %v934_v37, %v948_v40  ;;  %v2723_v2 = vadd.f32 %v4659_v42, %v2722_v58 }
 0x151   :  { %v1850_v3 = vmax.f32 %v1825_v7, %v1843_v55  ;;  %v961_v4 = vmax.f32 %v512_v47, %v954_v51  ;;  %v2292_v5 = vmul.f32 0.2, %v2274_v57  ;;  %v1378_v0 = vadd.f32 %v4659_v42, %v1377_v9 }
 0x152   :  { %v1408_v43 = vmax.f32 %v959_v46, %v1401_v49  ;;  %v962_v50 = vmax.f32 %v513_v56, %v955_v61  ;;  %v2741_v11 = vmul.f32 0.2, %v2723_v2  ;;  %v511_v44 = vmax.f32 %v487_v18, %v504_v60 }
 0x153   :  { %v2299_v12 = vmax.f32 %v2274_v57, %v2292_v5  ;;  %v953_v13 = vmax.f32 %v929_v41, %v946_v59  ;;  %v1395_v14 = vmul.f32 0.2, %v1378_v0  ;;  %v1827_v15 = vadd.f32 %v4659_v42, %v1826_v10 }
 0x154   :  { %v1857_v63 = vmax.f32 %v1408_v43, %v1850_v3  ;;  %v2748_v16 = vmax.f32 %v2723_v2, %v2741_v11  ;;  %v2276_v24 = vadd.f32 %v4659_v42, %v2275_v17  ;;  %v2724_v29 = vpop.f32.mrf.mxu1  ;;  %v1380_v28 = vpop.f32.mrf.mxu2 }
 0x155   :  { %v1402_v8 = vmax.f32 %v1378_v0, %v1395_v14  ;;  %v960_v21 = vmax.f32 %v511_v44, %v953_v13  ;;  %v1844_v23 = vmul.f32 0.2, %v1827_v15  ;;  %v2725_v31 = vadd.f32 %v4659_v42, %v2724_v29  ;;  %v1829_v36 = vpop.f32.mrf.mxu3 }
 0x156   :  { %v2306_v45 = vmax.f32 %v1857_v63, %v2299_v12  ;;  %v2293_v26 = vmul.f32 0.2, %v2276_v24  ;;  %v1381_v37 = vadd.f32 %v4659_v42, %v1380_v28  ;;  %v1830_v39 = vadd.f32 %v4659_v42, %v1829_v36 }
 0x157   :  { %v1409_v6 = vmax.f32 %v960_v21, %v1402_v8  ;;  %v1851_v62 = vmax.f32 %v1827_v15, %v1844_v23  ;;  %v2742_v33 = vmul.f32 0.2, %v2725_v31 }
 0x158   :  { %v2755_v20 = vmax.f32 %v2306_v45, %v2748_v16  ;;  %v2300_v30 = vmax.f32 %v2276_v24, %v2293_v26  ;;  %v1396_v18 = vmul.f32 0.2, %v1381_v37  ;;  %v1845_v19 = vmul.f32 0.2, %v1830_v39 }
 0x159   :  { %v1858_v27 = vmax.f32 %v1409_v6, %v1851_v62  ;;  %v2749_v34 = vmax.f32 %v2725_v31, %v2742_v33 }
 0x15a   :  { %2762 = vst [vmem:[%s4753_s3] sm:$0xff] %v2755_v20  ;;  %v1403_v41 = vmax.f32 %v1381_v37, %v1396_v18  ;;  %v1852_v56 = vmax.f32 %v1830_v39, %v1845_v19 }
 0x15b   :  { %v2307_v1 = vmax.f32 %v1858_v27, %v2300_v30 }
 0x15c   :  { %v1382_v38 = vpop.f32.mrf.mxu2  ;;  %v1410_v53 = vmax.f32 %v961_v4, %v1403_v41 }
 0x15d   :  { %v2756_v35 = vmax.f32 %v2307_v1, %v2749_v34  ;;  %v1383_v7 = vadd.f32 %v4659_v42, %v1382_v38  ;;  %v1831_v47 = vpop.f32.mrf.mxu3 }
 0x15e   :  { %v1832_v40 = vadd.f32 %v4659_v42, %v1831_v47  ;;  %v1859_v51 = vmax.f32 %v1410_v53, %v1852_v56 }
 0x15f   :  { %2763 = vst [vmem:[%s4753_s3 + $0x8] sm:$0xff] %v2756_v35  ;;  %v1397_v54 = vmul.f32 0.2, %v1383_v7 }
 0x160   :  { %v1846_v60 = vmul.f32 0.2, %v1832_v40 }
 0x161   :  { %v1404_v57 = vmax.f32 %v1383_v7, %v1397_v54 }
 0x162   :  { %v1853_v4 = vmax.f32 %v1832_v40, %v1846_v60 }
 0x163   :  { %v1411_v43 = vmax.f32 %v962_v50, %v1404_v57 }
 0x164   :  { %v1385_v55 = vpop.f32.mrf.mxu2 }
 0x165   :  { %v1860_v63 = vmax.f32 %v1411_v43, %v1853_v4  ;;  %v1386_v21 = vadd.f32 %v4659_v42, %v1385_v55 }
 0x167   :  { %v1398_v23 = vmul.f32 0.2, %v1386_v21 }
 0x169   :  { %v1405_v62 = vmax.f32 %v1386_v21, %v1398_v23 }
 0x16b   :  { %v1412_v31 = vmax.f32 %v4681_v22, %v1405_v62 }
 0x16c   :  { %v1387_v11 = vpop.f32.mrf.mxu2 }
 0x16d   :  { %v1388_v26 = vadd.f32 %v4659_v42, %v1387_v11 }
 0x16f   :  { %v1399_v1 = vmul.f32 0.2, %v1388_v26 }
 0x171   :  { %v1834_v17 = vpop.f32.mrf.mxu3  ;;  %v1406_v36 = vmax.f32 %v1388_v26, %v1399_v1 }
 0x172   :  { %v1835_v6 = vadd.f32 %v4659_v42, %v1834_v17 }
 0x173   :  { %v1413_v22 = vmax.f32 %v4684_v25, %v1406_v36 }
 0x174   :  { %v1847_v29 = vmul.f32 0.2, %v1835_v6 }
 0x176   :  { %v1854_v33 = vmax.f32 %v1835_v6, %v1847_v29 }
 0x178   :  { %v1861_v37 = vmax.f32 %v1412_v31, %v1854_v33 }
 0x179   :  { %v1836_v20 = vpop.f32.mrf.mxu3 }
 0x17a   :  { %v2278_v32 = vpop.f32.mrf.mxu0  ;;  %v1837_v34 = vadd.f32 %v4659_v42, %v1836_v20 }
 0x17b   :  { %v2279_v48 = vadd.f32 %v4659_v42, %v2278_v32 }
 0x17c   :  { %v1848_v39 = vmul.f32 0.2, %v1837_v34 }
 0x17d   :  { %v2294_v46 = vmul.f32 0.2, %v2279_v48 }
 0x17e   :  { %v1855_v54 = vmax.f32 %v1837_v34, %v1848_v39 }
 0x17f   :  { %v2301_v59 = vmax.f32 %v2279_v48, %v2294_v46 }
 0x180   :  { %v1862_v46 = vmax.f32 %v1413_v22, %v1855_v54 }
 0x181   :  { %v2308_v3 = vmax.f32 %v1859_v51, %v2301_v59 }
 0x182   :  { %v2280_v49 = vpop.f32.mrf.mxu0 }
 0x183   :  { %v2281_v61 = vadd.f32 %v4659_v42, %v2280_v49 }
 0x185   :  { %v2295_v9 = vmul.f32 0.2, %v2281_v61 }
 0x187   :  { %v2302_v44 = vmax.f32 %v2281_v61, %v2295_v9 }
 0x189   :  { %v2727_v58 = vpop.f32.mrf.mxu1  ;;  %v2309_v14 = vmax.f32 %v1860_v63, %v2302_v44 }
 0x18a   :  { %v2728_v2 = vadd.f32 %v4659_v42, %v2727_v58 }
 0x18c   :  { %v2743_v5 = vmul.f32 0.2, %v2728_v2 }
 0x18e   :  { %v2750_v10 = vmax.f32 %v2728_v2, %v2743_v5 }
 0x190   :  { %v2757_v0 = vmax.f32 %v2308_v3, %v2750_v10 }
 0x191   :  { %v2729_v12 = vpop.f32.mrf.mxu1 }
 0x192   :  { %2764 = vst [vmem:[%s4753_s3 + $0x10] sm:$0xff] %v2757_v0  ;;  %v2730_v13 = vadd.f32 %v4659_v42, %v2729_v12 }
 0x194   :  { %v2744_v15 = vmul.f32 0.2, %v2730_v13 }
 0x196   :  { %v2751_v45 = vmax.f32 %v2730_v13, %v2744_v15 }
 0x198   :  { %v2758_v50 = vmax.f32 %v2309_v14, %v2751_v45 }
 0x199   :  { %v1390_v16 = vpop.f32.mrf.mxu2 }
 0x19a   :  { %2765 = vst [vmem:[%s4753_s3 + $0x18] sm:$0xff] %v2758_v50  ;;  %v1391_v38 = vadd.f32 %v4659_v42, %v1390_v16 }
 0x19c   :  { %v1400_v53 = vmul.f32 0.2, %v1391_v38 }
 0x19e   :  { %v1407_v51 = vmax.f32 %v1391_v38, %v1400_v53 }
 0x1a0   :  { %v2283_v24 = vpop.f32.mrf.mxu0  ;;  %v1414_v3 = vmax.f32 %v4698_v52, %v1407_v51 }
 0x1a1   :  { %v1392_v8 = vpop.f32.mrf.mxu2  ;;  %v2284_v30 = vadd.f32 %v4659_v42, %v2283_v24 }
 0x1a3   :  { %v2296_v35 = vmul.f32 0.2, %v2284_v30 }
 0x1a5   :  { %v2303_v41 = vmax.f32 %v2284_v30, %v2296_v35 }
 0x1a7   :  { %v2310_v48 = vmax.f32 %v1861_v37, %v2303_v41 }
 0x1a8   :  { %v2285_v28 = vpop.f32.mrf.mxu0 }
 0x1a9   :  { %v2286_v7 = vadd.f32 %v4659_v42, %v2285_v28 }
 0x1ab   :  { %v2297_v55 = vmul.f32 0.2, %v2286_v7 }
 0x1ad   :  { %v2304_v58 = vmax.f32 %v2286_v7, %v2297_v55 }
 0x1af   :  { %v2311_v2 = vmax.f32 %v1862_v46, %v2304_v58 }
 0x1b0   :  { %v1839_v27 = vpop.f32.mrf.mxu3 }
 0x1b1   :  { %v1840_v40 = vadd.f32 %v4659_v42, %v1839_v27 }
 0x1b3   :  { %v1849_v59 = vmul.f32 0.2, %v1840_v40 }
 0x1b5   :  { %v1856_v4 = vmax.f32 %v1840_v40, %v1849_v59 }
 0x1b7   :  { %v2732_v18 = vpop.f32.mrf.mxu1  ;;  %v1863_v11 = vmax.f32 %v1414_v3, %v1856_v4 }
 0x1b8   :  { %v1841_v32 = vpop.f32.mrf.mxu3  ;;  %v2733_v19 = vadd.f32 %v4659_v42, %v2732_v18 }
 0x1ba   :  { %v2745_v47 = vmul.f32 0.2, %v2733_v19 }
 0x1bc   :  { %v2752_v56 = vmax.f32 %v2733_v19, %v2745_v47 }
 0x1be   :  { %v2759_v49 = vmax.f32 %v2310_v48, %v2752_v56 }
 0x1bf   :  { %v2734_v57 = vpop.f32.mrf.mxu1 }
 0x1c0   :  { %2766 = vst [vmem:[%s4753_s3 + $0x20] sm:$0xff] %v2759_v49  ;;  %v2735_v25 = vadd.f32 %v4659_v42, %v2734_v57 }
 0x1c1   :  { %v2288_v60 = vpop.f32.mrf.mxu0 }
 0x1c2   :  { %v2289_v61 = vadd.f32 %v4659_v42, %v2288_v60  ;;  %v2746_v43 = vmul.f32 0.2, %v2735_v25 }
 0x1c4   :  { %v2753_v5 = vmax.f32 %v2735_v25, %v2746_v43  ;;  %v2298_v9 = vmul.f32 0.2, %v2289_v61 }
 0x1c6   :  { %v2760_v10 = vmax.f32 %v2311_v2, %v2753_v5  ;;  %v2305_v12 = vmax.f32 %v2289_v61, %v2298_v9 }
 0x1c8   :  { %2767 = vst [vmem:[%s4753_s3 + $0x28] sm:$0xff] %v2760_v10  ;;  %v2737_v0 = vpop.f32.mrf.mxu1  ;;  %v2312_v13 = vmax.f32 %v1863_v11, %v2305_v12 }
 0x1c9   :  { %v2290_v63 = vpop.f32.mrf.mxu0  ;;  %v2738_v44 = vadd.f32 %v4659_v42, %v2737_v0 }
 0x1cb   :  { %v2747_v14 = vmul.f32 0.2, %v2738_v44 }
 0x1cd   :  { %v2754_v15 = vmax.f32 %v2738_v44, %v2747_v14 }
 0x1cf   :  { %v2761_v45 = vmax.f32 %v2312_v13, %v2754_v15 }
 0x1d0   :  { %v2739_v50 = vpop.f32.mrf.mxu1 }
 0x1d1   :  { %2768 = vst [vmem:[%s4753_s3 + $0x30] sm:$0xff] %v2761_v45 }

</bundles_post_ra>
